<compile_context>
chip_gen: v7x
topology: tpu7x:2x2x1
jax: 0.10.0
libtpu: 0.0.40
codegen_flags: <defaults>
</compile_context>

<pallas_src>
import functools

import jax
import jax.numpy as jnp
from jax.experimental import pallas as pl
from jax.experimental.pallas import tpu as pltpu


_VMEM = pl.BlockSpec(memory_space=pltpu.MemorySpace.VMEM)
_MXU_DTYPE = jnp.bfloat16       # MXU operand dtype; accumulation / epilogues are f32
_OUT_LANES = 128                # single lane-dense output slab


def _silu(x):
    return x * jax.nn.sigmoid(x)


# ------------------------------- Pallas kernel -------------------------------

def _experts_kernel(p1_ref, w1_ref, b1_ref,
                    w2_ref, b2_ref, w3_ref, b3_ref,
                    wsc1_ref, bsc1_ref, wsc2_ref, bsc2_ref,
                    wfc1_ref, bfc1_ref, whead_ref, bhead_ref,
                    out_ref,
                    h1_scr, h2_scr, c3_scr,
                    *, BP, HB, OH2, OW2, OH3, OW3, A):
    f32 = jnp.float32
    mdt = w1_ref.dtype                        # bf16 MXU operand dtype
    row2 = HB * BP                            # row stride per conv2 output row
    n2 = (OH2 - 1) * row2 + OW2 * BP          # conv2 "junk-row" layout length
    c2 = h2_scr.shape[-1]                     # conv2 out channels (64)
    n_pos = OH3 * OW3                         # conv3 spatial positions (4)

    # ---- conv1 (8x8 / stride 4) + SiLU: ONE GEMM, lane-dense output.
    h1 = jnp.dot(p1_ref[...], w1_ref[...], preferred_element_type=f32)
    h1_scr[...] = _silu(h1 + b1_ref[...]).astype(h1_scr.dtype)

    # ---- conv2 (4x4 / stride 2) + SiLU: 4 macro-tap GEMMs with K=128 each,
    #      f32 accumulation; first dot initializes the accumulator.
    acc = None
    for qi in range(2):
        for qj in range(2):
            start = qi * row2 + qj * BP
            lhs = h1_scr[start:start + n2, :].astype(mdt)
            d = jnp.dot(lhs, w2_ref[qi * 2 + qj], preferred_element_type=f32)
            acc = d if acc is None else acc + d
    h2_scr[...] = _silu(acc + b2_ref[...]).astype(h2_scr.dtype)

    # ---- conv3 (3x3 / stride 2) + SiLU: in-kernel im2col (static 8-aligned sublane
    #      copies) followed by ONE (n_pos*BP, 9*c2) x (9*c2, 64) GEMM.
    for oh3 in range(OH3):
        for ow3 in range(OW3):
            s = oh3 * OW3 + ow3
            for i in range(3):
                for j in range(3):
                    src = (2 * oh3 + i) * row2 + (2 * ow3 + j) * BP
                    c3_scr[s * BP:(s + 1) * BP,
                           (i * 3 + j) * c2:(i * 3 + j + 1) * c2] = \
                        h2_scr[src:src + BP, :]
    h3 = _silu(jnp.dot(c3_scr[...].astype(mdt), w3_ref[...],
                       preferred_element_type=f32) + b3_ref[...])    # (n_pos*BP, 64) f32

    # ---- ship classifier: global average pool -> 64->128 SiLU -> 128->1 -> sigmoid
    pooled = h3[0:BP, :]
    for s in range(1, n_pos):
        pooled = pooled + h3[s * BP:(s + 1) * BP, :]
    pooled = pooled * (1.0 / float(n_pos))
    t = _silu(jnp.dot(pooled.astype(mdt), wsc1_ref[...],
                      preferred_element_type=f32) + bsc1_ref[...])
    ship_logit = jnp.dot(t.astype(mdt), wsc2_ref[...],
                         preferred_element_type=f32) + bsc2_ref[...]  # (BP, 1)
    p_ship = jax.nn.sigmoid(ship_logit)

    # ---- cube_fc / ship_fc: ONE K=256 GEMM (lane-concatenated conv3 features)
    #      then ONE block-diagonal head GEMM producing [cube | ship] logits.
    fc_in = jnp.concatenate([h3[s * BP:(s + 1) * BP, :] for s in range(n_pos)],
                            axis=1).astype(mdt)                       # (BP, 256)
    fc1 = _silu(jnp.dot(fc_in, wfc1_ref[...], preferred_element_type=f32)
                + bfc1_ref[...]).astype(mdt)                          # (BP, 1024)
    hd = jnp.dot(fc1, whead_ref[...], preferred_element_type=f32) + bhead_ref[...]

    # Per-row expert selection on the raw ship logit (== sigmoid(logit) > 0.5).
    q = jnp.where(ship_logit > 0.0, hd[:, A:2 * A], hd[:, :A])

    pad = _OUT_LANES - (A + 1)
    out_ref[...] = jnp.concatenate(
        [q, p_ship, jnp.zeros((BP, pad), f32)], axis=1).astype(out_ref.dtype)


# ------------------------------- host-side prep -------------------------------

def _im2col_nhwc(x, kh, kw, stride):
    # x: (B, Cin, H, W) -> (B, OH, OW, Cin*KH*KW); K ordering (Cin, KH, KW) matches
    # the PyTorch weight flatten weight.reshape(Cout, Cin*KH*KW).
    B, C, H, W = x.shape
    oh = (H - kh) // stride + 1
    ow = (W - kw) // stride + 1
    cols = []
    for i in range(kh):
        for j in range(kw):
            cols.append(x[:, :, i:i + stride * oh:stride, j:j + stride * ow:stride])
    patches = jnp.stack(cols, axis=2)              # (B, C, KH*KW, OH, OW)
    patches = patches.transpose(0, 3, 4, 1, 2)     # (B, OH, OW, C, KH*KW)
    return patches.reshape(B, oh, ow, C * kh * kw), oh, ow


def _parity_pack_wide(patches, BP):
    # (B, OH, OW, K) -> (HA*HB*BP, 4*K). Row index = a*(HB*BP) + qb*BP + b where the
    # conv1 output position is (2a+pi, 2qb+pj); the 4 parity blocks live in the lane
    # dim at offsets (pi*2+pj)*K. Zero-padded rows are never read downstream.
    B, OH, OW, K = patches.shape
    HA, HB = (OH + 1) // 2, (OW + 1) // 2
    p = jnp.pad(patches, ((0, BP - B), (0, 2 * HA - OH), (0, 2 * HB - OW), (0, 0)))
    p = p.reshape(BP, HA, 2, HB, 2, K).transpose(1, 3, 0, 2, 4, 5)   # (a,qb,b,pi,pj,k)
    return p.reshape(HA * HB * BP, 4 * K), HA, HB


def experts_forward(x, params):
    """ExpertsModel forward (inference path): (B,T,C,H,W) -> (q (B,A), p_ship (B,1))."""
    B, T, C, H, W = x.shape
    # Cast early: halves the HBM traffic of the host-side im2col / parity pack.
    xc = x.reshape(B, T * C, H, W).astype(_MXU_DTYPE)

    patches, oh1, ow1 = _im2col_nhwc(xc, 8, 8, 4)
    k1 = patches.shape[-1]
    BP = max(8, -(-B // 8) * 8)                    # batch rows padded to sublane size
    p1w, HA, HB = _parity_pack_wide(patches, BP)   # (HA*HB*BP, 4*k1) bf16

    oh2, ow2 = (oh1 - 4) // 2 + 1, (ow1 - 4) // 2 + 1
    oh3, ow3 = (oh2 - 3) // 2 + 1, (ow2 - 3) // 2 + 1
    n_pos = oh3 * ow3
    assert oh2 + 1 <= HA and ow2 + 1 <= HB          # conv2 tap slices stay in-bounds
    assert 2 * (oh3 - 1) + 3 <= oh2 and 2 * (ow3 - 1) + 3 <= ow2

    cd, f32 = _MXU_DTYPE, jnp.float32
    c1 = params["conv1_w"].shape[0]        # 32
    c2 = params["conv2_w"].shape[0]        # 64
    c3 = params["conv3_w"].shape[0]        # 64
    A = params["cube2_w"].shape[1]
    nfc = params["cube2_w"].shape[0]       # 512

    # ---- weight / bias prep (pure layout, folded into the same jit) ----
    # conv1: block-diagonal weight folds the 4 parity blocks into 4*c1 output lanes.
    w1mat = params["conv1_w"].reshape(c1, -1).T.astype(f32)          # (k1, c1)
    w1blk = jnp.zeros((4 * k1, 4 * c1), f32)
    for blk in range(4):
        w1blk = w1blk.at[blk * k1:(blk + 1) * k1, blk * c1:(blk + 1) * c1].set(w1mat)
    w1blk = w1blk.astype(cd)
    b1w = jnp.tile(params["conv1_b"], 4).reshape(1, 4 * c1).astype(f32)

    # conv2: macro-tap (qi,qj) weights, K = 4 parities x c1 channels = 128.
    w2p = params["conv2_w"].transpose(2, 3, 1, 0)                    # (4,4,c1,c2) [i,j,c,o]
    w2p = w2p.reshape(2, 2, 2, 2, c1, c2).transpose(0, 2, 1, 3, 4, 5)
    w2p = w2p.reshape(4, 4 * c1, c2).astype(cd)                      # (4, 128, c2)
    b2 = params["conv2_b"].reshape(1, -1).astype(f32)

    # conv3: single im2col GEMM weight (9*c2, c3), K ordering (i, j, cin).
    w3cat = params["conv3_w"].transpose(2, 3, 1, 0).reshape(9 * c2, c3).astype(cd)
    b3 = params["conv3_b"].reshape(1, -1).astype(f32)

    wsc1 = params["sc1_w"].astype(cd)
    bsc1 = params["sc1_b"].reshape(1, -1).astype(f32)
    wsc2 = params["sc2_w"].astype(cd)
    bsc2 = params["sc2_b"].reshape(1, -1).astype(f32)

    def regroup(w):   # PyTorch Flatten rows (c, s) -> kernel fc_in column order (s, c)
        return w.reshape(c3, n_pos, w.shape[1]).transpose(1, 0, 2).reshape(c3 * n_pos, -1)

    wfc1 = jnp.concatenate([regroup(params["cube1_w"]), regroup(params["ship1_w"])],
                           axis=1).astype(cd)                        # (n_pos*c3, 2*nfc)
    bfc1 = jnp.concatenate([params["cube1_b"], params["ship1_b"]]).reshape(1, -1).astype(f32)

    whead = jnp.zeros((2 * nfc, 2 * A), f32)
    whead = whead.at[:nfc, :A].set(params["cube2_w"])
    whead = whead.at[nfc:, A:].set(params["ship2_w"])
    whead = whead.astype(cd)
    bhead = jnp.concatenate([params["cube2_b"], params["ship2_b"]]).reshape(1, -1).astype(f32)

    inputs = (p1w, w1blk, b1w, w2p, b2, w3cat, b3,
              wsc1, bsc1, wsc2, bsc2, wfc1, bfc1, whead, bhead)

    row2 = HB * BP
    n1 = HA * HB * BP
    n2 = (oh2 - 1) * row2 + ow2 * BP

    flops = 2 * (n1 * (4 * k1) * (4 * c1)
                 + 4 * n2 * (4 * c1) * c2
                 + n_pos * BP * (9 * c2) * c3
                 + BP * (c3 * 128 + 128 + n_pos * c3 * 2 * nfc + 2 * nfc * 2 * A))
    transcendentals = n1 * 4 * c1 + n2 * c2 + n_pos * BP * c3 + BP * (128 + 1 + 2 * nfc)
    bytes_accessed = int(sum(a.size * a.dtype.itemsize for a in inputs)
                         + BP * _OUT_LANES * 4)

    kernel = functools.partial(_experts_kernel, BP=BP, HB=HB,
                               OH2=oh2, OW2=ow2, OH3=oh3, OW3=ow3, A=A)

    out = pl.pallas_call(
        kernel,
        out_shape=jax.ShapeDtypeStruct((BP, _OUT_LANES), f32),
        in_specs=[_VMEM] * len(inputs),
        out_specs=_VMEM,
        scratch_shapes=[
            pltpu.VMEM((n1, 4 * c1), f32),           # conv1 activations (128-lane dense)
            pltpu.VMEM((n2, c2), f32),               # conv2 activations (junk-row layout)
            pltpu.VMEM((n_pos * BP, 9 * c2), f32),   # conv3 im2col patches
        ],
        compiler_params=pltpu.CompilerParams(vmem_limit_bytes=32 * 1024 * 1024),
        cost_estimate=pl.CostEstimate(flops=flops, transcendentals=transcendentals,
                                      bytes_accessed=bytes_accessed),
    )(*inputs)
    return out[:B, :A], out[:B, A:A + 1]


# ----------------------------- pure-JAX reference -----------------------------

def experts_reference(x, params):
    """float32 XLA reference mirroring the PyTorch module (inference path)."""
    B, T, C, H, W = x.shape
    h = x.reshape(B, T * C, H, W)

    def conv_silu(h, w, b, s):
        out = jax.lax.conv_general_dilated(h, w, (s, s), "VALID",
                                           dimension_numbers=("NCHW", "OIHW", "NCHW"))
        return jax.nn.silu(out + b.reshape(1, -1, 1, 1))

    h = conv_silu(h, params["conv1_w"], params["conv1_b"], 4)
    h = conv_silu(h, params["conv2_w"], params["conv2_b"], 2)
    h = conv_silu(h, params["conv3_w"], params["conv3_b"], 2)
    pooled = h.mean(axis=(2, 3))
    t = jax.nn.silu(pooled @ params["sc1_w"] + params["sc1_b"])
    ship_logit = t @ params["sc2_w"] + params["sc2_b"]
    flat = h.reshape(B, -1)                                   # PyTorch Flatten (C, H, W)
    cube = jax.nn.silu(flat @ params["cube1_w"] + params["cube1_b"]) \
        @ params["cube2_w"] + params["cube2_b"]
    ship = jax.nn.silu(flat @ params["ship1_w"] + params["ship1_b"]) \
        @ params["ship2_w"] + params["ship2_b"]
    return cube, ship, ship_logit


# --------------------------- deterministic params ---------------------------

def init_params(key, in_ch_total, num_actions, pooled_dim, flat_dim):
    ks = jax.random.split(key, 18)

    def winit(k, shape):
        fan_in = shape[1] * shape[2] * shape[3] if len(shape) == 4 else shape[0]
        return jax.random.normal(k, shape, jnp.float32) / jnp.sqrt(float(fan_in))

    def binit(k, n):
        return 0.01 * jax.random.normal(k, (n,), jnp.float32)

    return {
        "conv1_w": winit(ks[0], (32, in_ch_total, 8, 8)), "conv1_b": binit(ks[1], 32),
        "conv2_w": winit(ks[2], (64, 32, 4, 4)),          "conv2_b": binit(ks[3], 64),
        "conv3_w": winit(ks[4], (64, 64, 3, 3)),          "conv3_b": binit(ks[5], 64),
        "sc1_w": winit(ks[6], (pooled_dim, 128)),  "sc1_b": binit(ks[7], 128),
        "sc2_w": winit(ks[8], (128, 1)),           "sc2_b": binit(ks[9], 1),
        "cube1_w": winit(ks[10], (flat_dim, 512)), "cube1_b": binit(ks[11], 512),
        "cube2_w": winit(ks[12], (512, num_actions)), "cube2_b": binit(ks[13], num_actions),
        "ship1_w": winit(ks[14], (flat_dim, 512)), "ship1_b": binit(ks[15], 512),
        "ship2_w": winit(ks[16], (512, num_actions)), "ship2_b": binit(ks[17], num_actions),
    }


# ----------------------------------- main ------------------------------------

if __name__ == "__main__":
    # COLOR_CHANNELS = 1, FRAME_STACK_SIZE = 4  =>  conv in_channels = 4
    B, T, C, H, W = 2, 4, 1, 64, 64
    num_actions = 2

    oh1 = (H - 8) // 4 + 1          # 15
    oh2 = (oh1 - 4) // 2 + 1        # 6
    oh3 = (oh2 - 3) // 2 + 1        # 2
    pooled_dim = 64
    flat_dim = 64 * oh3 * oh3       # 256

    key = jax.random.PRNGKey(0)
    kx, kp = jax.random.split(key)
    x = jax.random.normal(kx, (B, T, C, H, W), jnp.float32)
    params = init_params(kp, T * C, num_actions, pooled_dim, flat_dim)

    fwd = jax.jit(experts_forward)
    q, p_ship = jax.block_until_ready(fwd(x, params))
    assert q.shape == (B, num_actions) and p_ship.shape == (B, 1)

    # Loose-tolerance check vs the float32 reference (kernel feeds the MXU bfloat16).
    cube_r, ship_r, ship_logit_r = experts_reference(x, params)
    assert jnp.allclose(p_ship, jax.nn.sigmoid(ship_logit_r), atol=5e-2)
    if bool(jnp.all(jnp.abs(ship_logit_r) > 0.1)):   # skip q check if the gate is borderline
        q_want = jnp.where(ship_logit_r > 0, ship_r, cube_r)
        assert jnp.allclose(q, q_want, atol=0.15, rtol=0.1)

    print("KERNEL_OK")
</pallas_src>

<mosaic_0001>
module attributes {stable_mosaic.version = 11 : i64} {
  func.func @_experts_kernel(%arg0: memref<512x1024xbf16, #tpu.memory_space<vmem>>, %arg1: memref<1024x128xbf16, #tpu.memory_space<vmem>>, %arg2: memref<1x128xf32, #tpu.memory_space<vmem>>, %arg3: memref<4x128x64xbf16, #tpu.memory_space<vmem>>, %arg4: memref<1x64xf32, #tpu.memory_space<vmem>>, %arg5: memref<576x64xbf16, #tpu.memory_space<vmem>>, %arg6: memref<1x64xf32, #tpu.memory_space<vmem>>, %arg7: memref<64x128xbf16, #tpu.memory_space<vmem>>, %arg8: memref<1x128xf32, #tpu.memory_space<vmem>>, %arg9: memref<128x1xbf16, #tpu.memory_space<vmem>>, %arg10: memref<1x1xf32, #tpu.memory_space<vmem>>, %arg11: memref<256x1024xbf16, #tpu.memory_space<vmem>>, %arg12: memref<1x1024xf32, #tpu.memory_space<vmem>>, %arg13: memref<1024x4xbf16, #tpu.memory_space<vmem>>, %arg14: memref<1x4xf32, #tpu.memory_space<vmem>>, %arg15: memref<8x128xf32, #tpu.memory_space<vmem>>, %arg16: memref<512x128xf32, #tpu.memory_space<vmem>>, %arg17: memref<368x64xf32, #tpu.memory_space<vmem>>, %arg18: memref<32x576xf32, #tpu.memory_space<vmem>>) attributes {dimension_semantics = [], scalar_prefetch = 0 : i64, scratch_operands = 3 : i64, tpu.core_type = #tpu.core_type<tc>} {
    %c0 = arith.constant 0 : index
    %c0_0 = arith.constant 0 : index
    %0 = vector.load %arg0[%c0, %c0_0] : memref<512x1024xbf16, #tpu.memory_space<vmem>>, vector<512x1024xbf16>
    %c0_1 = arith.constant 0 : index
    %c0_2 = arith.constant 0 : index
    %1 = vector.load %arg1[%c0_1, %c0_2] : memref<1024x128xbf16, #tpu.memory_space<vmem>>, vector<1024x128xbf16>
    %cst = arith.constant dense<0.000000e+00> : vector<512x128xf32>
    %2 = tpu.matmul %0, %1, %cst {dimension_numbers = #tpu.dot_dimension_numbers<[1], [0], [0], [1], [0, 0, 1, 1], [], []>} : vector<512x1024xbf16>, vector<1024x128xbf16>, vector<512x128xf32> -> vector<512x128xf32>
    %c0_3 = arith.constant 0 : index
    %c0_4 = arith.constant 0 : index
    %3 = vector.load %arg2[%c0_3, %c0_4] : memref<1x128xf32, #tpu.memory_space<vmem>>, vector<1x128xf32>
    %4 = vector.broadcast %3 : vector<1x128xf32> to vector<512x128xf32>
    %5 = arith.addf %2, %4 : vector<512x128xf32>
    %6 = arith.negf %5 : vector<512x128xf32>
    %7 = math.exp %6 : vector<512x128xf32>
    %cst_5 = arith.constant 1.000000e+00 : f32
    %8 = vector.broadcast %cst_5 : f32 to vector<512x128xf32>
    %9 = arith.addf %8, %7 : vector<512x128xf32>
    %10 = arith.divf %8, %9 : vector<512x128xf32>
    %11 = arith.mulf %5, %10 : vector<512x128xf32>
    %c0_6 = arith.constant 0 : index
    %c0_7 = arith.constant 0 : index
    %12 = vector.load %arg16[%c0_6, %c0_7] : memref<512x128xf32, #tpu.memory_space<vmem>>, vector<512x128xf32>
    tpu.vector_store %arg16[%c0_6, %c0_7], %11 {strides = array<i32>} : memref<512x128xf32, #tpu.memory_space<vmem>>, vector<512x128xf32>,
    %c0_8 = arith.constant 0 : index
    %c0_9 = arith.constant 0 : index
    %13 = vector.load %arg16[%c0_8, %c0_9] : memref<512x128xf32, #tpu.memory_space<vmem>>, vector<368x128xf32>
    %14 = arith.truncf %13 : vector<368x128xf32> to vector<368x128xbf16>
    %c0_10 = arith.constant 0 : index
    %c0_11 = arith.constant 0 : index
    %c0_12 = arith.constant 0 : index
    %15 = vector.load %arg3[%c0_10, %c0_11, %c0_12] : memref<4x128x64xbf16, #tpu.memory_space<vmem>>, vector<1x128x64xbf16>
    %16 = vector.shape_cast %15 : vector<1x128x64xbf16> to vector<128x64xbf16>
    %cst_13 = arith.constant dense<0.000000e+00> : vector<368x64xf32>
    %17 = tpu.matmul %14, %16, %cst_13 {dimension_numbers = #tpu.dot_dimension_numbers<[1], [0], [0], [1], [0, 0, 1, 1], [], []>} : vector<368x128xbf16>, vector<128x64xbf16>, vector<368x64xf32> -> vector<368x64xf32>
    %c8 = arith.constant 8 : index
    %c0_14 = arith.constant 0 : index
    %18 = vector.load %arg16[%c8, %c0_14] : memref<512x128xf32, #tpu.memory_space<vmem>>, vector<368x128xf32>
    %19 = arith.truncf %18 : vector<368x128xf32> to vector<368x128xbf16>
    %c1 = arith.constant 1 : index
    %c0_15 = arith.constant 0 : index
    %c0_16 = arith.constant 0 : index
    %20 = vector.load %arg3[%c1, %c0_15, %c0_16] : memref<4x128x64xbf16, #tpu.memory_space<vmem>>, vector<1x128x64xbf16>
    %21 = vector.shape_cast %20 : vector<1x128x64xbf16> to vector<128x64xbf16>
    %cst_17 = arith.constant dense<0.000000e+00> : vector<368x64xf32>
    %22 = tpu.matmul %19, %21, %cst_17 {dimension_numbers = #tpu.dot_dimension_numbers<[1], [0], [0], [1], [0, 0, 1, 1], [], []>} : vector<368x128xbf16>, vector<128x64xbf16>, vector<368x64xf32> -> vector<368x64xf32>
    %23 = arith.addf %17, %22 : vector<368x64xf32>
    %c64 = arith.constant 64 : index
    %c0_18 = arith.constant 0 : index
    %24 = vector.load %arg16[%c64, %c0_18] : memref<512x128xf32, #tpu.memory_space<vmem>>, vector<368x128xf32>
    %25 = arith.truncf %24 : vector<368x128xf32> to vector<368x128xbf16>
    %c2 = arith.constant 2 : index
    %c0_19 = arith.constant 0 : index
    %c0_20 = arith.constant 0 : index
    %26 = vector.load %arg3[%c2, %c0_19, %c0_20] : memref<4x128x64xbf16, #tpu.memory_space<vmem>>, vector<1x128x64xbf16>
    %27 = vector.shape_cast %26 : vector<1x128x64xbf16> to vector<128x64xbf16>
    %cst_21 = arith.constant dense<0.000000e+00> : vector<368x64xf32>
    %28 = tpu.matmul %25, %27, %cst_21 {dimension_numbers = #tpu.dot_dimension_numbers<[1], [0], [0], [1], [0, 0, 1, 1], [], []>} : vector<368x128xbf16>, vector<128x64xbf16>, vector<368x64xf32> -> vector<368x64xf32>
    %29 = arith.addf %23, %28 : vector<368x64xf32>
    %c72 = arith.constant 72 : index
    %c0_22 = arith.constant 0 : index
    %30 = vector.load %arg16[%c72, %c0_22] : memref<512x128xf32, #tpu.memory_space<vmem>>, vector<368x128xf32>
    %31 = arith.truncf %30 : vector<368x128xf32> to vector<368x128xbf16>
    %c3 = arith.constant 3 : index
    %c0_23 = arith.constant 0 : index
    %c0_24 = arith.constant 0 : index
    %32 = vector.load %arg3[%c3, %c0_23, %c0_24] : memref<4x128x64xbf16, #tpu.memory_space<vmem>>, vector<1x128x64xbf16>
    %33 = vector.shape_cast %32 : vector<1x128x64xbf16> to vector<128x64xbf16>
    %cst_25 = arith.constant dense<0.000000e+00> : vector<368x64xf32>
    %34 = tpu.matmul %31, %33, %cst_25 {dimension_numbers = #tpu.dot_dimension_numbers<[1], [0], [0], [1], [0, 0, 1, 1], [], []>} : vector<368x128xbf16>, vector<128x64xbf16>, vector<368x64xf32> -> vector<368x64xf32>
    %35 = arith.addf %29, %34 : vector<368x64xf32>
    %c0_26 = arith.constant 0 : index
    %c0_27 = arith.constant 0 : index
    %36 = vector.load %arg4[%c0_26, %c0_27] : memref<1x64xf32, #tpu.memory_space<vmem>>, vector<1x64xf32>
    %37 = vector.broadcast %36 : vector<1x64xf32> to vector<368x64xf32>
    %38 = arith.addf %35, %37 : vector<368x64xf32>
    %39 = arith.negf %38 : vector<368x64xf32>
    %40 = math.exp %39 : vector<368x64xf32>
    %cst_28 = arith.constant 1.000000e+00 : f32
    %41 = vector.broadcast %cst_28 : f32 to vector<368x64xf32>
    %42 = arith.addf %41, %40 : vector<368x64xf32>
    %43 = arith.divf %41, %42 : vector<368x64xf32>
    %44 = arith.mulf %38, %43 : vector<368x64xf32>
    %c0_29 = arith.constant 0 : index
    %c0_30 = arith.constant 0 : index
    %45 = vector.load %arg17[%c0_29, %c0_30] : memref<368x64xf32, #tpu.memory_space<vmem>>, vector<368x64xf32>
    tpu.vector_store %arg17[%c0_29, %c0_30], %44 {strides = array<i32>} : memref<368x64xf32, #tpu.memory_space<vmem>>, vector<368x64xf32>,
    %c0_31 = arith.constant 0 : index
    %c0_32 = arith.constant 0 : index
    %46 = vector.load %arg17[%c0_31, %c0_32] : memref<368x64xf32, #tpu.memory_space<vmem>>, vector<8x64xf32>
    %c0_33 = arith.constant 0 : index
    %c0_34 = arith.constant 0 : index
    %47 = vector.load %arg18[%c0_33, %c0_34] : memref<32x576xf32, #tpu.memory_space<vmem>>, vector<8x64xf32>
    tpu.vector_store %arg18[%c0_33, %c0_34], %46 {strides = array<i32>} : memref<32x576xf32, #tpu.memory_space<vmem>>, vector<8x64xf32>,
    %c8_35 = arith.constant 8 : index
    %c0_36 = arith.constant 0 : index
    %48 = vector.load %arg17[%c8_35, %c0_36] : memref<368x64xf32, #tpu.memory_space<vmem>>, vector<8x64xf32>
    %c0_37 = arith.constant 0 : index
    %c64_38 = arith.constant 64 : index
    %49 = vector.load %arg18[%c0_37, %c64_38] : memref<32x576xf32, #tpu.memory_space<vmem>>, vector<8x64xf32>
    tpu.vector_store %arg18[%c0_37, %c64_38], %48 {strides = array<i32>} : memref<32x576xf32, #tpu.memory_space<vmem>>, vector<8x64xf32>,
    %c16 = arith.constant 16 : index
    %c0_39 = arith.constant 0 : index
    %50 = vector.load %arg17[%c16, %c0_39] : memref<368x64xf32, #tpu.memory_space<vmem>>, vector<8x64xf32>
    %c0_40 = arith.constant 0 : index
    %c128 = arith.constant 128 : index
    %51 = vector.load %arg18[%c0_40, %c128] : memref<32x576xf32, #tpu.memory_space<vmem>>, vector<8x64xf32>
    tpu.vector_store %arg18[%c0_40, %c128], %50 {strides = array<i32>} : memref<32x576xf32, #tpu.memory_space<vmem>>, vector<8x64xf32>,
    %c64_41 = arith.constant 64 : index
    %c0_42 = arith.constant 0 : index
    %52 = vector.load %arg17[%c64_41, %c0_42] : memref<368x64xf32, #tpu.memory_space<vmem>>, vector<8x64xf32>
    %c0_43 = arith.constant 0 : index
    %c192 = arith.constant 192 : index
    %53 = vector.load %arg18[%c0_43, %c192] : memref<32x576xf32, #tpu.memory_space<vmem>>, vector<8x64xf32>
    tpu.vector_store %arg18[%c0_43, %c192], %52 {strides = array<i32>} : memref<32x576xf32, #tpu.memory_space<vmem>>, vector<8x64xf32>,
    %c72_44 = arith.constant 72 : index
    %c0_45 = arith.constant 0 : index
    %54 = vector.load %arg17[%c72_44, %c0_45] : memref<368x64xf32, #tpu.memory_space<vmem>>, vector<8x64xf32>
    %c0_46 = arith.constant 0 : index
    %c256 = arith.constant 256 : index
    %55 = vector.load %arg18[%c0_46, %c256] : memref<32x576xf32, #tpu.memory_space<vmem>>, vector<8x64xf32>
    tpu.vector_store %arg18[%c0_46, %c256], %54 {strides = array<i32>} : memref<32x576xf32, #tpu.memory_space<vmem>>, vector<8x64xf32>,
    %c80 = arith.constant 80 : index
    %c0_47 = arith.constant 0 : index
    %56 = vector.load %arg17[%c80, %c0_47] : memref<368x64xf32, #tpu.memory_space<vmem>>, vector<8x64xf32>
    %c0_48 = arith.constant 0 : index
    %c320 = arith.constant 320 : index
    %57 = vector.load %arg18[%c0_48, %c320] : memref<32x576xf32, #tpu.memory_space<vmem>>, vector<8x64xf32>
    tpu.vector_store %arg18[%c0_48, %c320], %56 {strides = array<i32>} : memref<32x576xf32, #tpu.memory_space<vmem>>, vector<8x64xf32>,
    %c128_49 = arith.constant 128 : index
    %c0_50 = arith.constant 0 : index
    %58 = vector.load %arg17[%c128_49, %c0_50] : memref<368x64xf32, #tpu.memory_space<vmem>>, vector<8x64xf32>
    %c0_51 = arith.constant 0 : index
    %c384 = arith.constant 384 : index
    %59 = vector.load %arg18[%c0_51, %c384] : memref<32x576xf32, #tpu.memory_space<vmem>>, vector<8x64xf32>
    tpu.vector_store %arg18[%c0_51, %c384], %58 {strides = array<i32>} : memref<32x576xf32, #tpu.memory_space<vmem>>, vector<8x64xf32>,
    %c136 = arith.constant 136 : index
    %c0_52 = arith.constant 0 : index
    %60 = vector.load %arg17[%c136, %c0_52] : memref<368x64xf32, #tpu.memory_space<vmem>>, vector<8x64xf32>
    %c0_53 = arith.constant 0 : index
    %c448 = arith.constant 448 : index
    %61 = vector.load %arg18[%c0_53, %c448] : memref<32x576xf32, #tpu.memory_space<vmem>>, vector<8x64xf32>
    tpu.vector_store %arg18[%c0_53, %c448], %60 {strides = array<i32>} : memref<32x576xf32, #tpu.memory_space<vmem>>, vector<8x64xf32>,
    %c144 = arith.constant 144 : index
    %c0_54 = arith.constant 0 : index
    %62 = vector.load %arg17[%c144, %c0_54] : memref<368x64xf32, #tpu.memory_space<vmem>>, vector<8x64xf32>
    %c0_55 = arith.constant 0 : index
    %c512 = arith.constant 512 : index
    %63 = vector.load %arg18[%c0_55, %c512] : memref<32x576xf32, #tpu.memory_space<vmem>>, vector<8x64xf32>
    tpu.vector_store %arg18[%c0_55, %c512], %62 {strides = array<i32>} : memref<32x576xf32, #tpu.memory_space<vmem>>, vector<8x64xf32>,
    %c16_56 = arith.constant 16 : index
    %c0_57 = arith.constant 0 : index
    %64 = vector.load %arg17[%c16_56, %c0_57] : memref<368x64xf32, #tpu.memory_space<vmem>>, vector<8x64xf32>
    %c8_58 = arith.constant 8 : index
    %c0_59 = arith.constant 0 : index
    %65 = vector.load %arg18[%c8_58, %c0_59] : memref<32x576xf32, #tpu.memory_space<vmem>>, vector<8x64xf32>
    tpu.vector_store %arg18[%c8_58, %c0_59], %64 {strides = array<i32>} : memref<32x576xf32, #tpu.memory_space<vmem>>, vector<8x64xf32>,
    %c24 = arith.constant 24 : index
    %c0_60 = arith.constant 0 : index
    %66 = vector.load %arg17[%c24, %c0_60] : memref<368x64xf32, #tpu.memory_space<vmem>>, vector<8x64xf32>
    %c8_61 = arith.constant 8 : index
    %c64_62 = arith.constant 64 : index
    %67 = vector.load %arg18[%c8_61, %c64_62] : memref<32x576xf32, #tpu.memory_space<vmem>>, vector<8x64xf32>
    tpu.vector_store %arg18[%c8_61, %c64_62], %66 {strides = array<i32>} : memref<32x576xf32, #tpu.memory_space<vmem>>, vector<8x64xf32>,
    %c32 = arith.constant 32 : index
    %c0_63 = arith.constant 0 : index
    %68 = vector.load %arg17[%c32, %c0_63] : memref<368x64xf32, #tpu.memory_space<vmem>>, vector<8x64xf32>
    %c8_64 = arith.constant 8 : index
    %c128_65 = arith.constant 128 : index
    %69 = vector.load %arg18[%c8_64, %c128_65] : memref<32x576xf32, #tpu.memory_space<vmem>>, vector<8x64xf32>
    tpu.vector_store %arg18[%c8_64, %c128_65], %68 {strides = array<i32>} : memref<32x576xf32, #tpu.memory_space<vmem>>, vector<8x64xf32>,
    %c80_66 = arith.constant 80 : index
    %c0_67 = arith.constant 0 : index
    %70 = vector.load %arg17[%c80_66, %c0_67] : memref<368x64xf32, #tpu.memory_space<vmem>>, vector<8x64xf32>
    %c8_68 = arith.constant 8 : index
    %c192_69 = arith.constant 192 : index
    %71 = vector.load %arg18[%c8_68, %c192_69] : memref<32x576xf32, #tpu.memory_space<vmem>>, vector<8x64xf32>
    tpu.vector_store %arg18[%c8_68, %c192_69], %70 {strides = array<i32>} : memref<32x576xf32, #tpu.memory_space<vmem>>, vector<8x64xf32>,
    %c88 = arith.constant 88 : index
    %c0_70 = arith.constant 0 : index
    %72 = vector.load %arg17[%c88, %c0_70] : memref<368x64xf32, #tpu.memory_space<vmem>>, vector<8x64xf32>
    %c8_71 = arith.constant 8 : index
    %c256_72 = arith.constant 256 : index
    %73 = vector.load %arg18[%c8_71, %c256_72] : memref<32x576xf32, #tpu.memory_space<vmem>>, vector<8x64xf32>
    tpu.vector_store %arg18[%c8_71, %c256_72], %72 {strides = array<i32>} : memref<32x576xf32, #tpu.memory_space<vmem>>, vector<8x64xf32>,
    %c96 = arith.constant 96 : index
    %c0_73 = arith.constant 0 : index
    %74 = vector.load %arg17[%c96, %c0_73] : memref<368x64xf32, #tpu.memory_space<vmem>>, vector<8x64xf32>
    %c8_74 = arith.constant 8 : index
    %c320_75 = arith.constant 320 : index
    %75 = vector.load %arg18[%c8_74, %c320_75] : memref<32x576xf32, #tpu.memory_space<vmem>>, vector<8x64xf32>
    tpu.vector_store %arg18[%c8_74, %c320_75], %74 {strides = array<i32>} : memref<32x576xf32, #tpu.memory_space<vmem>>, vector<8x64xf32>,
    %c144_76 = arith.constant 144 : index
    %c0_77 = arith.constant 0 : index
    %76 = vector.load %arg17[%c144_76, %c0_77] : memref<368x64xf32, #tpu.memory_space<vmem>>, vector<8x64xf32>
    %c8_78 = arith.constant 8 : index
    %c384_79 = arith.constant 384 : index
    %77 = vector.load %arg18[%c8_78, %c384_79] : memref<32x576xf32, #tpu.memory_space<vmem>>, vector<8x64xf32>
    tpu.vector_store %arg18[%c8_78, %c384_79], %76 {strides = array<i32>} : memref<32x576xf32, #tpu.memory_space<vmem>>, vector<8x64xf32>,
    %c152 = arith.constant 152 : index
    %c0_80 = arith.constant 0 : index
    %78 = vector.load %arg17[%c152, %c0_80] : memref<368x64xf32, #tpu.memory_space<vmem>>, vector<8x64xf32>
    %c8_81 = arith.constant 8 : index
    %c448_82 = arith.constant 448 : index
    %79 = vector.load %arg18[%c8_81, %c448_82] : memref<32x576xf32, #tpu.memory_space<vmem>>, vector<8x64xf32>
    tpu.vector_store %arg18[%c8_81, %c448_82], %78 {strides = array<i32>} : memref<32x576xf32, #tpu.memory_space<vmem>>, vector<8x64xf32>,
    %c160 = arith.constant 160 : index
    %c0_83 = arith.constant 0 : index
    %80 = vector.load %arg17[%c160, %c0_83] : memref<368x64xf32, #tpu.memory_space<vmem>>, vector<8x64xf32>
    %c8_84 = arith.constant 8 : index
    %c512_85 = arith.constant 512 : index
    %81 = vector.load %arg18[%c8_84, %c512_85] : memref<32x576xf32, #tpu.memory_space<vmem>>, vector<8x64xf32>
    tpu.vector_store %arg18[%c8_84, %c512_85], %80 {strides = array<i32>} : memref<32x576xf32, #tpu.memory_space<vmem>>, vector<8x64xf32>,
    %c128_86 = arith.constant 128 : index
    %c0_87 = arith.constant 0 : index
    %82 = vector.load %arg17[%c128_86, %c0_87] : memref<368x64xf32, #tpu.memory_space<vmem>>, vector<8x64xf32>
    %c16_88 = arith.constant 16 : index
    %c0_89 = arith.constant 0 : index
    %83 = vector.load %arg18[%c16_88, %c0_89] : memref<32x576xf32, #tpu.memory_space<vmem>>, vector<8x64xf32>
    tpu.vector_store %arg18[%c16_88, %c0_89], %82 {strides = array<i32>} : memref<32x576xf32, #tpu.memory_space<vmem>>, vector<8x64xf32>,
    %c136_90 = arith.constant 136 : index
    %c0_91 = arith.constant 0 : index
    %84 = vector.load %arg17[%c136_90, %c0_91] : memref<368x64xf32, #tpu.memory_space<vmem>>, vector<8x64xf32>
    %c16_92 = arith.constant 16 : index
    %c64_93 = arith.constant 64 : index
    %85 = vector.load %arg18[%c16_92, %c64_93] : memref<32x576xf32, #tpu.memory_space<vmem>>, vector<8x64xf32>
    tpu.vector_store %arg18[%c16_92, %c64_93], %84 {strides = array<i32>} : memref<32x576xf32, #tpu.memory_space<vmem>>, vector<8x64xf32>,
    %c144_94 = arith.constant 144 : index
    %c0_95 = arith.constant 0 : index
    %86 = vector.load %arg17[%c144_94, %c0_95] : memref<368x64xf32, #tpu.memory_space<vmem>>, vector<8x64xf32>
    %c16_96 = arith.constant 16 : index
    %c128_97 = arith.constant 128 : index
    %87 = vector.load %arg18[%c16_96, %c128_97] : memref<32x576xf32, #tpu.memory_space<vmem>>, vector<8x64xf32>
    tpu.vector_store %arg18[%c16_96, %c128_97], %86 {strides = array<i32>} : memref<32x576xf32, #tpu.memory_space<vmem>>, vector<8x64xf32>,
    %c192_98 = arith.constant 192 : index
    %c0_99 = arith.constant 0 : index
    %88 = vector.load %arg17[%c192_98, %c0_99] : memref<368x64xf32, #tpu.memory_space<vmem>>, vector<8x64xf32>
    %c16_100 = arith.constant 16 : index
    %c192_101 = arith.constant 192 : index
    %89 = vector.load %arg18[%c16_100, %c192_101] : memref<32x576xf32, #tpu.memory_space<vmem>>, vector<8x64xf32>
    tpu.vector_store %arg18[%c16_100, %c192_101], %88 {strides = array<i32>} : memref<32x576xf32, #tpu.memory_space<vmem>>, vector<8x64xf32>,
    %c200 = arith.constant 200 : index
    %c0_102 = arith.constant 0 : index
    %90 = vector.load %arg17[%c200, %c0_102] : memref<368x64xf32, #tpu.memory_space<vmem>>, vector<8x64xf32>
    %c16_103 = arith.constant 16 : index
    %c256_104 = arith.constant 256 : index
    %91 = vector.load %arg18[%c16_103, %c256_104] : memref<32x576xf32, #tpu.memory_space<vmem>>, vector<8x64xf32>
    tpu.vector_store %arg18[%c16_103, %c256_104], %90 {strides = array<i32>} : memref<32x576xf32, #tpu.memory_space<vmem>>, vector<8x64xf32>,
    %c208 = arith.constant 208 : index
    %c0_105 = arith.constant 0 : index
    %92 = vector.load %arg17[%c208, %c0_105] : memref<368x64xf32, #tpu.memory_space<vmem>>, vector<8x64xf32>
    %c16_106 = arith.constant 16 : index
    %c320_107 = arith.constant 320 : index
    %93 = vector.load %arg18[%c16_106, %c320_107] : memref<32x576xf32, #tpu.memory_space<vmem>>, vector<8x64xf32>
    tpu.vector_store %arg18[%c16_106, %c320_107], %92 {strides = array<i32>} : memref<32x576xf32, #tpu.memory_space<vmem>>, vector<8x64xf32>,
    %c256_108 = arith.constant 256 : index
    %c0_109 = arith.constant 0 : index
    %94 = vector.load %arg17[%c256_108, %c0_109] : memref<368x64xf32, #tpu.memory_space<vmem>>, vector<8x64xf32>
    %c16_110 = arith.constant 16 : index
    %c384_111 = arith.constant 384 : index
    %95 = vector.load %arg18[%c16_110, %c384_111] : memref<32x576xf32, #tpu.memory_space<vmem>>, vector<8x64xf32>
    tpu.vector_store %arg18[%c16_110, %c384_111], %94 {strides = array<i32>} : memref<32x576xf32, #tpu.memory_space<vmem>>, vector<8x64xf32>,
    %c264 = arith.constant 264 : index
    %c0_112 = arith.constant 0 : index
    %96 = vector.load %arg17[%c264, %c0_112] : memref<368x64xf32, #tpu.memory_space<vmem>>, vector<8x64xf32>
    %c16_113 = arith.constant 16 : index
    %c448_114 = arith.constant 448 : index
    %97 = vector.load %arg18[%c16_113, %c448_114] : memref<32x576xf32, #tpu.memory_space<vmem>>, vector<8x64xf32>
    tpu.vector_store %arg18[%c16_113, %c448_114], %96 {strides = array<i32>} : memref<32x576xf32, #tpu.memory_space<vmem>>, vector<8x64xf32>,
    %c272 = arith.constant 272 : index
    %c0_115 = arith.constant 0 : index
    %98 = vector.load %arg17[%c272, %c0_115] : memref<368x64xf32, #tpu.memory_space<vmem>>, vector<8x64xf32>
    %c16_116 = arith.constant 16 : index
    %c512_117 = arith.constant 512 : index
    %99 = vector.load %arg18[%c16_116, %c512_117] : memref<32x576xf32, #tpu.memory_space<vmem>>, vector<8x64xf32>
    tpu.vector_store %arg18[%c16_116, %c512_117], %98 {strides = array<i32>} : memref<32x576xf32, #tpu.memory_space<vmem>>, vector<8x64xf32>,
    %c144_118 = arith.constant 144 : index
    %c0_119 = arith.constant 0 : index
    %100 = vector.load %arg17[%c144_118, %c0_119] : memref<368x64xf32, #tpu.memory_space<vmem>>, vector<8x64xf32>
    %c24_120 = arith.constant 24 : index
    %c0_121 = arith.constant 0 : index
    %101 = vector.load %arg18[%c24_120, %c0_121] : memref<32x576xf32, #tpu.memory_space<vmem>>, vector<8x64xf32>
    tpu.vector_store %arg18[%c24_120, %c0_121], %100 {strides = array<i32>} : memref<32x576xf32, #tpu.memory_space<vmem>>, vector<8x64xf32>,
    %c152_122 = arith.constant 152 : index
    %c0_123 = arith.constant 0 : index
    %102 = vector.load %arg17[%c152_122, %c0_123] : memref<368x64xf32, #tpu.memory_space<vmem>>, vector<8x64xf32>
    %c24_124 = arith.constant 24 : index
    %c64_125 = arith.constant 64 : index
    %103 = vector.load %arg18[%c24_124, %c64_125] : memref<32x576xf32, #tpu.memory_space<vmem>>, vector<8x64xf32>
    tpu.vector_store %arg18[%c24_124, %c64_125], %102 {strides = array<i32>} : memref<32x576xf32, #tpu.memory_space<vmem>>, vector<8x64xf32>,
    %c160_126 = arith.constant 160 : index
    %c0_127 = arith.constant 0 : index
    %104 = vector.load %arg17[%c160_126, %c0_127] : memref<368x64xf32, #tpu.memory_space<vmem>>, vector<8x64xf32>
    %c24_128 = arith.constant 24 : index
    %c128_129 = arith.constant 128 : index
    %105 = vector.load %arg18[%c24_128, %c128_129] : memref<32x576xf32, #tpu.memory_space<vmem>>, vector<8x64xf32>
    tpu.vector_store %arg18[%c24_128, %c128_129], %104 {strides = array<i32>} : memref<32x576xf32, #tpu.memory_space<vmem>>, vector<8x64xf32>,
    %c208_130 = arith.constant 208 : index
    %c0_131 = arith.constant 0 : index
    %106 = vector.load %arg17[%c208_130, %c0_131] : memref<368x64xf32, #tpu.memory_space<vmem>>, vector<8x64xf32>
    %c24_132 = arith.constant 24 : index
    %c192_133 = arith.constant 192 : index
    %107 = vector.load %arg18[%c24_132, %c192_133] : memref<32x576xf32, #tpu.memory_space<vmem>>, vector<8x64xf32>
    tpu.vector_store %arg18[%c24_132, %c192_133], %106 {strides = array<i32>} : memref<32x576xf32, #tpu.memory_space<vmem>>, vector<8x64xf32>,
    %c216 = arith.constant 216 : index
    %c0_134 = arith.constant 0 : index
    %108 = vector.load %arg17[%c216, %c0_134] : memref<368x64xf32, #tpu.memory_space<vmem>>, vector<8x64xf32>
    %c24_135 = arith.constant 24 : index
    %c256_136 = arith.constant 256 : index
    %109 = vector.load %arg18[%c24_135, %c256_136] : memref<32x576xf32, #tpu.memory_space<vmem>>, vector<8x64xf32>
    tpu.vector_store %arg18[%c24_135, %c256_136], %108 {strides = array<i32>} : memref<32x576xf32, #tpu.memory_space<vmem>>, vector<8x64xf32>,
    %c224 = arith.constant 224 : index
    %c0_137 = arith.constant 0 : index
    %110 = vector.load %arg17[%c224, %c0_137] : memref<368x64xf32, #tpu.memory_space<vmem>>, vector<8x64xf32>
    %c24_138 = arith.constant 24 : index
    %c320_139 = arith.constant 320 : index
    %111 = vector.load %arg18[%c24_138, %c320_139] : memref<32x576xf32, #tpu.memory_space<vmem>>, vector<8x64xf32>
    tpu.vector_store %arg18[%c24_138, %c320_139], %110 {strides = array<i32>} : memref<32x576xf32, #tpu.memory_space<vmem>>, vector<8x64xf32>,
    %c272_140 = arith.constant 272 : index
    %c0_141 = arith.constant 0 : index
    %112 = vector.load %arg17[%c272_140, %c0_141] : memref<368x64xf32, #tpu.memory_space<vmem>>, vector<8x64xf32>
    %c24_142 = arith.constant 24 : index
    %c384_143 = arith.constant 384 : index
    %113 = vector.load %arg18[%c24_142, %c384_143] : memref<32x576xf32, #tpu.memory_space<vmem>>, vector<8x64xf32>
    tpu.vector_store %arg18[%c24_142, %c384_143], %112 {strides = array<i32>} : memref<32x576xf32, #tpu.memory_space<vmem>>, vector<8x64xf32>,
    %c280 = arith.constant 280 : index
    %c0_144 = arith.constant 0 : index
    %114 = vector.load %arg17[%c280, %c0_144] : memref<368x64xf32, #tpu.memory_space<vmem>>, vector<8x64xf32>
    %c24_145 = arith.constant 24 : index
    %c448_146 = arith.constant 448 : index
    %115 = vector.load %arg18[%c24_145, %c448_146] : memref<32x576xf32, #tpu.memory_space<vmem>>, vector<8x64xf32>
    tpu.vector_store %arg18[%c24_145, %c448_146], %114 {strides = array<i32>} : memref<32x576xf32, #tpu.memory_space<vmem>>, vector<8x64xf32>,
    %c288 = arith.constant 288 : index
    %c0_147 = arith.constant 0 : index
    %116 = vector.load %arg17[%c288, %c0_147] : memref<368x64xf32, #tpu.memory_space<vmem>>, vector<8x64xf32>
    %c24_148 = arith.constant 24 : index
    %c512_149 = arith.constant 512 : index
    %117 = vector.load %arg18[%c24_148, %c512_149] : memref<32x576xf32, #tpu.memory_space<vmem>>, vector<8x64xf32>
    tpu.vector_store %arg18[%c24_148, %c512_149], %116 {strides = array<i32>} : memref<32x576xf32, #tpu.memory_space<vmem>>, vector<8x64xf32>,
    %c0_150 = arith.constant 0 : index
    %c0_151 = arith.constant 0 : index
    %118 = vector.load %arg18[%c0_150, %c0_151] : memref<32x576xf32, #tpu.memory_space<vmem>>, vector<32x576xf32>
    %119 = arith.truncf %118 : vector<32x576xf32> to vector<32x576xbf16>
    %c0_152 = arith.constant 0 : index
    %c0_153 = arith.constant 0 : index
    %120 = vector.load %arg5[%c0_152, %c0_153] : memref<576x64xbf16, #tpu.memory_space<vmem>>, vector<576x64xbf16>
    %cst_154 = arith.constant dense<0.000000e+00> : vector<32x64xf32>
    %121 = tpu.matmul %119, %120, %cst_154 {dimension_numbers = #tpu.dot_dimension_numbers<[1], [0], [0], [1], [0, 0, 1, 1], [], []>} : vector<32x576xbf16>, vector<576x64xbf16>, vector<32x64xf32> -> vector<32x64xf32>
    %c0_155 = arith.constant 0 : index
    %c0_156 = arith.constant 0 : index
    %122 = vector.load %arg6[%c0_155, %c0_156] : memref<1x64xf32, #tpu.memory_space<vmem>>, vector<1x64xf32>
    %123 = vector.broadcast %122 : vector<1x64xf32> to vector<32x64xf32>
    %124 = arith.addf %121, %123 : vector<32x64xf32>
    %125 = arith.negf %124 : vector<32x64xf32>
    %126 = math.exp %125 : vector<32x64xf32>
    %cst_157 = arith.constant 1.000000e+00 : f32
    %127 = vector.broadcast %cst_157 : f32 to vector<32x64xf32>
    %128 = arith.addf %127, %126 : vector<32x64xf32>
    %129 = arith.divf %127, %128 : vector<32x64xf32>
    %130 = arith.mulf %124, %129 : vector<32x64xf32>
    %131 = vector.extract_strided_slice %130 {offsets = [0, 0], sizes = [8, 64], strides = [1, 1]} : vector<32x64xf32> to vector<8x64xf32>
    %132 = vector.extract_strided_slice %130 {offsets = [8, 0], sizes = [8, 64], strides = [1, 1]} : vector<32x64xf32> to vector<8x64xf32>
    %133 = arith.addf %131, %132 : vector<8x64xf32>
    %134 = vector.extract_strided_slice %130 {offsets = [16, 0], sizes = [8, 64], strides = [1, 1]} : vector<32x64xf32> to vector<8x64xf32>
    %135 = arith.addf %133, %134 : vector<8x64xf32>
    %136 = vector.extract_strided_slice %130 {offsets = [24, 0], sizes = [8, 64], strides = [1, 1]} : vector<32x64xf32> to vector<8x64xf32>
    %137 = arith.addf %135, %136 : vector<8x64xf32>
    %cst_158 = arith.constant 2.500000e-01 : f32
    %138 = vector.broadcast %cst_158 : f32 to vector<8x64xf32>
    %139 = arith.mulf %137, %138 : vector<8x64xf32>
    %140 = arith.truncf %139 : vector<8x64xf32> to vector<8x64xbf16>
    %c0_159 = arith.constant 0 : index
    %c0_160 = arith.constant 0 : index
    %141 = vector.load %arg7[%c0_159, %c0_160] : memref<64x128xbf16, #tpu.memory_space<vmem>>, vector<64x128xbf16>
    %cst_161 = arith.constant dense<0.000000e+00> : vector<8x128xf32>
    %142 = tpu.matmul %140, %141, %cst_161 {dimension_numbers = #tpu.dot_dimension_numbers<[1], [0], [0], [1], [0, 0, 1, 1], [], []>} : vector<8x64xbf16>, vector<64x128xbf16>, vector<8x128xf32> -> vector<8x128xf32>
    %c0_162 = arith.constant 0 : index
    %c0_163 = arith.constant 0 : index
    %143 = vector.load %arg8[%c0_162, %c0_163] : memref<1x128xf32, #tpu.memory_space<vmem>>, vector<1x128xf32>
    %144 = vector.broadcast %143 : vector<1x128xf32> to vector<8x128xf32>
    %145 = arith.addf %142, %144 : vector<8x128xf32>
    %146 = arith.negf %145 : vector<8x128xf32>
    %147 = math.exp %146 : vector<8x128xf32>
    %cst_164 = arith.constant 1.000000e+00 : f32
    %148 = vector.broadcast %cst_164 : f32 to vector<8x128xf32>
    %149 = arith.addf %148, %147 : vector<8x128xf32>
    %150 = arith.divf %148, %149 : vector<8x128xf32>
    %151 = arith.mulf %145, %150 : vector<8x128xf32>
    %152 = arith.truncf %151 : vector<8x128xf32> to vector<8x128xbf16>
    %c0_165 = arith.constant 0 : index
    %c0_166 = arith.constant 0 : index
    %153 = vector.load %arg9[%c0_165, %c0_166] : memref<128x1xbf16, #tpu.memory_space<vmem>>, vector<128x1xbf16>
    %cst_167 = arith.constant dense<0.000000e+00> : vector<8x1xf32>
    %154 = tpu.matmul %152, %153, %cst_167 {dimension_numbers = #tpu.dot_dimension_numbers<[1], [0], [0], [1], [0, 0, 1, 1], [], []>} : vector<8x128xbf16>, vector<128x1xbf16>, vector<8x1xf32> -> vector<8x1xf32>
    %c0_168 = arith.constant 0 : index
    %c0_169 = arith.constant 0 : index
    %155 = vector.load %arg10[%c0_168, %c0_169] : memref<1x1xf32, #tpu.memory_space<vmem>>, vector<1x1xf32>
    %156 = vector.broadcast %155 : vector<1x1xf32> to vector<8x1xf32>
    %157 = arith.addf %154, %156 : vector<8x1xf32>
    %158 = arith.negf %157 : vector<8x1xf32>
    %159 = math.exp %158 : vector<8x1xf32>
    %cst_170 = arith.constant 1.000000e+00 : f32
    %160 = vector.broadcast %cst_170 : f32 to vector<8x1xf32>
    %161 = arith.addf %160, %159 : vector<8x1xf32>
    %162 = arith.divf %160, %161 : vector<8x1xf32>
    %163 = vector.extract_strided_slice %130 {offsets = [0, 0], sizes = [8, 64], strides = [1, 1]} : vector<32x64xf32> to vector<8x64xf32>
    %164 = vector.extract_strided_slice %130 {offsets = [8, 0], sizes = [8, 64], strides = [1, 1]} : vector<32x64xf32> to vector<8x64xf32>
    %165 = vector.extract_strided_slice %130 {offsets = [16, 0], sizes = [8, 64], strides = [1, 1]} : vector<32x64xf32> to vector<8x64xf32>
    %166 = vector.extract_strided_slice %130 {offsets = [24, 0], sizes = [8, 64], strides = [1, 1]} : vector<32x64xf32> to vector<8x64xf32>
    %167 = tpu.concatenate %163, %164, %165, %166 in 1 : vector<8x64xf32>, vector<8x64xf32>, vector<8x64xf32>, vector<8x64xf32> -> vector<8x256xf32>
    %168 = arith.truncf %167 : vector<8x256xf32> to vector<8x256xbf16>
    %c0_171 = arith.constant 0 : index
    %c0_172 = arith.constant 0 : index
    %169 = vector.load %arg11[%c0_171, %c0_172] : memref<256x1024xbf16, #tpu.memory_space<vmem>>, vector<256x1024xbf16>
    %cst_173 = arith.constant dense<0.000000e+00> : vector<8x1024xf32>
    %170 = tpu.matmul %168, %169, %cst_173 {dimension_numbers = #tpu.dot_dimension_numbers<[1], [0], [0], [1], [0, 0, 1, 1], [], []>} : vector<8x256xbf16>, vector<256x1024xbf16>, vector<8x1024xf32> -> vector<8x1024xf32>
    %c0_174 = arith.constant 0 : index
    %c0_175 = arith.constant 0 : index
    %171 = vector.load %arg12[%c0_174, %c0_175] : memref<1x1024xf32, #tpu.memory_space<vmem>>, vector<1x1024xf32>
    %172 = vector.broadcast %171 : vector<1x1024xf32> to vector<8x1024xf32>
    %173 = arith.addf %170, %172 : vector<8x1024xf32>
    %174 = arith.negf %173 : vector<8x1024xf32>
    %175 = math.exp %174 : vector<8x1024xf32>
    %cst_176 = arith.constant 1.000000e+00 : f32
    %176 = vector.broadcast %cst_176 : f32 to vector<8x1024xf32>
    %177 = arith.addf %176, %175 : vector<8x1024xf32>
    %178 = arith.divf %176, %177 : vector<8x1024xf32>
    %179 = arith.mulf %173, %178 : vector<8x1024xf32>
    %180 = arith.truncf %179 : vector<8x1024xf32> to vector<8x1024xbf16>
    %c0_177 = arith.constant 0 : index
    %c0_178 = arith.constant 0 : index
    %181 = vector.load %arg13[%c0_177, %c0_178] : memref<1024x4xbf16, #tpu.memory_space<vmem>>, vector<1024x4xbf16>
    %cst_179 = arith.constant dense<0.000000e+00> : vector<8x4xf32>
    %182 = tpu.matmul %180, %181, %cst_179 {dimension_numbers = #tpu.dot_dimension_numbers<[1], [0], [0], [1], [0, 0, 1, 1], [], []>} : vector<8x1024xbf16>, vector<1024x4xbf16>, vector<8x4xf32> -> vector<8x4xf32>
    %c0_180 = arith.constant 0 : index
    %c0_181 = arith.constant 0 : index
    %183 = vector.load %arg14[%c0_180, %c0_181] : memref<1x4xf32, #tpu.memory_space<vmem>>, vector<1x4xf32>
    %184 = vector.broadcast %183 : vector<1x4xf32> to vector<8x4xf32>
    %185 = arith.addf %182, %184 : vector<8x4xf32>
    %cst_182 = arith.constant 0.000000e+00 : f32
    %186 = vector.broadcast %cst_182 : f32 to vector<8x1xf32>
    %187 = arith.cmpf ogt, %157, %186 : vector<8x1xf32>
    %188 = vector.extract_strided_slice %185 {offsets = [0, 2], sizes = [8, 2], strides = [1, 1]} : vector<8x4xf32> to vector<8x2xf32>
    %189 = vector.extract_strided_slice %185 {offsets = [0, 0], sizes = [8, 2], strides = [1, 1]} : vector<8x4xf32> to vector<8x2xf32>
    %190 = vector.shape_cast %187 : vector<8x1xi1> to vector<8x1xi1>
    %191 = vector.broadcast %190 : vector<8x1xi1> to vector<8x2xi1>
    %192 = arith.select %191, %188, %189 : vector<8x2xi1>, vector<8x2xf32>
    %cst_183 = arith.constant 0.000000e+00 : f32
    %193 = vector.broadcast %cst_183 : f32 to vector<8x125xf32>
    %194 = tpu.concatenate %192, %162, %193 in 1 : vector<8x2xf32>, vector<8x1xf32>, vector<8x125xf32> -> vector<8x128xf32>
    %c0_184 = arith.constant 0 : index
    %c0_185 = arith.constant 0 : index
    %195 = vector.load %arg15[%c0_184, %c0_185] : memref<8x128xf32, #tpu.memory_space<vmem>>, vector<8x128xf32>
    tpu.vector_store %arg15[%c0_184, %c0_185], %194 {strides = array<i32>} : memref<8x128xf32, #tpu.memory_space<vmem>>, vector<8x128xf32>,
    return
  }
}

</mosaic_0001>

<bundles_post_ra>
// kernel: tile.8
= control target key start
LH: loop header
LB: loop body
LE: loop exit
PB: predicated region body
PF: predicated region fallthrough
CT: control target
= control target key end

     0   :  { %s22_s0 = inlined_call_operand.vmem [shape: f32[32], index: 0, kind: input, shape index: {}]   ;;  %s23_s1 = inlined_call_operand.vmem [shape: f32[4,32], index: 1, kind: output, shape index: {}]  }
   0x1   :  { %v4_v0 = vld [vmem:[%s22_s0] ss:$0 sm:$0xff] }
   0x2   :  { %5 = vst [vmem:[%s23_s1] sm:$0xf] %v4_v0 }

// kernel: tile.9
= control target key start
LH: loop header
LB: loop body
LE: loop exit
PB: predicated region body
PF: predicated region fallthrough
CT: control target
= control target key end

     0   :  { %vm7_vm0 = vcmask 261120   ;;  %s37_s8 = smov 32   ;;  %s38_s9 = smov 64   ;;  %vm13_vm1 = vcmask 1048320   ;;  %vm19_vm2 = vcmask 785920   ;;  %vm25_vm3 = vcmask 523520   ;;  %s55_s0 = inlined_call_operand.vmem [shape: f32[4,32], index: 0, kind: input, shape index: {}]   ;;  %s56_s1 = inlined_call_operand.vmem [shape: f32[1,128], index: 1, kind: output, shape index: {}]  }
   0x1   :  { %v4_v0 = vld [vmem:[%s55_s0] sm:$0xf]  ;;  %s36_s0 = smov 96  }
   0x2   :  { %5 = vst [vmem:[#allocation1] sm:$0xf] %v4_v0 }
   0x9   :  { %v10_v1 = vld [vmem:[#allocation1 + $0x3] sm:$0x1]   ;;  %v22_v2 = vld [vmem:[#allocation1 + $0x1] sm:$0x1]   ;;  %v6_v3 = vld [vmem:[#allocation1] sm:$0x1]  }
   0xa   :  { %11 = vrot.lane.b32.xlu0 %v10_v1, %s36_s0  ;;  %23 = vrot.lane.b32.xlu1 %v22_v2, %s37_s8  ;;  %v16_v4 = vld [vmem:[#allocation1 + $0x2] sm:$0x1]   ;;  %8 = vst.msk [vmem:[#allocation0] sm:$0x1] %vm7_vm0, %v6_v3  }
   0xe   :  { %17 = vrot.lane.b32.xlu0 %v16_v4, %s38_s9 }
  0x7c   :  { %v12_v5 = vpop.permute.xlu0 %11   ;;  %v24_v6 = vpop.permute.xlu1 %23  }
  0x7d   :  { %14 = vst.msk [vmem:[#allocation0] sm:$0x1] %vm13_vm1, %v12_v5  }
  0x80   :  { %v18_v7 = vpop.permute.xlu0 %17  }
  0x81   :  { %20 = vst.msk [vmem:[#allocation0] sm:$0x1] %vm19_vm2, %v18_v7  }
  0x82   :  { %26 = vst.msk [vmem:[#allocation0] sm:$0x1] %vm25_vm3, %v24_v6  }
  0x89   :  { %v30_v8 = vld [vmem:[#allocation0] sm:$0x1] }
  0x8a   :  { %32 = vst [vmem:[%s56_s1] sm:$0x1] %v30_v8 }

// kernel: experts_forward.1
= control target key start
LH: loop header
LB: loop body
LE: loop exit
PB: predicated region body
PF: predicated region fallthrough
CT: control target
= control target key end

     0   :  { %v14286_v0 = vmov 0   ;;  %vm10873_vm0 = vmmov 0   ;;  %vm5601_vm1 = vcmask 523264   ;;  %s10874_s29 = smov 64   ;;  %vm5655_vm2 = vcmask 1048064   ;;  %s14270_s1 = inlined_call_operand.vmem [shape: bf16[1024,128], index: 1, kind: input, shape index: {}]   ;;  %s14271_s0 = inlined_call_operand.vmem [shape: bf16[512,1024], index: 0, kind: input, shape index: {}]   ;;  %s14272_s3 = inlined_call_operand.vmem [shape: bf16[4,128,64], index: 3, kind: input, shape index: {}]   ;;  %s14273_s2 = inlined_call_operand.vmem [shape: f32[1,128], index: 2, kind: input, shape index: {}]   ;;  %s14274_s5 = inlined_call_operand.vmem [shape: bf16[576,64], index: 5, kind: input, shape index: {}]   ;;  %s14275_s4 = inlined_call_operand.vmem [shape: f32[1,64], index: 4, kind: input, shape index: {}]   ;;  %s14276_s7 = inlined_call_operand.vmem [shape: bf16[64,128], index: 7, kind: input, shape index: {}]   ;;  %s14277_s11 = inlined_call_operand.vmem [shape: bf16[256,1024], index: 11, kind: input, shape index: {}]   ;;  %s14278_s6 = inlined_call_operand.vmem [shape: f32[1,64], index: 6, kind: input, shape index: {}]   ;;  %s14279_s9 = inlined_call_operand.vmem [shape: bf16[128,1], index: 9, kind: input, shape index: {}]   ;;  %s14280_s8 = inlined_call_operand.vmem [shape: f32[1,128], index: 8, kind: input, shape index: {}]   ;;  %s14281_s10 = inlined_call_operand.<no memory space> [shape: f32[1,1], index: 10, kind: input, shape index: {}]   ;;  %s14282_s13 = inlined_call_operand.vmem [shape: bf16[1024,4], index: 13, kind: input, shape index: {}]   ;;  %s14283_s12 = inlined_call_operand.vmem [shape: f32[1,1024], index: 12, kind: input, shape index: {}]   ;;  %s14284_s14 = inlined_call_operand.vmem [shape: f32[1,4], index: 14, kind: input, shape index: {}]   ;;  %s14285_s15 = inlined_call_operand.vmem [shape: f32[8,128], index: 15, kind: output, shape index: {}]  }
   0x1   :  { %2108 = vmatprep.subr.bf16.mxu0 %v14286_v0  ;;  %v10201_v1 = vld [vmem:[%s14270_s1] sm:$0xff]   ;;  %10199 = vset.pattern.permute.xlu1 %v14286_v0  ;;  %v10202_v2 = vld [vmem:[%s14270_s1 + $0x8] sm:$0xff]   ;;  %v10203_v3 = vld [vmem:[%s14270_s1 + $0x10] sm:$0xff]   ;;  %vm8251_vm5 = vcmask 15360   ;;  %vm8253_vm6 = vcmask 23552  }
   0x2   :  { %10200 = vset.pattern.permute.xlu0 %v14286_v0  ;;  %2109 = vmatpush1.bf16.msra.mxu0 %v10201_v1  ;;  %v10204_v4 = vld [vmem:[%s14270_s1 + $0x18] sm:$0xff]   ;;  %v10205_v5 = vld [vmem:[%s14270_s1 + $0x20] sm:$0xff]   ;;  %v10206_v9 = vld [vmem:[%s14270_s1 + $0x28] sm:$0xff]  }
   0x3   :  { %2110 = vmatprep.subr.bf16.mxu0 %v14286_v0  ;;  %v53_v6 = vld [vmem:[%s14271_s0] sm:$0xff]  ;;  %v10207_v10 = vld [vmem:[%s14270_s1 + $0x30] sm:$0xff]   ;;  %v10208_v11 = vld [vmem:[%s14270_s1 + $0x38] sm:$0xff]  }
   0x4   :  { %v57_v7 = vld [vmem:[%s14271_s0 + $0x20] sm:$0xff]  ;;  %v10210_v13 = vld [vmem:[%s14270_s1 + $0x48] sm:$0xff]   ;;  %v10211_v14 = vld [vmem:[%s14270_s1 + $0x50] sm:$0xff]  }
   0x5   :  { %v8262_v8 = vcombine.high %v53_v6, %v57_v7  ;;  %v10209_v12 = vld [vmem:[%s14270_s1 + $0x40] sm:$0xff]   ;;  %v10212_v15 = vld [vmem:[%s14270_s1 + $0x58] sm:$0xff]   ;;  %v10214_v17 = vld [vmem:[%s14270_s1 + $0x68] sm:$0xff]   ;;  %v8261_v22 = vcombine.low %v53_v6, %v57_v7 }
   0x6   :  { %2111 = vmatpush1.bf16.msra.mxu0 %v10202_v2  ;;  %v10213_v16 = vld [vmem:[%s14270_s1 + $0x60] sm:$0xff]   ;;  %v10215_v18 = vld [vmem:[%s14270_s1 + $0x70] sm:$0xff]   ;;  %v10216_v19 = vld [vmem:[%s14270_s1 + $0x78] sm:$0xff]  }
   0x7   :  { %2112 = vmatprep.subr.bf16.mxu0 %v14286_v0  ;;  %2140 = vmatprep.mubr.bf16.mxu0 %v8262_v8  ;;  %v61_v20 = vld [vmem:[%s14271_s0 + $0x40] sm:$0xff]  ;;  %v10218_v25 = vld [vmem:[%s14270_s1 + $0x88] sm:$0xff]   ;;  %v10219_v30 = vld [vmem:[%s14270_s1 + $0x90] sm:$0xff]  }
   0x8   :  { %v65_v21 = vld [vmem:[%s14271_s0 + $0x60] sm:$0xff]  ;;  %v10220_v31 = vld [vmem:[%s14270_s1 + $0x98] sm:$0xff]   ;;  %v10222_v37 = vld [vmem:[%s14270_s1 + $0xa8] sm:$0xff]  }
   0x9   :  { %v10217_v23 = vld [vmem:[%s14270_s1 + $0x80] sm:$0xff]   ;;  %v8270_v24 = vcombine.high %v61_v20, %v65_v21  ;;  %v8269_v28 = vcombine.low %v61_v20, %v65_v21  ;;  %v10223_v42 = vld [vmem:[%s14270_s1 + $0xb0] sm:$0xff]   ;;  %v10224_v43 = vld [vmem:[%s14270_s1 + $0xb8] sm:$0xff]  }
   0xa   :  { %2113 = vmatpush1.bf16.msra.mxu0 %v10203_v3  ;;  %v69_v26 = vld [vmem:[%s14271_s0 + $0x80] sm:$0xff]  ;;  %v10226_v49 = vld [vmem:[%s14270_s1 + $0xc8] sm:$0xff]   ;;  %v10227_v54 = vld [vmem:[%s14270_s1 + $0xd0] sm:$0xff]  }
   0xb   :  { %2114 = vmatprep.subr.bf16.mxu0 %v14286_v0  ;;  %v73_v27 = vld [vmem:[%s14271_s0 + $0xa0] sm:$0xff]  ;;  %v10228_v59 = vld [vmem:[%s14270_s1 + $0xd8] sm:$0xff]  }
   0xc   :  { %v8278_v29 = vcombine.high %v69_v26, %v73_v27  ;;  %v77_v32 = vld [vmem:[%s14271_s0 + $0xc0] sm:$0xff]  ;;  %v8277_v34 = vcombine.low %v69_v26, %v73_v27 }
   0xd   :  { %v81_v33 = vld [vmem:[%s14271_s0 + $0xe0] sm:$0xff] }
   0xe   :  { %2115 = vmatpush1.bf16.msra.mxu0 %v10204_v4  ;;  %v8286_v35 = vcombine.high %v77_v32, %v81_v33  ;;  %v10221_v36 = vld [vmem:[%s14270_s1 + $0xa0] sm:$0xff]   ;;  %v8285_v40 = vcombine.low %v77_v32, %v81_v33  ;;  %v10232_v32 = vld [vmem:[%s14270_s1 + $0xf8] sm:$0xff]  }
   0xf   :  { %2116 = vmatprep.subr.bf16.mxu0 %v14286_v0  ;;  %v85_v38 = vld [vmem:[%s14271_s0 + $0x100] sm:$0xff] }
  0x10   :  { %v89_v39 = vld [vmem:[%s14271_s0 + $0x120] sm:$0xff] }
  0x11   :  { %v8294_v41 = vcombine.high %v85_v38, %v89_v39  ;;  %v93_v44 = vld [vmem:[%s14271_s0 + $0x140] sm:$0xff]  ;;  %v8293_v46 = vcombine.low %v85_v38, %v89_v39 }
  0x12   :  { %2117 = vmatpush1.bf16.msra.mxu0 %v10205_v5  ;;  %v97_v45 = vld [vmem:[%s14271_s0 + $0x160] sm:$0xff] }
  0x13   :  { %2118 = vmatprep.subr.bf16.mxu0 %v14286_v0  ;;  %v8302_v47 = vcombine.high %v93_v44, %v97_v45  ;;  %v10225_v48 = vld [vmem:[%s14270_s1 + $0xc0] sm:$0xff]   ;;  %v8301_v52 = vcombine.low %v93_v44, %v97_v45 }
  0x14   :  { %v101_v50 = vld [vmem:[%s14271_s0 + $0x180] sm:$0xff] }
  0x15   :  { %v105_v51 = vld [vmem:[%s14271_s0 + $0x1a0] sm:$0xff] }
  0x16   :  { %2119 = vmatpush1.bf16.msra.mxu0 %v10206_v9  ;;  %v8310_v53 = vcombine.high %v101_v50, %v105_v51  ;;  %v109_v55 = vld [vmem:[%s14271_s0 + $0x1c0] sm:$0xff]  ;;  %v8309_v57 = vcombine.low %v101_v50, %v105_v51 }
  0x17   :  { %2120 = vmatprep.subr.bf16.mxu0 %v14286_v0  ;;  %v113_v56 = vld [vmem:[%s14271_s0 + $0x1e0] sm:$0xff] }
  0x18   :  { %v8318_v58 = vcombine.high %v109_v55, %v113_v56  ;;  %v117_v60 = vld [vmem:[%s14271_s0 + $0x200] sm:$0xff]  ;;  %v8317_v62 = vcombine.low %v109_v55, %v113_v56 }
  0x19   :  { %v121_v61 = vld [vmem:[%s14271_s0 + $0x220] sm:$0xff] }
  0x1a   :  { %2121 = vmatpush1.bf16.msra.mxu0 %v10207_v10  ;;  %v8326_v63 = vcombine.high %v117_v60, %v121_v61  ;;  %v125_v1 = vld [vmem:[%s14271_s0 + $0x240] sm:$0xff]  ;;  %v8325_v3 = vcombine.low %v117_v60, %v121_v61 }
  0x1b   :  { %2122 = vmatprep.subr.bf16.mxu0 %v14286_v0  ;;  %v129_v2 = vld [vmem:[%s14271_s0 + $0x260] sm:$0xff] }
  0x1c   :  { %v8334_v4 = vcombine.high %v125_v1, %v129_v2  ;;  %v10229_v5 = vld [vmem:[%s14270_s1 + $0xe0] sm:$0xff]   ;;  %v8333_v8 = vcombine.low %v125_v1, %v129_v2 }
  0x1d   :  { %v133_v6 = vld [vmem:[%s14271_s0 + $0x280] sm:$0xff] }
  0x1e   :  { %2123 = vmatpush1.bf16.msra.mxu0 %v10208_v11  ;;  %v137_v7 = vld [vmem:[%s14271_s0 + $0x2a0] sm:$0xff] }
  0x1f   :  { %2124 = vmatprep.subr.bf16.mxu0 %v14286_v0  ;;  %v8342_v9 = vcombine.high %v133_v6, %v137_v7  ;;  %v141_v10 = vld [vmem:[%s14271_s0 + $0x2c0] sm:$0xff] }
  0x20   :  { %v145_v11 = vld [vmem:[%s14271_s0 + $0x2e0] sm:$0xff] }
  0x21   :  { %v161_v20 = vld [vmem:[%s14271_s0 + $0x360] sm:$0xff] }
  0x22   :  { %2125 = vmatpush1.bf16.msra.mxu0 %v10209_v12  ;;  %v8341_v12 = vcombine.low %v133_v6, %v137_v7  ;;  %v181_v33 = vld [vmem:[%s14271_s0 + $0x400] sm:$0xff] }
  0x23   :  { %2126 = vmatprep.subr.bf16.mxu0 %v14286_v0  ;;  %v193_v38 = vld [vmem:[%s14271_s0 + $0x460] sm:$0xff] }
  0x24   :  { %v205_v45 = vld [vmem:[%s14271_s0 + $0x4c0] sm:$0xff] }
  0x25   :  { %v217_v50 = vld [vmem:[%s14271_s0 + $0x520] sm:$0xff] }
  0x26   :  { %2127 = vmatpush1.bf16.msra.mxu0 %v10210_v13  ;;  %v8350_v13 = vcombine.high %v141_v10, %v145_v11  ;;  %v237_v61 = vld [vmem:[%s14271_s0 + $0x5c0] sm:$0xff] }
  0x27   :  { %2128 = vmatprep.subr.bf16.mxu0 %v14286_v0  ;;  %v245_v2 = vld [vmem:[%s14271_s0 + $0x600] sm:$0xff] }
  0x28   :  { %v253_v6 = vld [vmem:[%s14271_s0 + $0x640] sm:$0xff] }
  0x29   :  { %v257_v7 = vld [vmem:[%s14271_s0 + $0x660] sm:$0xff] }
  0x2a   :  { %2129 = vmatpush1.bf16.msra.mxu0 %v10211_v14  ;;  %v10230_v14 = vld [vmem:[%s14270_s1 + $0xe8] sm:$0xff]  }
  0x2b   :  { %2130 = vmatprep.subr.bf16.mxu0 %v14286_v0 }
  0x2e   :  { %2131 = vmatpush1.bf16.msra.mxu0 %v10212_v15  ;;  %v149_v15 = vld [vmem:[%s14271_s0 + $0x300] sm:$0xff] }
  0x2f   :  { %2132 = vmatprep.subr.bf16.mxu0 %v14286_v0 }
  0x32   :  { %2133 = vmatpush1.bf16.msra.mxu0 %v10213_v16  ;;  %v153_v16 = vld [vmem:[%s14271_s0 + $0x320] sm:$0xff] }
  0x33   :  { %2134 = vmatprep.subr.bf16.mxu0 %v14286_v0  ;;  %v8357_v21 = vcombine.low %v149_v15, %v153_v16 }
  0x36   :  { %2135 = vmatpush1.bf16.msra.mxu0 %v10214_v17  ;;  %v8349_v17 = vcombine.low %v141_v10, %v145_v11  ;;  %v261_v10 = vld [vmem:[%s14271_s0 + $0x680] sm:$0xff] }
  0x37   :  { %2136 = vmatprep.subr.bf16.mxu0 %v14286_v0  ;;  %v265_v11 = vld [vmem:[%s14271_s0 + $0x6a0] sm:$0xff] }
  0x3a   :  { %2137 = vmatpush1.bf16.msra.mxu0 %v10215_v18  ;;  %v8358_v18 = vcombine.high %v149_v15, %v153_v16  ;;  %v273_v15 = vld [vmem:[%s14271_s0 + $0x6e0] sm:$0xff]  ;;  %v8469_v16 = vcombine.low %v261_v10, %v265_v11 }
  0x3b   :  { %2138 = vmatprep.subr.bf16.mxu0 %v14286_v0 }
  0x3e   :  { %2139 = vmatpush1.bf16.msra.mxu0 %v10216_v19  ;;  %v157_v19 = vld [vmem:[%s14271_s0 + $0x340] sm:$0xff] }
  0x3f   :  { %2397 = vmatprep.subr.bf16.mxu0 %v14286_v0  ;;  %v8365_v26 = vcombine.low %v157_v19, %v161_v20 }
  0x41   :  { %2141 = vmatmul.mubr.bf16.vlgmr.msra.gmra.mrb[0].mxu0 %v8261_v22  ;;  %v8366_v22 = vcombine.high %v157_v19, %v161_v20  ;;  %v281_v19 = vld [vmem:[%s14271_s0 + $0x720] sm:$0xff] }
  0x42   :  { %2398 = vmatpush1.bf16.msra.mxu0 %v10217_v23  ;;  %2148 = vmatprep.mubr.bf16.mxu0 %v8270_v24  ;;  %v10231_v23 = vld [vmem:[%s14270_s1 + $0xf0] sm:$0xff]   ;;  %v165_v24 = vld [vmem:[%s14271_s0 + $0x380] sm:$0xff] }
  0x43   :  { %2399 = vmatprep.subr.bf16.mxu0 %v14286_v0 }
  0x46   :  { %2400 = vmatpush1.bf16.msra.mxu0 %v10218_v25  ;;  %v169_v25 = vld [vmem:[%s14271_s0 + $0x3a0] sm:$0xff] }
  0x47   :  { %2401 = vmatprep.subr.bf16.mxu0 %v14286_v0  ;;  %v8374_v27 = vcombine.high %v165_v24, %v169_v25 }
  0x49   :  { %2149 = vmatmul.mubr.bf16.gmra.mrb[4].mxu0 %v8269_v28  ;;  %v173_v28 = vld [vmem:[%s14271_s0 + $0x3c0] sm:$0xff] }
  0x4a   :  { %2156 = vmatprep.mubr.bf16.mxu0 %v8278_v29  ;;  %2402 = vmatpush1.bf16.msra.mxu0 %v10219_v30  ;;  %v177_v29 = vld [vmem:[%s14271_s0 + $0x3e0] sm:$0xff]  ;;  %v8373_v30 = vcombine.low %v165_v24, %v169_v25 }
  0x4b   :  { %2403 = vmatprep.subr.bf16.mxu0 %v14286_v0 }
  0x4e   :  { %2404 = vmatpush1.bf16.msra.mxu0 %v10220_v31  ;;  %v8382_v31 = vcombine.high %v173_v28, %v177_v29 }
  0x4f   :  { %2405 = vmatprep.subr.bf16.mxu0 %v14286_v0 }
  0x51   :  { %2157 = vmatmul.mubr.bf16.gmra.mrb[8].mxu0 %v8277_v34  ;;  %v185_v34 = vld [vmem:[%s14271_s0 + $0x420] sm:$0xff] }
  0x52   :  { %2164 = vmatprep.mubr.bf16.mxu0 %v8286_v35  ;;  %2406 = vmatpush1.bf16.msra.mxu0 %v10221_v36  ;;  %v8381_v35 = vcombine.low %v173_v28, %v177_v29  ;;  %v8390_v36 = vcombine.high %v181_v33, %v185_v34  ;;  %v8389_v39 = vcombine.low %v181_v33, %v185_v34  ;;  %v54_v34 = vld [vmem:[%s14271_s0 + $0x8] sm:$0xff] }
  0x53   :  { %2407 = vmatprep.subr.bf16.mxu0 %v14286_v0 }
  0x56   :  { %2408 = vmatpush1.bf16.msra.mxu0 %v10222_v37  ;;  %v189_v37 = vld [vmem:[%s14271_s0 + $0x440] sm:$0xff] }
  0x57   :  { %2409 = vmatprep.subr.bf16.mxu0 %v14286_v0 }
  0x59   :  { %2165 = vmatmul.mubr.bf16.gmra.mrb[12].mxu0 %v8285_v40  ;;  %v8398_v40 = vcombine.high %v189_v37, %v193_v38 }
  0x5a   :  { %2172 = vmatprep.mubr.bf16.mxu0 %v8294_v41  ;;  %2410 = vmatpush1.bf16.msra.mxu0 %v10223_v42  ;;  %v197_v41 = vld [vmem:[%s14271_s0 + $0x480] sm:$0xff] }
  0x5b   :  { %2411 = vmatprep.subr.bf16.mxu0 %v14286_v0  ;;  %v201_v42 = vld [vmem:[%s14271_s0 + $0x4a0] sm:$0xff] }
  0x5c   :  { %v8406_v44 = vcombine.high %v197_v41, %v201_v42 }
  0x5e   :  { %2412 = vmatpush1.bf16.msra.mxu0 %v10224_v43  ;;  %v8397_v43 = vcombine.low %v189_v37, %v193_v38  ;;  %v62_v38 = vld [vmem:[%s14271_s0 + $0x48] sm:$0xff] }
  0x5f   :  { %2413 = vmatprep.subr.bf16.mxu0 %v14286_v0 }
  0x61   :  { %2173 = vmatmul.mubr.bf16.gmra.mrb[16].mxu0 %v8293_v46  ;;  %v209_v46 = vld [vmem:[%s14271_s0 + $0x4e0] sm:$0xff] }
  0x62   :  { %2180 = vmatprep.mubr.bf16.mxu0 %v8302_v47  ;;  %2414 = vmatpush1.bf16.msra.mxu0 %v10225_v48  ;;  %v8405_v47 = vcombine.low %v197_v41, %v201_v42  ;;  %v8414_v48 = vcombine.high %v205_v45, %v209_v46  ;;  %v8413_v51 = vcombine.low %v205_v45, %v209_v46  ;;  %v10233_v41 = vld [vmem:[%s14270_s1 + $0x100] sm:$0xff]   ;;  %v74_v45 = vld [vmem:[%s14271_s0 + $0xa8] sm:$0xff] }
  0x63   :  { %2415 = vmatprep.subr.bf16.mxu0 %v14286_v0 }
  0x66   :  { %2416 = vmatpush1.bf16.msra.mxu0 %v10226_v49  ;;  %v213_v49 = vld [vmem:[%s14271_s0 + $0x500] sm:$0xff] }
  0x67   :  { %2417 = vmatprep.subr.bf16.mxu0 %v14286_v0  ;;  %v8421_v55 = vcombine.low %v213_v49, %v217_v50 }
  0x69   :  { %2181 = vmatmul.mubr.bf16.gmra.mrb[20].mxu0 %v8301_v52  ;;  %v8422_v52 = vcombine.high %v213_v49, %v217_v50  ;;  %v10236_v49 = vld [vmem:[%s14270_s1 + $0x118] sm:$0xff]   ;;  %v78_v50 = vld [vmem:[%s14271_s0 + $0xc8] sm:$0xff] }
  0x6a   :  { %2188 = vmatprep.mubr.bf16.mxu0 %v8310_v53  ;;  %2418 = vmatpush1.bf16.msra.mxu0 %v10227_v54  ;;  %v221_v53 = vld [vmem:[%s14271_s0 + $0x540] sm:$0xff] }
  0x6b   :  { %2419 = vmatprep.subr.bf16.mxu0 %v14286_v0  ;;  %v225_v54 = vld [vmem:[%s14271_s0 + $0x560] sm:$0xff] }
  0x6c   :  { %v8430_v56 = vcombine.high %v221_v53, %v225_v54 }
  0x6e   :  { %2420 = vmatpush1.bf16.msra.mxu0 %v10228_v59  ;;  %v8429_v59 = vcombine.low %v221_v53, %v225_v54  ;;  %v10237_v54 = vld [vmem:[%s14270_s1 + $0x120] sm:$0xff]  }
  0x6f   :  { %2421 = vmatprep.subr.bf16.mxu0 %v14286_v0 }
  0x71   :  { %2189 = vmatmul.mubr.bf16.gmra.mrb[24].mxu0 %v8309_v57  ;;  %v229_v57 = vld [vmem:[%s14271_s0 + $0x580] sm:$0xff] }
  0x72   :  { %2196 = vmatprep.mubr.bf16.mxu0 %v8318_v58  ;;  %2422 = vmatpush1.bf16.msra.mxu0 %v10229_v5  ;;  %v233_v58 = vld [vmem:[%s14271_s0 + $0x5a0] sm:$0xff] }
  0x73   :  { %2423 = vmatprep.subr.bf16.mxu0 %v14286_v0  ;;  %v8438_v60 = vcombine.high %v229_v57, %v233_v58 }
  0x76   :  { %2424 = vmatpush1.bf16.msra.mxu0 %v10230_v14  ;;  %v269_v14 = vld [vmem:[%s14271_s0 + $0x6c0] sm:$0xff] }
  0x77   :  { %2425 = vmatprep.subr.bf16.mxu0 %v14286_v0  ;;  %v8477_v20 = vcombine.low %v269_v14, %v273_v15 }
  0x79   :  { %2197 = vmatmul.mubr.bf16.gmra.mrb[28].mxu0 %v8317_v62  ;;  %v241_v62 = vld [vmem:[%s14271_s0 + $0x5e0] sm:$0xff] }
  0x7a   :  { %2204 = vmatprep.mubr.bf16.mxu0 %v8326_v63  ;;  %2426 = vmatpush1.bf16.msra.mxu0 %v10231_v23  ;;  %v8437_v63 = vcombine.low %v229_v57, %v233_v58  ;;  %v8446_v1 = vcombine.high %v237_v61, %v241_v62  ;;  %v289_v23 = vld [vmem:[%s14271_s0 + $0x760] sm:$0xff]  ;;  %v90_v57 = vld [vmem:[%s14271_s0 + $0x128] sm:$0xff] }
  0x7b   :  { %2427 = vmatprep.subr.bf16.mxu0 %v14286_v0 }
  0x7e   :  { %2428 = vmatpush1.bf16.msra.mxu0 %v10232_v32 }
  0x7f   :  { %2686 = vmatprep.subr.bf16.mxu0 %v14286_v0 }
  0x81   :  { %2205 = vmatmul.mubr.bf16.gmra.mrb[32].mxu0 %v8325_v3  ;;  %v249_v3 = vld [vmem:[%s14271_s0 + $0x620] sm:$0xff] }
  0x82   :  { %2212 = vmatprep.mubr.bf16.mxu0 %v8334_v4  ;;  %v8445_v4 = vcombine.low %v237_v61, %v241_v62  ;;  %v8454_v5 = vcombine.high %v245_v2, %v249_v3  ;;  %v10240_v61 = vld [vmem:[%s14270_s1 + $0x138] sm:$0xff]   ;;  %v94_v62 = vld [vmem:[%s14271_s0 + $0x148] sm:$0xff] }
  0x89   :  { %2213 = vmatmul.mubr.bf16.gmra.mrb[36].mxu0 %v8333_v8  ;;  %v8453_v8 = vcombine.low %v245_v2, %v249_v3  ;;  %v10241_v3 = vld [vmem:[%s14270_s1 + $0x140] sm:$0xff]  }
  0x8a   :  { %2220 = vmatprep.mubr.bf16.mxu0 %v8342_v9  ;;  %v8462_v9 = vcombine.high %v253_v6, %v257_v7 }
  0x91   :  { %2221 = vmatmul.mubr.bf16.gmra.mrb[40].mxu0 %v8341_v12  ;;  %v8461_v12 = vcombine.low %v253_v6, %v257_v7  ;;  %v106_v6 = vld [vmem:[%s14271_s0 + $0x1a8] sm:$0xff] }
  0x92   :  { %2228 = vmatprep.mubr.bf16.mxu0 %v8350_v13  ;;  %v8470_v13 = vcombine.high %v261_v10, %v265_v11  ;;  %v110_v10 = vld [vmem:[%s14271_s0 + $0x1c8] sm:$0xff] }
  0x93   :  { %v114_v11 = vld [vmem:[%s14271_s0 + $0x1e8] sm:$0xff] }
  0x99   :  { %2229 = vmatmul.mubr.bf16.gmra.mrb[44].mxu0 %v8349_v17  ;;  %v8478_v17 = vcombine.high %v269_v14, %v273_v15  ;;  %v10244_v14 = vld [vmem:[%s14270_s1 + $0x158] sm:$0xff]   ;;  %v118_v15 = vld [vmem:[%s14271_s0 + $0x208] sm:$0xff] }
  0x9a   :  { %2236 = vmatprep.mubr.bf16.mxu0 %v8358_v18  ;;  %v277_v18 = vld [vmem:[%s14271_s0 + $0x700] sm:$0xff] }
  0x9b   :  { %v8485_v24 = vcombine.low %v277_v18, %v281_v19 }
  0xa1   :  { %2237 = vmatmul.mubr.bf16.gmra.mrb[48].mxu0 %v8357_v21  ;;  %v8486_v21 = vcombine.high %v277_v18, %v281_v19  ;;  %v126_v19 = vld [vmem:[%s14271_s0 + $0x248] sm:$0xff] }
  0xa2   :  { %2244 = vmatprep.mubr.bf16.mxu0 %v8366_v22  ;;  %v285_v22 = vld [vmem:[%s14271_s0 + $0x740] sm:$0xff] }
  0xa3   :  { %v8494_v25 = vcombine.high %v285_v22, %v289_v23  ;;  %v8493_v28 = vcombine.low %v285_v22, %v289_v23  ;;  %v10245_v23 = vld [vmem:[%s14270_s1 + $0x160] sm:$0xff]  }
  0xa9   :  { %2245 = vmatmul.mubr.bf16.gmra.mrb[52].mxu0 %v8365_v26  ;;  %v293_v26 = vld [vmem:[%s14271_s0 + $0x780] sm:$0xff] }
  0xaa   :  { %2252 = vmatprep.mubr.bf16.mxu0 %v8374_v27  ;;  %v297_v27 = vld [vmem:[%s14271_s0 + $0x7a0] sm:$0xff] }
  0xab   :  { %v8502_v29 = vcombine.high %v293_v26, %v297_v27  ;;  %v8501_v32 = vcombine.low %v293_v26, %v297_v27 }
  0xb1   :  { %2253 = vmatmul.mubr.bf16.gmra.mrb[56].mxu0 %v8373_v30  ;;  %v301_v30 = vld [vmem:[%s14271_s0 + $0x7c0] sm:$0xff] }
  0xb2   :  { %2260 = vmatprep.mubr.bf16.mxu0 %v8382_v31  ;;  %v305_v31 = vld [vmem:[%s14271_s0 + $0x7e0] sm:$0xff] }
  0xb3   :  { %v8510_v33 = vcombine.high %v301_v30, %v305_v31 }
  0xb9   :  { %2261 = vmatmul.mubr.bf16.gmra.mrb[60].mxu0 %v8381_v35  ;;  %v58_v35 = vld [vmem:[%s14271_s0 + $0x28] sm:$0xff] }
  0xba   :  { %2268 = vmatprep.mubr.bf16.mxu0 %v8390_v36  ;;  %v8509_v36 = vcombine.low %v301_v30, %v305_v31  ;;  %v8264_v37 = vcombine.high %v54_v34, %v58_v35 }
  0xc1   :  { %2269 = vmatmul.mubr.bf16.gmra.mrb[64].mxu0 %v8389_v39  ;;  %v66_v39 = vld [vmem:[%s14271_s0 + $0x68] sm:$0xff] }
  0xc2   :  { %2276 = vmatprep.mubr.bf16.mxu0 %v8398_v40  ;;  %v8263_v40 = vcombine.low %v54_v34, %v58_v35  ;;  %v8272_v42 = vcombine.high %v62_v38, %v66_v39  ;;  %v8271_v46 = vcombine.low %v62_v38, %v66_v39  ;;  %v154_v34 = vld [vmem:[%s14271_s0 + $0x328] sm:$0xff] }
  0xc3   :  { %v162_v38 = vld [vmem:[%s14271_s0 + $0x368] sm:$0xff] }
  0xc9   :  { %2277 = vmatmul.mubr.bf16.gmra.mrb[68].mxu0 %v8397_v43  ;;  %v10234_v43 = vld [vmem:[%s14270_s1 + $0x108] sm:$0xff]  }
  0xca   :  { %2284 = vmatprep.mubr.bf16.mxu0 %v8406_v44  ;;  %v70_v44 = vld [vmem:[%s14271_s0 + $0x88] sm:$0xff] }
  0xd1   :  { %2285 = vmatmul.mubr.bf16.gmra.mrb[72].mxu0 %v8405_v47  ;;  %v8280_v47 = vcombine.high %v70_v44, %v74_v45 }
  0xd2   :  { %2292 = vmatprep.mubr.bf16.mxu0 %v8414_v48  ;;  %v10235_v48 = vld [vmem:[%s14270_s1 + $0x110] sm:$0xff]  }
  0xd9   :  { %2293 = vmatmul.mubr.bf16.gmra.mrb[76].mxu0 %v8413_v51  ;;  %v82_v51 = vld [vmem:[%s14271_s0 + $0xe8] sm:$0xff] }
  0xda   :  { %2300 = vmatprep.mubr.bf16.mxu0 %v8422_v52  ;;  %v8279_v52 = vcombine.low %v70_v44, %v74_v45  ;;  %v8288_v53 = vcombine.high %v78_v50, %v82_v51  ;;  %v8287_v58 = vcombine.low %v78_v50, %v82_v51  ;;  %v10248_v50 = vld [vmem:[%s14270_s1 + $0x178] sm:$0xff]   ;;  %v182_v51 = vld [vmem:[%s14271_s0 + $0x408] sm:$0xff] }
  0xe1   :  { %2301 = vmatmul.mubr.bf16.gmra.mrb[80].mxu0 %v8421_v55  ;;  %v10238_v55 = vld [vmem:[%s14270_s1 + $0x128] sm:$0xff]  }
  0xe2   :  { %2308 = vmatprep.mubr.bf16.mxu0 %v8430_v56  ;;  %v86_v56 = vld [vmem:[%s14271_s0 + $0x108] sm:$0xff] }
  0xe9   :  { %2309 = vmatmul.mubr.bf16.gmra.mrb[84].mxu0 %v8429_v59  ;;  %v8296_v59 = vcombine.high %v86_v56, %v90_v57 }
  0xea   :  { %2316 = vmatprep.mubr.bf16.mxu0 %v8438_v60  ;;  %v10239_v60 = vld [vmem:[%s14270_s1 + $0x130] sm:$0xff]  }
  0xf1   :  { %2317 = vmatmul.mubr.bf16.gmra.mrb[88].mxu0 %v8437_v63  ;;  %v98_v63 = vld [vmem:[%s14271_s0 + $0x168] sm:$0xff] }
  0xf2   :  { %2324 = vmatprep.mubr.bf16.mxu0 %v8446_v1  ;;  %v8295_v1 = vcombine.low %v86_v56, %v90_v57  ;;  %v8304_v2 = vcombine.high %v94_v62, %v98_v63  ;;  %v8303_v7 = vcombine.low %v94_v62, %v98_v63  ;;  %v194_v56 = vld [vmem:[%s14271_s0 + $0x468] sm:$0xff] }
  0xf3   :  { %v206_v63 = vld [vmem:[%s14271_s0 + $0x4c8] sm:$0xff] }
  0xf9   :  { %2325 = vmatmul.mubr.bf16.gmra.mrb[92].mxu0 %v8445_v4  ;;  %v10242_v4 = vld [vmem:[%s14270_s1 + $0x148] sm:$0xff]  }
  0xfa   :  { %2332 = vmatprep.mubr.bf16.mxu0 %v8454_v5  ;;  %v102_v5 = vld [vmem:[%s14271_s0 + $0x188] sm:$0xff] }
 0x101   :  { %2333 = vmatmul.mubr.bf16.gmra.mrb[96].mxu0 %v8453_v8  ;;  %v8312_v8 = vcombine.high %v102_v5, %v106_v6 }
 0x102   :  { %2340 = vmatprep.mubr.bf16.mxu0 %v8462_v9  ;;  %v10243_v9 = vld [vmem:[%s14270_s1 + $0x150] sm:$0xff]  }
 0x109   :  { %2341 = vmatmul.mubr.bf16.gmra.mrb[100].mxu0 %v8461_v12  ;;  %v8311_v12 = vcombine.low %v102_v5, %v106_v6  ;;  %v218_v5 = vld [vmem:[%s14271_s0 + $0x528] sm:$0xff] }
 0x10a   :  { %2348 = vmatprep.mubr.bf16.mxu0 %v8470_v13  ;;  %v8320_v13 = vcombine.high %v110_v10, %v114_v11 }
 0x111   :  { %2349 = vmatmul.mubr.bf16.gmra.mrb[104].mxu0 %v8469_v16  ;;  %v122_v16 = vld [vmem:[%s14271_s0 + $0x228] sm:$0xff] }
 0x112   :  { %2356 = vmatprep.mubr.bf16.mxu0 %v8478_v17  ;;  %v8319_v17 = vcombine.low %v110_v10, %v114_v11  ;;  %v8328_v18 = vcombine.high %v118_v15, %v122_v16 }
 0x119   :  { %2357 = vmatmul.mubr.bf16.gmra.mrb[108].mxu0 %v8477_v20  ;;  %v130_v20 = vld [vmem:[%s14271_s0 + $0x268] sm:$0xff] }
 0x11a   :  { %2364 = vmatprep.mubr.bf16.mxu0 %v8486_v21  ;;  %v8327_v21 = vcombine.low %v118_v15, %v122_v16  ;;  %v8336_v22 = vcombine.high %v126_v19, %v130_v20  ;;  %v8335_v26 = vcombine.low %v126_v19, %v130_v20  ;;  %v238_v16 = vld [vmem:[%s14271_s0 + $0x5c8] sm:$0xff] }
 0x11b   :  { %v246_v20 = vld [vmem:[%s14271_s0 + $0x608] sm:$0xff] }
 0x121   :  { %2365 = vmatmul.mubr.bf16.gmra.mrb[112].mxu0 %v8485_v24  ;;  %v134_v24 = vld [vmem:[%s14271_s0 + $0x288] sm:$0xff] }
 0x122   :  { %2372 = vmatprep.mubr.bf16.mxu0 %v8494_v25  ;;  %v138_v25 = vld [vmem:[%s14271_s0 + $0x2a8] sm:$0xff] }
 0x123   :  { %v8344_v27 = vcombine.high %v134_v24, %v138_v25  ;;  %v8343_v30 = vcombine.low %v134_v24, %v138_v25 }
 0x129   :  { %2373 = vmatmul.mubr.bf16.gmra.mrb[116].mxu0 %v8493_v28  ;;  %v142_v28 = vld [vmem:[%s14271_s0 + $0x2c8] sm:$0xff] }
 0x12a   :  { %2380 = vmatprep.mubr.bf16.mxu0 %v8502_v29  ;;  %v146_v29 = vld [vmem:[%s14271_s0 + $0x2e8] sm:$0xff] }
 0x12b   :  { %v8352_v31 = vcombine.high %v142_v28, %v146_v29  ;;  %v8351_v35 = vcombine.low %v142_v28, %v146_v29  ;;  %v254_v28 = vld [vmem:[%s14271_s0 + $0x648] sm:$0xff] }
 0x12c   :  { %v258_v29 = vld [vmem:[%s14271_s0 + $0x668] sm:$0xff] }
 0x131   :  { %2381 = vmatmul.mubr.bf16.gmra.mrb[120].mxu0 %v8501_v32  ;;  %v10246_v32 = vld [vmem:[%s14270_s1 + $0x168] sm:$0xff]  }
 0x132   :  { %2388 = vmatprep.mubr.bf16.mxu0 %v8510_v33  ;;  %v150_v33 = vld [vmem:[%s14271_s0 + $0x308] sm:$0xff] }
 0x133   :  { %v8359_v39 = vcombine.low %v150_v33, %v154_v34 }
 0x139   :  { %2389 = vmatmul.mubr.bf16.gmra.mrb[124].mxu0 %v8509_v36  ;;  %v8360_v36 = vcombine.high %v150_v33, %v154_v34  ;;  %v8464_v34 = vcombine.high %v254_v28, %v258_v29 }
 0x13a   :  { %2429 = vmatprep.mubr.bf16.mxu0 %v8264_v37  ;;  %v158_v37 = vld [vmem:[%s14271_s0 + $0x348] sm:$0xff] }
 0x13b   :  { %v8367_v44 = vcombine.low %v158_v37, %v162_v38 }
 0x141   :  { %2430 = vmatmul.mubr.bf16.vlgmr.msra.gmra.mrb[0].mxu0 %v8263_v40  ;;  %v8368_v40 = vcombine.high %v158_v37, %v162_v38  ;;  %v266_v37 = vld [vmem:[%s14271_s0 + $0x6a8] sm:$0xff] }
 0x142   :  { %2687 = vmatpush1.bf16.msra.mxu0 %v10233_v41  ;;  %2437 = vmatprep.mubr.bf16.mxu0 %v8272_v42  ;;  %v10247_v41 = vld [vmem:[%s14270_s1 + $0x170] sm:$0xff]   ;;  %v166_v42 = vld [vmem:[%s14271_s0 + $0x388] sm:$0xff] }
 0x143   :  { %2688 = vmatprep.subr.bf16.mxu0 %v14286_v0 }
 0x146   :  { %2689 = vmatpush1.bf16.msra.mxu0 %v10234_v43  ;;  %v170_v43 = vld [vmem:[%s14271_s0 + $0x3a8] sm:$0xff] }
 0x147   :  { %2690 = vmatprep.subr.bf16.mxu0 %v14286_v0  ;;  %v8376_v45 = vcombine.high %v166_v42, %v170_v43 }
 0x149   :  { %2438 = vmatmul.mubr.bf16.gmra.mrb[4].mxu0 %v8271_v46  ;;  %v174_v46 = vld [vmem:[%s14271_s0 + $0x3c8] sm:$0xff] }
 0x14a   :  { %2445 = vmatprep.mubr.bf16.mxu0 %v8280_v47  ;;  %2691 = vmatpush1.bf16.msra.mxu0 %v10235_v48  ;;  %v178_v47 = vld [vmem:[%s14271_s0 + $0x3e8] sm:$0xff]  ;;  %v8375_v48 = vcombine.low %v166_v42, %v170_v43 }
 0x14b   :  { %2692 = vmatprep.subr.bf16.mxu0 %v14286_v0 }
 0x14e   :  { %2693 = vmatpush1.bf16.msra.mxu0 %v10236_v49  ;;  %v8384_v49 = vcombine.high %v174_v46, %v178_v47 }
 0x14f   :  { %2694 = vmatprep.subr.bf16.mxu0 %v14286_v0 }
 0x151   :  { %2446 = vmatmul.mubr.bf16.gmra.mrb[8].mxu0 %v8279_v52  ;;  %v186_v52 = vld [vmem:[%s14271_s0 + $0x428] sm:$0xff] }
 0x152   :  { %2453 = vmatprep.mubr.bf16.mxu0 %v8288_v53  ;;  %2695 = vmatpush1.bf16.msra.mxu0 %v10237_v54  ;;  %v8383_v53 = vcombine.low %v174_v46, %v178_v47  ;;  %v8392_v54 = vcombine.high %v182_v51, %v186_v52  ;;  %v8391_v57 = vcombine.low %v182_v51, %v186_v52  ;;  %v278_v52 = vld [vmem:[%s14271_s0 + $0x708] sm:$0xff] }
 0x153   :  { %2696 = vmatprep.subr.bf16.mxu0 %v14286_v0 }
 0x156   :  { %2697 = vmatpush1.bf16.msra.mxu0 %v10238_v55  ;;  %v190_v55 = vld [vmem:[%s14271_s0 + $0x448] sm:$0xff] }
 0x157   :  { %2698 = vmatprep.subr.bf16.mxu0 %v14286_v0 }
 0x159   :  { %2454 = vmatmul.mubr.bf16.gmra.mrb[12].mxu0 %v8287_v58  ;;  %v8400_v58 = vcombine.high %v190_v55, %v194_v56 }
 0x15a   :  { %2461 = vmatprep.mubr.bf16.mxu0 %v8296_v59  ;;  %2699 = vmatpush1.bf16.msra.mxu0 %v10239_v60  ;;  %v198_v59 = vld [vmem:[%s14271_s0 + $0x488] sm:$0xff] }
 0x15b   :  { %2700 = vmatprep.subr.bf16.mxu0 %v14286_v0  ;;  %v202_v60 = vld [vmem:[%s14271_s0 + $0x4a8] sm:$0xff] }
 0x15c   :  { %v8408_v62 = vcombine.high %v198_v59, %v202_v60 }
 0x15e   :  { %2701 = vmatpush1.bf16.msra.mxu0 %v10240_v61  ;;  %v8399_v61 = vcombine.low %v190_v55, %v194_v56  ;;  %v286_v56 = vld [vmem:[%s14271_s0 + $0x748] sm:$0xff] }
 0x15f   :  { %2702 = vmatprep.subr.bf16.mxu0 %v14286_v0 }
 0x161   :  { %2462 = vmatmul.mubr.bf16.gmra.mrb[16].mxu0 %v8295_v1  ;;  %v210_v1 = vld [vmem:[%s14271_s0 + $0x4e8] sm:$0xff] }
 0x162   :  { %2469 = vmatprep.mubr.bf16.mxu0 %v8304_v2  ;;  %2703 = vmatpush1.bf16.msra.mxu0 %v10241_v3  ;;  %v8407_v2 = vcombine.low %v198_v59, %v202_v60  ;;  %v8416_v3 = vcombine.high %v206_v63, %v210_v1  ;;  %v8415_v6 = vcombine.low %v206_v63, %v210_v1  ;;  %v294_v60 = vld [vmem:[%s14271_s0 + $0x788] sm:$0xff] }
 0x163   :  { %2704 = vmatprep.subr.bf16.mxu0 %v14286_v0  ;;  %v302_v1 = vld [vmem:[%s14271_s0 + $0x7c8] sm:$0xff] }
 0x166   :  { %2705 = vmatpush1.bf16.msra.mxu0 %v10242_v4  ;;  %v214_v4 = vld [vmem:[%s14271_s0 + $0x508] sm:$0xff] }
 0x167   :  { %2706 = vmatprep.subr.bf16.mxu0 %v14286_v0  ;;  %v8423_v10 = vcombine.low %v214_v4, %v218_v5 }
 0x169   :  { %2470 = vmatmul.mubr.bf16.gmra.mrb[20].mxu0 %v8303_v7  ;;  %v8424_v7 = vcombine.high %v214_v4, %v218_v5  ;;  %v55_v5 = vld [vmem:[%s14271_s0 + $0x10] sm:$0xff] }
 0x16a   :  { %2477 = vmatprep.mubr.bf16.mxu0 %v8312_v8  ;;  %2707 = vmatpush1.bf16.msra.mxu0 %v10243_v9  ;;  %v222_v8 = vld [vmem:[%s14271_s0 + $0x548] sm:$0xff] }
 0x16b   :  { %2708 = vmatprep.subr.bf16.mxu0 %v14286_v0  ;;  %v226_v9 = vld [vmem:[%s14271_s0 + $0x568] sm:$0xff] }
 0x16c   :  { %v8432_v11 = vcombine.high %v222_v8, %v226_v9 }
 0x16e   :  { %2709 = vmatpush1.bf16.msra.mxu0 %v10244_v14  ;;  %v8431_v14 = vcombine.low %v222_v8, %v226_v9  ;;  %v63_v9 = vld [vmem:[%s14271_s0 + $0x50] sm:$0xff] }
 0x16f   :  { %2710 = vmatprep.subr.bf16.mxu0 %v14286_v0 }
 0x171   :  { %2478 = vmatmul.mubr.bf16.gmra.mrb[24].mxu0 %v8311_v12  ;;  %v230_v12 = vld [vmem:[%s14271_s0 + $0x588] sm:$0xff] }
 0x172   :  { %2485 = vmatprep.mubr.bf16.mxu0 %v8320_v13  ;;  %2711 = vmatpush1.bf16.msra.mxu0 %v10245_v23  ;;  %v234_v13 = vld [vmem:[%s14271_s0 + $0x5a8] sm:$0xff] }
 0x173   :  { %2712 = vmatprep.subr.bf16.mxu0 %v14286_v0  ;;  %v8440_v15 = vcombine.high %v230_v12, %v234_v13 }
 0x176   :  { %2713 = vmatpush1.bf16.msra.mxu0 %v10246_v32 }
 0x177   :  { %2714 = vmatprep.subr.bf16.mxu0 %v14286_v0 }
 0x179   :  { %2486 = vmatmul.mubr.bf16.gmra.mrb[28].mxu0 %v8319_v17  ;;  %v242_v17 = vld [vmem:[%s14271_s0 + $0x5e8] sm:$0xff] }
 0x17a   :  { %2493 = vmatprep.mubr.bf16.mxu0 %v8328_v18  ;;  %2715 = vmatpush1.bf16.msra.mxu0 %v10247_v41  ;;  %v8439_v18 = vcombine.low %v230_v12, %v234_v13  ;;  %v8448_v19 = vcombine.high %v238_v16, %v242_v17  ;;  %v8447_v24 = vcombine.low %v238_v16, %v242_v17  ;;  %v10249_v12 = vld [vmem:[%s14270_s1 + $0x180] sm:$0xff]   ;;  %v75_v16 = vld [vmem:[%s14271_s0 + $0xb0] sm:$0xff] }
 0x17b   :  { %2716 = vmatprep.subr.bf16.mxu0 %v14286_v0 }
 0x17e   :  { %2717 = vmatpush1.bf16.msra.mxu0 %v10248_v50 }
 0x17f   :  { %2975 = vmatprep.subr.bf16.mxu0 %v14286_v0 }
 0x181   :  { %2494 = vmatmul.mubr.bf16.gmra.mrb[32].mxu0 %v8327_v21  ;;  %v250_v21 = vld [vmem:[%s14271_s0 + $0x628] sm:$0xff] }
 0x182   :  { %2501 = vmatprep.mubr.bf16.mxu0 %v8336_v22  ;;  %v8455_v32 = vcombine.low %v246_v20, %v250_v21 }
 0x189   :  { %2502 = vmatmul.mubr.bf16.gmra.mrb[36].mxu0 %v8335_v26  ;;  %v8456_v26 = vcombine.high %v246_v20, %v250_v21  ;;  %v10252_v20 = vld [vmem:[%s14270_s1 + $0x198] sm:$0xff]   ;;  %v79_v21 = vld [vmem:[%s14271_s0 + $0xd0] sm:$0xff] }
 0x18a   :  { %2509 = vmatprep.mubr.bf16.mxu0 %v8344_v27 }
 0x191   :  { %2510 = vmatmul.mubr.bf16.gmra.mrb[40].mxu0 %v8343_v30 }
 0x192   :  { %2517 = vmatprep.mubr.bf16.mxu0 %v8352_v31 }
 0x199   :  { %2518 = vmatmul.mubr.bf16.gmra.mrb[44].mxu0 %v8351_v35 }
 0x19a   :  { %2525 = vmatprep.mubr.bf16.mxu0 %v8360_v36  ;;  %v262_v36 = vld [vmem:[%s14271_s0 + $0x688] sm:$0xff] }
 0x19b   :  { %v8472_v42 = vcombine.high %v262_v36, %v266_v37 }
 0x1a1   :  { %2526 = vmatmul.mubr.bf16.gmra.mrb[48].mxu0 %v8359_v39 }
 0x1a2   :  { %2533 = vmatprep.mubr.bf16.mxu0 %v8368_v40  ;;  %v8463_v40 = vcombine.low %v254_v28, %v258_v29  ;;  %v91_v28 = vld [vmem:[%s14271_s0 + $0x130] sm:$0xff] }
 0x1a9   :  { %2534 = vmatmul.mubr.bf16.gmra.mrb[52].mxu0 %v8367_v44  ;;  %v270_v44 = vld [vmem:[%s14271_s0 + $0x6c8] sm:$0xff] }
 0x1aa   :  { %2541 = vmatprep.mubr.bf16.mxu0 %v8376_v45  ;;  %v274_v45 = vld [vmem:[%s14271_s0 + $0x6e8] sm:$0xff] }
 0x1ab   :  { %v8480_v50 = vcombine.high %v270_v44, %v274_v45 }
 0x1b1   :  { %2542 = vmatmul.mubr.bf16.gmra.mrb[56].mxu0 %v8375_v48  ;;  %v8471_v48 = vcombine.low %v262_v36, %v266_v37  ;;  %v10257_v37 = vld [vmem:[%s14270_s1 + $0x1c0] sm:$0xff]  }
 0x1b2   :  { %2549 = vmatprep.mubr.bf16.mxu0 %v8384_v49 }
 0x1b9   :  { %2550 = vmatmul.mubr.bf16.gmra.mrb[60].mxu0 %v8383_v53  ;;  %v282_v53 = vld [vmem:[%s14271_s0 + $0x728] sm:$0xff] }
 0x1ba   :  { %2557 = vmatprep.mubr.bf16.mxu0 %v8392_v54  ;;  %v8479_v54 = vcombine.low %v270_v44, %v274_v45  ;;  %v8488_v55 = vcombine.high %v278_v52, %v282_v53  ;;  %v111_v44 = vld [vmem:[%s14271_s0 + $0x1d0] sm:$0xff] }
 0x1bb   :  { %v115_v45 = vld [vmem:[%s14271_s0 + $0x1f0] sm:$0xff] }
 0x1c1   :  { %2558 = vmatmul.mubr.bf16.gmra.mrb[64].mxu0 %v8391_v57  ;;  %v290_v57 = vld [vmem:[%s14271_s0 + $0x768] sm:$0xff] }
 0x1c2   :  { %2565 = vmatprep.mubr.bf16.mxu0 %v8400_v58  ;;  %v8487_v58 = vcombine.low %v278_v52, %v282_v53  ;;  %v8496_v59 = vcombine.high %v286_v56, %v290_v57  ;;  %v127_v53 = vld [vmem:[%s14271_s0 + $0x250] sm:$0xff] }
 0x1c9   :  { %2566 = vmatmul.mubr.bf16.gmra.mrb[68].mxu0 %v8399_v61  ;;  %v298_v61 = vld [vmem:[%s14271_s0 + $0x7a8] sm:$0xff] }
 0x1ca   :  { %2573 = vmatprep.mubr.bf16.mxu0 %v8408_v62  ;;  %v8495_v62 = vcombine.low %v286_v56, %v290_v57  ;;  %v8504_v63 = vcombine.high %v294_v60, %v298_v61  ;;  %v10261_v57 = vld [vmem:[%s14270_s1 + $0x1e0] sm:$0xff]  }
 0x1d1   :  { %2574 = vmatmul.mubr.bf16.gmra.mrb[72].mxu0 %v8407_v2  ;;  %v306_v2 = vld [vmem:[%s14271_s0 + $0x7e8] sm:$0xff] }
 0x1d2   :  { %2581 = vmatprep.mubr.bf16.mxu0 %v8416_v3  ;;  %v8503_v3 = vcombine.low %v294_v60, %v298_v61  ;;  %v8512_v4 = vcombine.high %v302_v1, %v306_v2 }
 0x1d9   :  { %2582 = vmatmul.mubr.bf16.gmra.mrb[76].mxu0 %v8415_v6  ;;  %v59_v6 = vld [vmem:[%s14271_s0 + $0x30] sm:$0xff] }
 0x1da   :  { %2589 = vmatprep.mubr.bf16.mxu0 %v8424_v7  ;;  %v8511_v7 = vcombine.low %v302_v1, %v306_v2  ;;  %v8266_v8 = vcombine.high %v55_v5, %v59_v6 }
 0x1e1   :  { %2590 = vmatmul.mubr.bf16.gmra.mrb[80].mxu0 %v8423_v10  ;;  %v67_v10 = vld [vmem:[%s14271_s0 + $0x70] sm:$0xff] }
 0x1e2   :  { %2597 = vmatprep.mubr.bf16.mxu0 %v8432_v11  ;;  %v8265_v11 = vcombine.low %v55_v5, %v59_v6  ;;  %v8274_v13 = vcombine.high %v63_v9, %v67_v10  ;;  %v8273_v17 = vcombine.low %v63_v9, %v67_v10  ;;  %v155_v5 = vld [vmem:[%s14271_s0 + $0x330] sm:$0xff] }
 0x1e3   :  { %v163_v9 = vld [vmem:[%s14271_s0 + $0x370] sm:$0xff] }
 0x1e9   :  { %2598 = vmatmul.mubr.bf16.gmra.mrb[84].mxu0 %v8431_v14  ;;  %v10250_v14 = vld [vmem:[%s14270_s1 + $0x188] sm:$0xff]  }
 0x1ea   :  { %2605 = vmatprep.mubr.bf16.mxu0 %v8440_v15  ;;  %v71_v15 = vld [vmem:[%s14271_s0 + $0x90] sm:$0xff] }
 0x1f1   :  { %2606 = vmatmul.mubr.bf16.gmra.mrb[88].mxu0 %v8439_v18  ;;  %v8282_v18 = vcombine.high %v71_v15, %v75_v16 }
 0x1f2   :  { %2613 = vmatprep.mubr.bf16.mxu0 %v8448_v19  ;;  %v10251_v19 = vld [vmem:[%s14270_s1 + $0x190] sm:$0xff]  }
 0x1f4   :  { %v2366_v22 = vpop.f32.mrb[112].mxu0 }
 0x1f5   :  { %v2368_v23 = vpop.f32.mrb[113].mxu0  ;;  %v83_v22 = vld [vmem:[%s14271_s0 + $0xf0] sm:$0xff] }
 0x1f6   :  { %v2369_v25 = vpop.f32.mrb[114].mxu0  ;;  %v8281_v23 = vcombine.low %v71_v15, %v75_v16  ;;  %v8289_v29 = vcombine.low %v79_v21, %v83_v22 }
 0x1f7   :  { %v2371_v27 = vpop.f32.mrb[115].mxu0  ;;  %v10253_v25 = vld [vmem:[%s14270_s1 + $0x1a0] sm:$0xff]  }
 0x1f8   :  { %v87_v27 = vld [vmem:[%s14271_s0 + $0x110] sm:$0xff] }
 0x1f9   :  { %2614 = vmatmul.mubr.bf16.gmra.mrb[92].mxu0 %v8447_v24  ;;  %v8290_v24 = vcombine.high %v79_v21, %v83_v22  ;;  %v10264_v21 = vld [vmem:[%s14270_s1 + $0x1f8] sm:$0xff]   ;;  %v183_v22 = vld [vmem:[%s14271_s0 + $0x410] sm:$0xff] }
 0x1fa   :  { %2621 = vmatprep.mubr.bf16.mxu0 %v8456_v26  ;;  %v10254_v26 = vld [vmem:[%s14270_s1 + $0x1a8] sm:$0xff]  }
 0x1fc   :  { %v2374_v30 = vpop.f32.mrb[116].mxu0 }
 0x1fd   :  { %v2376_v31 = vpop.f32.mrb[117].mxu0  ;;  %v8298_v30 = vcombine.high %v87_v27, %v91_v28 }
 0x1fe   :  { %v2377_v33 = vpop.f32.mrb[118].mxu0  ;;  %v10255_v31 = vld [vmem:[%s14270_s1 + $0x1b0] sm:$0xff]  }
 0x1ff   :  { %v2379_v35 = vpop.f32.mrb[119].mxu0  ;;  %v95_v33 = vld [vmem:[%s14271_s0 + $0x150] sm:$0xff] }
 0x200   :  { %v8297_v35 = vcombine.low %v87_v27, %v91_v28  ;;  %v195_v27 = vld [vmem:[%s14271_s0 + $0x470] sm:$0xff] }
 0x201   :  { %2622 = vmatmul.mubr.bf16.gmra.mrb[96].mxu0 %v8455_v32  ;;  %v10256_v32 = vld [vmem:[%s14270_s1 + $0x1b8] sm:$0xff]  }
 0x202   :  { %2629 = vmatprep.mubr.bf16.mxu0 %v8464_v34  ;;  %v99_v34 = vld [vmem:[%s14271_s0 + $0x170] sm:$0xff] }
 0x203   :  { %v8306_v36 = vcombine.high %v95_v33, %v99_v34 }
 0x204   :  { %v2382_v38 = vpop.f32.mrb[120].mxu0 }
 0x205   :  { %v2384_v39 = vpop.f32.mrb[121].mxu0  ;;  %v10258_v38 = vld [vmem:[%s14270_s1 + $0x1c8] sm:$0xff]  }
 0x206   :  { %v2385_v41 = vpop.f32.mrb[122].mxu0  ;;  %v103_v39 = vld [vmem:[%s14271_s0 + $0x190] sm:$0xff] }
 0x207   :  { %v2387_v43 = vpop.f32.mrb[123].mxu0  ;;  %v8305_v41 = vcombine.low %v95_v33, %v99_v34  ;;  %v207_v34 = vld [vmem:[%s14271_s0 + $0x4d0] sm:$0xff] }
 0x208   :  { %v10259_v43 = vld [vmem:[%s14270_s1 + $0x1d0] sm:$0xff]  }
 0x209   :  { %2630 = vmatmul.mubr.bf16.gmra.mrb[100].mxu0 %v8463_v40  ;;  %v107_v40 = vld [vmem:[%s14271_s0 + $0x1b0] sm:$0xff] }
 0x20a   :  { %2637 = vmatprep.mubr.bf16.mxu0 %v8472_v42  ;;  %v8314_v42 = vcombine.high %v103_v39, %v107_v40 }
 0x20c   :  { %v2390_v46 = vpop.f32.mrb[124].mxu0 }
 0x20d   :  { %v2392_v47 = vpop.f32.mrb[125].mxu0  ;;  %v8313_v46 = vcombine.low %v103_v39, %v107_v40  ;;  %v219_v39 = vld [vmem:[%s14271_s0 + $0x530] sm:$0xff] }
 0x20e   :  { %v2393_v49 = vpop.f32.mrb[126].mxu0  ;;  %v8322_v47 = vcombine.high %v111_v44, %v115_v45 }
 0x20f   :  { %v2395_v51 = vpop.f32.mrb[127].mxu0  ;;  %v119_v49 = vld [vmem:[%s14271_s0 + $0x210] sm:$0xff] }
 0x210   :  { %v8321_v51 = vcombine.low %v111_v44, %v115_v45 }
 0x211   :  { %2638 = vmatmul.mubr.bf16.gmra.mrb[104].mxu0 %v8471_v48  ;;  %v10260_v48 = vld [vmem:[%s14270_s1 + $0x1d8] sm:$0xff]  }
 0x212   :  { %2645 = vmatprep.mubr.bf16.mxu0 %v8480_v50  ;;  %v123_v50 = vld [vmem:[%s14271_s0 + $0x230] sm:$0xff] }
 0x213   :  { %v8330_v52 = vcombine.high %v119_v49, %v123_v50 }
 0x219   :  { %2646 = vmatmul.mubr.bf16.gmra.mrb[108].mxu0 %v8479_v54  ;;  %v131_v54 = vld [vmem:[%s14271_s0 + $0x270] sm:$0xff] }
 0x21a   :  { %2653 = vmatprep.mubr.bf16.mxu0 %v8488_v55  ;;  %v8329_v55 = vcombine.low %v119_v49, %v123_v50  ;;  %v8338_v56 = vcombine.high %v127_v53, %v131_v54  ;;  %v8337_v60 = vcombine.low %v127_v53, %v131_v54  ;;  %v239_v50 = vld [vmem:[%s14271_s0 + $0x5d0] sm:$0xff] }
 0x21b   :  { %v247_v54 = vld [vmem:[%s14271_s0 + $0x610] sm:$0xff] }
 0x221   :  { %2654 = vmatmul.mubr.bf16.gmra.mrb[128].mxu0 %v8487_v58  ;;  %v135_v58 = vld [vmem:[%s14271_s0 + $0x290] sm:$0xff] }
 0x222   :  { %2661 = vmatprep.mubr.bf16.mxu0 %v8496_v59  ;;  %v139_v59 = vld [vmem:[%s14271_s0 + $0x2b0] sm:$0xff] }
 0x223   :  { %v8346_v61 = vcombine.high %v135_v58, %v139_v59  ;;  %v8345_v1 = vcombine.low %v135_v58, %v139_v59 }
 0x229   :  { %2662 = vmatmul.mubr.bf16.gmra.mrb[132].mxu0 %v8495_v62  ;;  %v143_v62 = vld [vmem:[%s14271_s0 + $0x2d0] sm:$0xff] }
 0x22a   :  { %2669 = vmatprep.mubr.bf16.mxu0 %v8504_v63  ;;  %v147_v63 = vld [vmem:[%s14271_s0 + $0x2f0] sm:$0xff] }
 0x22b   :  { %v8354_v2 = vcombine.high %v143_v62, %v147_v63  ;;  %v8353_v6 = vcombine.low %v143_v62, %v147_v63  ;;  %v255_v62 = vld [vmem:[%s14271_s0 + $0x650] sm:$0xff] }
 0x22c   :  { %v259_v63 = vld [vmem:[%s14271_s0 + $0x670] sm:$0xff] }
 0x231   :  { %2670 = vmatmul.mubr.bf16.gmra.mrb[136].mxu0 %v8503_v3  ;;  %v10262_v3 = vld [vmem:[%s14270_s1 + $0x1e8] sm:$0xff]  }
 0x232   :  { %2677 = vmatprep.mubr.bf16.mxu0 %v8512_v4  ;;  %v151_v4 = vld [vmem:[%s14271_s0 + $0x310] sm:$0xff] }
 0x233   :  { %v8361_v10 = vcombine.low %v151_v4, %v155_v5 }
 0x239   :  { %2678 = vmatmul.mubr.bf16.gmra.mrb[140].mxu0 %v8511_v7  ;;  %v8362_v7 = vcombine.high %v151_v4, %v155_v5  ;;  %v8466_v5 = vcombine.high %v255_v62, %v259_v63 }
 0x23a   :  { %2718 = vmatprep.mubr.bf16.mxu0 %v8266_v8  ;;  %v159_v8 = vld [vmem:[%s14271_s0 + $0x350] sm:$0xff] }
 0x23b   :  { %v8369_v15 = vcombine.low %v159_v8, %v163_v9 }
 0x241   :  { %2719 = vmatmul.mubr.bf16.vlgmr.msra.gmra.mrb[0].mxu0 %v8265_v11  ;;  %v8370_v11 = vcombine.high %v159_v8, %v163_v9  ;;  %v267_v8 = vld [vmem:[%s14271_s0 + $0x6b0] sm:$0xff] }
 0x242   :  { %2976 = vmatpush1.bf16.msra.mxu0 %v10249_v12  ;;  %2726 = vmatprep.mubr.bf16.mxu0 %v8274_v13  ;;  %v10263_v12 = vld [vmem:[%s14270_s1 + $0x1f0] sm:$0xff]  }
 0x243   :  { %2977 = vmatprep.subr.bf16.mxu0 %v14286_v0  ;;  %v167_v13 = vld [vmem:[%s14271_s0 + $0x390] sm:$0xff] }
 0x246   :  { %2978 = vmatpush1.bf16.msra.mxu0 %v10250_v14  ;;  %v171_v14 = vld [vmem:[%s14271_s0 + $0x3b0] sm:$0xff] }
 0x247   :  { %2979 = vmatprep.subr.bf16.mxu0 %v14286_v0  ;;  %v8378_v16 = vcombine.high %v167_v13, %v171_v14 }
 0x249   :  { %2727 = vmatmul.mubr.bf16.gmra.mrb[4].mxu0 %v8273_v17  ;;  %v175_v17 = vld [vmem:[%s14271_s0 + $0x3d0] sm:$0xff] }
 0x24a   :  { %2734 = vmatprep.mubr.bf16.mxu0 %v8282_v18  ;;  %2980 = vmatpush1.bf16.msra.mxu0 %v10251_v19  ;;  %v179_v18 = vld [vmem:[%s14271_s0 + $0x3f0] sm:$0xff]  ;;  %v8377_v19 = vcombine.low %v167_v13, %v171_v14 }
 0x24b   :  { %2981 = vmatprep.subr.bf16.mxu0 %v14286_v0 }
 0x24e   :  { %2982 = vmatpush1.bf16.msra.mxu0 %v10252_v20  ;;  %v8386_v20 = vcombine.high %v175_v17, %v179_v18 }
 0x24f   :  { %2983 = vmatprep.subr.bf16.mxu0 %v14286_v0 }
 0x251   :  { %2735 = vmatmul.mubr.bf16.gmra.mrb[8].mxu0 %v8281_v23  ;;  %v187_v23 = vld [vmem:[%s14271_s0 + $0x430] sm:$0xff] }
 0x252   :  { %2742 = vmatprep.mubr.bf16.mxu0 %v8290_v24  ;;  %2984 = vmatpush1.bf16.msra.mxu0 %v10253_v25  ;;  %v8385_v24 = vcombine.low %v175_v17, %v179_v18  ;;  %v8394_v25 = vcombine.high %v183_v22, %v187_v23  ;;  %v8393_v28 = vcombine.low %v183_v22, %v187_v23  ;;  %v279_v23 = vld [vmem:[%s14271_s0 + $0x710] sm:$0xff] }
 0x253   :  { %2985 = vmatprep.subr.bf16.mxu0 %v14286_v0 }
 0x256   :  { %2986 = vmatpush1.bf16.msra.mxu0 %v10254_v26  ;;  %v191_v26 = vld [vmem:[%s14271_s0 + $0x450] sm:$0xff] }
 0x257   :  { %2987 = vmatprep.subr.bf16.mxu0 %v14286_v0 }
 0x259   :  { %2743 = vmatmul.mubr.bf16.gmra.mrb[12].mxu0 %v8289_v29  ;;  %v8402_v29 = vcombine.high %v191_v26, %v195_v27 }
 0x25a   :  { %2750 = vmatprep.mubr.bf16.mxu0 %v8298_v30  ;;  %2988 = vmatpush1.bf16.msra.mxu0 %v10255_v31  ;;  %v199_v30 = vld [vmem:[%s14271_s0 + $0x490] sm:$0xff] }
 0x25b   :  { %2989 = vmatprep.subr.bf16.mxu0 %v14286_v0  ;;  %v203_v31 = vld [vmem:[%s14271_s0 + $0x4b0] sm:$0xff] }
 0x25c   :  { %v8410_v33 = vcombine.high %v199_v30, %v203_v31 }
 0x25e   :  { %2990 = vmatpush1.bf16.msra.mxu0 %v10256_v32  ;;  %v8401_v32 = vcombine.low %v191_v26, %v195_v27  ;;  %v287_v27 = vld [vmem:[%s14271_s0 + $0x750] sm:$0xff] }
 0x25f   :  { %2991 = vmatprep.subr.bf16.mxu0 %v14286_v0 }
 0x261   :  { %2751 = vmatmul.mubr.bf16.gmra.mrb[16].mxu0 %v8297_v35  ;;  %v211_v35 = vld [vmem:[%s14271_s0 + $0x4f0] sm:$0xff] }
 0x262   :  { %2758 = vmatprep.mubr.bf16.mxu0 %v8306_v36  ;;  %2992 = vmatpush1.bf16.msra.mxu0 %v10257_v37  ;;  %v8409_v36 = vcombine.low %v199_v30, %v203_v31  ;;  %v8418_v37 = vcombine.high %v207_v34, %v211_v35  ;;  %v8417_v40 = vcombine.low %v207_v34, %v211_v35  ;;  %v295_v31 = vld [vmem:[%s14271_s0 + $0x790] sm:$0xff] }
 0x263   :  { %2993 = vmatprep.subr.bf16.mxu0 %v14286_v0  ;;  %v303_v35 = vld [vmem:[%s14271_s0 + $0x7d0] sm:$0xff] }
 0x266   :  { %2994 = vmatpush1.bf16.msra.mxu0 %v10258_v38  ;;  %v215_v38 = vld [vmem:[%s14271_s0 + $0x510] sm:$0xff] }
 0x267   :  { %2995 = vmatprep.subr.bf16.mxu0 %v14286_v0  ;;  %v8425_v44 = vcombine.low %v215_v38, %v219_v39 }
 0x269   :  { %2759 = vmatmul.mubr.bf16.gmra.mrb[20].mxu0 %v8305_v41  ;;  %v8426_v41 = vcombine.high %v215_v38, %v219_v39  ;;  %v56_v39 = vld [vmem:[%s14271_s0 + $0x18] sm:$0xff] }
 0x26a   :  { %2766 = vmatprep.mubr.bf16.mxu0 %v8314_v42  ;;  %2996 = vmatpush1.bf16.msra.mxu0 %v10259_v43  ;;  %v223_v42 = vld [vmem:[%s14271_s0 + $0x550] sm:$0xff] }
 0x26b   :  { %2997 = vmatprep.subr.bf16.mxu0 %v14286_v0  ;;  %v227_v43 = vld [vmem:[%s14271_s0 + $0x570] sm:$0xff] }
 0x26c   :  { %v8434_v45 = vcombine.high %v223_v42, %v227_v43 }
 0x26e   :  { %2998 = vmatpush1.bf16.msra.mxu0 %v10260_v48  ;;  %v8433_v48 = vcombine.low %v223_v42, %v227_v43  ;;  %v64_v43 = vld [vmem:[%s14271_s0 + $0x58] sm:$0xff] }
 0x26f   :  { %2999 = vmatprep.subr.bf16.mxu0 %v14286_v0 }
 0x271   :  { %2767 = vmatmul.mubr.bf16.gmra.mrb[24].mxu0 %v8313_v46  ;;  %v231_v46 = vld [vmem:[%s14271_s0 + $0x590] sm:$0xff] }
 0x272   :  { %2774 = vmatprep.mubr.bf16.mxu0 %v8322_v47  ;;  %3000 = vmatpush1.bf16.msra.mxu0 %v10261_v57  ;;  %v235_v47 = vld [vmem:[%s14271_s0 + $0x5b0] sm:$0xff] }
 0x273   :  { %3001 = vmatprep.subr.bf16.mxu0 %v14286_v0  ;;  %v8442_v49 = vcombine.high %v231_v46, %v235_v47 }
 0x276   :  { %3002 = vmatpush1.bf16.msra.mxu0 %v10262_v3 }
 0x277   :  { %3003 = vmatprep.subr.bf16.mxu0 %v14286_v0 }
 0x279   :  { %2775 = vmatmul.mubr.bf16.gmra.mrb[28].mxu0 %v8321_v51  ;;  %v243_v51 = vld [vmem:[%s14271_s0 + $0x5f0] sm:$0xff] }
 0x27a   :  { %2782 = vmatprep.mubr.bf16.mxu0 %v8330_v52  ;;  %3004 = vmatpush1.bf16.msra.mxu0 %v10263_v12  ;;  %v8441_v52 = vcombine.low %v231_v46, %v235_v47  ;;  %v8450_v53 = vcombine.high %v239_v50, %v243_v51  ;;  %v8449_v58 = vcombine.low %v239_v50, %v243_v51  ;;  %v72_v47 = vld [vmem:[%s14271_s0 + $0x98] sm:$0xff] }
 0x27b   :  { %3005 = vmatprep.subr.bf16.mxu0 %v14286_v0  ;;  %v80_v51 = vld [vmem:[%s14271_s0 + $0xd8] sm:$0xff] }
 0x27e   :  { %3006 = vmatpush1.bf16.msra.mxu0 %v10264_v21 }
 0x281   :  { %2783 = vmatmul.mubr.bf16.gmra.mrb[32].mxu0 %v8329_v55  ;;  %v251_v55 = vld [vmem:[%s14271_s0 + $0x630] sm:$0xff] }
 0x282   :  { %2790 = vmatprep.mubr.bf16.mxu0 %v8338_v56  ;;  %v8457_v3 = vcombine.low %v247_v54, %v251_v55 }
 0x289   :  { %2791 = vmatmul.mubr.bf16.gmra.mrb[36].mxu0 %v8337_v60  ;;  %v8458_v60 = vcombine.high %v247_v54, %v251_v55  ;;  %v88_v55 = vld [vmem:[%s14271_s0 + $0x118] sm:$0xff] }
 0x28a   :  { %2798 = vmatprep.mubr.bf16.mxu0 %v8346_v61 }
 0x291   :  { %2799 = vmatmul.mubr.bf16.gmra.mrb[40].mxu0 %v8345_v1 }
 0x292   :  { %2806 = vmatprep.mubr.bf16.mxu0 %v8354_v2 }
 0x299   :  { %2807 = vmatmul.mubr.bf16.gmra.mrb[44].mxu0 %v8353_v6 }
 0x29a   :  { %2814 = vmatprep.mubr.bf16.mxu0 %v8362_v7  ;;  %v263_v7 = vld [vmem:[%s14271_s0 + $0x690] sm:$0xff] }
 0x29b   :  { %v8474_v13 = vcombine.high %v263_v7, %v267_v8 }
 0x2a1   :  { %2815 = vmatmul.mubr.bf16.gmra.mrb[48].mxu0 %v8361_v10 }
 0x2a2   :  { %2822 = vmatprep.mubr.bf16.mxu0 %v8370_v11  ;;  %v8465_v11 = vcombine.low %v255_v62, %v259_v63  ;;  %v104_v63 = vld [vmem:[%s14271_s0 + $0x198] sm:$0xff] }
 0x2a9   :  { %2823 = vmatmul.mubr.bf16.gmra.mrb[52].mxu0 %v8369_v15  ;;  %v271_v15 = vld [vmem:[%s14271_s0 + $0x6d0] sm:$0xff] }
 0x2aa   :  { %2830 = vmatprep.mubr.bf16.mxu0 %v8378_v16  ;;  %v275_v16 = vld [vmem:[%s14271_s0 + $0x6f0] sm:$0xff] }
 0x2ab   :  { %v8482_v21 = vcombine.high %v271_v15, %v275_v16 }
 0x2b1   :  { %2831 = vmatmul.mubr.bf16.gmra.mrb[56].mxu0 %v8377_v19  ;;  %v8473_v19 = vcombine.low %v263_v7, %v267_v8  ;;  %v120_v8 = vld [vmem:[%s14271_s0 + $0x218] sm:$0xff] }
 0x2b2   :  { %2838 = vmatprep.mubr.bf16.mxu0 %v8386_v20 }
 0x2b9   :  { %2839 = vmatmul.mubr.bf16.gmra.mrb[60].mxu0 %v8385_v24  ;;  %v283_v24 = vld [vmem:[%s14271_s0 + $0x730] sm:$0xff] }
 0x2ba   :  { %2846 = vmatprep.mubr.bf16.mxu0 %v8394_v25  ;;  %v8481_v25 = vcombine.low %v271_v15, %v275_v16  ;;  %v8490_v26 = vcombine.high %v279_v23, %v283_v24  ;;  %v136_v16 = vld [vmem:[%s14271_s0 + $0x298] sm:$0xff] }
 0x2c1   :  { %2847 = vmatmul.mubr.bf16.gmra.mrb[64].mxu0 %v8393_v28  ;;  %v291_v28 = vld [vmem:[%s14271_s0 + $0x770] sm:$0xff] }
 0x2c2   :  { %2854 = vmatprep.mubr.bf16.mxu0 %v8402_v29  ;;  %v8489_v29 = vcombine.low %v279_v23, %v283_v24  ;;  %v8498_v30 = vcombine.high %v287_v27, %v291_v28  ;;  %v152_v24 = vld [vmem:[%s14271_s0 + $0x318] sm:$0xff] }
 0x2c9   :  { %2855 = vmatmul.mubr.bf16.gmra.mrb[68].mxu0 %v8401_v32  ;;  %v299_v32 = vld [vmem:[%s14271_s0 + $0x7b0] sm:$0xff] }
 0x2ca   :  { %2862 = vmatprep.mubr.bf16.mxu0 %v8410_v33  ;;  %v8497_v33 = vcombine.low %v287_v27, %v291_v28  ;;  %v8506_v34 = vcombine.high %v295_v31, %v299_v32  ;;  %v160_v28 = vld [vmem:[%s14271_s0 + $0x358] sm:$0xff] }
 0x2d1   :  { %2863 = vmatmul.mubr.bf16.gmra.mrb[72].mxu0 %v8409_v36  ;;  %v307_v36 = vld [vmem:[%s14271_s0 + $0x7f0] sm:$0xff] }
 0x2d2   :  { %2870 = vmatprep.mubr.bf16.mxu0 %v8418_v37  ;;  %v8505_v37 = vcombine.low %v295_v31, %v299_v32  ;;  %v8514_v38 = vcombine.high %v303_v35, %v307_v36  ;;  %v14287_v32 = vmov 0.0  }
 0x2d3   :  { %9321 = vmatprep.subr.bf16.mxu1 %v14287_v32  ;;  %9337 = vmatprep.mubr.msk.bf16.mxu1 %vm10873_vm0, %v14287_v32 }
 0x2d9   :  { %2871 = vmatmul.mubr.bf16.gmra.mrb[76].mxu0 %v8417_v40  ;;  %v60_v40 = vld [vmem:[%s14271_s0 + $0x38] sm:$0xff] }
 0x2da   :  { %2878 = vmatprep.mubr.bf16.mxu0 %v8426_v41  ;;  %v8513_v41 = vcombine.low %v303_v35, %v307_v36  ;;  %v8268_v42 = vcombine.high %v56_v39, %v60_v40  ;;  %v168_v35 = vld [vmem:[%s14271_s0 + $0x398] sm:$0xff] }
 0x2db   :  { %v172_v36 = vld [vmem:[%s14271_s0 + $0x3b8] sm:$0xff] }
 0x2e1   :  { %2879 = vmatmul.mubr.bf16.gmra.mrb[80].mxu0 %v8425_v44  ;;  %v68_v44 = vld [vmem:[%s14271_s0 + $0x78] sm:$0xff] }
 0x2e2   :  { %2886 = vmatprep.mubr.bf16.mxu0 %v8434_v45  ;;  %v8267_v45 = vcombine.low %v56_v39, %v60_v40  ;;  %v8276_v46 = vcombine.high %v64_v43, %v68_v44  ;;  %v8380_v39 = vcombine.high %v168_v35, %v172_v36  ;;  %v10268_v40 = vld [vmem:[%s14272_s3 + $0x58] sm:$0xff]  }
 0x2e9   :  { %2887 = vmatmul.mubr.bf16.gmra.mrb[84].mxu0 %v8433_v48  ;;  %v76_v48 = vld [vmem:[%s14271_s0 + $0xb8] sm:$0xff] }
 0x2ea   :  { %2894 = vmatprep.mubr.bf16.mxu0 %v8442_v49  ;;  %v8275_v49 = vcombine.low %v64_v43, %v68_v44  ;;  %v8284_v50 = vcombine.high %v72_v47, %v76_v48  ;;  %v10269_v43 = vld [vmem:[%s14272_s3 + $0x60] sm:$0xff]   ;;  %v8379_v44 = vcombine.low %v168_v35, %v172_v36  ;;  %v264_v35 = vld [vmem:[%s14271_s0 + $0x698] sm:$0xff] }
 0x2eb   :  { %v268_v36 = vld [vmem:[%s14271_s0 + $0x6b8] sm:$0xff] }
 0x2f1   :  { %2895 = vmatmul.mubr.bf16.gmra.mrb[88].mxu0 %v8441_v52  ;;  %v84_v52 = vld [vmem:[%s14271_s0 + $0xf8] sm:$0xff] }
 0x2f2   :  { %2902 = vmatprep.mubr.bf16.mxu0 %v8450_v53  ;;  %v8283_v53 = vcombine.low %v72_v47, %v76_v48  ;;  %v8292_v54 = vcombine.high %v80_v51, %v84_v52  ;;  %v184_v47 = vld [vmem:[%s14271_s0 + $0x418] sm:$0xff] }
 0x2f3   :  { %v188_v48 = vld [vmem:[%s14271_s0 + $0x438] sm:$0xff] }
 0x2f4   :  { %v2655_v56 = vpop.f32.mrb[128].mxu0 }
 0x2f5   :  { %v2657_v57 = vpop.f32.mrb[129].mxu0  ;;  %v92_v56 = vld [vmem:[%s14271_s0 + $0x138] sm:$0xff] }
 0x2f6   :  { %v2658_v59 = vpop.f32.mrb[130].mxu0  ;;  %v8291_v57 = vcombine.low %v80_v51, %v84_v52  ;;  %v8396_v51 = vcombine.high %v184_v47, %v188_v48  ;;  %v10272_v52 = vld [vmem:[%s14272_s3 + $0x78] sm:$0xff]  }
 0x2f7   :  { %v2660_v61 = vpop.f32.mrb[131].mxu0  ;;  %v96_v59 = vld [vmem:[%s14271_s0 + $0x158] sm:$0xff] }
 0x2f8   :  { %v8299_v61 = vcombine.low %v88_v55, %v92_v56 }
 0x2f9   :  { %2903 = vmatmul.mubr.bf16.gmra.mrb[92].mxu0 %v8449_v58  ;;  %v8300_v58 = vcombine.high %v88_v55, %v92_v56  ;;  %v8395_v55 = vcombine.low %v184_v47, %v188_v48  ;;  %v8475_v47 = vcombine.low %v264_v35, %v268_v36 }
 0x2fa   :  { %2910 = vmatprep.mubr.bf16.mxu0 %v8458_v60  ;;  %v100_v60 = vld [vmem:[%s14271_s0 + $0x178] sm:$0xff] }
 0x2fb   :  { %v8308_v62 = vcombine.high %v96_v59, %v100_v60 }
 0x2fc   :  { %v2663_v1 = vpop.f32.mrb[132].mxu0 }
 0x2fd   :  { %v2665_v2 = vpop.f32.mrb[133].mxu0  ;;  %v108_v1 = vld [vmem:[%s14271_s0 + $0x1b8] sm:$0xff] }
 0x2fe   :  { %v2666_v4 = vpop.f32.mrb[134].mxu0  ;;  %v8307_v2 = vcombine.low %v96_v59, %v100_v60 }
 0x2ff   :  { %v2668_v6 = vpop.f32.mrb[135].mxu0  ;;  %v112_v4 = vld [vmem:[%s14271_s0 + $0x1d8] sm:$0xff] }
 0x300   :  { %v8315_v6 = vcombine.low %v104_v63, %v108_v1 }
 0x301   :  { %2911 = vmatmul.mubr.bf16.gmra.mrb[96].mxu0 %v8457_v3  ;;  %v8316_v3 = vcombine.high %v104_v63, %v108_v1 }
 0x302   :  { %2918 = vmatprep.mubr.bf16.mxu0 %v8466_v5  ;;  %v116_v5 = vld [vmem:[%s14271_s0 + $0x1f8] sm:$0xff] }
 0x303   :  { %v8324_v7 = vcombine.high %v112_v4, %v116_v5 }
 0x304   :  { %v2671_v9 = vpop.f32.mrb[136].mxu0 }
 0x305   :  { %v2673_v10 = vpop.f32.mrb[137].mxu0  ;;  %v124_v9 = vld [vmem:[%s14271_s0 + $0x238] sm:$0xff] }
 0x306   :  { %v2674_v12 = vpop.f32.mrb[138].mxu0  ;;  %v8323_v10 = vcombine.low %v112_v4, %v116_v5 }
 0x307   :  { %v2676_v14 = vpop.f32.mrb[139].mxu0  ;;  %v128_v12 = vld [vmem:[%s14271_s0 + $0x258] sm:$0xff] }
 0x308   :  { %v8331_v14 = vcombine.low %v120_v8, %v124_v9 }
 0x309   :  { %2919 = vmatmul.mubr.bf16.gmra.mrb[100].mxu0 %v8465_v11  ;;  %v8332_v11 = vcombine.high %v120_v8, %v124_v9 }
 0x30a   :  { %2926 = vmatprep.mubr.bf16.mxu0 %v8474_v13  ;;  %v132_v13 = vld [vmem:[%s14271_s0 + $0x278] sm:$0xff] }
 0x30b   :  { %v8340_v15 = vcombine.high %v128_v12, %v132_v13 }
 0x30c   :  { %v2679_v17 = vpop.f32.mrb[140].mxu0 }
 0x30d   :  { %v2681_v18 = vpop.f32.mrb[141].mxu0  ;;  %v140_v17 = vld [vmem:[%s14271_s0 + $0x2b8] sm:$0xff] }
 0x30e   :  { %v2682_v20 = vpop.f32.mrb[142].mxu0  ;;  %v8339_v18 = vcombine.low %v128_v12, %v132_v13 }
 0x30f   :  { %v2684_v22 = vpop.f32.mrb[143].mxu0  ;;  %v144_v20 = vld [vmem:[%s14271_s0 + $0x2d8] sm:$0xff] }
 0x310   :  { %v8347_v22 = vcombine.low %v136_v16, %v140_v17 }
 0x311   :  { %2927 = vmatmul.mubr.bf16.gmra.mrb[104].mxu0 %v8473_v19  ;;  %v8348_v19 = vcombine.high %v136_v16, %v140_v17 }
 0x312   :  { %2934 = vmatprep.mubr.bf16.mxu0 %v8482_v21  ;;  %v148_v21 = vld [vmem:[%s14271_s0 + $0x2f8] sm:$0xff] }
 0x313   :  { %v8356_v23 = vcombine.high %v144_v20, %v148_v21 }
 0x319   :  { %2935 = vmatmul.mubr.bf16.gmra.mrb[108].mxu0 %v8481_v25  ;;  %v156_v25 = vld [vmem:[%s14271_s0 + $0x338] sm:$0xff] }
 0x31a   :  { %2942 = vmatprep.mubr.bf16.mxu0 %v8490_v26  ;;  %v8355_v26 = vcombine.low %v144_v20, %v148_v21  ;;  %v8364_v27 = vcombine.high %v152_v24, %v156_v25  ;;  %v8363_v31 = vcombine.low %v152_v24, %v156_v25 }
 0x321   :  { %2943 = vmatmul.mubr.bf16.gmra.mrb[144].mxu0 %v8489_v29  ;;  %v164_v29 = vld [vmem:[%s14271_s0 + $0x378] sm:$0xff] }
 0x322   :  { %2950 = vmatprep.mubr.bf16.mxu0 %v8498_v30  ;;  %v10265_v30 = vld [vmem:[%s14272_s3 + $0x40] sm:$0xff]  }
 0x323   :  { %9322 = vmatpush3.bf16.msra.mxu1 %v10265_v30 }
 0x324   :  { %9323 = vmatprep.subr.bf16.mxu1 %v14287_v32 }
 0x329   :  { %2951 = vmatmul.mubr.bf16.gmra.mrb[148].mxu0 %v8497_v33  ;;  %v8372_v33 = vcombine.high %v160_v28, %v164_v29 }
 0x32a   :  { %2958 = vmatprep.mubr.bf16.mxu0 %v8506_v34  ;;  %v10266_v34 = vld [vmem:[%s14272_s3 + $0x48] sm:$0xff]  }
 0x32b   :  { %9324 = vmatpush3.bf16.msra.mxu1 %v10266_v34 }
 0x32c   :  { %9325 = vmatprep.subr.bf16.mxu1 %v14287_v32 }
 0x331   :  { %2959 = vmatmul.mubr.bf16.gmra.mrb[152].mxu0 %v8505_v37  ;;  %v10267_v37 = vld [vmem:[%s14272_s3 + $0x50] sm:$0xff]  }
 0x332   :  { %2966 = vmatprep.mubr.bf16.mxu0 %v8514_v38  ;;  %v8371_v38 = vcombine.low %v160_v28, %v164_v29  ;;  %9326 = vmatpush3.bf16.msra.mxu1 %v10267_v37 }
 0x333   :  { %9327 = vmatprep.subr.bf16.mxu1 %v14287_v32 }
 0x336   :  { %9328 = vmatpush3.bf16.msra.mxu1 %v10268_v40 }
 0x337   :  { %9329 = vmatprep.subr.bf16.mxu1 %v14287_v32 }
 0x339   :  { %2967 = vmatmul.mubr.bf16.gmra.mrb[156].mxu0 %v8513_v41  ;;  %v176_v41 = vld [vmem:[%s14271_s0 + $0x3d8] sm:$0xff] }
 0x33a   :  { %3007 = vmatprep.mubr.bf16.mxu0 %v8268_v42  ;;  %v180_v42 = vld [vmem:[%s14271_s0 + $0x3f8] sm:$0xff]  ;;  %9330 = vmatpush3.bf16.msra.mxu1 %v10269_v43 }
 0x33b   :  { %9331 = vmatprep.subr.bf16.mxu1 %v14287_v32  ;;  %v272_v43 = vld [vmem:[%s14271_s0 + $0x6d8] sm:$0xff] }
 0x341   :  { %3008 = vmatmul.mubr.bf16.vlgmr.msra.gmra.mrb[0].mxu0 %v8267_v45  ;;  %v8388_v45 = vcombine.high %v176_v41, %v180_v42 }
 0x342   :  { %3015 = vmatprep.mubr.bf16.mxu0 %v8276_v46  ;;  %v10270_v46 = vld [vmem:[%s14272_s3 + $0x68] sm:$0xff]  }
 0x343   :  { %9332 = vmatpush3.bf16.msra.mxu1 %v10270_v46 }
 0x344   :  { %9333 = vmatprep.subr.bf16.mxu1 %v14287_v32 }
 0x349   :  { %3016 = vmatmul.mubr.bf16.gmra.mrb[4].mxu0 %v8275_v49  ;;  %v10271_v49 = vld [vmem:[%s14272_s3 + $0x70] sm:$0xff]  }
 0x34a   :  { %3023 = vmatprep.mubr.bf16.mxu0 %v8284_v50  ;;  %v8387_v50 = vcombine.low %v176_v41, %v180_v42  ;;  %9334 = vmatpush3.bf16.msra.mxu1 %v10271_v49  ;;  %v8476_v41 = vcombine.high %v264_v35, %v268_v36 }
 0x34b   :  { %9335 = vmatprep.subr.bf16.mxu1 %v14287_v32 }
 0x34e   :  { %9336 = vmatpush3.bf16.msra.mxu1 %v10272_v52 }
 0x34f   :  { %9429 = vmatprep.subr.bf16.mxu1 %v14287_v32 }
 0x351   :  { %3024 = vmatmul.mubr.bf16.gmra.mrb[8].mxu0 %v8283_v53  ;;  %v192_v53 = vld [vmem:[%s14271_s0 + $0x458] sm:$0xff] }
 0x352   :  { %3031 = vmatprep.mubr.bf16.mxu0 %v8292_v54  ;;  %v196_v54 = vld [vmem:[%s14271_s0 + $0x478] sm:$0xff] }
 0x353   :  { %v8404_v56 = vcombine.high %v192_v53, %v196_v54  ;;  %v8403_v59 = vcombine.low %v192_v53, %v196_v54 }
 0x359   :  { %3032 = vmatmul.mubr.bf16.gmra.mrb[12].mxu0 %v8291_v57  ;;  %v200_v57 = vld [vmem:[%s14271_s0 + $0x498] sm:$0xff] }
 0x35a   :  { %3039 = vmatprep.mubr.bf16.mxu0 %v8300_v58  ;;  %v204_v58 = vld [vmem:[%s14271_s0 + $0x4b8] sm:$0xff] }
 0x35b   :  { %v8412_v60 = vcombine.high %v200_v57, %v204_v58  ;;  %v8411_v63 = vcombine.low %v200_v57, %v204_v58 }
 0x361   :  { %3040 = vmatmul.mubr.bf16.gmra.mrb[16].mxu0 %v8299_v61  ;;  %v208_v61 = vld [vmem:[%s14271_s0 + $0x4d8] sm:$0xff] }
 0x362   :  { %3047 = vmatprep.mubr.bf16.mxu0 %v8308_v62  ;;  %v212_v62 = vld [vmem:[%s14271_s0 + $0x4f8] sm:$0xff] }
 0x363   :  { %v8420_v1 = vcombine.high %v208_v61, %v212_v62  ;;  %v8419_v4 = vcombine.low %v208_v61, %v212_v62 }
 0x369   :  { %3048 = vmatmul.mubr.bf16.gmra.mrb[20].mxu0 %v8307_v2  ;;  %v216_v2 = vld [vmem:[%s14271_s0 + $0x518] sm:$0xff] }
 0x36a   :  { %3055 = vmatprep.mubr.bf16.mxu0 %v8316_v3  ;;  %v220_v3 = vld [vmem:[%s14271_s0 + $0x538] sm:$0xff] }
 0x36b   :  { %v8428_v5 = vcombine.high %v216_v2, %v220_v3  ;;  %v8427_v8 = vcombine.low %v216_v2, %v220_v3 }
 0x371   :  { %3056 = vmatmul.mubr.bf16.gmra.mrb[24].mxu0 %v8315_v6  ;;  %v224_v6 = vld [vmem:[%s14271_s0 + $0x558] sm:$0xff] }
 0x372   :  { %3063 = vmatprep.mubr.bf16.mxu0 %v8324_v7  ;;  %v228_v7 = vld [vmem:[%s14271_s0 + $0x578] sm:$0xff] }
 0x373   :  { %v8436_v9 = vcombine.high %v224_v6, %v228_v7  ;;  %v8435_v12 = vcombine.low %v224_v6, %v228_v7 }
 0x379   :  { %3064 = vmatmul.mubr.bf16.gmra.mrb[28].mxu0 %v8323_v10  ;;  %v232_v10 = vld [vmem:[%s14271_s0 + $0x598] sm:$0xff] }
 0x37a   :  { %3071 = vmatprep.mubr.bf16.mxu0 %v8332_v11  ;;  %v236_v11 = vld [vmem:[%s14271_s0 + $0x5b8] sm:$0xff] }
 0x37b   :  { %v8444_v13 = vcombine.high %v232_v10, %v236_v11  ;;  %v8443_v16 = vcombine.low %v232_v10, %v236_v11 }
 0x381   :  { %3072 = vmatmul.mubr.bf16.gmra.mrb[32].mxu0 %v8331_v14  ;;  %v240_v14 = vld [vmem:[%s14271_s0 + $0x5d8] sm:$0xff] }
 0x382   :  { %3079 = vmatprep.mubr.bf16.mxu0 %v8340_v15  ;;  %v244_v15 = vld [vmem:[%s14271_s0 + $0x5f8] sm:$0xff] }
 0x383   :  { %v8452_v17 = vcombine.high %v240_v14, %v244_v15 }
 0x389   :  { %3080 = vmatmul.mubr.bf16.gmra.mrb[36].mxu0 %v8339_v18  ;;  %v248_v18 = vld [vmem:[%s14271_s0 + $0x618] sm:$0xff] }
 0x38a   :  { %3087 = vmatprep.mubr.bf16.mxu0 %v8348_v19  ;;  %v252_v19 = vld [vmem:[%s14271_s0 + $0x638] sm:$0xff] }
 0x38b   :  { %v8460_v24 = vcombine.high %v248_v18, %v252_v19  ;;  %v8459_v30 = vcombine.low %v248_v18, %v252_v19 }
 0x391   :  { %3088 = vmatmul.mubr.bf16.gmra.mrb[40].mxu0 %v8347_v22  ;;  %v8451_v22 = vcombine.low %v240_v14, %v244_v15 }
 0x392   :  { %3095 = vmatprep.mubr.bf16.mxu0 %v8356_v23 }
 0x399   :  { %3096 = vmatmul.mubr.bf16.gmra.mrb[44].mxu0 %v8355_v26  ;;  %v256_v26 = vld [vmem:[%s14271_s0 + $0x658] sm:$0xff] }
 0x39a   :  { %3103 = vmatprep.mubr.bf16.mxu0 %v8364_v27  ;;  %v260_v27 = vld [vmem:[%s14271_s0 + $0x678] sm:$0xff] }
 0x3a1   :  { %3104 = vmatmul.mubr.bf16.gmra.mrb[48].mxu0 %v8363_v31 }
 0x3a2   :  { %3111 = vmatprep.mubr.bf16.mxu0 %v8372_v33  ;;  %v8468_v33 = vcombine.high %v256_v26, %v260_v27 }
 0x3a9   :  { %3112 = vmatmul.mubr.bf16.gmra.mrb[52].mxu0 %v8371_v38 }
 0x3aa   :  { %3119 = vmatprep.mubr.bf16.mxu0 %v8380_v39  ;;  %v8467_v39 = vcombine.low %v256_v26, %v260_v27 }
 0x3b1   :  { %3120 = vmatmul.mubr.bf16.gmra.mrb[56].mxu0 %v8379_v44  ;;  %v276_v44 = vld [vmem:[%s14271_s0 + $0x6f8] sm:$0xff] }
 0x3b2   :  { %3127 = vmatprep.mubr.bf16.mxu0 %v8388_v45  ;;  %v8484_v49 = vcombine.high %v272_v43, %v276_v44 }
 0x3b9   :  { %3128 = vmatmul.mubr.bf16.gmra.mrb[60].mxu0 %v8387_v50 }
 0x3ba   :  { %3135 = vmatprep.mubr.bf16.mxu0 %v8396_v51  ;;  %v11997_v51 = vld [vmem:[%s14273_s2] ss:$0 sm:$0xff] }
 0x3c1   :  { %3136 = vmatmul.mubr.bf16.gmra.mrb[64].mxu0 %v8395_v55  ;;  %v8483_v55 = vcombine.low %v272_v43, %v276_v44 }
 0x3c2   :  { %3143 = vmatprep.mubr.bf16.mxu0 %v8404_v56 }
 0x3c9   :  { %3144 = vmatmul.mubr.bf16.gmra.mrb[68].mxu0 %v8403_v59 }
 0x3ca   :  { %3151 = vmatprep.mubr.bf16.mxu0 %v8412_v60 }
 0x3d1   :  { %3152 = vmatmul.mubr.bf16.gmra.mrb[72].mxu0 %v8411_v63 }
 0x3d2   :  { %3159 = vmatprep.mubr.bf16.mxu0 %v8420_v1 }
 0x3d9   :  { %3160 = vmatmul.mubr.bf16.gmra.mrb[76].mxu0 %v8419_v4 }
 0x3da   :  { %3167 = vmatprep.mubr.bf16.mxu0 %v8428_v5 }
 0x3e1   :  { %3168 = vmatmul.mubr.bf16.gmra.mrb[80].mxu0 %v8427_v8 }
 0x3e2   :  { %3175 = vmatprep.mubr.bf16.mxu0 %v8436_v9 }
 0x3e9   :  { %3176 = vmatmul.mubr.bf16.gmra.mrb[84].mxu0 %v8435_v12 }
 0x3ea   :  { %3183 = vmatprep.mubr.bf16.mxu0 %v8444_v13 }
 0x3f1   :  { %3184 = vmatmul.mubr.bf16.gmra.mrb[88].mxu0 %v8443_v16 }
 0x3f2   :  { %3191 = vmatprep.mubr.bf16.mxu0 %v8452_v17 }
 0x3f4   :  { %v2944_v20 = vpop.f32.mrb[144].mxu0 }
 0x3f5   :  { %v2946_v21 = vpop.f32.mrb[145].mxu0 }
 0x3f6   :  { %v2947_v23 = vpop.f32.mrb[146].mxu0 }
 0x3f7   :  { %v2949_v25 = vpop.f32.mrb[147].mxu0 }
 0x3f9   :  { %3192 = vmatmul.mubr.bf16.gmra.mrb[92].mxu0 %v8451_v22 }
 0x3fa   :  { %3199 = vmatprep.mubr.bf16.mxu0 %v8460_v24 }
 0x3fc   :  { %v2952_v28 = vpop.f32.mrb[148].mxu0 }
 0x3fd   :  { %v2954_v29 = vpop.f32.mrb[149].mxu0 }
 0x3fe   :  { %v2955_v31 = vpop.f32.mrb[150].mxu0 }
 0x3ff   :  { %v2957_v34 = vpop.f32.mrb[151].mxu0 }
 0x401   :  { %3200 = vmatmul.mubr.bf16.gmra.mrb[96].mxu0 %v8459_v30 }
 0x402   :  { %3207 = vmatprep.mubr.bf16.mxu0 %v8468_v33 }
 0x404   :  { %v2960_v37 = vpop.f32.mrb[152].mxu0 }
 0x405   :  { %v2962_v38 = vpop.f32.mrb[153].mxu0 }
 0x406   :  { %v2963_v40 = vpop.f32.mrb[154].mxu0 }
 0x407   :  { %v2965_v42 = vpop.f32.mrb[155].mxu0 }
 0x409   :  { %3208 = vmatmul.mubr.bf16.gmra.mrb[100].mxu0 %v8467_v39 }
 0x40a   :  { %3215 = vmatprep.mubr.bf16.mxu0 %v8476_v41 }
 0x40c   :  { %v2968_v45 = vpop.f32.mrb[156].mxu0 }
 0x40d   :  { %v2970_v46 = vpop.f32.mrb[157].mxu0 }
 0x40e   :  { %v2971_v48 = vpop.f32.mrb[158].mxu0 }
 0x40f   :  { %v2973_v50 = vpop.f32.mrb[159].mxu0 }
 0x411   :  { %3216 = vmatmul.mubr.bf16.gmra.mrb[104].mxu0 %v8475_v47 }
 0x412   :  { %3223 = vmatprep.mubr.bf16.mxu0 %v8484_v49 }
 0x414   :  { %v3009_v52 = vpop.f32.mrb[0].mxu0 }
 0x415   :  { %v9797_v53 = vadd.f32 %v11997_v51, %v3009_v52  ;;  %v3011_v54 = vpop.f32.mrb[1].mxu0  ;;  %v10273_v52 = vld [vmem:[%s14272_s3] sm:$0xff]  }
 0x416   :  { %v3012_v56 = vpop.f32.mrb[2].mxu0 }
 0x417   :  { %v8581_v57 = vmul.f32 -1.442695, %v9797_v53  ;;  %v9798_v58 = vadd.f32 %v11997_v51, %v3012_v56  ;;  %v3014_v59 = vpop.f32.mrb[3].mxu0 }
 0x419   :  { %10409 = vpow2.f32 %v8581_v57  ;;  %v8582_v60 = vmul.f32 -1.442695, %v9798_v58  ;;  %3224 = vmatmul.mubr.bf16.gmra.mrb[108].mxu0 %v8483_v55 }
 0x41b   :  { %10411 = vpow2.f32 %v8582_v60 }
 0x41c   :  { %v3017_v61 = vpop.f32.mrb[4].mxu0 }
 0x41d   :  { %v9799_v62 = vadd.f32 %v11997_v51, %v3017_v61  ;;  %v3019_v63 = vpop.f32.mrb[5].mxu0 }
 0x41e   :  { %v3020_v1 = vpop.f32.mrb[6].mxu0 }
 0x41f   :  { %v8583_v2 = vmul.f32 -1.442695, %v9799_v62  ;;  %v9800_v3 = vadd.f32 %v11997_v51, %v3020_v1  ;;  %v3022_v4 = vpop.f32.mrb[7].mxu0  ;;  %v10274_v1 = vld [vmem:[%s14272_s3 + $0x8] sm:$0xff]  }
 0x421   :  { %10413 = vpow2.f32 %v8583_v2  ;;  %v8584_v5 = vmul.f32 -1.442695, %v9800_v3 }
 0x423   :  { %v10410_v6 = vpop.eup %10409  ;;  %10415 = vpow2.f32 %v8584_v5 }
 0x424   :  { %v3456_v7 = vadd.f32 1.0, %v10410_v6  ;;  %v3025_v8 = vpop.f32.mrb[8].mxu0 }
 0x425   :  { %v10412_v9 = vpop.eup %10411  ;;  %v12004_v10 = vadd.f32 %v11997_v51, %v3025_v8  ;;  %v3027_v11 = vpop.f32.mrb[9].mxu0 }
 0x426   :  { %10417 = vrcp.f32 %v3456_v7  ;;  %v3457_v12 = vadd.f32 1.0, %v10412_v9  ;;  %v3028_v13 = vpop.f32.mrb[10].mxu0  ;;  %v10275_v9 = vld [vmem:[%s14272_s3 + $0x10] sm:$0xff]  }
 0x427   :  { %v8585_v14 = vmul.f32 -1.442695, %v12004_v10  ;;  %v12008_v15 = vadd.f32 %v11997_v51, %v3028_v13  ;;  %v3030_v16 = vpop.f32.mrb[11].mxu0 }
 0x428   :  { %10419 = vrcp.f32 %v3457_v12 }
 0x429   :  { %10421 = vpow2.f32 %v8585_v14  ;;  %v8586_v17 = vmul.f32 -1.442695, %v12008_v15 }
 0x42b   :  { %v10414_v18 = vpop.eup %10413  ;;  %10423 = vpow2.f32 %v8586_v17 }
 0x42c   :  { %v3458_v19 = vadd.f32 1.0, %v10414_v18  ;;  %v3033_v20 = vpop.f32.mrb[12].mxu0 }
 0x42d   :  { %v10416_v21 = vpop.eup %10415  ;;  %v12012_v22 = vadd.f32 %v11997_v51, %v3033_v20  ;;  %v3035_v23 = vpop.f32.mrb[13].mxu0 }
 0x42e   :  { %10425 = vrcp.f32 %v3458_v19  ;;  %v3459_v24 = vadd.f32 1.0, %v10416_v21  ;;  %v3036_v25 = vpop.f32.mrb[14].mxu0  ;;  %v10276_v21 = vld [vmem:[%s14272_s3 + $0x18] sm:$0xff]  }
 0x42f   :  { %v8587_v26 = vmul.f32 -1.442695, %v12012_v22  ;;  %v12016_v27 = vadd.f32 %v11997_v51, %v3036_v25  ;;  %v3038_v28 = vpop.f32.mrb[15].mxu0 }
 0x430   :  { %v10418_v29 = vpop.eup %10417  ;;  %10427 = vrcp.f32 %v3459_v24 }
 0x431   :  { %10429 = vpow2.f32 %v8587_v26  ;;  %v8588_v30 = vmul.f32 -1.442695, %v12016_v27  ;;  %v12019_v34 = vmul.f32 %v10418_v29, %v9797_v53 }
 0x432   :  { %v10420_v31 = vpop.eup %10419 }
 0x433   :  { %v10422_v33 = vpop.eup %10421  ;;  %v12021_v35 = vmul.f32 %v10420_v31, %v9798_v58  ;;  %10431 = vpow2.f32 %v8588_v30  ;;  %v10277_v31 = vld [vmem:[%s14272_s3 + $0x20] sm:$0xff]  }
 0x434   :  { %v3460_v36 = vadd.f32 1.0, %v10422_v33  ;;  %v3041_v37 = vpop.f32.mrb[16].mxu0 }
 0x435   :  { %v10424_v38 = vpop.eup %10423  ;;  %v12026_v40 = vadd.f32 %v11997_v51, %v3041_v37  ;;  %v3043_v41 = vpop.f32.mrb[17].mxu0 }
 0x436   :  { %10433 = vrcp.f32 %v3460_v36  ;;  %v3461_v42 = vadd.f32 1.0, %v10424_v38  ;;  %v3044_v43 = vpop.f32.mrb[18].mxu0 }
 0x437   :  { %v8589_v44 = vmul.f32 -1.442695, %v12026_v40  ;;  %v12030_v45 = vadd.f32 %v11997_v51, %v3044_v43  ;;  %v3046_v46 = vpop.f32.mrb[19].mxu0 }
 0x438   :  { %v10426_v47 = vpop.eup %10425  ;;  %10435 = vrcp.f32 %v3461_v42 }
 0x439   :  { %v12032_v48 = vmul.f32 %v10426_v47, %v9799_v62  ;;  %10437 = vpow2.f32 %v8589_v44  ;;  %v8590_v49 = vmul.f32 -1.442695, %v12030_v45  ;;  %v10278_v47 = vld [vmem:[%s14272_s3 + $0x28] sm:$0xff]  }
 0x43a   :  { %v10428_v50 = vpop.eup %10427 }
 0x43b   :  { %v10430_v53 = vpop.eup %10429  ;;  %v12038_v54 = vmul.f32 %v10428_v50, %v9800_v3  ;;  %10439 = vpow2.f32 %v8590_v49  ;;  %v3862_v55 = vpack.c.bf16 %v12032_v48, %v12021_v35 }
 0x43c   :  { %v3462_v56 = vadd.f32 1.0, %v10430_v53  ;;  %v3049_v57 = vpop.f32.mrb[20].mxu0 }
 0x43d   :  { %v10432_v58 = vpop.eup %10431  ;;  %v12043_v59 = vadd.f32 %v11997_v51, %v3049_v57  ;;  %v3051_v60 = vpop.f32.mrb[21].mxu0  ;;  %9338 = vmatmul.mubr.bf16.vlgmr.msra.gmra.mrb[0].mxu1 %v3862_v55 }
 0x43e   :  { %10441 = vrcp.f32 %v3462_v56  ;;  %v3463_v62 = vadd.f32 1.0, %v10432_v58  ;;  %v3052_v63 = vpop.f32.mrb[22].mxu0  ;;  %9430 = vmatpush3.bf16.msra.mxu1 %v10273_v52  ;;  %9341 = vmatprep.mubr.msk.bf16.mxu1 %vm10873_vm0, %v14287_v32 }
 0x43f   :  { %v8591_v2 = vmul.f32 -1.442695, %v12043_v59  ;;  %v12054_v3 = vadd.f32 %v11997_v51, %v3052_v63  ;;  %v3054_v4 = vpop.f32.mrb[23].mxu0  ;;  %9431 = vmatprep.subr.bf16.mxu1 %v14287_v32 }
 0x440   :  { %v10434_v5 = vpop.eup %10433  ;;  %10443 = vrcp.f32 %v3463_v62 }
 0x441   :  { %v12058_v6 = vmul.f32 %v10434_v5, %v12004_v10  ;;  %10445 = vpow2.f32 %v8591_v2  ;;  %v8592_v7 = vmul.f32 -1.442695, %v12054_v3 }
 0x442   :  { %v10436_v8 = vpop.eup %10435  ;;  %9432 = vmatpush3.bf16.msra.mxu1 %v10274_v1 }
 0x443   :  { %v10438_v11 = vpop.eup %10437  ;;  %v12065_v12 = vmul.f32 %v10436_v8, %v12008_v15  ;;  %10447 = vpow2.f32 %v8592_v7  ;;  %v3863_v13 = vpack.c.bf16 %v12058_v6, %v12038_v54  ;;  %9433 = vmatprep.subr.bf16.mxu1 %v14287_v32 }
 0x444   :  { %v3464_v10 = vadd.f32 1.0, %v10438_v11  ;;  %v3057_v14 = vpop.f32.mrb[24].mxu0 }
 0x445   :  { %v10440_v16 = vpop.eup %10439  ;;  %v12071_v17 = vadd.f32 %v11997_v51, %v3057_v14  ;;  %v3059_v18 = vpop.f32.mrb[25].mxu0  ;;  %9342 = vmatmul.mubr.bf16.gmra.mrb[4].mxu1 %v3863_v13 }
 0x446   :  { %10449 = vrcp.f32 %v3464_v10  ;;  %v3465_v15 = vadd.f32 1.0, %v10440_v16  ;;  %v3060_v20 = vpop.f32.mrb[26].mxu0  ;;  %9345 = vmatprep.mubr.msk.bf16.mxu1 %vm10873_vm0, %v14287_v32  ;;  %9434 = vmatpush3.bf16.msra.mxu1 %v10275_v9 }
 0x447   :  { %v8593_v23 = vmul.f32 -1.442695, %v12071_v17  ;;  %v12082_v24 = vadd.f32 %v11997_v51, %v3060_v20  ;;  %v3062_v25 = vpop.f32.mrb[27].mxu0  ;;  %9435 = vmatprep.subr.bf16.mxu1 %v14287_v32 }
 0x448   :  { %v10442_v26 = vpop.eup %10441  ;;  %10451 = vrcp.f32 %v3465_v15 }
 0x449   :  { %v12086_v28 = vmul.f32 %v10442_v26, %v12012_v22  ;;  %10453 = vpow2.f32 %v8593_v23  ;;  %v8594_v29 = vmul.f32 -1.442695, %v12082_v24 }
 0x44a   :  { %v10444_v30 = vpop.eup %10443  ;;  %9436 = vmatpush3.bf16.msra.mxu1 %v10276_v21 }
 0x44b   :  { %v10446_v33 = vpop.eup %10445  ;;  %v12093_v36 = vmul.f32 %v10444_v30, %v12016_v27  ;;  %10455 = vpow2.f32 %v8594_v29  ;;  %v3864_v37 = vpack.c.bf16 %v12086_v28, %v12065_v12  ;;  %9437 = vmatprep.subr.bf16.mxu1 %v14287_v32 }
 0x44c   :  { %v3466_v22 = vadd.f32 1.0, %v10446_v33  ;;  %v3065_v38 = vpop.f32.mrb[28].mxu0 }
 0x44d   :  { %v10448_v41 = vpop.eup %10447  ;;  %v12099_v42 = vadd.f32 %v11997_v51, %v3065_v38  ;;  %v3067_v43 = vpop.f32.mrb[29].mxu0  ;;  %9346 = vmatmul.mubr.bf16.gmra.mrb[8].mxu1 %v3864_v37 }
 0x44e   :  { %10457 = vrcp.f32 %v3466_v22  ;;  %v3467_v27 = vadd.f32 1.0, %v10448_v41  ;;  %v3068_v46 = vpop.f32.mrb[30].mxu0  ;;  %9349 = vmatprep.mubr.msk.bf16.mxu1 %vm10873_vm0, %v14287_v32  ;;  %9438 = vmatpush3.bf16.msra.mxu1 %v10277_v31 }
 0x44f   :  { %v8595_v49 = vmul.f32 -1.442695, %v12099_v42  ;;  %v12110_v50 = vadd.f32 %v11997_v51, %v3068_v46  ;;  %v3070_v52 = vpop.f32.mrb[31].mxu0  ;;  %9439 = vmatprep.subr.bf16.mxu1 %v14287_v32 }
 0x450   :  { %v10450_v53 = vpop.eup %10449  ;;  %10459 = vrcp.f32 %v3467_v27 }
 0x451   :  { %v3656_v55 = vmul.f32 %v10450_v53, %v12026_v40  ;;  %10461 = vpow2.f32 %v8595_v49  ;;  %v8596_v56 = vmul.f32 -1.442695, %v12110_v50  ;;  %v10279_v49 = vld [vmem:[%s14272_s3 + $0x30] sm:$0xff]  }
 0x452   :  { %v10452_v57 = vpop.eup %10451  ;;  %9440 = vmatpush3.bf16.msra.mxu1 %v10278_v47 }
 0x453   :  { %v10454_v58 = vpop.eup %10453  ;;  %v3657_v60 = vmul.f32 %v10452_v57, %v12030_v45  ;;  %10463 = vpow2.f32 %v8596_v56  ;;  %v3865_v62 = vpack.c.bf16 %v3656_v55, %v12093_v36  ;;  %9441 = vmatprep.subr.bf16.mxu1 %v14287_v32 }
 0x454   :  { %v3468_v63 = vadd.f32 1.0, %v10454_v58  ;;  %v3073_v1 = vpop.f32.mrb[32].mxu0 }
 0x455   :  { %v10456_v2 = vpop.eup %10455  ;;  %v12119_v4 = vadd.f32 %v11997_v51, %v3073_v1  ;;  %v3075_v40 = vpop.f32.mrb[33].mxu0  ;;  %9350 = vmatmul.mubr.bf16.gmra.mrb[12].mxu1 %v3865_v62  ;;  %v12121_v5 = vpack.c.bf16 %v3657_v60, %v3656_v55 }
 0x456   :  { %10465 = vrcp.f32 %v3468_v63  ;;  %v3469_v7 = vadd.f32 1.0, %v10456_v2  ;;  %v3076_v8 = vpop.f32.mrb[34].mxu0  ;;  %9353 = vmatprep.mubr.msk.bf16.mxu1 %vm10873_vm0, %v14287_v32  ;;  %9442 = vmatpush3.bf16.msra.mxu1 %v10279_v49 }
 0x457   :  { %v8597_v45 = vmul.f32 -1.442695, %v12119_v4  ;;  %v12127_v9 = vadd.f32 %v11997_v51, %v3076_v8  ;;  %v3078_v11 = vpop.f32.mrb[35].mxu0  ;;  %9443 = vmatprep.subr.bf16.mxu1 %v14287_v32 }
 0x458   :  { %v10458_v13 = vpop.eup %10457  ;;  %10467 = vrcp.f32 %v3469_v7 }
 0x459   :  { %v3658_v10 = vmul.f32 %v10458_v13, %v12043_v59  ;;  %10469 = vpow2.f32 %v8597_v45  ;;  %v8598_v14 = vmul.f32 -1.442695, %v12127_v9 }
 0x45a   :  { %v10460_v16 = vpop.eup %10459 }
 0x45b   :  { %v10462_v18 = vpop.eup %10461  ;;  %v3659_v15 = vmul.f32 %v10460_v16, %v12054_v3  ;;  %10471 = vpow2.f32 %v8598_v14  ;;  %v12132_v20 = vpack.c.bf16 %v3658_v10, %v3657_v60 }
 0x45c   :  { %v3470_v21 = vadd.f32 1.0, %v10462_v18  ;;  %v3081_v23 = vpop.f32.mrb[36].mxu0 }
 0x45d   :  { %14321 = vst [vmem:[#allocation6_spill] sm:$0xff] %v12132_v20  ;;  %v10464_v25 = vpop.eup %10463  ;;  %v12135_v26 = vadd.f32 %v11997_v51, %v3081_v23  ;;  %v3083_v29 = vpop.f32.mrb[37].mxu0  ;;  %9354 = vmatmul.mubr.bf16.gmra.mrb[16].mxu1 %v12132_v20  ;;  %v12138_v59 = vpack.c.bf16 %v3659_v15, %v3658_v10 }
 0x45e   :  { %10473 = vrcp.f32 %v3470_v21  ;;  %v3471_v30 = vadd.f32 1.0, %v10464_v25  ;;  %v3084_v31 = vpop.f32.mrb[38].mxu0  ;;  %9357 = vmatprep.mubr.msk.bf16.mxu1 %vm10873_vm0, %v14287_v32 }
 0x45f   :  { %v8599_v3 = vmul.f32 -1.442695, %v12135_v26  ;;  %v12144_v33 = vadd.f32 %v11997_v51, %v3084_v31  ;;  %v3086_v37 = vpop.f32.mrb[39].mxu0 }
 0x460   :  { %v10466_v22 = vpop.eup %10465  ;;  %10475 = vrcp.f32 %v3471_v30  ;;  %v10280_v30 = vld [vmem:[%s14272_s3 + $0x38] sm:$0xff]  }
 0x461   :  { %v3660_v38 = vmul.f32 %v10466_v22, %v12071_v17  ;;  %10477 = vpow2.f32 %v8599_v3  ;;  %v8600_v41 = vmul.f32 -1.442695, %v12144_v33  ;;  %9444 = vmatpush3.bf16.msra.mxu1 %v10280_v30 }
 0x462   :  { %v10468_v43 = vpop.eup %10467  ;;  %9537 = vmatprep.subr.bf16.mxu1 %v14287_v32 }
 0x463   :  { %v10470_v27 = vpop.eup %10469  ;;  %v3661_v46 = vmul.f32 %v10468_v43, %v12082_v24  ;;  %10479 = vpow2.f32 %v8600_v41  ;;  %v12149_v47 = vpack.c.bf16 %v3660_v38, %v3659_v15 }
 0x464   :  { %v3472_v52 = vadd.f32 1.0, %v10470_v27  ;;  %v3089_v53 = vpop.f32.mrb[40].mxu0 }
 0x465   :  { %14322 = vst [vmem:[#allocation7_spill] sm:$0xff] %v12149_v47  ;;  %v10472_v55 = vpop.eup %10471  ;;  %v12155_v56 = vadd.f32 %v11997_v51, %v3089_v53  ;;  %v3091_v17 = vpop.f32.mrb[41].mxu0  ;;  %9358 = vmatmul.mubr.bf16.gmra.mrb[20].mxu1 %v12149_v47  ;;  %v12158_v57 = vpack.c.bf16 %v3661_v46, %v3660_v38 }
 0x466   :  { %10481 = vrcp.f32 %v3472_v52  ;;  %v3473_v24 = vadd.f32 1.0, %v10472_v55  ;;  %v3092_v58 = vpop.f32.mrb[42].mxu0  ;;  %9361 = vmatprep.mubr.msk.bf16.mxu1 %vm10873_vm0, %v14287_v32 }
 0x467   :  { %v8601_v60 = vmul.f32 -1.442695, %v12155_v56  ;;  %v12164_v62 = vadd.f32 %v11997_v51, %v3092_v58  ;;  %v3094_v63 = vpop.f32.mrb[43].mxu0 }
 0x468   :  { %v10474_v1 = vpop.eup %10473  ;;  %10483 = vrcp.f32 %v3473_v24 }
 0x469   :  { %v3662_v2 = vmul.f32 %v10474_v1, %v12099_v42  ;;  %10485 = vpow2.f32 %v8601_v60  ;;  %v8602_v40 = vmul.f32 -1.442695, %v12164_v62 }
 0x46a   :  { %v10476_v7 = vpop.eup %10475 }
 0x46b   :  { %v10478_v8 = vpop.eup %10477  ;;  %v3663_v45 = vmul.f32 %v10476_v7, %v12110_v50  ;;  %10487 = vpow2.f32 %v8602_v40  ;;  %v12170_v11 = vpack.c.bf16 %v3662_v2, %v3661_v46 }
 0x46c   :  { %v3474_v13 = vadd.f32 1.0, %v10478_v8  ;;  %v3097_v10 = vpop.f32.mrb[44].mxu0 }
 0x46d   :  { %14323 = vst [vmem:[#allocation8_spill] sm:$0xff] %v12170_v11  ;;  %v10480_v14 = vpop.eup %10479  ;;  %v12173_v16 = vadd.f32 %v11997_v51, %v3097_v10  ;;  %v3099_v18 = vpop.f32.mrb[45].mxu0  ;;  %9362 = vmatmul.mubr.bf16.gmra.mrb[24].mxu1 %v12170_v11  ;;  %v12176_v42 = vpack.c.bf16 %v3663_v45, %v3662_v2 }
 0x46e   :  { %10489 = vrcp.f32 %v3474_v13  ;;  %v3475_v15 = vadd.f32 1.0, %v10480_v14  ;;  %v3100_v21 = vpop.f32.mrb[46].mxu0  ;;  %9365 = vmatprep.mubr.msk.bf16.mxu1 %vm10873_vm0, %v14287_v32 }
 0x46f   :  { %v8603_v50 = vmul.f32 -1.442695, %v12173_v16  ;;  %v12182_v23 = vadd.f32 %v11997_v51, %v3100_v21  ;;  %v3102_v25 = vpop.f32.mrb[47].mxu0 }
 0x470   :  { %v10482_v29 = vpop.eup %10481  ;;  %10491 = vrcp.f32 %v3475_v15 }
 0x471   :  { %v3664_v31 = vmul.f32 %v10482_v29, %v12119_v4  ;;  %10493 = vpow2.f32 %v8603_v50  ;;  %v8604_v3 = vmul.f32 -1.442695, %v12182_v23 }
 0x472   :  { %v10484_v37 = vpop.eup %10483 }
 0x473   :  { %v10486_v22 = vpop.eup %10485  ;;  %v3665_v38 = vmul.f32 %v10484_v37, %v12127_v9  ;;  %10495 = vpow2.f32 %v8604_v3  ;;  %v12190_v41 = vpack.c.bf16 %v3664_v31, %v3663_v45 }
 0x474   :  { %v3476_v43 = vadd.f32 1.0, %v10486_v22  ;;  %v3105_v27 = vpop.f32.mrb[48].mxu0 }
 0x475   :  { %14324 = vst [vmem:[#allocation9_spill] sm:$0xff] %v12190_v41  ;;  %v10488_v46 = vpop.eup %10487  ;;  %v12194_v49 = vadd.f32 %v11997_v51, %v3105_v27  ;;  %v3107_v4 = vpop.f32.mrb[49].mxu0  ;;  %9366 = vmatmul.mubr.bf16.gmra.mrb[28].mxu1 %v12190_v41  ;;  %v12197_v52 = vpack.c.bf16 %v3665_v38, %v3664_v31 }
 0x476   :  { %10497 = vrcp.f32 %v3476_v43  ;;  %v3477_v53 = vadd.f32 1.0, %v10488_v46  ;;  %v3108_v55 = vpop.f32.mrb[50].mxu0  ;;  %9369 = vmatprep.mubr.msk.bf16.mxu1 %vm10873_vm0, %v14287_v32 }
 0x477   :  { %v8605_v9 = vmul.f32 -1.442695, %v12194_v49  ;;  %v12203_v17 = vadd.f32 %v11997_v51, %v3108_v55  ;;  %v3110_v24 = vpop.f32.mrb[51].mxu0 }
 0x478   :  { %v10490_v58 = vpop.eup %10489  ;;  %10499 = vrcp.f32 %v3477_v53 }
 0x479   :  { %v3666_v60 = vmul.f32 %v10490_v58, %v12135_v26  ;;  %10501 = vpow2.f32 %v8605_v9  ;;  %v8606_v63 = vmul.f32 -1.442695, %v12203_v17 }
 0x47a   :  { %v10492_v1 = vpop.eup %10491 }
 0x47b   :  { %v10494_v2 = vpop.eup %10493  ;;  %v3667_v40 = vmul.f32 %v10492_v1, %v12144_v33  ;;  %10503 = vpow2.f32 %v8606_v63  ;;  %v12208_v7 = vpack.c.bf16 %v3666_v60, %v3665_v38 }
 0x47c   :  { %v3478_v8 = vadd.f32 1.0, %v10494_v2  ;;  %v3113_v45 = vpop.f32.mrb[52].mxu0 }
 0x47d   :  { %14325 = vst [vmem:[#allocation10_spill] sm:$0xff] %v12208_v7  ;;  %v10496_v13 = vpop.eup %10495  ;;  %v12211_v10 = vadd.f32 %v11997_v51, %v3113_v45  ;;  %v3115_v14 = vpop.f32.mrb[53].mxu0  ;;  %9370 = vmatmul.mubr.bf16.gmra.mrb[32].mxu1 %v12208_v7  ;;  %v12214_v26 = vpack.c.bf16 %v3667_v40, %v3666_v60 }
 0x47e   :  { %10505 = vrcp.f32 %v3478_v8  ;;  %v3479_v18 = vadd.f32 1.0, %v10496_v13  ;;  %v3116_v15 = vpop.f32.mrb[54].mxu0  ;;  %9373 = vmatprep.mubr.msk.bf16.mxu1 %vm10873_vm0, %v14287_v32 }
 0x47f   :  { %v8607_v33 = vmul.f32 -1.442695, %v12211_v10  ;;  %v12220_v21 = vadd.f32 %v11997_v51, %v3116_v15  ;;  %v3118_v50 = vpop.f32.mrb[55].mxu0 }
 0x480   :  { %v10498_v25 = vpop.eup %10497  ;;  %10507 = vrcp.f32 %v3479_v18 }
 0x481   :  { %v3668_v29 = vmul.f32 %v10498_v25, %v12155_v56  ;;  %10509 = vpow2.f32 %v8607_v33  ;;  %v8608_v30 = vmul.f32 -1.442695, %v12220_v21 }
 0x482   :  { %v10500_v31 = vpop.eup %10499 }
 0x483   :  { %v10502_v3 = vpop.eup %10501  ;;  %v3669_v37 = vmul.f32 %v10500_v31, %v12164_v62  ;;  %10511 = vpow2.f32 %v8608_v30  ;;  %v12225_v22 = vpack.c.bf16 %v3668_v29, %v3667_v40 }
 0x484   :  { %v3480_v38 = vadd.f32 1.0, %v10502_v3  ;;  %v3121_v43 = vpop.f32.mrb[56].mxu0 }
 0x485   :  { %14326 = vst [vmem:[#allocation11_spill] sm:$0xff] %v12225_v22  ;;  %v10504_v27 = vpop.eup %10503  ;;  %v12228_v46 = vadd.f32 %v11997_v51, %v3121_v43  ;;  %v3123_v4 = vpop.f32.mrb[57].mxu0  ;;  %9374 = vmatmul.mubr.bf16.gmra.mrb[36].mxu1 %v12225_v22  ;;  %v12231_v56 = vpack.c.bf16 %v3669_v37, %v3668_v29 }
 0x486   :  { %10513 = vrcp.f32 %v3480_v38  ;;  %v3481_v53 = vadd.f32 1.0, %v10504_v27  ;;  %v3124_v55 = vpop.f32.mrb[58].mxu0  ;;  %9377 = vmatprep.mubr.msk.bf16.mxu1 %vm10873_vm0, %v14287_v32 }
 0x487   :  { %v8609_v62 = vmul.f32 -1.442695, %v12228_v46  ;;  %v12237_v9 = vadd.f32 %v11997_v51, %v3124_v55  ;;  %v3126_v24 = vpop.f32.mrb[59].mxu0 }
 0x488   :  { %v10506_v58 = vpop.eup %10505  ;;  %10515 = vrcp.f32 %v3481_v53 }
 0x489   :  { %v3670_v60 = vmul.f32 %v10506_v58, %v12173_v16  ;;  %10517 = vpow2.f32 %v8609_v62  ;;  %v8610_v63 = vmul.f32 -1.442695, %v12237_v9 }
 0x48a   :  { %v10508_v1 = vpop.eup %10507 }
 0x48b   :  { %v10510_v2 = vpop.eup %10509  ;;  %v3671_v40 = vmul.f32 %v10508_v1, %v12182_v23  ;;  %10519 = vpow2.f32 %v8610_v63  ;;  %v12242_v8 = vpack.c.bf16 %v3670_v60, %v3669_v37 }
 0x48c   :  { %v3482_v45 = vadd.f32 1.0, %v10510_v2  ;;  %v3129_v13 = vpop.f32.mrb[60].mxu0 }
 0x48d   :  { %14327 = vst [vmem:[#allocation12_spill] sm:$0xff] %v12242_v8  ;;  %v10512_v14 = vpop.eup %10511  ;;  %v12245_v18 = vadd.f32 %v11997_v51, %v3129_v13  ;;  %v3131_v15 = vpop.f32.mrb[61].mxu0  ;;  %9378 = vmatmul.mubr.bf16.gmra.mrb[40].mxu1 %v12242_v8  ;;  %v12248_v16 = vpack.c.bf16 %v3671_v40, %v3670_v60 }
 0x48e   :  { %10521 = vrcp.f32 %v3482_v45  ;;  %v3483_v33 = vadd.f32 1.0, %v10512_v14  ;;  %v3132_v50 = vpop.f32.mrb[62].mxu0  ;;  %9381 = vmatprep.mubr.msk.bf16.mxu1 %vm10873_vm0, %v14287_v32 }
 0x48f   :  { %v8611_v23 = vmul.f32 -1.442695, %v12245_v18  ;;  %v12254_v25 = vadd.f32 %v11997_v51, %v3132_v50  ;;  %v3134_v29 = vpop.f32.mrb[63].mxu0 }
 0x490   :  { %v10514_v30 = vpop.eup %10513  ;;  %10523 = vrcp.f32 %v3483_v33 }
 0x491   :  { %v3672_v31 = vmul.f32 %v10514_v30, %v12194_v49  ;;  %10525 = vpow2.f32 %v8611_v23  ;;  %v8612_v3 = vmul.f32 -1.442695, %v12254_v25 }
 0x492   :  { %v10516_v37 = vpop.eup %10515 }
 0x493   :  { %v10518_v38 = vpop.eup %10517  ;;  %v3673_v43 = vmul.f32 %v10516_v37, %v12203_v17  ;;  %10527 = vpow2.f32 %v8612_v3  ;;  %v12259_v27 = vpack.c.bf16 %v3672_v31, %v3671_v40 }
 0x494   :  { %v3484_v4 = vadd.f32 1.0, %v10518_v38  ;;  %v3137_v53 = vpop.f32.mrb[64].mxu0 }
 0x495   :  { %14328 = vst [vmem:[#allocation13_spill] sm:$0xff] %v12259_v27  ;;  %v10520_v55 = vpop.eup %10519  ;;  %v12262_v62 = vadd.f32 %v11997_v51, %v3137_v53  ;;  %v3139_v24 = vpop.f32.mrb[65].mxu0  ;;  %9382 = vmatmul.mubr.bf16.gmra.mrb[44].mxu1 %v12259_v27  ;;  %v12265_v49 = vpack.c.bf16 %v3673_v43, %v3672_v31 }
 0x496   :  { %10529 = vrcp.f32 %v3484_v4  ;;  %v3485_v58 = vadd.f32 1.0, %v10520_v55  ;;  %v3140_v60 = vpop.f32.mrb[66].mxu0  ;;  %9385 = vmatprep.mubr.msk.bf16.mxu1 %vm10873_vm0, %v14287_v32 }
 0x497   :  { %v8613_v17 = vmul.f32 -1.442695, %v12262_v62  ;;  %v12271_v63 = vadd.f32 %v11997_v51, %v3140_v60  ;;  %v3142_v1 = vpop.f32.mrb[67].mxu0 }
 0x498   :  { %v10522_v2 = vpop.eup %10521  ;;  %10531 = vrcp.f32 %v3485_v58 }
 0x499   :  { %v3674_v40 = vmul.f32 %v10522_v2, %v12211_v10  ;;  %10533 = vpow2.f32 %v8613_v17  ;;  %v8614_v45 = vmul.f32 -1.442695, %v12271_v63 }
 0x49a   :  { %v10524_v13 = vpop.eup %10523 }
 0x49b   :  { %v10526_v14 = vpop.eup %10525  ;;  %v3675_v15 = vmul.f32 %v10524_v13, %v12220_v21  ;;  %10535 = vpow2.f32 %v8614_v45  ;;  %v12276_v33 = vpack.c.bf16 %v3674_v40, %v3673_v43 }
 0x49c   :  { %v3486_v50 = vadd.f32 1.0, %v10526_v14  ;;  %v3145_v23 = vpop.f32.mrb[68].mxu0 }
 0x49d   :  { %14329 = vst [vmem:[#allocation14_spill] sm:$0xff] %v12276_v33  ;;  %v10528_v29 = vpop.eup %10527  ;;  %v12279_v30 = vadd.f32 %v11997_v51, %v3145_v23  ;;  %v3147_v31 = vpop.f32.mrb[69].mxu0  ;;  %9386 = vmatmul.mubr.bf16.gmra.mrb[48].mxu1 %v12276_v33  ;;  %v12282_v10 = vpack.c.bf16 %v3675_v15, %v3674_v40 }
 0x49e   :  { %10537 = vrcp.f32 %v3486_v50  ;;  %v3487_v3 = vadd.f32 1.0, %v10528_v29  ;;  %v3148_v37 = vpop.f32.mrb[70].mxu0  ;;  %9389 = vmatprep.mubr.msk.bf16.mxu1 %vm10873_vm0, %v14287_v32 }
 0x49f   :  { %v8615_v21 = vmul.f32 -1.442695, %v12279_v30  ;;  %v12288_v38 = vadd.f32 %v11997_v51, %v3148_v37  ;;  %v3150_v43 = vpop.f32.mrb[71].mxu0 }
 0x4a0   :  { %v10530_v4 = vpop.eup %10529  ;;  %10539 = vrcp.f32 %v3487_v3 }
 0x4a1   :  { %v3676_v53 = vmul.f32 %v10530_v4, %v12228_v46  ;;  %10541 = vpow2.f32 %v8615_v21  ;;  %v8616_v55 = vmul.f32 -1.442695, %v12288_v38 }
 0x4a2   :  { %v10532_v24 = vpop.eup %10531 }
 0x4a3   :  { %v10534_v58 = vpop.eup %10533  ;;  %v3677_v60 = vmul.f32 %v10532_v24, %v12237_v9  ;;  %10543 = vpow2.f32 %v8616_v55  ;;  %v12293_v17 = vpack.c.bf16 %v3676_v53, %v3675_v15 }
 0x4a4   :  { %v3488_v1 = vadd.f32 1.0, %v10534_v58  ;;  %v3153_v2 = vpop.f32.mrb[72].mxu0 }
 0x4a5   :  { %14330 = vst [vmem:[#allocation15_spill] sm:$0xff] %v12293_v17  ;;  %v10536_v40 = vpop.eup %10535  ;;  %v12296_v45 = vadd.f32 %v11997_v51, %v3153_v2  ;;  %v3155_v13 = vpop.f32.mrb[73].mxu0  ;;  %9390 = vmatmul.mubr.bf16.gmra.mrb[52].mxu1 %v12293_v17  ;;  %v12299_v46 = vpack.c.bf16 %v3677_v60, %v3676_v53 }
 0x4a6   :  { %10545 = vrcp.f32 %v3488_v1  ;;  %v3489_v14 = vadd.f32 1.0, %v10536_v40  ;;  %v3156_v50 = vpop.f32.mrb[74].mxu0  ;;  %9393 = vmatprep.mubr.msk.bf16.mxu1 %vm10873_vm0, %v14287_v32 }
 0x4a7   :  { %v8617_v9 = vmul.f32 -1.442695, %v12296_v45  ;;  %v12305_v15 = vadd.f32 %v11997_v51, %v3156_v50  ;;  %v3158_v23 = vpop.f32.mrb[75].mxu0 }
 0x4a8   :  { %v10538_v29 = vpop.eup %10537  ;;  %10547 = vrcp.f32 %v3489_v14 }
 0x4a9   :  { %v3678_v31 = vmul.f32 %v10538_v29, %v12245_v18  ;;  %10549 = vpow2.f32 %v8617_v9  ;;  %v8618_v3 = vmul.f32 -1.442695, %v12305_v15 }
 0x4aa   :  { %v10540_v37 = vpop.eup %10539 }
 0x4ab   :  { %v10542_v21 = vpop.eup %10541  ;;  %v3679_v43 = vmul.f32 %v10540_v37, %v12254_v25  ;;  %10551 = vpow2.f32 %v8618_v3  ;;  %v12310_v4 = vpack.c.bf16 %v3678_v31, %v3677_v60 }
 0x4ac   :  { %v3490_v53 = vadd.f32 1.0, %v10542_v21  ;;  %v3161_v55 = vpop.f32.mrb[76].mxu0 }
 0x4ad   :  { %14331 = vst [vmem:[#allocation16_spill] sm:$0xff] %v12310_v4  ;;  %v10544_v24 = vpop.eup %10543  ;;  %v12313_v58 = vadd.f32 %v11997_v51, %v3161_v55  ;;  %v3163_v1 = vpop.f32.mrb[77].mxu0  ;;  %9394 = vmatmul.mubr.bf16.gmra.mrb[56].mxu1 %v12310_v4  ;;  %v12316_v18 = vpack.c.bf16 %v3679_v43, %v3678_v31 }
 0x4ae   :  { %10553 = vrcp.f32 %v3490_v53  ;;  %v3491_v2 = vadd.f32 1.0, %v10544_v24  ;;  %v3164_v40 = vpop.f32.mrb[78].mxu0  ;;  %9397 = vmatprep.mubr.msk.bf16.mxu1 %vm10873_vm0, %v14287_v32 }
 0x4af   :  { %v8619_v25 = vmul.f32 -1.442695, %v12313_v58  ;;  %v12322_v60 = vadd.f32 %v11997_v51, %v3164_v40  ;;  %v3166_v13 = vpop.f32.mrb[79].mxu0 }
 0x4b0   :  { %v10546_v14 = vpop.eup %10545  ;;  %10555 = vrcp.f32 %v3491_v2 }
 0x4b1   :  { %v3680_v50 = vmul.f32 %v10546_v14, %v12262_v62  ;;  %10557 = vpow2.f32 %v8619_v25  ;;  %v8620_v9 = vmul.f32 -1.442695, %v12322_v60 }
 0x4b2   :  { %v10548_v23 = vpop.eup %10547 }
 0x4b3   :  { %v10550_v29 = vpop.eup %10549  ;;  %v3681_v31 = vmul.f32 %v10548_v23, %v12271_v63  ;;  %10559 = vpow2.f32 %v8620_v9  ;;  %v12327_v3 = vpack.c.bf16 %v3680_v50, %v3679_v43 }
 0x4b4   :  { %v3492_v37 = vadd.f32 1.0, %v10550_v29  ;;  %v3169_v21 = vpop.f32.mrb[80].mxu0 }
 0x4b5   :  { %14332 = vst [vmem:[#allocation17_spill] sm:$0xff] %v12327_v3  ;;  %v10552_v53 = vpop.eup %10551  ;;  %v12330_v55 = vadd.f32 %v11997_v51, %v3169_v21  ;;  %v3171_v24 = vpop.f32.mrb[81].mxu0  ;;  %9398 = vmatmul.mubr.bf16.gmra.mrb[60].mxu1 %v12327_v3  ;;  %v12333_v62 = vpack.c.bf16 %v3681_v31, %v3680_v50 }
 0x4b6   :  { %10561 = vrcp.f32 %v3492_v37  ;;  %v3493_v1 = vadd.f32 1.0, %v10552_v53  ;;  %v3172_v2 = vpop.f32.mrb[82].mxu0  ;;  %9401 = vmatprep.mubr.msk.bf16.mxu1 %vm10873_vm0, %v14287_v32 }
 0x4b7   :  { %v8621_v63 = vmul.f32 -1.442695, %v12330_v55  ;;  %v12339_v43 = vadd.f32 %v11997_v51, %v3172_v2  ;;  %v3174_v40 = vpop.f32.mrb[83].mxu0 }
 0x4b8   :  { %v10554_v25 = vpop.eup %10553  ;;  %10563 = vrcp.f32 %v3493_v1 }
 0x4b9   :  { %v3682_v13 = vmul.f32 %v10554_v25, %v12279_v30  ;;  %10565 = vpow2.f32 %v8621_v63  ;;  %v8622_v14 = vmul.f32 -1.442695, %v12339_v43 }
 0x4ba   :  { %v10556_v50 = vpop.eup %10555 }
 0x4bb   :  { %v10558_v9 = vpop.eup %10557  ;;  %v3683_v23 = vmul.f32 %v10556_v50, %v12288_v38  ;;  %10567 = vpow2.f32 %v8622_v14  ;;  %v12344_v29 = vpack.c.bf16 %v3682_v13, %v3681_v31 }
 0x4bc   :  { %v3494_v37 = vadd.f32 1.0, %v10558_v9  ;;  %v3177_v21 = vpop.f32.mrb[84].mxu0 }
 0x4bd   :  { %14333 = vst [vmem:[#allocation18_spill] sm:$0xff] %v12344_v29  ;;  %v10560_v53 = vpop.eup %10559  ;;  %v12347_v24 = vadd.f32 %v11997_v51, %v3177_v21  ;;  %v3179_v2 = vpop.f32.mrb[85].mxu0  ;;  %9402 = vmatmul.mubr.bf16.gmra.mrb[64].mxu1 %v12344_v29  ;;  %v12350_v30 = vpack.c.bf16 %v3683_v23, %v3682_v13 }
 0x4be   :  { %10569 = vrcp.f32 %v3494_v37  ;;  %v3495_v1 = vadd.f32 1.0, %v10560_v53  ;;  %v3180_v63 = vpop.f32.mrb[86].mxu0  ;;  %9405 = vmatprep.mubr.msk.bf16.mxu1 %vm10873_vm0, %v14287_v32 }
 0x4bf   :  { %v8623_v38 = vmul.f32 -1.442695, %v12347_v24  ;;  %v12356_v31 = vadd.f32 %v11997_v51, %v3180_v63  ;;  %v3182_v40 = vpop.f32.mrb[87].mxu0  ;;  %v12366_v51 = vld [vmem:[%s14273_s2] ss:$0 sm:$0xff] }
 0x4c0   :  { %v10562_v25 = vpop.eup %10561  ;;  %10571 = vrcp.f32 %v3495_v1 }
 0x4c1   :  { %v3684_v14 = vmul.f32 %v10562_v25, %v12296_v45  ;;  %10573 = vpow2.f32 %v8623_v38  ;;  %v8624_v13 = vmul.f32 -1.442695, %v12356_v31 }
 0x4c2   :  { %v10564_v50 = vpop.eup %10563 }
 0x4c3   :  { %v10566_v9 = vpop.eup %10565  ;;  %v3685_v37 = vmul.f32 %v10564_v50, %v12305_v15  ;;  %10575 = vpow2.f32 %v8624_v13  ;;  %v12361_v21 = vpack.c.bf16 %v3684_v14, %v3683_v23 }
 0x4c4   :  { %v3496_v53 = vadd.f32 1.0, %v10566_v9  ;;  %v3185_v2 = vpop.f32.mrb[88].mxu0 }
 0x4c5   :  { %14334 = vst [vmem:[#allocation19_spill] sm:$0xff] %v12361_v21  ;;  %v10568_v0 = vpop.eup %10567  ;;  %v12369_v45 = vadd.f32 %v12366_v51, %v3185_v2  ;;  %v3187_v1 = vpop.f32.mrb[89].mxu0  ;;  %9406 = vmatmul.mubr.bf16.gmra.mrb[68].mxu1 %v12361_v21  ;;  %v12372_v63 = vpack.c.bf16 %v3685_v37, %v3684_v14 }
 0x4c6   :  { %10577 = vrcp.f32 %v3496_v53  ;;  %v3497_v15 = vadd.f32 1.0, %v10568_v0  ;;  %v3188_v23 = vpop.f32.mrb[90].mxu0  ;;  %9409 = vmatprep.mubr.msk.bf16.mxu1 %vm10873_vm0, %v14287_v32 }
 0x4c7   :  { %v8625_v38 = vmul.f32 -1.442695, %v12369_v45  ;;  %v12378_v40 = vadd.f32 %v12366_v51, %v3188_v23  ;;  %v3190_v25 = vpop.f32.mrb[91].mxu0 }
 0x4c8   :  { %v10570_v13 = vpop.eup %10569  ;;  %10579 = vrcp.f32 %v3497_v15 }
 0x4c9   :  { %v3686_v50 = vmul.f32 %v10570_v13, %v12313_v58  ;;  %10581 = vpow2.f32 %v8625_v38  ;;  %v8626_v14 = vmul.f32 -1.442695, %v12378_v40 }
 0x4ca   :  { %v10572_v9 = vpop.eup %10571 }
 0x4cb   :  { %v10574_v53 = vpop.eup %10573  ;;  %v3687_v0 = vmul.f32 %v10572_v9, %v12322_v60  ;;  %10583 = vpow2.f32 %v8626_v14  ;;  %v12383_v2 = vpack.c.bf16 %v3686_v50, %v3685_v37 }
 0x4cc   :  { %v3498_v1 = vadd.f32 1.0, %v10574_v53  ;;  %v3193_v44 = vpop.f32.mrb[92].mxu0 }
 0x4cd   :  { %14335 = vst [vmem:[#allocation20_spill] sm:$0xff] %v12383_v2  ;;  %v10576_v19 = vpop.eup %10575  ;;  %v12386_v23 = vadd.f32 %v12366_v51, %v3193_v44  ;;  %v3195_v25 = vpop.f32.mrb[93].mxu0  ;;  %9410 = vmatmul.mubr.bf16.gmra.mrb[72].mxu1 %v12383_v2  ;;  %v12389_v58 = vpack.c.bf16 %v3687_v0, %v3686_v50 }
 0x4ce   :  { %10585 = vrcp.f32 %v3498_v1  ;;  %v3499_v15 = vadd.f32 1.0, %v10576_v19  ;;  %v3196_v38 = vpop.f32.mrb[94].mxu0  ;;  %9413 = vmatprep.mubr.msk.bf16.mxu1 %vm10873_vm0, %v14287_v32 }
 0x4cf   :  { %v8627_v60 = vmul.f32 -1.442695, %v12386_v23  ;;  %v12395_v37 = vadd.f32 %v12366_v51, %v3196_v38  ;;  %v3198_v13 = vpop.f32.mrb[95].mxu0 }
 0x4d0   :  { %v10578_v14 = vpop.eup %10577  ;;  %10587 = vrcp.f32 %v3499_v15 }
 0x4d1   :  { %v3688_v44 = vmul.f32 %v10578_v14, %v12330_v55  ;;  %10589 = vpow2.f32 %v8627_v60  ;;  %v8628_v50 = vmul.f32 -1.442695, %v12395_v37 }
 0x4d2   :  { %v10580_v9 = vpop.eup %10579 }
 0x4d3   :  { %v10582_v53 = vpop.eup %10581  ;;  %v3689_v19 = vmul.f32 %v10580_v9, %v12339_v43  ;;  %10591 = vpow2.f32 %v8628_v50  ;;  %v12400_v1 = vpack.c.bf16 %v3688_v44, %v3687_v0 }
 0x4d4   :  { %v3500_v25 = vadd.f32 1.0, %v10582_v53  ;;  %v3201_v61 = vpop.f32.mrb[96].mxu0 }
 0x4d5   :  { %14336 = vst [vmem:[#allocation21_spill] sm:$0xff] %v12400_v1  ;;  %v10584_v39 = vpop.eup %10583  ;;  %v12403_v38 = vadd.f32 %v12366_v51, %v3201_v61  ;;  %v3203_v13 = vpop.f32.mrb[97].mxu0  ;;  %9414 = vmatmul.mubr.bf16.gmra.mrb[76].mxu1 %v12400_v1  ;;  %v12406_v55 = vpack.c.bf16 %v3689_v19, %v3688_v44 }
 0x4d6   :  { %10593 = vrcp.f32 %v3500_v25  ;;  %v3501_v15 = vadd.f32 1.0, %v10584_v39  ;;  %v3204_v60 = vpop.f32.mrb[98].mxu0  ;;  %9417 = vmatprep.mubr.msk.bf16.mxu1 %vm10873_vm0, %v14287_v32 }
 0x4d7   :  { %v8629_v43 = vmul.f32 -1.442695, %v12403_v38  ;;  %v12412_v0 = vadd.f32 %v12366_v51, %v3204_v60  ;;  %v3206_v14 = vpop.f32.mrb[99].mxu0 }
 0x4d8   :  { %v10586_v50 = vpop.eup %10585  ;;  %10595 = vrcp.f32 %v3501_v15 }
 0x4d9   :  { %v3690_v61 = vmul.f32 %v10586_v50, %v12347_v24  ;;  %10597 = vpow2.f32 %v8629_v43  ;;  %v8630_v44 = vmul.f32 -1.442695, %v12412_v0  ;;  %v14338_v50 = vmov 0.0  }
 0x4da   :  { %v10588_v9 = vpop.eup %10587 }
 0x4db   :  { %v10590_v53 = vpop.eup %10589  ;;  %v3691_v39 = vmul.f32 %v10588_v9, %v12356_v31  ;;  %10599 = vpow2.f32 %v8630_v44  ;;  %v12417_v25 = vpack.c.bf16 %v3690_v61, %v3689_v19 }
 0x4dc   :  { %v3502_v13 = vadd.f32 1.0, %v10590_v53  ;;  %v3209_v32 = vpop.f32.mrb[100].mxu0 }
 0x4dd   :  { %14337 = vst [vmem:[#allocation22_spill] sm:$0xff] %v12417_v25  ;;  %v10592_v1 = vpop.eup %10591  ;;  %v12420_v60 = vadd.f32 %v12366_v51, %v3209_v32  ;;  %v3211_v14 = vpop.f32.mrb[101].mxu0  ;;  %9418 = vmatmul.mubr.bf16.gmra.mrb[80].mxu1 %v12417_v25  ;;  %v12423_v24 = vpack.c.bf16 %v3691_v39, %v3690_v61 }
 0x4de   :  { %10601 = vrcp.f32 %v3502_v13  ;;  %v3503_v15 = vadd.f32 1.0, %v10592_v1  ;;  %v3212_v43 = vpop.f32.mrb[102].mxu0  ;;  %9421 = vmatprep.mubr.msk.bf16.mxu1 %vm10873_vm0, %v14338_v50 }
 0x4df   :  { %v8631_v31 = vmul.f32 -1.442695, %v12420_v60  ;;  %v12429_v19 = vadd.f32 %v12366_v51, %v3212_v43  ;;  %v3214_v44 = vpop.f32.mrb[103].mxu0 }
 0x4e0   :  { %v10594_v9 = vpop.eup %10593  ;;  %10603 = vrcp.f32 %v3503_v15 }
 0x4e1   :  { %v3692_v32 = vmul.f32 %v10594_v9, %v12369_v45  ;;  %10605 = vpow2.f32 %v8631_v31  ;;  %v8632_v61 = vmul.f32 -1.442695, %v12429_v19 }
 0x4e2   :  { %v10596_v53 = vpop.eup %10595 }
 0x4e3   :  { %v10598_v13 = vpop.eup %10597  ;;  %v3693_v1 = vmul.f32 %v10596_v53, %v12378_v40  ;;  %10607 = vpow2.f32 %v8632_v61  ;;  %v12434_v14 = vpack.c.bf16 %v3692_v32, %v3691_v39 }
 0x4e4   :  { %v3504_v25 = vadd.f32 1.0, %v10598_v13  ;;  %v3217_v2 = vpop.f32.mrb[104].mxu0 }
 0x4e5   :  { %14339 = vst [vmem:[#allocation23_spill] sm:$0xff] %v12434_v14  ;;  %v10600_v21 = vpop.eup %10599  ;;  %v12437_v43 = vadd.f32 %v12366_v51, %v3217_v2  ;;  %v3219_v44 = vpop.f32.mrb[105].mxu0  ;;  %9422 = vmatmul.mubr.bf16.gmra.mrb[84].mxu1 %v12434_v14  ;;  %v12440_v45 = vpack.c.bf16 %v3693_v1, %v3692_v32 }
 0x4e6   :  { %10609 = vrcp.f32 %v3504_v25  ;;  %v3505_v15 = vadd.f32 1.0, %v10600_v21  ;;  %v3220_v31 = vpop.f32.mrb[106].mxu0  ;;  %9425 = vmatprep.mubr.msk.bf16.mxu1 %vm10873_vm0, %v14338_v50 }
 0x4e7   :  { %v8633_v40 = vmul.f32 -1.442695, %v12437_v43  ;;  %v12446_v39 = vadd.f32 %v12366_v51, %v3220_v31  ;;  %v3222_v9 = vpop.f32.mrb[107].mxu0 }
 0x4e8   :  { %v10602_v61 = vpop.eup %10601  ;;  %10611 = vrcp.f32 %v3505_v15 }
 0x4e9   :  { %v12449_v2 = vmul.f32 %v10602_v61, %v12386_v23  ;;  %10613 = vpow2.f32 %v8633_v40  ;;  %v8634_v32 = vmul.f32 -1.442695, %v12446_v39 }
 0x4ea   :  { %v10604_v25 = vpop.eup %10603 }
 0x4eb   :  { %v10606_v21 = vpop.eup %10605  ;;  %v12453_v53 = vmul.f32 %v10604_v25, %v12395_v37  ;;  %10615 = vpow2.f32 %v8634_v32  ;;  %v12456_v13 = vpack.c.bf16 %v12449_v2, %v3693_v1 }
 0x4ec   :  { %v3506_v44 = vadd.f32 1.0, %v10606_v21  ;;  %v3225_v31 = vpop.f32.mrb[108].mxu0 }
 0x4ed   :  { %14340 = vst [vmem:[#allocation24_spill] sm:$0xff] %v12456_v13  ;;  %v10608_v9 = vpop.eup %10607  ;;  %v9851_v23 = vadd.f32 %v12366_v51, %v3225_v31  ;;  %v3227_v40 = vpop.f32.mrb[109].mxu0  ;;  %9426 = vmatmul.mubr.bf16.gmra.mrb[88].mxu1 %v12456_v13  ;;  %v10281_v51 = vld [vmem:[%s14272_s3 + $0x80] sm:$0xff]  }
 0x4ee   :  { %10617 = vrcp.f32 %v3506_v44  ;;  %v3507_v61 = vadd.f32 1.0, %v10608_v9  ;;  %v3228_v14 = vpop.f32.mrb[110].mxu0  ;;  %9445 = vmatprep.mubr.msk.bf16.mxu1 %vm10873_vm0, %v14338_v50 }
 0x4ef   :  { %v8635_v37 = vmul.f32 -1.442695, %v9851_v23  ;;  %v3230_v1 = vpop.f32.mrb[111].mxu0 }
 0x4f0   :  { %v10610_v32 = vpop.eup %10609  ;;  %10619 = vrcp.f32 %v3507_v61 }
 0x4f1   :  { %v12465_v25 = vmul.f32 %v10610_v32, %v12403_v38  ;;  %10621 = vpow2.f32 %v8635_v37  ;;  %v14343_v38 = vpack.c.bf16 %v12021_v35, %v12019_v34  ;;  %v10283_v34 = vld [vmem:[%s14272_s3 + $0x90] sm:$0xff]  }
 0x4f2   :  { %v10612_v21 = vpop.eup %10611 }
 0x4f3   :  { %14341 = vst [vmem:[#allocation25_spill] sm:$0xff] %v12465_v25  ;;  %v10614_v31 = vpop.eup %10613  ;;  %v12473_v44 = vmul.f32 %v10612_v21, %v12412_v0  ;;  %v10282_v0 = vld [vmem:[%s14272_s3 + $0x88] sm:$0xff]  }
 0x4f4   :  { %v3508_v9 = vadd.f32 1.0, %v10614_v31 }
 0x4f5   :  { %14342 = vst [vmem:[#allocation26_spill] sm:$0xff] %v12473_v44  ;;  %v10616_v40 = vpop.eup %10615  ;;  %9446 = vmatmul.mubr.bf16.vlgmr.msra.gmra.mrb[92].mxu1 %v14343_v38 }
 0x4f6   :  { %10623 = vrcp.f32 %v3508_v9  ;;  %v3509_v37 = vadd.f32 1.0, %v10616_v40  ;;  %9538 = vmatpush3.bf16.msra.mxu1 %v10281_v51  ;;  %9449 = vmatprep.mubr.msk.bf16.mxu1 %vm10873_vm0, %v14338_v50  ;;  %v14346_v40 = vpack.c.bf16 %v12038_v54, %v12032_v48  ;;  %v10285_v48 = vld [vmem:[%s14272_s3 + $0xa0] sm:$0xff]  }
 0x4f7   :  { %9539 = vmatprep.subr.bf16.mxu1 %v14338_v50 }
 0x4f8   :  { %v10618_v1 = vpop.eup %10617  ;;  %10625 = vrcp.f32 %v3509_v37 }
 0x4f9   :  { %v12487_v32 = vmul.f32 %v10618_v1, %v12420_v60 }
 0x4fa   :  { %v10620_v21 = vpop.eup %10619  ;;  %9540 = vmatpush3.bf16.msra.mxu1 %v10282_v0 }
 0x4fb   :  { %14344 = vst [vmem:[#allocation27_spill] sm:$0xff] %v12487_v32  ;;  %v10622_v35 = vpop.eup %10621  ;;  %v12495_v31 = vmul.f32 %v10620_v21, %v12429_v19  ;;  %9541 = vmatprep.subr.bf16.mxu1 %v14338_v50  ;;  %v10284_v19 = vld [vmem:[%s14272_s3 + $0x98] sm:$0xff]  }
 0x4fc   :  { %v3510_v9 = vadd.f32 1.0, %v10622_v35 }
 0x4fd   :  { %14345 = vst [vmem:[#allocation28_spill] sm:$0xff] %v12495_v31  ;;  %9450 = vmatmul.mubr.bf16.gmra.mrb[96].mxu1 %v14346_v40 }
 0x4fe   :  { %10627 = vrcp.f32 %v3510_v9  ;;  %9453 = vmatprep.mubr.msk.bf16.mxu1 %vm10873_vm0, %v14338_v50  ;;  %9542 = vmatpush3.bf16.msra.mxu1 %v10283_v34  ;;  %v10286_v34 = vld [vmem:[%s14272_s3 + $0xa8] sm:$0xff]   ;;  %v10287_v9 = vld [vmem:[%s14272_s3 + $0xb0] sm:$0xff]  }
 0x4ff   :  { %9543 = vmatprep.subr.bf16.mxu1 %v14338_v50 }
 0x500   :  { %v10624_v38 = vpop.eup %10623 }
 0x501   :  { %v12510_v37 = vmul.f32 %v10624_v38, %v12437_v43  ;;  %v14349_v43 = vpack.c.bf16 %v12065_v12, %v12058_v6  ;;  %v14351_v12 = vpack.c.bf16 %v12093_v36, %v12086_v28 }
 0x502   :  { %v10626_v0 = vpop.eup %10625  ;;  %9544 = vmatpush3.bf16.msra.mxu1 %v10284_v19 }
 0x503   :  { %14347 = vst [vmem:[#allocation29_spill] sm:$0xff] %v12510_v37  ;;  %v12518_v1 = vmul.f32 %v10626_v0, %v12446_v39  ;;  %9545 = vmatprep.subr.bf16.mxu1 %v14338_v50  ;;  %v10288_v0 = vld [vmem:[%s14272_s3 + $0xb8] sm:$0xff]  }
 0x505   :  { %14348 = vst [vmem:[#allocation30_spill] sm:$0xff] %v12518_v1  ;;  %9454 = vmatmul.mubr.bf16.gmra.mrb[100].mxu1 %v14349_v43 }
 0x506   :  { %9457 = vmatprep.mubr.msk.bf16.mxu1 %vm10873_vm0, %v14338_v50  ;;  %9546 = vmatpush3.bf16.msra.mxu1 %v10285_v48 }
 0x507   :  { %9547 = vmatprep.subr.bf16.mxu1 %v14338_v50 }
 0x508   :  { %v10628_v39 = vpop.eup %10627 }
 0x509   :  { %v12532_v35 = vmul.f32 %v10628_v39, %v9851_v23 }
 0x50a   :  { %9548 = vmatpush3.bf16.msra.mxu1 %v10286_v34 }
 0x50b   :  { %14350 = vst [vmem:[#allocation31_spill] sm:$0xff] %v12532_v35  ;;  %9549 = vmatprep.subr.bf16.mxu1 %v14338_v50 }
 0x50d   :  { %9458 = vmatmul.mubr.bf16.gmra.mrb[104].mxu1 %v14351_v12 }
 0x50e   :  { %9461 = vmatprep.mubr.msk.bf16.mxu1 %vm10873_vm0, %v14338_v50  ;;  %9550 = vmatpush3.bf16.msra.mxu1 %v10287_v9 }
 0x50f   :  { %9551 = vmatprep.subr.bf16.mxu1 %v14338_v50 }
 0x510   :  { %v12546_v23 = vpop.f32.mrb[0].mxu1 }
 0x511   :  { %v9339_v40 = vpop.f32.mrb[1].mxu1 }
 0x512   :  { %v12548_v19 = vpop.f32.mrb[2].mxu1  ;;  %9552 = vmatpush3.bf16.msra.mxu1 %v10288_v0 }
 0x513   :  { %v9340_v38 = vpop.f32.mrb[3].mxu1  ;;  %9645 = vmatprep.subr.bf16.mxu1 %v14338_v50 }
 0x515   :  { %9462 = vmatmul.mubr.bf16.gmra.mrb[108].mxu1 %v12121_v5 }
 0x516   :  { %9465 = vmatprep.mubr.msk.bf16.mxu1 %vm10873_vm0, %v14338_v50 }
 0x518   :  { %v12556_v28 = vpop.f32.mrb[4].mxu1 }
 0x519   :  { %v9343_v36 = vpop.f32.mrb[5].mxu1 }
 0x51a   :  { %v12559_v48 = vpop.f32.mrb[6].mxu1 }
 0x51b   :  { %v9344_v43 = vpop.f32.mrb[7].mxu1 }
 0x51d   :  { %9466 = vmatmul.mubr.bf16.gmra.mrb[112].mxu1 %v12138_v59 }
 0x51e   :  { %9469 = vmatprep.mubr.msk.bf16.mxu1 %vm10873_vm0, %v14338_v50 }
 0x520   :  { %v12564_v34 = vpop.f32.mrb[8].mxu1 }
 0x521   :  { %v9347_v39 = vpop.f32.mrb[9].mxu1 }
 0x522   :  { %v12566_v9 = vpop.f32.mrb[10].mxu1 }
 0x523   :  { %v9348_v12 = vpop.f32.mrb[11].mxu1 }
 0x525   :  { %9470 = vmatmul.mubr.bf16.gmra.mrb[116].mxu1 %v12158_v57 }
 0x526   :  { %9473 = vmatprep.mubr.msk.bf16.mxu1 %vm10873_vm0, %v14338_v50 }
 0x528   :  { %v12571_v40 = vpop.f32.mrb[12].mxu1 }
 0x529   :  { %v9351_v38 = vpop.f32.mrb[13].mxu1 }
 0x52a   :  { %v12573_v0 = vpop.f32.mrb[14].mxu1 }
 0x52b   :  { %v9352_v36 = vpop.f32.mrb[15].mxu1 }
 0x52d   :  { %9474 = vmatmul.mubr.bf16.gmra.mrb[120].mxu1 %v12176_v42 }
 0x52e   :  { %9477 = vmatprep.mubr.msk.bf16.mxu1 %vm10873_vm0, %v14338_v50 }
 0x530   :  { %v12578_v43 = vpop.f32.mrb[16].mxu1 }
 0x531   :  { %v9355_v39 = vpop.f32.mrb[17].mxu1 }
 0x532   :  { %v12580_v12 = vpop.f32.mrb[18].mxu1 }
 0x533   :  { %v9356_v6 = vpop.f32.mrb[19].mxu1 }
 0x535   :  { %9478 = vmatmul.mubr.bf16.gmra.mrb[124].mxu1 %v12197_v52 }
 0x536   :  { %9481 = vmatprep.mubr.msk.bf16.mxu1 %vm10873_vm0, %v14338_v50 }
 0x538   :  { %v12585_v38 = vpop.f32.mrb[20].mxu1 }
 0x539   :  { %v9359_v54 = vpop.f32.mrb[21].mxu1 }
 0x53a   :  { %v12587_v36 = vpop.f32.mrb[22].mxu1 }
 0x53b   :  { %v9360_v51 = vpop.f32.mrb[23].mxu1 }
 0x53d   :  { %9482 = vmatmul.mubr.bf16.gmra.mrb[128].mxu1 %v12214_v26 }
 0x53e   :  { %9485 = vmatprep.mubr.msk.bf16.mxu1 %vm10873_vm0, %v14338_v50 }
 0x540   :  { %v12592_v39 = vpop.f32.mrb[24].mxu1 }
 0x541   :  { %v9363_v14 = vpop.f32.mrb[25].mxu1 }
 0x542   :  { %v12594_v6 = vpop.f32.mrb[26].mxu1 }
 0x543   :  { %v9364_v21 = vpop.f32.mrb[27].mxu1 }
 0x545   :  { %9486 = vmatmul.mubr.bf16.gmra.mrb[132].mxu1 %v12231_v56 }
 0x546   :  { %9489 = vmatprep.mubr.msk.bf16.mxu1 %vm10873_vm0, %v14338_v50 }
 0x548   :  { %v12599_v54 = vpop.f32.mrb[28].mxu1 }
 0x549   :  { %v9367_v60 = vpop.f32.mrb[29].mxu1 }
 0x54a   :  { %v12601_v51 = vpop.f32.mrb[30].mxu1 }
 0x54b   :  { %v9368_v61 = vpop.f32.mrb[31].mxu1 }
 0x54d   :  { %9490 = vmatmul.mubr.bf16.gmra.mrb[136].mxu1 %v12248_v16 }
 0x54e   :  { %9493 = vmatprep.mubr.msk.bf16.mxu1 %vm10873_vm0, %v14338_v50 }
 0x550   :  { %v12606_v14 = vpop.f32.mrb[32].mxu1 }
 0x551   :  { %v9371_v15 = vpop.f32.mrb[33].mxu1 }
 0x552   :  { %v12608_v21 = vpop.f32.mrb[34].mxu1 }
 0x553   :  { %v9372_v35 = vpop.f32.mrb[35].mxu1 }
 0x555   :  { %9494 = vmatmul.mubr.bf16.gmra.mrb[140].mxu1 %v12265_v49 }
 0x556   :  { %9497 = vmatprep.mubr.msk.bf16.mxu1 %vm10873_vm0, %v14338_v50 }
 0x558   :  { %v12613_v60 = vpop.f32.mrb[36].mxu1 }
 0x559   :  { %v9375_v13 = vpop.f32.mrb[37].mxu1 }
 0x55a   :  { %v12615_v61 = vpop.f32.mrb[38].mxu1 }
 0x55b   :  { %v9376_v29 = vpop.f32.mrb[39].mxu1 }
 0x55d   :  { %9498 = vmatmul.mubr.bf16.gmra.mrb[144].mxu1 %v12282_v10 }
 0x55e   :  { %9501 = vmatprep.mubr.msk.bf16.mxu1 %vm10873_vm0, %v14338_v50 }
 0x560   :  { %v12620_v15 = vpop.f32.mrb[40].mxu1 }
 0x561   :  { %v9379_v3 = vpop.f32.mrb[41].mxu1 }
 0x562   :  { %v12622_v35 = vpop.f32.mrb[42].mxu1 }
 0x563   :  { %v9380_v4 = vpop.f32.mrb[43].mxu1 }
 0x565   :  { %9502 = vmatmul.mubr.bf16.gmra.mrb[148].mxu1 %v12299_v46 }
 0x566   :  { %9505 = vmatprep.mubr.msk.bf16.mxu1 %vm10873_vm0, %v14338_v50 }
 0x568   :  { %v12627_v13 = vpop.f32.mrb[44].mxu1 }
 0x569   :  { %v9383_v17 = vpop.f32.mrb[45].mxu1 }
 0x56a   :  { %v12629_v29 = vpop.f32.mrb[46].mxu1 }
 0x56b   :  { %v9384_v33 = vpop.f32.mrb[47].mxu1 }
 0x56d   :  { %9506 = vmatmul.mubr.bf16.gmra.mrb[152].mxu1 %v12316_v18 }
 0x56e   :  { %9509 = vmatprep.mubr.msk.bf16.mxu1 %vm10873_vm0, %v14338_v50 }
 0x570   :  { %v12634_v3 = vpop.f32.mrb[48].mxu1 }
 0x571   :  { %v9387_v27 = vpop.f32.mrb[49].mxu1 }
 0x572   :  { %v12636_v4 = vpop.f32.mrb[50].mxu1 }
 0x573   :  { %v9388_v8 = vpop.f32.mrb[51].mxu1 }
 0x575   :  { %9510 = vmatmul.mubr.bf16.gmra.mrb[156].mxu1 %v12333_v62 }
 0x576   :  { %9513 = vmatprep.mubr.msk.bf16.mxu1 %vm10873_vm0, %v14338_v50 }
 0x578   :  { %v12641_v17 = vpop.f32.mrb[52].mxu1 }
 0x579   :  { %v9391_v22 = vpop.f32.mrb[53].mxu1 }
 0x57a   :  { %v12643_v33 = vpop.f32.mrb[54].mxu1 }
 0x57b   :  { %v9392_v7 = vpop.f32.mrb[55].mxu1 }
 0x57d   :  { %9514 = vmatmul.mubr.bf16.gmra.mrb[160].mxu1 %v12350_v30 }
 0x57e   :  { %9517 = vmatprep.mubr.msk.bf16.mxu1 %vm10873_vm0, %v14338_v50 }
 0x580   :  { %v12648_v27 = vpop.f32.mrb[56].mxu1 }
 0x581   :  { %v9395_v41 = vpop.f32.mrb[57].mxu1 }
 0x582   :  { %v12650_v8 = vpop.f32.mrb[58].mxu1 }
 0x583   :  { %v9396_v11 = vpop.f32.mrb[59].mxu1 }
 0x585   :  { %9518 = vmatmul.mubr.bf16.gmra.mrb[164].mxu1 %v12372_v63 }
 0x586   :  { %9521 = vmatprep.mubr.msk.bf16.mxu1 %vm10873_vm0, %v14338_v50 }
 0x588   :  { %v12655_v22 = vpop.f32.mrb[60].mxu1 }
 0x589   :  { %v9399_v47 = vpop.f32.mrb[61].mxu1 }
 0x58a   :  { %v12657_v7 = vpop.f32.mrb[62].mxu1 }
 0x58b   :  { %v9400_v20 = vpop.f32.mrb[63].mxu1 }
 0x58d   :  { %9522 = vmatmul.mubr.bf16.gmra.mrb[168].mxu1 %v12389_v58 }
 0x58e   :  { %9525 = vmatprep.mubr.msk.bf16.mxu1 %vm10873_vm0, %v14338_v50 }
 0x590   :  { %v12662_v41 = vpop.f32.mrb[64].mxu1 }
 0x591   :  { %v9403_v37 = vpop.f32.mrb[65].mxu1 }
 0x592   :  { %v12664_v11 = vpop.f32.mrb[66].mxu1 }
 0x593   :  { %14352 = vst [vmem:[#allocation32_spill] sm:$0xff] %v12664_v11  ;;  %v9404_v1 = vpop.f32.mrb[67].mxu1 }
 0x595   :  { %9526 = vmatmul.mubr.bf16.gmra.mrb[172].mxu1 %v12406_v55 }
 0x596   :  { %9529 = vmatprep.mubr.msk.bf16.mxu1 %vm10873_vm0, %v14338_v50 }
 0x598   :  { %v12669_v47 = vpop.f32.mrb[68].mxu1 }
 0x599   :  { %14353 = vst [vmem:[#allocation33_spill] sm:$0xff] %v12669_v47  ;;  %v9407_v32 = vpop.f32.mrb[69].mxu1  ;;  %v10289_v47 = vld [vmem:[%s14272_s3 + $0xc0] sm:$0xff]  }
 0x59a   :  { %v12671_v20 = vpop.f32.mrb[70].mxu1 }
 0x59b   :  { %14354 = vst [vmem:[#allocation34_spill] sm:$0xff] %v12671_v20  ;;  %v9408_v31 = vpop.f32.mrb[71].mxu1 }
 0x59d   :  { %9530 = vmatmul.mubr.bf16.gmra.mrb[176].mxu1 %v12423_v24 }
 0x59e   :  { %9533 = vmatprep.mubr.msk.bf16.mxu1 %vm10873_vm0, %v14338_v50 }
 0x5a0   :  { %v12676_v37 = vpop.f32.mrb[72].mxu1 }
 0x5a1   :  { %v9411_v25 = vpop.f32.mrb[73].mxu1 }
 0x5a2   :  { %v12678_v1 = vpop.f32.mrb[74].mxu1  ;;  %v10290_v25 = vld [vmem:[%s14272_s3 + $0xc8] sm:$0xff]  }
 0x5a3   :  { %v9412_v44 = vpop.f32.mrb[75].mxu1 }
 0x5a5   :  { %9534 = vmatmul.mubr.bf16.gmra.mrb[180].mxu1 %v12440_v45 }
 0x5a6   :  { %9553 = vmatprep.mubr.msk.bf16.mxu1 %vm10873_vm0, %v14338_v50 }
 0x5a8   :  { %v12683_v32 = vpop.f32.mrb[76].mxu1 }
 0x5a9   :  { %v9415_v20 = vpop.f32.mrb[77].mxu1 }
 0x5aa   :  { %v12685_v31 = vpop.f32.mrb[78].mxu1 }
 0x5ab   :  { %14355 = vst [vmem:[#allocation35_spill] sm:$0xff] %v12685_v31  ;;  %v9416_v11 = vpop.f32.mrb[79].mxu1 }
 0x5ad   :  { %9554 = vmatmul.mubr.bf16.vlgmr.msra.gmra.mrb[184].mxu1 %v12121_v5  ;;  %v10291_v5 = vld [vmem:[%s14272_s3 + $0xd0] sm:$0xff]  }
 0x5ae   :  { %9646 = vmatpush3.bf16.msra.mxu1 %v10289_v47  ;;  %9557 = vmatprep.mubr.msk.bf16.mxu1 %vm10873_vm0, %v14338_v50  ;;  %v10292_v47 = vld [vmem:[%s14272_s3 + $0xd8] sm:$0xff]  }
 0x5af   :  { %9647 = vmatprep.subr.bf16.mxu1 %v14338_v50 }
 0x5b0   :  { %v12697_v44 = vpop.f32.mrb[80].mxu1 }
 0x5b1   :  { %v9419_v20 = vpop.f32.mrb[81].mxu1 }
 0x5b2   :  { %v12699_v31 = vpop.f32.mrb[82].mxu1  ;;  %9648 = vmatpush3.bf16.msra.mxu1 %v10290_v25 }
 0x5b3   :  { %14356 = vst [vmem:[#allocation36_spill] sm:$0xff] %v12699_v31  ;;  %v9420_v11 = vpop.f32.mrb[83].mxu1  ;;  %9649 = vmatprep.subr.bf16.mxu1 %v14338_v50 }
 0x5b5   :  { %9558 = vmatmul.mubr.bf16.gmra.mrb[188].mxu1 %v12138_v59  ;;  %v10293_v59 = vld [vmem:[%s14272_s3 + $0xe0] sm:$0xff]  }
 0x5b6   :  { %9561 = vmatprep.mubr.msk.bf16.mxu1 %vm10873_vm0, %v14338_v50  ;;  %9650 = vmatpush3.bf16.msra.mxu1 %v10291_v5  ;;  %v10294_v5 = vld [vmem:[%s14272_s3 + $0xe8] sm:$0xff]  }
 0x5b7   :  { %9651 = vmatprep.subr.bf16.mxu1 %v14338_v50 }
 0x5b8   :  { %v12712_v25 = vpop.f32.mrb[84].mxu1 }
 0x5b9   :  { %14357 = vst [vmem:[#allocation37_spill] sm:$0xff] %v12712_v25  ;;  %v9423_v20 = vpop.f32.mrb[85].mxu1 }
 0x5ba   :  { %v12714_v31 = vpop.f32.mrb[86].mxu1  ;;  %9652 = vmatpush3.bf16.msra.mxu1 %v10292_v47 }
 0x5bb   :  { %14358 = vst [vmem:[#allocation38_spill] sm:$0xff] %v12714_v31  ;;  %v9424_v11 = vpop.f32.mrb[87].mxu1  ;;  %9653 = vmatprep.subr.bf16.mxu1 %v14338_v50 }
 0x5bd   :  { %9562 = vmatmul.mubr.bf16.gmra.mrb[192].mxu1 %v12158_v57  ;;  %v10295_v57 = vld [vmem:[%s14272_s3 + $0xf0] sm:$0xff]  }
 0x5be   :  { %9565 = vmatprep.mubr.msk.bf16.mxu1 %vm10873_vm0, %v14338_v50  ;;  %9654 = vmatpush3.bf16.msra.mxu1 %v10293_v59 }
 0x5bf   :  { %9655 = vmatprep.subr.bf16.mxu1 %v14338_v50 }
 0x5c0   :  { %v12727_v47 = vpop.f32.mrb[88].mxu1 }
 0x5c1   :  { %14359 = vst [vmem:[#allocation39_spill] sm:$0xff] %v12727_v47  ;;  %v9427_v20 = vpop.f32.mrb[89].mxu1 }
 0x5c2   :  { %v12729_v31 = vpop.f32.mrb[90].mxu1  ;;  %9656 = vmatpush3.bf16.msra.mxu1 %v10294_v5 }
 0x5c3   :  { %14360 = vst [vmem:[#allocation40_spill] sm:$0xff] %v12729_v31  ;;  %v9428_v11 = vpop.f32.mrb[91].mxu1  ;;  %9657 = vmatprep.subr.bf16.mxu1 %v14338_v50 }
 0x5c5   :  { %9566 = vmatmul.mubr.bf16.gmra.mrb[196].mxu1 %v12176_v42  ;;  %v10296_v42 = vld [vmem:[%s14272_s3 + $0xf8] sm:$0xff]  }
 0x5c6   :  { %9569 = vmatprep.mubr.msk.bf16.mxu1 %vm10873_vm0, %v14338_v50  ;;  %9658 = vmatpush3.bf16.msra.mxu1 %v10295_v57 }
 0x5c7   :  { %9659 = vmatprep.subr.bf16.mxu1 %v14338_v50 }
 0x5c8   :  { %v4249_v59 = vpop.f32.mrb[92].mxu1 }
 0x5c9   :  { %v9447_v20 = vpop.f32.mrb[93].mxu1  ;;  %v12740_v31 = vadd.f32 %v4249_v59, %v12546_v23 }
 0x5ca   :  { %v4252_v5 = vpop.f32.mrb[94].mxu1  ;;  %9660 = vmatpush3.bf16.msra.mxu1 %v10296_v42 }
 0x5cb   :  { %v9448_v47 = vpop.f32.mrb[95].mxu1  ;;  %v12743_v25 = vadd.f32 %v4252_v5, %v12548_v19 }
 0x5cd   :  { %9570 = vmatmul.mubr.bf16.gmra.mrb[200].mxu1 %v12197_v52 }
 0x5ce   :  { %9573 = vmatprep.mubr.msk.bf16.mxu1 %vm10873_vm0, %v14338_v50 }
 0x5d0   :  { %v4257_v57 = vpop.f32.mrb[96].mxu1 }
 0x5d1   :  { %v9451_v11 = vpop.f32.mrb[97].mxu1  ;;  %v12752_v23 = vadd.f32 %v4257_v57, %v12556_v28 }
 0x5d2   :  { %v4260_v59 = vpop.f32.mrb[98].mxu1 }
 0x5d3   :  { %v9452_v47 = vpop.f32.mrb[99].mxu1  ;;  %v12755_v19 = vadd.f32 %v4260_v59, %v12559_v48 }
 0x5d5   :  { %9574 = vmatmul.mubr.bf16.gmra.mrb[204].mxu1 %v12214_v26 }
 0x5d6   :  { %9577 = vmatprep.mubr.msk.bf16.mxu1 %vm10873_vm0, %v14338_v50 }
 0x5d8   :  { %v4265_v52 = vpop.f32.mrb[100].mxu1 }
 0x5d9   :  { %v9455_v20 = vpop.f32.mrb[101].mxu1  ;;  %v12761_v5 = vadd.f32 %v4265_v52, %v12564_v34 }
 0x5da   :  { %v4268_v42 = vpop.f32.mrb[102].mxu1 }
 0x5db   :  { %v9456_v11 = vpop.f32.mrb[103].mxu1  ;;  %v12764_v28 = vadd.f32 %v4268_v42, %v12566_v9 }
 0x5dd   :  { %9578 = vmatmul.mubr.bf16.gmra.mrb[208].mxu1 %v12231_v56 }
 0x5de   :  { %9581 = vmatprep.mubr.msk.bf16.mxu1 %vm10873_vm0, %v14338_v50 }
 0x5e0   :  { %v4273_v48 = vpop.f32.mrb[104].mxu1 }
 0x5e1   :  { %v9459_v26 = vpop.f32.mrb[105].mxu1  ;;  %v12770_v57 = vadd.f32 %v4273_v48, %v12571_v40 }
 0x5e2   :  { %v4276_v59 = vpop.f32.mrb[106].mxu1 }
 0x5e3   :  { %v9460_v47 = vpop.f32.mrb[107].mxu1  ;;  %v12773_v34 = vadd.f32 %v4276_v59, %v12573_v0 }
 0x5e5   :  { %9582 = vmatmul.mubr.bf16.gmra.mrb[212].mxu1 %v12248_v16 }
 0x5e6   :  { %9585 = vmatprep.mubr.msk.bf16.mxu1 %vm10873_vm0, %v14338_v50 }
 0x5e8   :  { %v4281_v9 = vpop.f32.mrb[108].mxu1 }
 0x5e9   :  { %v9463_v56 = vpop.f32.mrb[109].mxu1  ;;  %v12779_v52 = vadd.f32 %v4281_v9, %v12578_v43 }
 0x5ea   :  { %v4284_v20 = vpop.f32.mrb[110].mxu1 }
 0x5eb   :  { %v9464_v42 = vpop.f32.mrb[111].mxu1  ;;  %v12782_v40 = vadd.f32 %v4284_v20, %v12580_v12 }
 0x5ed   :  { %9586 = vmatmul.mubr.bf16.gmra.mrb[216].mxu1 %v12265_v49 }
 0x5ee   :  { %9589 = vmatprep.mubr.msk.bf16.mxu1 %vm10873_vm0, %v14338_v50 }
 0x5f0   :  { %v4289_v0 = vpop.f32.mrb[112].mxu1 }
 0x5f1   :  { %v9467_v16 = vpop.f32.mrb[113].mxu1  ;;  %v12788_v11 = vadd.f32 %v4289_v0, %v12585_v38 }
 0x5f2   :  { %v4292_v48 = vpop.f32.mrb[114].mxu1 }
 0x5f3   :  { %v9468_v26 = vpop.f32.mrb[115].mxu1  ;;  %v12791_v43 = vadd.f32 %v4292_v48, %v12587_v36 }
 0x5f5   :  { %9590 = vmatmul.mubr.bf16.gmra.mrb[220].mxu1 %v12282_v10 }
 0x5f6   :  { %9593 = vmatprep.mubr.msk.bf16.mxu1 %vm10873_vm0, %v14338_v50 }
 0x5f8   :  { %v4297_v12 = vpop.f32.mrb[116].mxu1 }
 0x5f9   :  { %v9471_v49 = vpop.f32.mrb[117].mxu1  ;;  %v12797_v59 = vadd.f32 %v4297_v12, %v12592_v39 }
 0x5fa   :  { %v4300_v47 = vpop.f32.mrb[118].mxu1 }
 0x5fb   :  { %v9472_v9 = vpop.f32.mrb[119].mxu1  ;;  %v12800_v38 = vadd.f32 %v4300_v47, %v12594_v6 }
 0x5fd   :  { %9594 = vmatmul.mubr.bf16.gmra.mrb[224].mxu1 %v12299_v46 }
 0x5fe   :  { %9597 = vmatprep.mubr.msk.bf16.mxu1 %vm10873_vm0, %v14338_v50 }
 0x600   :  { %v4305_v36 = vpop.f32.mrb[120].mxu1 }
 0x601   :  { %v9475_v10 = vpop.f32.mrb[121].mxu1  ;;  %v12806_v56 = vadd.f32 %v4305_v36, %v12599_v54 }
 0x602   :  { %v4308_v20 = vpop.f32.mrb[122].mxu1 }
 0x603   :  { %v9476_v42 = vpop.f32.mrb[123].mxu1  ;;  %v12809_v39 = vadd.f32 %v4308_v20, %v12601_v51 }
 0x605   :  { %9598 = vmatmul.mubr.bf16.gmra.mrb[228].mxu1 %v12316_v18 }
 0x606   :  { %9601 = vmatprep.mubr.msk.bf16.mxu1 %vm10873_vm0, %v14338_v50 }
 0x608   :  { %v4313_v6 = vpop.f32.mrb[124].mxu1 }
 0x609   :  { %v9479_v46 = vpop.f32.mrb[125].mxu1  ;;  %v12815_v0 = vadd.f32 %v4313_v6, %v12606_v14 }
 0x60a   :  { %v4316_v16 = vpop.f32.mrb[126].mxu1 }
 0x60b   :  { %v9480_v48 = vpop.f32.mrb[127].mxu1  ;;  %v12818_v54 = vadd.f32 %v4316_v16, %v12608_v21 }
 0x60d   :  { %9602 = vmatmul.mubr.bf16.gmra.mrb[232].mxu1 %v12333_v62 }
 0x60e   :  { %9605 = vmatprep.mubr.msk.bf16.mxu1 %vm10873_vm0, %v14338_v50 }
 0x610   :  { %v4321_v51 = vpop.f32.mrb[128].mxu1 }
 0x611   :  { %v9483_v18 = vpop.f32.mrb[129].mxu1  ;;  %v12824_v26 = vadd.f32 %v4321_v51, %v12613_v60 }
 0x612   :  { %v4324_v12 = vpop.f32.mrb[130].mxu1 }
 0x613   :  { %v9484_v49 = vpop.f32.mrb[131].mxu1  ;;  %v12827_v14 = vadd.f32 %v4324_v12, %v12615_v61 }
 0x615   :  { %9606 = vmatmul.mubr.bf16.gmra.mrb[236].mxu1 %v12350_v30 }
 0x616   :  { %9609 = vmatprep.mubr.msk.bf16.mxu1 %vm10873_vm0, %v14338_v50 }
 0x618   :  { %v4329_v21 = vpop.f32.mrb[132].mxu1 }
 0x619   :  { %v9487_v62 = vpop.f32.mrb[133].mxu1  ;;  %v12833_v47 = vadd.f32 %v4329_v21, %v12620_v15 }
 0x61a   :  { %v4332_v9 = vpop.f32.mrb[134].mxu1 }
 0x61b   :  { %v9488_v36 = vpop.f32.mrb[135].mxu1  ;;  %v12836_v60 = vadd.f32 %v4332_v9, %v12622_v35 }
 0x61d   :  { %9610 = vmatmul.mubr.bf16.gmra.mrb[240].mxu1 %v12372_v63 }
 0x61e   :  { %9613 = vmatprep.mubr.msk.bf16.mxu1 %vm10873_vm0, %v14338_v50 }
 0x620   :  { %v4337_v61 = vpop.f32.mrb[136].mxu1 }
 0x621   :  { %v9491_v30 = vpop.f32.mrb[137].mxu1  ;;  %v12842_v10 = vadd.f32 %v4337_v61, %v12627_v13  ;;  %v14361_v61 = vpack.c.bf16 %v12453_v53, %v12449_v2 }
 0x622   :  { %v4340_v20 = vpop.f32.mrb[138].mxu1 }
 0x623   :  { %v9492_v42 = vpop.f32.mrb[139].mxu1  ;;  %v12845_v15 = vadd.f32 %v4340_v20, %v12629_v29 }
 0x624   :  { %v14362_v42 = vld [vmem:[#allocation32_spill] sm:$0xff] }
 0x625   :  { %9614 = vmatmul.mubr.bf16.gmra.mrb[244].mxu1 %v12389_v58 }
 0x626   :  { %9617 = vmatprep.mubr.msk.bf16.mxu1 %vm10873_vm0, %v14338_v50 }
 0x628   :  { %v4345_v35 = vpop.f32.mrb[140].mxu1 }
 0x629   :  { %v9495_v63 = vpop.f32.mrb[141].mxu1  ;;  %v12851_v6 = vadd.f32 %v4345_v35, %v12634_v3 }
 0x62a   :  { %v4348_v46 = vpop.f32.mrb[142].mxu1  ;;  %v14363_v63 = vld [vmem:[#allocation26_spill] sm:$0xff] }
 0x62b   :  { %v9496_v16 = vpop.f32.mrb[143].mxu1  ;;  %v12854_v13 = vadd.f32 %v4348_v46, %v12636_v4 }
 0x62c   :  { %v14366_v16 = vld [vmem:[#allocation33_spill] sm:$0xff] }
 0x62d   :  { %9618 = vmatmul.mubr.bf16.gmra.mrb[248].mxu1 %v12406_v55 }
 0x62e   :  { %9621 = vmatprep.mubr.msk.bf16.mxu1 %vm10873_vm0, %v14338_v50 }
 0x630   :  { %v4353_v29 = vpop.f32.mrb[144].mxu1 }
 0x631   :  { %v9499_v58 = vpop.f32.mrb[145].mxu1  ;;  %v12860_v48 = vadd.f32 %v4353_v29, %v12641_v17 }
 0x632   :  { %v4356_v51 = vpop.f32.mrb[146].mxu1 }
 0x633   :  { %v9500_v18 = vpop.f32.mrb[147].mxu1  ;;  %v12863_v3 = vadd.f32 %v4356_v51, %v12643_v33 }
 0x635   :  { %9622 = vmatmul.mubr.bf16.gmra.mrb[252].mxu1 %v12423_v24 }
 0x636   :  { %9625 = vmatprep.mubr.msk.bf16.mxu1 %vm10873_vm0, %v14338_v50 }
 0x638   :  { %v4361_v4 = vpop.f32.mrb[148].mxu1 }
 0x639   :  { %v9503_v55 = vpop.f32.mrb[149].mxu1  ;;  %v12869_v12 = vadd.f32 %v4361_v4, %v12648_v27 }
 0x63a   :  { %v4364_v49 = vpop.f32.mrb[150].mxu1  ;;  %v14368_v55 = vld [vmem:[#allocation28_spill] sm:$0xff] }
 0x63b   :  { %v9504_v21 = vpop.f32.mrb[151].mxu1  ;;  %v12872_v17 = vadd.f32 %v4364_v49, %v12650_v8  ;;  %v14369_v49 = vld [vmem:[#allocation27_spill] sm:$0xff] }
 0x63c   :  { %v14370_v21 = vpack.c.bf16 %v14368_v55, %v14369_v49 }
 0x63d   :  { %9626 = vmatmul.mubr.bf16.gmra.mrb[0].mxu1 %v12440_v45 }
 0x63e   :  { %9629 = vmatprep.mubr.msk.bf16.mxu1 %vm10873_vm0, %v14338_v50 }
 0x640   :  { %v4369_v33 = vpop.f32.mrb[152].mxu1 }
 0x641   :  { %v9507_v24 = vpop.f32.mrb[153].mxu1  ;;  %v12878_v62 = vadd.f32 %v4369_v33, %v12655_v22 }
 0x642   :  { %v4372_v9 = vpop.f32.mrb[154].mxu1 }
 0x643   :  { %v9508_v36 = vpop.f32.mrb[155].mxu1  ;;  %v12881_v27 = vadd.f32 %v4372_v9, %v12657_v7  ;;  %v14364_v7 = vld [vmem:[#allocation25_spill] sm:$0xff] }
 0x644   :  { %v14365_v46 = vpack.c.bf16 %v14363_v63, %v14364_v7 }
 0x645   :  { %9630 = vmatmul.mubr.bf16.gmra.mrb[4].mxu1 %v14361_v61 }
 0x646   :  { %9633 = vmatprep.mubr.msk.bf16.mxu1 %vm10873_vm0, %v14338_v50 }
 0x648   :  { %v4377_v45 = vpop.f32.mrb[156].mxu1 }
 0x649   :  { %v9511_v8 = vpop.f32.mrb[157].mxu1  ;;  %v12889_v30 = vadd.f32 %v4377_v45, %v12662_v41  ;;  %v14367_v41 = vld [vmem:[#allocation34_spill] sm:$0xff] }
 0x64a   :  { %v4380_v20 = vpop.f32.mrb[158].mxu1  ;;  %v14371_v8 = vld [vmem:[#allocation30_spill] sm:$0xff] }
 0x64b   :  { %v9512_v22 = vpop.f32.mrb[159].mxu1  ;;  %v12892_v35 = vadd.f32 %v4380_v20, %v14362_v42  ;;  %v14372_v20 = vld [vmem:[#allocation29_spill] sm:$0xff] }
 0x64c   :  { %v14373_v22 = vpack.c.bf16 %v14371_v8, %v14372_v20 }
 0x64d   :  { %9634 = vmatmul.mubr.bf16.gmra.mrb[8].mxu1 %v14365_v46 }
 0x64e   :  { %9637 = vmatprep.mubr.msk.bf16.mxu1 %vm10873_vm0, %v14338_v50 }
 0x650   :  { %v4385_v2 = vpop.f32.mrb[160].mxu1 }
 0x651   :  { %v12900_v29 = vadd.f32 %v4385_v2, %v14366_v16  ;;  %v9515_v58 = vpop.f32.mrb[161].mxu1  ;;  %v14374_v16 = vld [vmem:[#allocation35_spill] sm:$0xff] }
 0x652   :  { %v4388_v51 = vpop.f32.mrb[162].mxu1 }
 0x653   :  { %v12903_v18 = vadd.f32 %v4388_v51, %v14367_v41  ;;  %v9516_v4 = vpop.f32.mrb[163].mxu1 }
 0x655   :  { %9638 = vmatmul.mubr.bf16.gmra.mrb[12].mxu1 %v14370_v21 }
 0x656   :  { %9641 = vmatprep.mubr.msk.bf16.mxu1 %vm10873_vm0, %v14338_v50 }
 0x658   :  { %v4393_v33 = vpop.f32.mrb[164].mxu1 }
 0x659   :  { %v12911_v24 = vadd.f32 %v4393_v33, %v12676_v37  ;;  %v9519_v9 = vpop.f32.mrb[165].mxu1 }
 0x65a   :  { %v4396_v36 = vpop.f32.mrb[166].mxu1  ;;  %v14376_v9 = vld [vmem:[#allocation36_spill] sm:$0xff] }
 0x65b   :  { %v12914_v61 = vadd.f32 %v4396_v36, %v12678_v1  ;;  %v9520_v45 = vpop.f32.mrb[167].mxu1  ;;  %v14375_v1 = vld [vmem:[#allocation6_spill] sm:$0xff] }
 0x65c   :  { %v14378_v45 = vld [vmem:[#allocation7_spill] sm:$0xff] }
 0x65d   :  { %9642 = vmatmul.mubr.bf16.gmra.mrb[16].mxu1 %v14373_v22 }
 0x65e   :  { %9661 = vmatprep.mubr.msk.bf16.mxu1 %vm10873_vm0, %v14338_v50 }
 0x660   :  { %v4401_v42 = vpop.f32.mrb[168].mxu1 }
 0x661   :  { %v12922_v46 = vadd.f32 %v4401_v42, %v12683_v32  ;;  %v9523_v2 = vpop.f32.mrb[169].mxu1  ;;  %v14379_v42 = vld [vmem:[#allocation37_spill] sm:$0xff] }
 0x662   :  { %v4404_v37 = vpop.f32.mrb[170].mxu1 }
 0x663   :  { %v12925_v58 = vadd.f32 %v4404_v37, %v14374_v16  ;;  %v9524_v51 = vpop.f32.mrb[171].mxu1 }
 0x664   :  { %v14380_v51 = vld [vmem:[#allocation38_spill] sm:$0xff] }
 0x665   :  { %9662 = vmatmul.mubr.bf16.vlgmr.msra.gmra.mrb[20].mxu1 %v14375_v1 }
 0x666   :  { %9665 = vmatprep.mubr.msk.bf16.mxu1 %vm10873_vm0, %v14338_v50 }
 0x668   :  { %v4409_v41 = vpop.f32.mrb[172].mxu1 }
 0x669   :  { %v12931_v4 = vadd.f32 %v4409_v41, %v12697_v44  ;;  %v9527_v21 = vpop.f32.mrb[173].mxu1  ;;  %v14381_v41 = vld [vmem:[#allocation8_spill] sm:$0xff] }
 0x66a   :  { %v4412_v33 = vpop.f32.mrb[174].mxu1 }
 0x66b   :  { %v12934_v32 = vadd.f32 %v4412_v33, %v14376_v9  ;;  %v9528_v36 = vpop.f32.mrb[175].mxu1  ;;  %v14382_v33 = vld [vmem:[#allocation39_spill] sm:$0xff] }
 0x66d   :  { %14377 = vst [vmem:[#allocation32_spill] sm:$0xff] %v12934_v32  ;;  %9666 = vmatmul.mubr.bf16.gmra.mrb[24].mxu1 %v14378_v45  ;;  %v14383_v32 = vld [vmem:[#allocation40_spill] sm:$0xff] }
 0x66e   :  { %9669 = vmatprep.mubr.msk.bf16.mxu1 %vm10873_vm0, %v14338_v50 }
 0x670   :  { %v4417_v22 = vpop.f32.mrb[176].mxu1 }
 0x671   :  { %v12940_v2 = vadd.f32 %v4417_v22, %v14379_v42  ;;  %v9531_v37 = vpop.f32.mrb[177].mxu1 }
 0x672   :  { %v4420_v16 = vpop.f32.mrb[178].mxu1  ;;  %v14384_v37 = vld [vmem:[#allocation9_spill] sm:$0xff] }
 0x673   :  { %v12943_v44 = vadd.f32 %v4420_v16, %v14380_v51  ;;  %v9532_v1 = vpop.f32.mrb[179].mxu1 }
 0x675   :  { %9670 = vmatmul.mubr.bf16.gmra.mrb[28].mxu1 %v14381_v41 }
 0x676   :  { %9673 = vmatprep.mubr.msk.bf16.mxu1 %vm10873_vm0, %v14338_v50 }
 0x678   :  { %v4425_v21 = vpop.f32.mrb[180].mxu1 }
 0x679   :  { %v12949_v9 = vadd.f32 %v4425_v21, %v14382_v33  ;;  %v9535_v36 = vpop.f32.mrb[181].mxu1 }
 0x67a   :  { %v4428_v45 = vpop.f32.mrb[182].mxu1  ;;  %v14385_v36 = vld [vmem:[#allocation10_spill] sm:$0xff] }
 0x67b   :  { %v12952_v22 = vadd.f32 %v4428_v45, %v14383_v32  ;;  %v9536_v42 = vpop.f32.mrb[183].mxu1 }
 0x67d   :  { %9674 = vmatmul.mubr.bf16.gmra.mrb[32].mxu1 %v14384_v37 }
 0x67e   :  { %9677 = vmatprep.mubr.msk.bf16.mxu1 %vm10873_vm0, %v14338_v50 }
 0x680   :  { %v4600_v16 = vpop.f32.mrb[184].mxu1 }
 0x681   :  { %v12958_v51 = vadd.f32 %v4600_v16, %v12740_v31  ;;  %v9555_v1 = vpop.f32.mrb[185].mxu1 }
 0x682   :  { %v4603_v41 = vpop.f32.mrb[186].mxu1  ;;  %v14386_v1 = vld [vmem:[#allocation11_spill] sm:$0xff] }
 0x683   :  { %v12961_v21 = vadd.f32 %v4603_v41, %v12743_v25  ;;  %v9556_v33 = vpop.f32.mrb[187].mxu1 }
 0x685   :  { %9678 = vmatmul.mubr.bf16.gmra.mrb[36].mxu1 %v14385_v36 }
 0x686   :  { %9681 = vmatprep.mubr.msk.bf16.mxu1 %vm10873_vm0, %v14338_v50 }
 0x688   :  { %v4608_v32 = vpop.f32.mrb[188].mxu1 }
 0x689   :  { %v12967_v45 = vadd.f32 %v4608_v32, %v12752_v23  ;;  %v9559_v42 = vpop.f32.mrb[189].mxu1 }
 0x68a   :  { %v4611_v37 = vpop.f32.mrb[190].mxu1  ;;  %v14387_v42 = vld [vmem:[#allocation12_spill] sm:$0xff] }
 0x68b   :  { %v12970_v31 = vadd.f32 %v4611_v37, %v12755_v19  ;;  %v9560_v16 = vpop.f32.mrb[191].mxu1 }
 0x68d   :  { %9682 = vmatmul.mubr.bf16.gmra.mrb[40].mxu1 %v14386_v1 }
 0x68e   :  { %9685 = vmatprep.mubr.msk.bf16.mxu1 %vm10873_vm0, %v14338_v50 }
 0x690   :  { %v4616_v25 = vpop.f32.mrb[192].mxu1 }
 0x691   :  { %v12976_v41 = vadd.f32 %v4616_v25, %v12761_v5  ;;  %v9563_v33 = vpop.f32.mrb[193].mxu1 }
 0x692   :  { %v4619_v36 = vpop.f32.mrb[194].mxu1  ;;  %v14388_v33 = vld [vmem:[#allocation13_spill] sm:$0xff] }
 0x693   :  { %v12979_v23 = vadd.f32 %v4619_v36, %v12764_v28  ;;  %v9564_v32 = vpop.f32.mrb[195].mxu1 }
 0x695   :  { %9686 = vmatmul.mubr.bf16.gmra.mrb[44].mxu1 %v14387_v42 }
 0x696   :  { %9689 = vmatprep.mubr.msk.bf16.mxu1 %vm10873_vm0, %v14338_v50 }
 0x698   :  { %v4624_v19 = vpop.f32.mrb[196].mxu1 }
 0x699   :  { %v12985_v37 = vadd.f32 %v4624_v19, %v12770_v57  ;;  %v9567_v16 = vpop.f32.mrb[197].mxu1 }
 0x69a   :  { %v4627_v1 = vpop.f32.mrb[198].mxu1  ;;  %v14389_v16 = vld [vmem:[#allocation14_spill] sm:$0xff] }
 0x69b   :  { %v12988_v5 = vadd.f32 %v4627_v1, %v12773_v34  ;;  %v9568_v25 = vpop.f32.mrb[199].mxu1 }
 0x69d   :  { %9690 = vmatmul.mubr.bf16.gmra.mrb[48].mxu1 %v14388_v33 }
 0x69e   :  { %9693 = vmatprep.mubr.msk.bf16.mxu1 %vm10873_vm0, %v14338_v50 }
 0x6a0   :  { %v4632_v28 = vpop.f32.mrb[200].mxu1 }
 0x6a1   :  { %v12994_v36 = vadd.f32 %v4632_v28, %v12779_v52  ;;  %v9571_v32 = vpop.f32.mrb[201].mxu1 }
 0x6a2   :  { %v4635_v42 = vpop.f32.mrb[202].mxu1  ;;  %v14390_v32 = vld [vmem:[#allocation15_spill] sm:$0xff] }
 0x6a3   :  { %v12997_v57 = vadd.f32 %v4635_v42, %v12782_v40  ;;  %v9572_v19 = vpop.f32.mrb[203].mxu1 }
 0x6a5   :  { %9694 = vmatmul.mubr.bf16.gmra.mrb[52].mxu1 %v14389_v16 }
 0x6a6   :  { %9697 = vmatprep.mubr.msk.bf16.mxu1 %vm10873_vm0, %v14338_v50 }
 0x6a8   :  { %v4640_v34 = vpop.f32.mrb[204].mxu1 }
 0x6a9   :  { %v13003_v1 = vadd.f32 %v4640_v34, %v12788_v11  ;;  %v9575_v25 = vpop.f32.mrb[205].mxu1 }
 0x6aa   :  { %v4643_v33 = vpop.f32.mrb[206].mxu1  ;;  %v14391_v25 = vld [vmem:[#allocation16_spill] sm:$0xff] }
 0x6ab   :  { %v13006_v52 = vadd.f32 %v4643_v33, %v12791_v43  ;;  %v9576_v28 = vpop.f32.mrb[207].mxu1 }
 0x6ad   :  { %9698 = vmatmul.mubr.bf16.gmra.mrb[56].mxu1 %v14390_v32 }
 0x6ae   :  { %9701 = vmatprep.mubr.msk.bf16.mxu1 %vm10873_vm0, %v14338_v50 }
 0x6b0   :  { %v4648_v40 = vpop.f32.mrb[208].mxu1 }
 0x6b1   :  { %v13012_v42 = vadd.f32 %v4648_v40, %v12797_v59  ;;  %v9579_v19 = vpop.f32.mrb[209].mxu1 }
 0x6b2   :  { %v4651_v16 = vpop.f32.mrb[210].mxu1  ;;  %v14392_v19 = vld [vmem:[#allocation17_spill] sm:$0xff] }
 0x6b3   :  { %v13015_v11 = vadd.f32 %v4651_v16, %v12800_v38  ;;  %v9580_v34 = vpop.f32.mrb[211].mxu1 }
 0x6b5   :  { %9702 = vmatmul.mubr.bf16.gmra.mrb[60].mxu1 %v14391_v25 }
 0x6b6   :  { %9705 = vmatprep.mubr.msk.bf16.mxu1 %vm10873_vm0, %v14338_v50 }
 0x6b8   :  { %v4656_v43 = vpop.f32.mrb[212].mxu1 }
 0x6b9   :  { %v13021_v33 = vadd.f32 %v4656_v43, %v12806_v56  ;;  %v9583_v28 = vpop.f32.mrb[213].mxu1 }
 0x6ba   :  { %v4659_v32 = vpop.f32.mrb[214].mxu1  ;;  %v14393_v28 = vld [vmem:[#allocation18_spill] sm:$0xff] }
 0x6bb   :  { %v13024_v59 = vadd.f32 %v4659_v32, %v12809_v39  ;;  %v9584_v40 = vpop.f32.mrb[215].mxu1 }
 0x6bd   :  { %9706 = vmatmul.mubr.bf16.gmra.mrb[64].mxu1 %v14392_v19 }
 0x6be   :  { %9709 = vmatprep.mubr.msk.bf16.mxu1 %vm10873_vm0, %v14338_v50 }
 0x6c0   :  { %v4664_v38 = vpop.f32.mrb[216].mxu1 }
 0x6c1   :  { %v13030_v16 = vadd.f32 %v4664_v38, %v12815_v0  ;;  %v9587_v34 = vpop.f32.mrb[217].mxu1 }
 0x6c2   :  { %v4667_v25 = vpop.f32.mrb[218].mxu1  ;;  %v14394_v34 = vld [vmem:[#allocation19_spill] sm:$0xff] }
 0x6c3   :  { %v13033_v56 = vadd.f32 %v4667_v25, %v12818_v54  ;;  %v9588_v43 = vpop.f32.mrb[219].mxu1 }
 0x6c5   :  { %9710 = vmatmul.mubr.bf16.gmra.mrb[68].mxu1 %v14393_v28 }
 0x6c6   :  { %9713 = vmatprep.mubr.msk.bf16.mxu1 %vm10873_vm0, %v14338_v50 }
 0x6c8   :  { %v4672_v39 = vpop.f32.mrb[220].mxu1 }
 0x6c9   :  { %v13039_v32 = vadd.f32 %v4672_v39, %v12824_v26  ;;  %v9591_v40 = vpop.f32.mrb[221].mxu1 }
 0x6ca   :  { %v4675_v19 = vpop.f32.mrb[222].mxu1  ;;  %v14395_v40 = vld [vmem:[#allocation20_spill] sm:$0xff] }
 0x6cb   :  { %v13042_v0 = vadd.f32 %v4675_v19, %v12827_v14  ;;  %v9592_v38 = vpop.f32.mrb[223].mxu1 }
 0x6cd   :  { %9714 = vmatmul.mubr.bf16.gmra.mrb[72].mxu1 %v14394_v34 }
 0x6ce   :  { %9717 = vmatprep.mubr.msk.bf16.mxu1 %vm10873_vm0, %v14338_v50 }
 0x6d0   :  { %v4680_v54 = vpop.f32.mrb[224].mxu1 }
 0x6d1   :  { %v13048_v25 = vadd.f32 %v4680_v54, %v12833_v47  ;;  %v9595_v43 = vpop.f32.mrb[225].mxu1 }
 0x6d2   :  { %v4683_v28 = vpop.f32.mrb[226].mxu1  ;;  %v14396_v43 = vld [vmem:[#allocation21_spill] sm:$0xff] }
 0x6d3   :  { %v13051_v26 = vadd.f32 %v4683_v28, %v12836_v60  ;;  %v9596_v39 = vpop.f32.mrb[227].mxu1 }
 0x6d5   :  { %9718 = vmatmul.mubr.bf16.gmra.mrb[76].mxu1 %v14395_v40 }
 0x6d6   :  { %9721 = vmatprep.mubr.msk.bf16.mxu1 %vm10873_vm0, %v14338_v50 }
 0x6d8   :  { %v4688_v14 = vpop.f32.mrb[228].mxu1 }
 0x6d9   :  { %v13057_v19 = vadd.f32 %v4688_v14, %v12842_v10  ;;  %v9599_v38 = vpop.f32.mrb[229].mxu1 }
 0x6da   :  { %v4691_v34 = vpop.f32.mrb[230].mxu1  ;;  %v14397_v38 = vld [vmem:[#allocation22_spill] sm:$0xff] }
 0x6db   :  { %v13060_v47 = vadd.f32 %v4691_v34, %v12845_v15  ;;  %v9600_v54 = vpop.f32.mrb[231].mxu1 }
 0x6dd   :  { %9722 = vmatmul.mubr.bf16.gmra.mrb[80].mxu1 %v14396_v43 }
 0x6de   :  { %9725 = vmatprep.mubr.msk.bf16.mxu1 %vm10873_vm0, %v14338_v50 }
 0x6e0   :  { %v4696_v60 = vpop.f32.mrb[232].mxu1 }
 0x6e1   :  { %v13066_v28 = vadd.f32 %v4696_v60, %v12851_v6  ;;  %v9603_v39 = vpop.f32.mrb[233].mxu1 }
 0x6e2   :  { %v4699_v40 = vpop.f32.mrb[234].mxu1  ;;  %v14398_v39 = vld [vmem:[#allocation23_spill] sm:$0xff] }
 0x6e3   :  { %v13069_v10 = vadd.f32 %v4699_v40, %v12854_v13  ;;  %v9604_v14 = vpop.f32.mrb[235].mxu1 }
 0x6e5   :  { %9726 = vmatmul.mubr.bf16.gmra.mrb[84].mxu1 %v14397_v38 }
 0x6e6   :  { %9729 = vmatprep.mubr.msk.bf16.mxu1 %vm10873_vm0, %v14338_v50 }
 0x6e8   :  { %v4704_v15 = vpop.f32.mrb[236].mxu1 }
 0x6e9   :  { %v13075_v34 = vadd.f32 %v4704_v15, %v12860_v48  ;;  %v9607_v54 = vpop.f32.mrb[237].mxu1 }
 0x6ea   :  { %v4707_v43 = vpop.f32.mrb[238].mxu1  ;;  %v14399_v54 = vld [vmem:[#allocation24_spill] sm:$0xff] }
 0x6eb   :  { %v13078_v6 = vadd.f32 %v4707_v43, %v12863_v3  ;;  %v9608_v60 = vpop.f32.mrb[239].mxu1 }
 0x6ed   :  { %9730 = vmatmul.mubr.bf16.gmra.mrb[88].mxu1 %v14398_v39 }
 0x6ee   :  { %9733 = vmatprep.mubr.msk.bf16.mxu1 %vm10873_vm0, %v14338_v50 }
 0x6f0   :  { %v4712_v13 = vpop.f32.mrb[240].mxu1 }
 0x6f1   :  { %v13084_v40 = vadd.f32 %v4712_v13, %v12869_v12  ;;  %v9611_v14 = vpop.f32.mrb[241].mxu1 }
 0x6f2   :  { %v4715_v38 = vpop.f32.mrb[242].mxu1 }
 0x6f3   :  { %v13087_v48 = vadd.f32 %v4715_v38, %v12872_v17  ;;  %v9612_v15 = vpop.f32.mrb[243].mxu1  ;;  %v14400_v17 = vpack.c.bf16 %v14364_v7, %v12453_v53 }
 0x6f5   :  { %9734 = vmatmul.mubr.bf16.gmra.mrb[92].mxu1 %v14399_v54 }
 0x6f6   :  { %9737 = vmatprep.mubr.msk.bf16.mxu1 %vm10873_vm0, %v14338_v50 }
 0x6f8   :  { %v4720_v3 = vpop.f32.mrb[244].mxu1 }
 0x6f9   :  { %v13093_v43 = vadd.f32 %v4720_v3, %v12878_v62  ;;  %v9615_v60 = vpop.f32.mrb[245].mxu1 }
 0x6fa   :  { %v4723_v39 = vpop.f32.mrb[246].mxu1 }
 0x6fb   :  { %v13096_v12 = vadd.f32 %v4723_v39, %v12881_v27  ;;  %v9616_v13 = vpop.f32.mrb[247].mxu1  ;;  %v14401_v27 = vpack.c.bf16 %v14369_v49, %v14363_v63 }
 0x6fd   :  { %9738 = vmatmul.mubr.bf16.gmra.mrb[96].mxu1 %v14400_v17 }
 0x6fe   :  { %9741 = vmatprep.mubr.msk.bf16.mxu1 %vm10873_vm0, %v14338_v50 }
 0x700   :  { %v4728_v14 = vpop.f32.mrb[248].mxu1 }
 0x701   :  { %v13104_v38 = vadd.f32 %v4728_v14, %v12889_v30  ;;  %v9619_v15 = vpop.f32.mrb[249].mxu1 }
 0x702   :  { %v4731_v62 = vpop.f32.mrb[250].mxu1 }
 0x703   :  { %v13107_v54 = vadd.f32 %v4731_v62, %v12892_v35  ;;  %v9620_v3 = vpop.f32.mrb[251].mxu1  ;;  %v14402_v35 = vpack.c.bf16 %v14372_v20, %v14368_v55 }
 0x705   :  { %9742 = vmatmul.mubr.bf16.gmra.mrb[100].mxu1 %v14401_v27 }
 0x706   :  { %9745 = vmatprep.mubr.msk.bf16.mxu1 %vm10873_vm0, %v14338_v50 }
 0x708   :  { %v4736_v53 = vpop.f32.mrb[252].mxu1 }
 0x709   :  { %v13115_v7 = vadd.f32 %v4736_v53, %v12900_v29  ;;  %v9623_v60 = vpop.f32.mrb[253].mxu1 }
 0x70a   :  { %v4739_v30 = vpop.f32.mrb[254].mxu1 }
 0x70b   :  { %v13118_v39 = vadd.f32 %v4739_v30, %v12903_v18  ;;  %v9624_v13 = vpop.f32.mrb[255].mxu1  ;;  %v14403_v18 = vld [vmem:[#allocation31_spill] sm:$0xff] }
 0x70c   :  { %v14404_v62 = vpack.c.bf16 %v14403_v18, %v14371_v8 }
 0x70d   :  { %9746 = vmatmul.mubr.bf16.gmra.mrb[104].mxu1 %v14402_v35  ;;  %v14405_v35 = vld [vmem:[#allocation32_spill] sm:$0xff] }
 0x70e   :  { %9749 = vmatprep.mubr.msk.bf16.mxu1 %vm10873_vm0, %v14338_v50 }
 0x710   :  { %v4744_v63 = vpop.f32.mrb[0].mxu1 }
 0x711   :  { %v13126_v49 = vadd.f32 %v4744_v63, %v12911_v24  ;;  %v9627_v17 = vpop.f32.mrb[1].mxu1 }
 0x712   :  { %v4747_v29 = vpop.f32.mrb[2].mxu1 }
 0x713   :  { %v13129_v14 = vadd.f32 %v4747_v29, %v12914_v61  ;;  %v9628_v15 = vpop.f32.mrb[3].mxu1 }
 0x715   :  { %9750 = vmatmul.mubr.bf16.gmra.mrb[108].mxu1 %v14404_v62 }
 0x718   :  { %v4752_v3 = vpop.f32.mrb[4].mxu1 }
 0x719   :  { %v13135_v55 = vadd.f32 %v4752_v3, %v12922_v46  ;;  %v9631_v20 = vpop.f32.mrb[5].mxu1 }
 0x71a   :  { %v4755_v27 = vpop.f32.mrb[6].mxu1 }
 0x71b   :  { %v13138_v53 = vadd.f32 %v4755_v27, %v12925_v58  ;;  %v9632_v24 = vpop.f32.mrb[7].mxu1  ;;  %v10297_v27 = vld [vmem:[%s14274_s5 + $0x40] sm:$0xff]  }
 0x71c   :  { %9157 = vmatprep.subr.bf16.mxu1 %v10297_v27 }
 0x720   :  { %v4760_v60 = vpop.f32.mrb[8].mxu1 }
 0x721   :  { %v13141_v30 = vadd.f32 %v4760_v60, %v12931_v4  ;;  %v9635_v61 = vpop.f32.mrb[9].mxu1 }
 0x722   :  { %v4763_v13 = vpop.f32.mrb[10].mxu1 }
 0x723   :  { %v13144_v63 = vadd.f32 %v4763_v13, %v14405_v35  ;;  %v9636_v8 = vpop.f32.mrb[11].mxu1 }
 0x728   :  { %v4768_v17 = vpop.f32.mrb[12].mxu1 }
 0x729   :  { %v13147_v46 = vadd.f32 %v4768_v17, %v12940_v2  ;;  %v9639_v29 = vpop.f32.mrb[13].mxu1 }
 0x72a   :  { %v4771_v15 = vpop.f32.mrb[14].mxu1 }
 0x72b   :  { %v13150_v58 = vadd.f32 %v4771_v15, %v12943_v44  ;;  %v9640_v18 = vpop.f32.mrb[15].mxu1  ;;  %v10298_v44 = vld [vmem:[%s14274_s5] sm:$0xff]  }
 0x72c   :  { %9158 = vmatpush3.bf16.msra.mxu1 %v10298_v44 }
 0x730   :  { %v4776_v62 = vpop.f32.mrb[16].mxu1 }
 0x731   :  { %v13153_v4 = vadd.f32 %v4776_v62, %v12949_v9  ;;  %v9643_v3 = vpop.f32.mrb[17].mxu1  ;;  %v13167_v9 = vld [vmem:[%s14275_s4] ss:$0 sm:$0xff] }
 0x732   :  { %v4779_v20 = vpop.f32.mrb[18].mxu1 }
 0x733   :  { %v13159_v24 = vadd.f32 %v4779_v20, %v12952_v22  ;;  %v9644_v2 = vpop.f32.mrb[19].mxu1 }
 0x738   :  { %v4997_v60 = vpop.f32.mrb[20].mxu1 }
 0x739   :  { %v5180_v61 = vadd.f32 %v4997_v60, %v12958_v51  ;;  %v9663_v13 = vpop.f32.mrb[21].mxu1  ;;  %v10300_v60 = vld [vmem:[%s14274_s5 + $0x8] sm:$0xff]  }
 0x73a   :  { %v5000_v35 = vpop.f32.mrb[22].mxu1 }
 0x73b   :  { %v5233_v22 = vadd.f32 %v13167_v9, %v5180_v61  ;;  %v5181_v8 = vadd.f32 %v5000_v35, %v12961_v21  ;;  %v9664_v17 = vpop.f32.mrb[23].mxu1  ;;  %v10299_v21 = vld [vmem:[%s14274_s5 + $0x48] sm:$0xff]  }
 0x73c   :  { %9159 = vmatprep.subr.bf16.mxu1 %v10299_v21 }
 0x73d   :  { %v8726_v29 = vmul.f32 -1.442695, %v5233_v22  ;;  %v5234_v15 = vadd.f32 %v13167_v9, %v5181_v8  ;;  %9160 = vmatpush3.bf16.msra.mxu1 %v10300_v60 }
 0x73f   :  { %10629 = vpow2.f32 %v8726_v29  ;;  %v8727_v18 = vmul.f32 -1.442695, %v5234_v15 }
 0x740   :  { %v5005_v62 = vpop.f32.mrb[24].mxu1 }
 0x741   :  { %10631 = vpow2.f32 %v8727_v18  ;;  %v5182_v3 = vadd.f32 %v5005_v62, %v12967_v45  ;;  %v9667_v20 = vpop.f32.mrb[25].mxu1 }
 0x742   :  { %v5008_v27 = vpop.f32.mrb[26].mxu1 }
 0x743   :  { %v13175_v51 = vadd.f32 %v13167_v9, %v5182_v3  ;;  %v5183_v2 = vadd.f32 %v5008_v27, %v12970_v31  ;;  %v9668_v44 = vpop.f32.mrb[27].mxu1 }
 0x745   :  { %v8728_v61 = vmul.f32 -1.442695, %v13175_v51  ;;  %v13186_v45 = vadd.f32 %v13167_v9, %v5183_v2 }
 0x747   :  { %10633 = vpow2.f32 %v8728_v61  ;;  %v8729_v13 = vmul.f32 -1.442695, %v13186_v45 }
 0x748   :  { %v5013_v31 = vpop.f32.mrb[28].mxu1 }
 0x749   :  { %v10630_v35 = vpop.eup %10629  ;;  %10635 = vpow2.f32 %v8729_v13  ;;  %v5184_v8 = vadd.f32 %v5013_v31, %v12976_v41  ;;  %v9671_v17 = vpop.f32.mrb[29].mxu1 }
 0x74a   :  { %v5417_v29 = vadd.f32 1.0, %v10630_v35  ;;  %v5016_v18 = vpop.f32.mrb[30].mxu1 }
 0x74b   :  { %v10632_v62 = vpop.eup %10631  ;;  %v13191_v3 = vadd.f32 %v13167_v9, %v5184_v8  ;;  %v5185_v20 = vadd.f32 %v5016_v18, %v12979_v23  ;;  %v9672_v27 = vpop.f32.mrb[31].mxu1 }
 0x74c   :  { %10637 = vrcp.f32 %v5417_v29  ;;  %v5418_v2 = vadd.f32 1.0, %v10632_v62 }
 0x74d   :  { %v8730_v44 = vmul.f32 -1.442695, %v13191_v3  ;;  %v5238_v21 = vadd.f32 %v13167_v9, %v5185_v20 }
 0x74e   :  { %10639 = vrcp.f32 %v5418_v2 }
 0x74f   :  { %10641 = vpow2.f32 %v8730_v44  ;;  %v8731_v60 = vmul.f32 -1.442695, %v5238_v21 }
 0x750   :  { %v5021_v41 = vpop.f32.mrb[32].mxu1 }
 0x751   :  { %v10634_v61 = vpop.eup %10633  ;;  %10643 = vpow2.f32 %v8731_v60  ;;  %v5186_v13 = vadd.f32 %v5021_v41, %v12985_v37  ;;  %v9675_v31 = vpop.f32.mrb[33].mxu1 }
 0x752   :  { %v5419_v35 = vadd.f32 1.0, %v10634_v61  ;;  %v5024_v8 = vpop.f32.mrb[34].mxu1 }
 0x753   :  { %v10636_v17 = vpop.eup %10635  ;;  %v5239_v23 = vadd.f32 %v13167_v9, %v5186_v13  ;;  %v5187_v29 = vadd.f32 %v5024_v8, %v12988_v5  ;;  %v9676_v18 = vpop.f32.mrb[35].mxu1 }
 0x754   :  { %10645 = vrcp.f32 %v5419_v35  ;;  %v5420_v62 = vadd.f32 1.0, %v10636_v17 }
 0x755   :  { %v8732_v20 = vmul.f32 -1.442695, %v5239_v23  ;;  %v5240_v27 = vadd.f32 %v13167_v9, %v5187_v29  ;;  %v10301_v29 = vld [vmem:[%s14274_s5 + $0x50] sm:$0xff]  }
 0x756   :  { %v10638_v2 = vpop.eup %10637  ;;  %10647 = vrcp.f32 %v5420_v62  ;;  %9161 = vmatprep.subr.bf16.mxu1 %v10301_v29 }
 0x757   :  { %v5555_v44 = vmul.f32 %v10638_v2, %v5233_v22  ;;  %10649 = vpow2.f32 %v8732_v20  ;;  %v8733_v37 = vmul.f32 -1.442695, %v5240_v27 }
 0x758   :  { %v10640_v21 = vpop.eup %10639  ;;  %v5029_v60 = vpop.f32.mrb[36].mxu1 }
 0x759   :  { %v10642_v41 = vpop.eup %10641  ;;  %5602 = vst.msk [vmem:[#allocation3] sm:$0xff] %vm5601_vm1, %v5555_v44  ;;  %v5556_v61 = vmul.f32 %v10640_v21, %v5234_v15  ;;  %10651 = vpow2.f32 %v8733_v37  ;;  %v5188_v5 = vadd.f32 %v5029_v60, %v12994_v36  ;;  %v9679_v13 = vpop.f32.mrb[37].mxu1  ;;  %v10302_v36 = vld [vmem:[%s14274_s5 + $0x10] sm:$0xff]  }
 0x75a   :  { %v5421_v31 = vadd.f32 1.0, %v10642_v41  ;;  %v5032_v35 = vpop.f32.mrb[38].mxu1  ;;  %9162 = vmatpush3.bf16.msra.mxu1 %v10302_v36 }
 0x75b   :  { %v10644_v8 = vpop.eup %10643  ;;  %5603 = vst.msk [vmem:[#allocation3 + $0x8] sm:$0xff] %vm5601_vm1, %v5556_v61  ;;  %v13204_v17 = vadd.f32 %v13167_v9, %v5188_v5  ;;  %v5189_v22 = vadd.f32 %v5032_v35, %v12997_v57  ;;  %v9680_v23 = vpop.f32.mrb[39].mxu1 }
 0x75c   :  { %10653 = vrcp.f32 %v5421_v31  ;;  %v5422_v15 = vadd.f32 1.0, %v10644_v8 }
 0x75d   :  { %v8734_v18 = vmul.f32 -1.442695, %v13204_v17  ;;  %v13215_v62 = vadd.f32 %v13167_v9, %v5189_v22 }
 0x75e   :  { %v10646_v20 = vpop.eup %10645  ;;  %10655 = vrcp.f32 %v5422_v15 }
 0x75f   :  { %v5557_v57 = vmul.f32 %v10646_v20, %v13175_v51  ;;  %10657 = vpow2.f32 %v8734_v18  ;;  %v8735_v27 = vmul.f32 -1.442695, %v13215_v62 }
 0x760   :  { %v10648_v2 = vpop.eup %10647  ;;  %v5037_v44 = vpop.f32.mrb[40].mxu1  ;;  %v5648_v37 = vld [vmem:[#allocation3] sm:$0xff] }
 0x761   :  { %v10650_v21 = vpop.eup %10649  ;;  %5604 = vst.msk [vmem:[#allocation3 + $0x10] sm:$0xff] %vm5601_vm1, %v5557_v57  ;;  %v5558_v60 = vmul.f32 %v10648_v2, %v13186_v45  ;;  %10659 = vpow2.f32 %v8735_v27  ;;  %v5190_v41 = vadd.f32 %v5037_v44, %v13003_v1  ;;  %v9683_v61 = vpop.f32.mrb[41].mxu1  ;;  %5649 = vst.msk [vmem:[#allocation4] sm:$0xff] %vm5601_vm1, %v5648_v37 }
 0x762   :  { %v5423_v5 = vadd.f32 1.0, %v10650_v21  ;;  %v5040_v13 = vpop.f32.mrb[42].mxu1  ;;  %v5650_v51 = vld [vmem:[#allocation3 + $0x8] sm:$0xff] }
 0x763   :  { %v10652_v31 = vpop.eup %10651  ;;  %5605 = vst.msk [vmem:[#allocation3 + $0x18] sm:$0xff] %vm5601_vm1, %v5558_v60  ;;  %v13225_v35 = vadd.f32 %v13167_v9, %v5190_v41  ;;  %v5191_v8 = vadd.f32 %v5040_v13, %v13006_v52  ;;  %5652 = vrot.lane.b32.xlu1 %v5650_v51, %s10874_s29  ;;  %v9684_v45 = vpop.f32.mrb[43].mxu1 }
 0x764   :  { %10661 = vrcp.f32 %v5423_v5  ;;  %v5424_v1 = vadd.f32 1.0, %v10652_v31 }
 0x765   :  { %v8736_v22 = vmul.f32 -1.442695, %v13225_v35  ;;  %v13231_v23 = vadd.f32 %v13167_v9, %v5191_v8 }
 0x766   :  { %v10654_v29 = vpop.eup %10653  ;;  %10663 = vrcp.f32 %v5424_v1 }
 0x767   :  { %v5559_v36 = vmul.f32 %v10654_v29, %v13191_v3  ;;  %10665 = vpow2.f32 %v8736_v22  ;;  %v8737_v15 = vmul.f32 -1.442695, %v13231_v23 }
 0x768   :  { %v10656_v18 = vpop.eup %10655  ;;  %v5045_v52 = vpop.f32.mrb[44].mxu1  ;;  %v5683_v20 = vld [vmem:[#allocation3 + $0x10] sm:$0xff] }
 0x769   :  { %v10658_v57 = vpop.eup %10657  ;;  %5606 = vst.msk [vmem:[#allocation3 + $0x20] sm:$0xff] %vm5601_vm1, %v5559_v36  ;;  %10667 = vpow2.f32 %v8737_v15  ;;  %v5192_v27 = vadd.f32 %v5045_v52, %v13012_v42  ;;  %v9687_v2 = vpop.f32.mrb[45].mxu1  ;;  %5684 = vst.msk [vmem:[#allocation4 + $0x28] sm:$0xff] %vm5601_vm1, %v5683_v20  ;;  %v10303_v36 = vld [vmem:[%s14274_s5 + $0x58] sm:$0xff]  }
 0x76a   :  { %5658 = vst.msk [vmem:[#allocation4 + $0x8] sm:$0xff] %vm5601_vm1, %v5683_v20  ;;  %v5425_v44 = vadd.f32 1.0, %v10658_v57  ;;  %v5048_v37 = vpop.f32.mrb[46].mxu1  ;;  %v5685_v3 = vld [vmem:[#allocation3 + $0x18] sm:$0xff]  ;;  %9163 = vmatprep.subr.bf16.mxu1 %v10303_v36 }
 0x76b   :  { %v10660_v21 = vpop.eup %10659  ;;  %v13240_v60 = vadd.f32 %v13167_v9, %v5192_v27  ;;  %v5193_v41 = vadd.f32 %v5048_v37, %v13015_v11  ;;  %5687 = vrot.lane.b32.xlu1 %v5685_v3, %s10874_s29  ;;  %v9688_v61 = vpop.f32.mrb[47].mxu1  ;;  %v10304_v52 = vld [vmem:[%s14274_s5 + $0x18] sm:$0xff]   ;;  %v10305_v3 = vld [vmem:[%s14274_s5 + $0x60] sm:$0xff]  }
 0x76c   :  { %10669 = vrcp.f32 %v5425_v44  ;;  %v5426_v5 = vadd.f32 1.0, %v10660_v21  ;;  %9164 = vmatpush3.bf16.msra.mxu1 %v10304_v52  ;;  %v10309_v52 = vld [vmem:[%s14274_s5 + $0x70] sm:$0xff]  }
 0x76d   :  { %v8738_v42 = vmul.f32 -1.442695, %v13240_v60  ;;  %v5246_v13 = vadd.f32 %v13167_v9, %v5193_v41  ;;  %v10306_v41 = vld [vmem:[%s14274_s5 + $0x20] sm:$0xff]   ;;  %9165 = vmatprep.subr.bf16.mxu1 %v10305_v3 }
 0x76e   :  { %v10662_v51 = vpop.eup %10661  ;;  %10671 = vrcp.f32 %v5426_v5 }
 0x76f   :  { %10673 = vpow2.f32 %v8738_v42  ;;  %v8739_v31 = vmul.f32 -1.442695, %v5246_v13 }
 0x770   :  { %v10664_v8 = vpop.eup %10663  ;;  %v5053_v45 = vpop.f32.mrb[48].mxu1  ;;  %v5691_v1 = vld [vmem:[#allocation3 + $0x20] sm:$0xff]  ;;  %9166 = vmatpush3.bf16.msra.mxu1 %v10306_v41 }
 0x771   :  { %v10666_v22 = vpop.eup %10665  ;;  %10675 = vpow2.f32 %v8739_v31  ;;  %v5194_v11 = vadd.f32 %v5053_v45, %v13021_v33  ;;  %v9691_v29 = vpop.f32.mrb[49].mxu1  ;;  %5692 = vst.msk [vmem:[#allocation4 + $0x30] sm:$0xff] %vm5601_vm1, %v5691_v1  ;;  %v10307_v45 = vld [vmem:[%s14274_s5 + $0x68] sm:$0xff]  }
 0x772   :  { %v5427_v15 = vadd.f32 1.0, %v10666_v22  ;;  %v5056_v18 = vpop.f32.mrb[50].mxu1  ;;  %v10308_v22 = vld [vmem:[%s14274_s5 + $0x28] sm:$0xff]   ;;  %9167 = vmatprep.subr.bf16.mxu1 %v10307_v45 }
 0x773   :  { %v10668_v20 = vpop.eup %10667  ;;  %v5247_v57 = vadd.f32 %v13167_v9, %v5194_v11  ;;  %v5195_v27 = vadd.f32 %v5056_v18, %v13024_v59  ;;  %v9692_v2 = vpop.f32.mrb[51].mxu1 }
 0x774   :  { %10677 = vrcp.f32 %v5427_v15  ;;  %v5428_v33 = vadd.f32 1.0, %v10668_v20  ;;  %9168 = vmatpush3.bf16.msra.mxu1 %v10308_v22 }
 0x775   :  { %v8740_v44 = vmul.f32 -1.442695, %v5247_v57  ;;  %v5248_v37 = vadd.f32 %v13167_v9, %v5195_v27  ;;  %9169 = vmatprep.subr.bf16.mxu1 %v10309_v52 }
 0x776   :  { %v10670_v21 = vpop.eup %10669  ;;  %10679 = vrcp.f32 %v5428_v33 }
 0x777   :  { %v5563_v59 = vmul.f32 %v10670_v21, %v13204_v17  ;;  %10681 = vpow2.f32 %v8740_v44  ;;  %v8741_v61 = vmul.f32 -1.442695, %v5248_v37 }
 0x778   :  { %v10672_v5 = vpop.eup %10671  ;;  %v5061_v42 = vpop.f32.mrb[52].mxu1 }
 0x779   :  { %v10674_v13 = vpop.eup %10673  ;;  %5610 = vst.msk [vmem:[#allocation3 + $0x40] sm:$0xff] %vm5601_vm1, %v5563_v59  ;;  %v5564_v51 = vmul.f32 %v10672_v5, %v13215_v62  ;;  %10683 = vpow2.f32 %v8741_v61  ;;  %v5196_v31 = vadd.f32 %v5061_v42, %v13030_v16  ;;  %v9695_v8 = vpop.f32.mrb[53].mxu1  ;;  %v10312_v5 = vld [vmem:[%s14274_s5 + $0x38] sm:$0xff]  }
 0x77a   :  { %v5429_v17 = vadd.f32 1.0, %v10674_v13  ;;  %v5064_v1 = vpop.f32.mrb[54].mxu1 }
 0x77b   :  { %v10676_v11 = vpop.eup %10675  ;;  %5611 = vst.msk [vmem:[#allocation3 + $0x48] sm:$0xff] %vm5601_vm1, %v5564_v51  ;;  %v13275_v29 = vadd.f32 %v13167_v9, %v5196_v31  ;;  %v5197_v62 = vadd.f32 %v5064_v1, %v13033_v56  ;;  %v9696_v16 = vpop.f32.mrb[55].mxu1  ;;  %v10310_v56 = vld [vmem:[%s14274_s5 + $0x30] sm:$0xff]  }
 0x77c   :  { %10685 = vrcp.f32 %v5429_v17  ;;  %v5430_v36 = vadd.f32 1.0, %v10676_v11  ;;  %9170 = vmatpush3.bf16.msra.mxu1 %v10310_v56 }
 0x77d   :  { %v8742_v15 = vmul.f32 -1.442695, %v13275_v29  ;;  %v13280_v18 = vadd.f32 %v13167_v9, %v5197_v62 }
 0x77e   :  { %v10678_v20 = vpop.eup %10677  ;;  %10687 = vrcp.f32 %v5430_v36 }
 0x77f   :  { %v5565_v57 = vmul.f32 %v10678_v20, %v13225_v35  ;;  %10689 = vpow2.f32 %v8742_v15  ;;  %v8743_v27 = vmul.f32 -1.442695, %v13280_v18  ;;  %v10311_v35 = vld [vmem:[%s14274_s5 + $0x78] sm:$0xff]  }
 0x780   :  { %v10680_v2 = vpop.eup %10679  ;;  %v5069_v33 = vpop.f32.mrb[56].mxu1  ;;  %v5659_v44 = vld [vmem:[#allocation3 + $0x40] sm:$0xff]  ;;  %9171 = vmatprep.subr.bf16.mxu1 %v10311_v35 }
 0x781   :  { %v10682_v37 = vpop.eup %10681  ;;  %5612 = vst.msk [vmem:[#allocation3 + $0x50] sm:$0xff] %vm5601_vm1, %v5565_v57  ;;  %v5566_v3 = vmul.f32 %v10680_v2, %v13231_v23  ;;  %10691 = vpow2.f32 %v8743_v27  ;;  %v5198_v21 = vadd.f32 %v5069_v33, %v13039_v32  ;;  %5661 = vrot.lane.b32.xlu0 %v5659_v44, %s10874_s29  ;;  %v9699_v41 = vpop.f32.mrb[57].mxu1  ;;  %9172 = vmatpush3.bf16.msra.mxu1 %v10312_v5  ;;  %v10313_v33 = vld [vmem:[%s14274_s5 + $0xc0] sm:$0xff]  }
 0x782   :  { %v5431_v59 = vadd.f32 1.0, %v10682_v37  ;;  %v5072_v61 = vpop.f32.mrb[58].mxu1  ;;  %v5665_v42 = vld [vmem:[#allocation3 + $0x48] sm:$0xff]  ;;  %9185 = vmatprep.subr.bf16.mxu1 %v10313_v33 }
 0x783   :  { %v10684_v13 = vpop.eup %10683  ;;  %5613 = vst.msk [vmem:[#allocation3 + $0x58] sm:$0xff] %vm5601_vm1, %v5566_v3  ;;  %v13302_v23 = vadd.f32 %v13167_v9, %v5198_v21  ;;  %v5199_v32 = vadd.f32 %v5072_v61, %v13042_v0  ;;  %v9700_v51 = vpop.f32.mrb[59].mxu1  ;;  %5666 = vst.msk [vmem:[#allocation4 + $0x10] sm:$0xff] %vm5601_vm1, %v5665_v42 }
 0x784   :  { %10693 = vrcp.f32 %v5431_v59  ;;  %v5432_v31 = vadd.f32 1.0, %v10684_v13 }
 0x785   :  { %v8744_v8 = vmul.f32 -1.442695, %v13302_v23  ;;  %v13308_v45 = vadd.f32 %v13167_v9, %v5199_v32 }
 0x786   :  { %v10686_v17 = vpop.eup %10685  ;;  %10695 = vrcp.f32 %v5432_v31 }
 0x787   :  { %v5567_v1 = vmul.f32 %v10686_v17, %v13240_v60  ;;  %10697 = vpow2.f32 %v8744_v8  ;;  %v8745_v22 = vmul.f32 -1.442695, %v13308_v45 }
 0x788   :  { %v10688_v0 = vpop.eup %10687  ;;  %v5077_v11 = vpop.f32.mrb[60].mxu1  ;;  %v13312_v62 = vld [vmem:[#allocation3 + $0x50] sm:$0xff] }
 0x789   :  { %v10690_v16 = vpop.eup %10689  ;;  %5614 = vst.msk [vmem:[#allocation3 + $0x60] sm:$0xff] %vm5601_vm1, %v5567_v1  ;;  %10699 = vpow2.f32 %v8745_v22  ;;  %v5200_v36 = vadd.f32 %v5077_v11, %v13048_v25  ;;  %5695 = vrot.lane.b32.xlu0 %v13312_v62, %s10874_s29  ;;  %v9703_v15 = vpop.f32.mrb[61].mxu1 }
 0x78a   :  { %v5433_v52 = vadd.f32 1.0, %v10690_v16  ;;  %v5080_v20 = vpop.f32.mrb[62].mxu1  ;;  %v5699_v60 = vld [vmem:[#allocation3 + $0x58] sm:$0xff] }
 0x78b   :  { %v10692_v56 = vpop.eup %10691  ;;  %v13319_v57 = vadd.f32 %v13167_v9, %v5200_v36  ;;  %v5201_v27 = vadd.f32 %v5080_v20, %v13051_v26  ;;  %v9704_v2 = vpop.f32.mrb[63].mxu1  ;;  %5700 = vst.msk [vmem:[#allocation4 + $0x38] sm:$0xff] %vm5601_vm1, %v5699_v60 }
 0x78c   :  { %10701 = vrcp.f32 %v5433_v52  ;;  %v5434_v25 = vadd.f32 1.0, %v10692_v56 }
 0x78d   :  { %v8746_v44 = vmul.f32 -1.442695, %v13319_v57  ;;  %v5254_v37 = vadd.f32 %v13167_v9, %v5201_v27 }
 0x78e   :  { %v10694_v3 = vpop.eup %10693  ;;  %10703 = vrcp.f32 %v5434_v25 }
 0x78f   :  { %10705 = vpow2.f32 %v8746_v44  ;;  %v8747_v21 = vmul.f32 -1.442695, %v5254_v37 }
 0x790   :  { %v10696_v41 = vpop.eup %10695  ;;  %v5085_v26 = vpop.f32.mrb[64].mxu1 }
 0x791   :  { %v10698_v35 = vpop.eup %10697  ;;  %10707 = vpow2.f32 %v8747_v21  ;;  %v5202_v59 = vadd.f32 %v5085_v26, %v13057_v19  ;;  %v9707_v61 = vpop.f32.mrb[65].mxu1 }
 0x792   :  { %v5435_v5 = vadd.f32 1.0, %v10698_v35  ;;  %v5088_v42 = vpop.f32.mrb[66].mxu1 }
 0x793   :  { %v10700_v13 = vpop.eup %10699  ;;  %v5255_v32 = vadd.f32 %v13167_v9, %v5202_v59  ;;  %v5203_v51 = vadd.f32 %v5088_v42, %v13060_v47  ;;  %v9708_v31 = vpop.f32.mrb[67].mxu1 }
 0x794   :  { %10709 = vrcp.f32 %v5435_v5  ;;  %v5436_v8 = vadd.f32 1.0, %v10700_v13 }
 0x795   :  { %v8748_v17 = vmul.f32 -1.442695, %v5255_v32  ;;  %v5256_v1 = vadd.f32 %v13167_v9, %v5203_v51 }
 0x796   :  { %v10702_v22 = vpop.eup %10701  ;;  %10711 = vrcp.f32 %v5436_v8 }
 0x797   :  { %v5571_v0 = vmul.f32 %v10702_v22, %v13275_v29  ;;  %10713 = vpow2.f32 %v8748_v17  ;;  %v8749_v19 = vmul.f32 -1.442695, %v5256_v1 }
 0x798   :  { %v10704_v11 = vpop.eup %10703  ;;  %v5093_v16 = vpop.f32.mrb[68].mxu1 }
 0x799   :  { %v10706_v36 = vpop.eup %10705  ;;  %5618 = vst.msk [vmem:[#allocation3 + $0x80] sm:$0xff] %vm5601_vm1, %v5571_v0  ;;  %v5572_v15 = vmul.f32 %v10704_v11, %v13280_v18  ;;  %10715 = vpow2.f32 %v8749_v19  ;;  %v5204_v47 = vadd.f32 %v5093_v16, %v13066_v28  ;;  %v9711_v52 = vpop.f32.mrb[69].mxu1 }
 0x79a   :  { %v5437_v20 = vadd.f32 1.0, %v10706_v36  ;;  %v5096_v60 = vpop.f32.mrb[70].mxu1 }
 0x79b   :  { %v10708_v56 = vpop.eup %10707  ;;  %5619 = vst.msk [vmem:[#allocation3 + $0x88] sm:$0xff] %vm5601_vm1, %v5572_v15  ;;  %v13338_v29 = vadd.f32 %v13167_v9, %v5204_v47  ;;  %v5205_v27 = vadd.f32 %v5096_v60, %v13069_v10  ;;  %v9712_v2 = vpop.f32.mrb[71].mxu1 }
 0x79c   :  { %10717 = vrcp.f32 %v5437_v20  ;;  %v5438_v33 = vadd.f32 1.0, %v10708_v56 }
 0x79d   :  { %v8750_v25 = vmul.f32 -1.442695, %v13338_v29  ;;  %v13343_v18 = vadd.f32 %v13167_v9, %v5205_v27 }
 0x79e   :  { %v10710_v28 = vpop.eup %10709  ;;  %10719 = vrcp.f32 %v5438_v33 }
 0x79f   :  { %v5573_v44 = vmul.f32 %v10710_v28, %v13302_v23  ;;  %10721 = vpow2.f32 %v8750_v25  ;;  %v8751_v37 = vmul.f32 -1.442695, %v13343_v18 }
 0x7a0   :  { %v10712_v3 = vpop.eup %10711  ;;  %v5101_v21 = vpop.f32.mrb[72].mxu1  ;;  %v5717_v41 = vld [vmem:[#allocation3 + $0x80] sm:$0xff] }
 0x7a1   :  { %v10714_v26 = vpop.eup %10713  ;;  %5620 = vst.msk [vmem:[#allocation3 + $0x90] sm:$0xff] %vm5601_vm1, %v5573_v44  ;;  %v5574_v10 = vmul.f32 %v10712_v3, %v13308_v45  ;;  %10723 = vpow2.f32 %v8751_v37  ;;  %v5206_v35 = vadd.f32 %v5101_v21, %v13075_v34  ;;  %v9715_v59 = vpop.f32.mrb[73].mxu1  ;;  %5718 = vst.msk [vmem:[#allocation4 + $0x50] sm:$0xff] %vm5601_vm1, %v5717_v41 }
 0x7a2   :  { %5674 = vst.msk [vmem:[#allocation4 + $0x18] sm:$0xff] %vm5601_vm1, %v5717_v41  ;;  %v5439_v23 = vadd.f32 1.0, %v10714_v26  ;;  %v5104_v61 = vpop.f32.mrb[74].mxu1 }
 0x7a3   :  { %v10716_v5 = vpop.eup %10715  ;;  %5621 = vst.msk [vmem:[#allocation3 + $0x98] sm:$0xff] %vm5601_vm1, %v5574_v10  ;;  %v13354_v42 = vadd.f32 %v13167_v9, %v5206_v35  ;;  %v5207_v13 = vadd.f32 %v5104_v61, %v13078_v6  ;;  %v9716_v32 = vpop.f32.mrb[75].mxu1 }
 0x7a4   :  { %10725 = vrcp.f32 %v5439_v23  ;;  %v5440_v45 = vadd.f32 1.0, %v10716_v5 }
 0x7a5   :  { %v8752_v34 = vmul.f32 -1.442695, %v13354_v42  ;;  %v13359_v51 = vadd.f32 %v13167_v9, %v5207_v13 }
 0x7a6   :  { %v10718_v31 = vpop.eup %10717  ;;  %10727 = vrcp.f32 %v5440_v45 }
 0x7a7   :  { %v5575_v8 = vmul.f32 %v10718_v31, %v13319_v57  ;;  %10729 = vpow2.f32 %v8752_v34  ;;  %v8753_v17 = vmul.f32 -1.442695, %v13359_v51 }
 0x7a8   :  { %v10720_v1 = vpop.eup %10719  ;;  %v5681_v22 = vld [vmem:[#allocation3 + $0x90] sm:$0xff]  ;;  %v5109_v0 = vpop.f32.mrb[76].mxu1 }
 0x7a9   :  { %v10722_v19 = vpop.eup %10721  ;;  %5682 = vst.msk [vmem:[#allocation4 + $0x20] sm:$0xff] %vm5601_vm1, %v5681_v22  ;;  %5622 = vst.msk [vmem:[#allocation3 + $0xa0] sm:$0xff] %vm5601_vm1, %v5575_v8  ;;  %10731 = vpow2.f32 %v8753_v17  ;;  %v5208_v6 = vadd.f32 %v5109_v0, %v13084_v40  ;;  %v9719_v11 = vpop.f32.mrb[77].mxu1 }
 0x7aa   :  { %5726 = vst.msk [vmem:[#allocation4 + $0x58] sm:$0xff] %vm5601_vm1, %v5681_v22  ;;  %5752 = vst.msk [vmem:[#allocation4 + $0x78] sm:$0xff] %vm5601_vm1, %v5681_v22  ;;  %v5441_v57 = vadd.f32 1.0, %v10722_v19  ;;  %v5112_v16 = vpop.f32.mrb[78].mxu1 }
 0x7ab   :  { %5708 = vst.msk [vmem:[#allocation4 + $0x40] sm:$0xff] %vm5601_vm1, %v5681_v22  ;;  %v10724_v36 = vpop.eup %10723  ;;  %v13370_v15 = vadd.f32 %v13167_v9, %v5208_v6  ;;  %v5209_v47 = vadd.f32 %v5112_v16, %v13087_v48  ;;  %v9720_v52 = vpop.f32.mrb[79].mxu1 }
 0x7ac   :  { %10733 = vrcp.f32 %v5441_v57  ;;  %v5442_v20 = vadd.f32 1.0, %v10724_v36 }
 0x7ad   :  { %v8754_v40 = vmul.f32 -1.442695, %v13370_v15  ;;  %v5262_v60 = vadd.f32 %v13167_v9, %v5209_v47 }
 0x7ae   :  { %v10726_v56 = vpop.eup %10725  ;;  %10735 = vrcp.f32 %v5442_v20 }
 0x7af   :  { %10737 = vpow2.f32 %v8754_v40  ;;  %v8755_v27 = vmul.f32 -1.442695, %v5262_v60 }
 0x7b0   :  { %v10728_v2 = vpop.eup %10727  ;;  %v5715_v33 = vld [vmem:[#allocation3 + $0xa0] sm:$0xff]  ;;  %v5117_v25 = vpop.f32.mrb[80].mxu1 }
 0x7b1   :  { %v10730_v28 = vpop.eup %10729  ;;  %5716 = vst.msk [vmem:[#allocation4 + $0x48] sm:$0xff] %vm5601_vm1, %v5715_v33  ;;  %10739 = vpow2.f32 %v8755_v27  ;;  %v5210_v48 = vadd.f32 %v5117_v25, %v13093_v43  ;;  %v9723_v44 = vpop.f32.mrb[81].mxu1  ;;  %5760 = vst.msk [vmem:[#allocation4 + $0x80] sm:$0xff] %vm5601_vm1, %v5715_v33  ;;  %v13404_v27 = vld [vmem:[%s14275_s4] ss:$0 sm:$0xff]  ;;  %v5719_v25 = vld [vmem:[#allocation3 + $0x88] sm:$0xff] }
 0x7b2   :  { %v5443_v37 = vadd.f32 1.0, %v10730_v28  ;;  %v5120_v3 = vpop.f32.mrb[82].mxu1 }
 0x7b3   :  { %v10732_v21 = vpop.eup %10731  ;;  %v5263_v41 = vadd.f32 %v13167_v9, %v5210_v48  ;;  %v5211_v26 = vadd.f32 %v5120_v3, %v13096_v12  ;;  %v9724_v10 = vpop.f32.mrb[83].mxu1 }
 0x7b4   :  { %10741 = vrcp.f32 %v5443_v37  ;;  %v5444_v35 = vadd.f32 1.0, %v10732_v21 }
 0x7b5   :  { %v8756_v59 = vmul.f32 -1.442695, %v5263_v41  ;;  %v5264_v23 = vadd.f32 %v13167_v9, %v5211_v26 }
 0x7b6   :  { %v10734_v61 = vpop.eup %10733  ;;  %10743 = vrcp.f32 %v5444_v35 }
 0x7b7   :  { %v5579_v43 = vmul.f32 %v10734_v61, %v13338_v29  ;;  %10745 = vpow2.f32 %v8756_v59  ;;  %v8757_v5 = vmul.f32 -1.442695, %v5264_v23 }
 0x7b8   :  { %v10736_v13 = vpop.eup %10735  ;;  %v5125_v32 = vpop.f32.mrb[84].mxu1 }
 0x7b9   :  { %v10738_v45 = vpop.eup %10737  ;;  %5626 = vst.msk [vmem:[#allocation3 + $0xc0] sm:$0xff] %vm5601_vm1, %v5579_v43  ;;  %v5580_v34 = vmul.f32 %v10736_v13, %v13343_v18  ;;  %10747 = vpow2.f32 %v8757_v5  ;;  %v5212_v12 = vadd.f32 %v5125_v32, %v13104_v38  ;;  %v9727_v31 = vpop.f32.mrb[85].mxu1  ;;  %v5753_v32 = vld [vmem:[#allocation3 + $0x98] sm:$0xff] }
 0x7ba   :  { %v5445_v8 = vadd.f32 1.0, %v10738_v45  ;;  %v5128_v17 = vpop.f32.mrb[86].mxu1 }
 0x7bb   :  { %v10740_v1 = vpop.eup %10739  ;;  %5627 = vst.msk [vmem:[#allocation3 + $0xc8] sm:$0xff] %vm5601_vm1, %v5580_v34  ;;  %v13387_v29 = vadd.f32 %v13167_v9, %v5212_v12  ;;  %v5213_v22 = vadd.f32 %v5128_v17, %v13107_v54  ;;  %v9728_v0 = vpop.f32.mrb[87].mxu1 }
 0x7bc   :  { %10749 = vrcp.f32 %v5445_v8  ;;  %v5446_v19 = vadd.f32 1.0, %v10740_v1 }
 0x7bd   :  { %v8758_v6 = vmul.f32 -1.442695, %v13387_v29  ;;  %v13392_v18 = vadd.f32 %v13167_v9, %v5213_v22 }
 0x7be   :  { %v10742_v38 = vpop.eup %10741  ;;  %10751 = vrcp.f32 %v5446_v19 }
 0x7bf   :  { %v5581_v11 = vmul.f32 %v10742_v38, %v13354_v42  ;;  %10753 = vpow2.f32 %v8758_v6  ;;  %v8759_v57 = vmul.f32 -1.442695, %v13392_v18 }
 0x7c0   :  { %v10744_v16 = vpop.eup %10743  ;;  %v5133_v36 = vpop.f32.mrb[88].mxu1  ;;  %v5727_v47 = vld [vmem:[#allocation3 + $0xc0] sm:$0xff] }
 0x7c1   :  { %v10746_v52 = vpop.eup %10745  ;;  %5628 = vst.msk [vmem:[#allocation3 + $0xd0] sm:$0xff] %vm5601_vm1, %v5581_v11  ;;  %v5582_v54 = vmul.f32 %v10744_v16, %v13359_v51  ;;  %10755 = vpow2.f32 %v8759_v57  ;;  %v5214_v20 = vadd.f32 %v5133_v36, %v13115_v7  ;;  %5729 = vrot.lane.b32.xlu0 %v5727_v47, %s10874_s29  ;;  %v9731_v9 = vpop.f32.mrb[89].mxu1  ;;  %v5701_v16 = vld [vmem:[#allocation3 + $0x60] sm:$0xff] }
 0x7c2   :  { %v5447_v40 = vadd.f32 1.0, %v10746_v52  ;;  %v5136_v60 = vpop.f32.mrb[90].mxu1  ;;  %v5733_v42 = vld [vmem:[#allocation3 + $0xc8] sm:$0xff] }
 0x7c3   :  { %v10748_v56 = vpop.eup %10747  ;;  %5629 = vst.msk [vmem:[#allocation3 + $0xd8] sm:$0xff] %vm5601_vm1, %v5582_v54  ;;  %v13407_v2 = vadd.f32 %v13404_v27, %v5214_v20  ;;  %v5215_v51 = vadd.f32 %v5136_v60, %v13118_v39  ;;  %v9732_v7 = vpop.f32.mrb[91].mxu1  ;;  %5734 = vst.msk [vmem:[#allocation4 + $0x60] sm:$0xff] %vm5601_vm1, %v5733_v42 }
 0x7c4   :  { %10757 = vrcp.f32 %v5447_v40  ;;  %v5448_v33 = vadd.f32 1.0, %v10748_v56 }
 0x7c5   :  { %v8760_v28 = vmul.f32 -1.442695, %v13407_v2  ;;  %v13413_v48 = vadd.f32 %v13404_v27, %v5215_v51  ;;  %5721 = vrot.lane.b32.xlu0 %v5719_v25, %s10874_s29 }
 0x7c6   :  { %v10750_v44 = vpop.eup %10749  ;;  %10759 = vrcp.f32 %v5448_v33 }
 0x7c7   :  { %v5583_v37 = vmul.f32 %v10750_v44, %v13370_v15  ;;  %10761 = vpow2.f32 %v8760_v28  ;;  %v8761_v39 = vmul.f32 -1.442695, %v13413_v48 }
 0x7c8   :  { %v10752_v3 = vpop.eup %10751  ;;  %v5141_v21 = vpop.f32.mrb[92].mxu1  ;;  %v13418_v41 = vld [vmem:[#allocation3 + $0xd0] sm:$0xff] }
 0x7c9   :  { %v10754_v26 = vpop.eup %10753  ;;  %5630 = vst.msk [vmem:[#allocation3 + $0xe0] sm:$0xff] %vm5601_vm1, %v5583_v37  ;;  %10763 = vpow2.f32 %v8761_v39  ;;  %v5216_v10 = vadd.f32 %v5141_v21, %v13126_v49  ;;  %5677 = vrot.lane.b32.xlu0 %v5719_v25, %s10874_s29  ;;  %5763 = vrot.lane.b32.xlu1 %v13418_v41, %s10874_s29  ;;  %v9735_v35 = vpop.f32.mrb[93].mxu1 }
 0x7ca   :  { %v5449_v15 = vadd.f32 1.0, %v10754_v26  ;;  %v5144_v59 = vpop.f32.mrb[94].mxu1  ;;  %v5767_v23 = vld [vmem:[#allocation3 + $0xd8] sm:$0xff] }
 0x7cb   :  { %v10756_v61 = vpop.eup %10755  ;;  %v13426_v43 = vadd.f32 %v13404_v27, %v5216_v10  ;;  %v5217_v5 = vadd.f32 %v5144_v59, %v13129_v14  ;;  %v9736_v13 = vpop.f32.mrb[95].mxu1  ;;  %5768 = vst.msk [vmem:[#allocation4 + $0x88] sm:$0xff] %vm5601_vm1, %v5767_v23 }
 0x7cc   :  { %10765 = vrcp.f32 %v5449_v15  ;;  %v5450_v49 = vadd.f32 1.0, %v10756_v61 }
 0x7cd   :  { %v8762_v45 = vmul.f32 -1.442695, %v13426_v43  ;;  %v5270_v34 = vadd.f32 %v13404_v27, %v5217_v5  ;;  %5669 = vrot.lane.b32.xlu0 %v13312_v62, %s10874_s29  ;;  %5755 = vrot.lane.b32.xlu1 %v5753_v32, %s10874_s29 }
 0x7ce   :  { %v10758_v12 = vpop.eup %10757  ;;  %10767 = vrcp.f32 %v5450_v49 }
 0x7cf   :  { %10769 = vpow2.f32 %v8762_v45  ;;  %v8763_v31 = vmul.f32 -1.442695, %v5270_v34 }
 0x7d0   :  { %v10760_v14 = vpop.eup %10759  ;;  %v5149_v8 = vpop.f32.mrb[96].mxu1 }
 0x7d1   :  { %v10762_v17 = vpop.eup %10761  ;;  %10771 = vpow2.f32 %v8763_v31  ;;  %v5218_v1 = vadd.f32 %v5149_v8, %v13135_v55  ;;  %5711 = vrot.lane.b32.xlu1 %v5753_v32, %s10874_s29  ;;  %v9739_v22 = vpop.f32.mrb[97].mxu1 }
 0x7d2   :  { %v5451_v0 = vadd.f32 1.0, %v10762_v17  ;;  %v5152_v19 = vpop.f32.mrb[98].mxu1 }
 0x7d3   :  { %v10764_v6 = vpop.eup %10763  ;;  %v5271_v62 = vadd.f32 %v13404_v27, %v5218_v1  ;;  %v5219_v38 = vadd.f32 %v5152_v19, %v13138_v53  ;;  %v9740_v11 = vpop.f32.mrb[99].mxu1 }
 0x7d4   :  { %10773 = vrcp.f32 %v5451_v0  ;;  %v5452_v57 = vadd.f32 1.0, %v10764_v6 }
 0x7d5   :  { %v8764_v36 = vmul.f32 -1.442695, %v5271_v62  ;;  %v5272_v47 = vadd.f32 %v13404_v27, %v5219_v38  ;;  %v5653_v52 = vpop.permute.xlu1 %5652  ;;  %5703 = vrot.lane.b32.xlu1 %v5701_v16, %s10874_s29 }
 0x7d6   :  { %v10766_v55 = vpop.eup %10765  ;;  %10775 = vrcp.f32 %v5452_v57  ;;  %5656 = vst.msk [vmem:[#allocation4] sm:$0xff] %vm5655_vm2, %v5653_v52 }
 0x7d7   :  { %v5587_v54 = vmul.f32 %v10766_v55, %v13387_v29  ;;  %10777 = vpow2.f32 %v8764_v36  ;;  %v8765_v20 = vmul.f32 -1.442695, %v5272_v47  ;;  %v5769_v47 = vld [vmem:[#allocation3 + $0xe0] sm:$0xff] }
 0x7d8   :  { %v10768_v53 = vpop.eup %10767  ;;  %v5157_v9 = vpop.f32.mrb[100].mxu1 }
 0x7d9   :  { %v10770_v40 = vpop.eup %10769  ;;  %5634 = vst.msk [vmem:[#allocation3 + $0x100] sm:$0xff] %vm5601_vm1, %v5587_v54  ;;  %v5588_v60 = vmul.f32 %v10768_v53, %v13392_v18  ;;  %10779 = vpow2.f32 %v8765_v20  ;;  %v5220_v42 = vadd.f32 %v5157_v9, %v13141_v30  ;;  %v9743_v56 = vpop.f32.mrb[101].mxu1 }
 0x7da   :  { %v5453_v51 = vadd.f32 1.0, %v10770_v40  ;;  %v5160_v7 = vpop.f32.mrb[102].mxu1 }
 0x7db   :  { %v10772_v33 = vpop.eup %10771  ;;  %5635 = vst.msk [vmem:[#allocation3 + $0x108] sm:$0xff] %vm5601_vm1, %v5588_v60  ;;  %v5273_v29 = vadd.f32 %v13404_v27, %v5220_v42  ;;  %v5221_v25 = vadd.f32 %v5160_v7, %v13144_v63  ;;  %v9744_v28 = vpop.f32.mrb[103].mxu1 }
 0x7dc   :  { %10781 = vrcp.f32 %v5453_v51  ;;  %v5454_v44 = vadd.f32 1.0, %v10772_v33 }
 0x7dd   :  { %v8766_v37 = vmul.f32 -1.442695, %v5273_v29  ;;  %v5274_v39 = vadd.f32 %v13404_v27, %v5221_v25  ;;  %v5688_v18 = vpop.permute.xlu1 %5687 }
 0x7de   :  { %v10774_v3 = vpop.eup %10773  ;;  %10783 = vrcp.f32 %v5454_v44  ;;  %5690 = vst.msk [vmem:[#allocation4 + $0x28] sm:$0xff] %vm5655_vm2, %v5688_v18 }
 0x7df   :  { %v5589_v30 = vmul.f32 %v10774_v3, %v13407_v2  ;;  %10785 = vpow2.f32 %v8766_v37  ;;  %v8767_v21 = vmul.f32 -1.442695, %v5274_v39  ;;  %v5785_v39 = vld [vmem:[#allocation4] sm:$0xff]  ;;  %v10314_v3 = vld [vmem:[%s14274_s5 + $0x80] sm:$0xff]  }
 0x7e0   :  { %v10776_v26 = vpop.eup %10775  ;;  %v5165_v10 = vpop.f32.mrb[104].mxu1  ;;  %v5741_v35 = vld [vmem:[#allocation3 + $0x100] sm:$0xff] }
 0x7e1   :  { %v10778_v15 = vpop.eup %10777  ;;  %5636 = vst.msk [vmem:[#allocation3 + $0x110] sm:$0xff] %vm5601_vm1, %v5589_v30  ;;  %v5590_v63 = vmul.f32 %v10776_v26, %v13413_v48  ;;  %10787 = vpow2.f32 %v8767_v21  ;;  %v5222_v59 = vadd.f32 %v5165_v10, %v13147_v46  ;;  %v9747_v23 = vpop.f32.mrb[105].mxu1  ;;  %5742 = vst.msk [vmem:[#allocation4 + $0x68] sm:$0xff] %vm5601_vm1, %v5741_v35  ;;  %v10315_v21 = vld [vmem:[%s14274_s5 + $0xc8] sm:$0xff]  }
 0x7e2   :  { %v5455_v61 = vadd.f32 1.0, %v10778_v15  ;;  %v5168_v5 = vpop.f32.mrb[106].mxu1  ;;  %v5743_v13 = vld [vmem:[#allocation3 + $0x108] sm:$0xff]  ;;  %v10317_v15 = vld [vmem:[%s14274_s5 + $0xd0] sm:$0xff]   ;;  %v10320_v23 = vld [vmem:[%s14274_s5 + $0x98] sm:$0xff]  }
 0x7e3   :  { %v10780_v2 = vpop.eup %10779  ;;  %5637 = vst.msk [vmem:[#allocation3 + $0x118] sm:$0xff] %vm5601_vm1, %v5590_v63  ;;  %v5275_v49 = vadd.f32 %v13404_v27, %v5222_v59  ;;  %v5223_v32 = vadd.f32 %v5168_v5, %v13150_v58  ;;  %5745 = vrot.lane.b32.xlu0 %v5743_v13, %s10874_s29  ;;  %v9748_v45 = vpop.f32.mrb[107].mxu1  ;;  %v10316_v35 = vld [vmem:[%s14274_s5 + $0x88] sm:$0xff]   ;;  %v10318_v63 = vld [vmem:[%s14274_s5 + $0x90] sm:$0xff]   ;;  %v10319_v59 = vld [vmem:[%s14274_s5 + $0xd8] sm:$0xff]  }
 0x7e4   :  { %10789 = vrcp.f32 %v5455_v61  ;;  %v5456_v48 = vadd.f32 1.0, %v10780_v2  ;;  %v10321_v61 = vld [vmem:[%s14274_s5 + $0xe0] sm:$0xff]   ;;  %v10323_v13 = vld [vmem:[%s14274_s5 + $0xe8] sm:$0xff]   ;;  %v10327_v45 = vld [vmem:[%s14274_s5 + $0xf8] sm:$0xff]  }
 0x7e5   :  { %v8768_v34 = vmul.f32 -1.442695, %v5275_v49  ;;  %v5276_v46 = vadd.f32 %v13404_v27, %v5223_v32  ;;  %v5790_v28 = vld [vmem:[#allocation4 + $0x28] sm:$0xff]  ;;  %v10322_v5 = vld [vmem:[%s14274_s5 + $0xa0] sm:$0xff]   ;;  %v10324_v2 = vld [vmem:[%s14274_s5 + $0xa8] sm:$0xff]  }
 0x7e6   :  { %v10782_v12 = vpop.eup %10781  ;;  %10791 = vrcp.f32 %v5456_v48  ;;  %v5805_v30 = vpack.c.bf16 %v5790_v28, %v5785_v39  ;;  %v10325_v49 = vld [vmem:[%s14274_s5 + $0xf0] sm:$0xff]   ;;  %v10328_v48 = vld [vmem:[%s14274_s5 + $0xb8] sm:$0xff]  }
 0x7e7   :  { %v5591_v31 = vmul.f32 %v10782_v12, %v13426_v43  ;;  %10793 = vpow2.f32 %v8768_v34  ;;  %v8769_v14 = vmul.f32 -1.442695, %v5276_v46  ;;  %5737 = vrot.lane.b32.xlu0 %v13418_v41, %s10874_s29  ;;  %v10326_v32 = vld [vmem:[%s14274_s5 + $0xb0] sm:$0xff]   ;;  %v10329_v34 = vld [vmem:[%s14274_s5 + $0x100] sm:$0xff]  }
 0x7e8   :  { %v10784_v8 = vpop.eup %10783  ;;  %v5749_v17 = vld [vmem:[#allocation3 + $0x110] sm:$0xff]  ;;  %v5173_v58 = vpop.f32.mrb[108].mxu1 }
 0x7e9   :  { %v10786_v1 = vpop.eup %10785  ;;  %5750 = vst.msk [vmem:[#allocation4 + $0x70] sm:$0xff] %vm5601_vm1, %v5749_v17  ;;  %5638 = vst.msk [vmem:[#allocation3 + $0x120] sm:$0xff] %vm5601_vm1, %v5591_v31  ;;  %10795 = vpow2.f32 %v8769_v14  ;;  %v5224_v22 = vadd.f32 %v5173_v58, %v13153_v4  ;;  %v9751_v0 = vpop.f32.mrb[109].mxu1 }
 0x7ea   :  { %5776 = vst.msk [vmem:[#allocation4 + $0x90] sm:$0xff] %vm5601_vm1, %v5749_v17  ;;  %v5457_v43 = vadd.f32 1.0, %v10786_v1  ;;  %v5176_v19 = vpop.f32.mrb[110].mxu1  ;;  %v5777_v6 = vld [vmem:[#allocation3 + $0x118] sm:$0xff] }
 0x7eb   :  { %v10788_v62 = vpop.eup %10787  ;;  %v5277_v41 = vadd.f32 %v13404_v27, %v5224_v22  ;;  %v5225_v38 = vadd.f32 %v5176_v19, %v13159_v24  ;;  %5779 = vrot.lane.b32.xlu1 %v5777_v6, %s10874_s29  ;;  %v9752_v11 = vpop.f32.mrb[111].mxu1 }
 0x7ec   :  { %10797 = vrcp.f32 %v5457_v43  ;;  %v5458_v57 = vadd.f32 1.0, %v10788_v62 }
 0x7ed   :  { %v8770_v16 = vmul.f32 -1.442695, %v5277_v41  ;;  %v5278_v36 = vadd.f32 %v13404_v27, %v5225_v38 }
 0x7ee   :  { %v10790_v4 = vpop.eup %10789  ;;  %10799 = vrcp.f32 %v5458_v57 }
 0x7ef   :  { %10801 = vpow2.f32 %v8770_v16  ;;  %v8771_v52 = vmul.f32 -1.442695, %v5278_v36  ;;  %5771 = vrot.lane.b32.xlu1 %v5769_v47, %s10874_s29  ;;  %v10330_v4 = vld [vmem:[%s14274_s5 + $0x108] sm:$0xff]   ;;  %v10331_v47 = vld [vmem:[%s14274_s5 + $0x110] sm:$0xff]  }
 0x7f0   :  { %v10792_v55 = vpop.eup %10791  ;;  %v5783_v54 = vld [vmem:[#allocation3 + $0x120] sm:$0xff] }
 0x7f1   :  { %v10794_v20 = vpop.eup %10793  ;;  %5784 = vst.msk [vmem:[#allocation4 + $0x98] sm:$0xff] %vm5601_vm1, %v5783_v54  ;;  %10803 = vpow2.f32 %v8771_v52  ;;  %v10332_v55 = vld [vmem:[%s14274_s5 + $0x118] sm:$0xff]  }
 0x7f2   :  { %v5459_v24 = vadd.f32 1.0, %v10794_v20 }
 0x7f3   :  { %v10796_v53 = vpop.eup %10795  ;;  %v5662_v9 = vpop.permute.xlu0 %5661 }
 0x7f4   :  { %10805 = vrcp.f32 %v5459_v24  ;;  %v5460_v40 = vadd.f32 1.0, %v10796_v53  ;;  %5664 = vst.msk [vmem:[#allocation4 + $0x8] sm:$0xff] %vm5655_vm2, %v5662_v9 }
 0x7f6   :  { %v10798_v27 = vpop.eup %10797  ;;  %10807 = vrcp.f32 %v5460_v40 }
 0x7f7   :  { %v5794_v27 = vld [vmem:[#allocation4 + $0x48] sm:$0xff] }
 0x7f8   :  { %v10800_v60 = vpop.eup %10799 }
 0x7f9   :  { %v10802_v42 = vpop.eup %10801 }
 0x7fa   :  { %v5461_v56 = vadd.f32 1.0, %v10802_v42 }
 0x7fb   :  { %v10804_v51 = vpop.eup %10803  ;;  %v5696_v7 = vpop.permute.xlu0 %5695  ;;  %v5786_v44 = vld [vmem:[#allocation4 + $0x8] sm:$0xff] }
 0x7fc   :  { %10809 = vrcp.f32 %v5461_v56  ;;  %v5462_v33 = vadd.f32 1.0, %v10804_v51  ;;  %5698 = vst.msk [vmem:[#allocation4 + $0x30] sm:$0xff] %vm5655_vm2, %v5696_v7  ;;  %v5789_v51 = vld [vmem:[#allocation4 + $0x20] sm:$0xff] }
 0x7fd   :  { %v5809_v7 = vpack.c.bf16 %v5794_v27, %v5789_v51  ;;  %v6586_v51 = vld [vmem:[%s14277_s11 + $0x238] sm:$0xff] }
 0x7fe   :  { %v10806_v29 = vpop.eup %10805  ;;  %10811 = vrcp.f32 %v5462_v33  ;;  %v5804_v33 = vld [vmem:[#allocation4 + $0x98] sm:$0xff] }
 0x7ff   :  { %v5799_v29 = vld [vmem:[#allocation4 + $0x70] sm:$0xff] }
 0x800   :  { %v10808_v25 = vpop.eup %10807 }
 0x801   :  { %v5814_v25 = vpack.c.bf16 %v5804_v33, %v5799_v29  ;;  %v6590_v29 = vld [vmem:[%s14277_s11 + $0x258] sm:$0xff] }
 0x803   :  { %v5791_v37 = vld [vmem:[#allocation4 + $0x30] sm:$0xff] }
 0x804   :  { %v5806_v18 = vpack.c.bf16 %v5791_v37, %v5786_v44 }
 0x806   :  { %v10810_v26 = vpop.eup %10809  ;;  %6148 = vmatprep.mubr.bf16.mxu1 %v5806_v18 }
 0x807   :  { %6149 = vmatmul.mubr.bf16.vlgmr.msra.gmra.mrb[112].mxu1 %v5805_v30  ;;  %v10333_v30 = vld [vmem:[%s14276_s7] sm:$0xff]   ;;  %v10335_v26 = vld [vmem:[%s14276_s7 + $0x10] sm:$0xff]  }
 0x808   :  { %v10812_v10 = vpop.eup %10811  ;;  %9186 = vmatpush3.bf16.msra.mxu1 %v10314_v3 }
 0x809   :  { %9187 = vmatprep.subr.bf16.mxu1 %v10315_v21  ;;  %v10334_v21 = vld [vmem:[%s14276_s7 + $0x8] sm:$0xff]   ;;  %v10336_v10 = vld [vmem:[%s14276_s7 + $0x18] sm:$0xff]  }
 0x80c   :  { %9188 = vmatpush3.bf16.msra.mxu1 %v10316_v35  ;;  %v280_v35 = vld [vmem:[%s14271_s0 + $0x718] sm:$0xff] }
 0x80d   :  { %9189 = vmatprep.subr.bf16.mxu1 %v10317_v15  ;;  %v284_v15 = vld [vmem:[%s14271_s0 + $0x738] sm:$0xff] }
 0x810   :  { %9190 = vmatpush3.bf16.msra.mxu1 %v10318_v63  ;;  %v6518_v63 = vld [vmem:[%s14277_s11 + $0x18] sm:$0xff] }
 0x811   :  { %9191 = vmatprep.subr.bf16.mxu1 %v10319_v59  ;;  %v6522_v59 = vld [vmem:[%s14277_s11 + $0x38] sm:$0xff] }
 0x814   :  { %9192 = vmatpush3.bf16.msra.mxu1 %v10320_v23  ;;  %v6526_v23 = vld [vmem:[%s14277_s11 + $0x58] sm:$0xff] }
 0x815   :  { %9193 = vmatprep.subr.bf16.mxu1 %v10321_v61  ;;  %v8492_v61 = vcombine.high %v280_v35, %v284_v15 }
 0x817   :  { %3231 = vmatprep.mubr.bf16.mxu0 %v8492_v61  ;;  %v6618_v61 = vld [vmem:[%s14277_s11 + $0x338] sm:$0xff] }
 0x818   :  { %9194 = vmatpush3.bf16.msra.mxu1 %v10322_v5  ;;  %v8491_v5 = vcombine.low %v280_v35, %v284_v15 }
 0x819   :  { %9195 = vmatprep.subr.bf16.mxu1 %v10323_v13  ;;  %v8838_v13 = vcombine.low %v6518_v63, %v6522_v59 }
 0x81a   :  { %3232 = vmatmul.mubr.bf16.gmra.mrb[160].mxu0 %v8491_v5 }
 0x81c   :  { %9196 = vmatpush3.bf16.msra.mxu1 %v10324_v2  ;;  %v8839_v2 = vcombine.high %v6518_v63, %v6522_v59 }
 0x81d   :  { %9197 = vmatprep.subr.bf16.mxu1 %v10325_v49  ;;  %v6530_v49 = vld [vmem:[%s14277_s11 + $0x78] sm:$0xff] }
 0x81e   :  { %7448 = vmatprep.subr.bf16.mxu0 %v8839_v2 }
 0x81f   :  { %7449 = vmatpush1.bf16.msra.mxu0 %v8838_v13 }
 0x820   :  { %9198 = vmatpush3.bf16.msra.mxu1 %v10326_v32  ;;  %v8847_v32 = vcombine.high %v6526_v23, %v6530_v49 }
 0x821   :  { %9199 = vmatprep.subr.bf16.mxu1 %v10327_v45  ;;  %v6534_v45 = vld [vmem:[%s14277_s11 + $0x98] sm:$0xff] }
 0x822   :  { %7450 = vmatprep.subr.bf16.mxu0 %v8847_v32 }
 0x824   :  { %9200 = vmatpush3.bf16.msra.mxu1 %v10328_v48  ;;  %v6538_v48 = vld [vmem:[%s14277_s11 + $0xb8] sm:$0xff] }
 0x825   :  { %9753 = vmatprep.subr.bf16.mxu1 %v10329_v34 }
 0x833   :  { %v5730_v46 = vpop.permute.xlu0 %5729 }
 0x834   :  { %5732 = vst.msk [vmem:[#allocation4 + $0x58] sm:$0xff] %vm5655_vm2, %v5730_v46  ;;  %v288_v46 = vld [vmem:[%s14271_s0 + $0x758] sm:$0xff] }
 0x837   :  { %v5722_v12 = vpop.permute.xlu0 %5721 }
 0x838   :  { %5724 = vst.msk [vmem:[#allocation4 + $0x50] sm:$0xff] %vm5655_vm2, %v5722_v12  ;;  %v8855_v12 = vcombine.high %v6534_v45, %v6538_v48 }
 0x83b   :  { %v5678_v31 = vpop.permute.xlu0 %5677  ;;  %v5764_v14 = vpop.permute.xlu1 %5763  ;;  %v5796_v1 = vld [vmem:[#allocation4 + $0x58] sm:$0xff] }
 0x83c   :  { %5680 = vst.msk [vmem:[#allocation4 + $0x18] sm:$0xff] %vm5655_vm2, %v5678_v31  ;;  %5766 = vst.msk [vmem:[#allocation4 + $0x80] sm:$0xff] %vm5655_vm2, %v5764_v14  ;;  %v6542_v31 = vld [vmem:[%s14277_s11 + $0xd8] sm:$0xff] }
 0x83d   :  { %v6546_v14 = vld [vmem:[%s14277_s11 + $0xf8] sm:$0xff] }
 0x83f   :  { %v5670_v8 = vpop.permute.xlu0 %5669  ;;  %v5756_v17 = vpop.permute.xlu1 %5755  ;;  %v5795_v19 = vld [vmem:[#allocation4 + $0x50] sm:$0xff] }
 0x840   :  { %5672 = vst.msk [vmem:[#allocation4 + $0x10] sm:$0xff] %vm5655_vm2, %v5670_v8  ;;  %5758 = vst.msk [vmem:[#allocation4 + $0x78] sm:$0xff] %vm5655_vm2, %v5756_v17  ;;  %v292_v8 = vld [vmem:[%s14271_s0 + $0x778] sm:$0xff] }
 0x841   :  { %v8500_v17 = vcombine.high %v288_v46, %v292_v8 }
 0x843   :  { %v5712_v58 = vpop.permute.xlu1 %5711  ;;  %v5801_v22 = vld [vmem:[#allocation4 + $0x80] sm:$0xff]  ;;  %v5788_v41 = vld [vmem:[#allocation4 + $0x18] sm:$0xff]  ;;  %3239 = vmatprep.mubr.bf16.mxu0 %v8500_v17  ;;  %v6630_v17 = vld [vmem:[%s14277_s11 + $0x398] sm:$0xff] }
 0x844   :  { %5714 = vst.msk [vmem:[#allocation4 + $0x40] sm:$0xff] %vm5655_vm2, %v5712_v58  ;;  %v5811_v0 = vpack.c.bf16 %v5801_v22, %v5796_v1  ;;  %v8499_v58 = vcombine.low %v288_v46, %v292_v8  ;;  %v8854_v1 = vcombine.low %v6534_v45, %v6538_v48  ;;  %v296_v22 = vld [vmem:[%s14271_s0 + $0x798] sm:$0xff]  ;;  %v8772_v46 = vld [vmem:[%s14278_s6] ss:$0 sm:$0xff] }
 0x845   :  { %v6622_v48 = vld [vmem:[%s14277_s11 + $0x358] sm:$0xff] }
 0x846   :  { %6156 = vmatprep.mubr.bf16.mxu1 %v5811_v0  ;;  %v300_v0 = vld [vmem:[%s14271_s0 + $0x7b8] sm:$0xff]  ;;  %3240 = vmatmul.mubr.bf16.gmra.mrb[164].mxu0 %v8499_v58 }
 0x847   :  { %v5704_v43 = vpop.permute.xlu1 %5703  ;;  %v5800_v6 = vld [vmem:[#allocation4 + $0x78] sm:$0xff]  ;;  %v5787_v57 = vld [vmem:[#allocation4 + $0x10] sm:$0xff]  ;;  %v6634_v58 = vld [vmem:[%s14277_s11 + $0x3b8] sm:$0xff] }
 0x848   :  { %5706 = vst.msk [vmem:[#allocation4 + $0x38] sm:$0xff] %vm5655_vm2, %v5704_v43  ;;  %v5810_v62 = vpack.c.bf16 %v5800_v6, %v5795_v19  ;;  %v8863_v43 = vcombine.high %v6542_v31, %v6546_v14  ;;  %v8508_v19 = vcombine.high %v296_v22, %v300_v0  ;;  %v6550_v6 = vld [vmem:[%s14277_s11 + $0x118] sm:$0xff] }
 0x84a   :  { %6157 = vmatmul.mubr.bf16.gmra.mrb[116].mxu1 %v5810_v62  ;;  %v6554_v62 = vld [vmem:[%s14277_s11 + $0x138] sm:$0xff]  ;;  %3247 = vmatprep.mubr.bf16.mxu0 %v8508_v19 }
 0x84b   :  { %v5793_v38 = vld [vmem:[#allocation4 + $0x40] sm:$0xff] }
 0x84c   :  { %v5808_v11 = vpack.c.bf16 %v5793_v38, %v5788_v41  ;;  %v8862_v41 = vcombine.low %v6542_v31, %v6546_v14  ;;  %v8871_v38 = vcombine.high %v6550_v6, %v6554_v62 }
 0x84e   :  { %6197 = vmatprep.mubr.bf16.mxu1 %v5808_v11  ;;  %v304_v11 = vld [vmem:[%s14271_s0 + $0x7d8] sm:$0xff] }
 0x84f   :  { %v5792_v16 = vld [vmem:[#allocation4 + $0x38] sm:$0xff] }
 0x850   :  { %v5807_v36 = vpack.c.bf16 %v5792_v16, %v5787_v57  ;;  %v308_v57 = vld [vmem:[%s14271_s0 + $0x7f8] sm:$0xff] }
 0x851   :  { %v6558_v16 = vld [vmem:[%s14277_s11 + $0x158] sm:$0xff]  ;;  %v8515_v27 = vcombine.low %v304_v11, %v308_v57 }
 0x852   :  { %6198 = vmatmul.mubr.bf16.vlgmr.msra.gmra.mrb[120].mxu1 %v5807_v36  ;;  %v6562_v36 = vld [vmem:[%s14277_s11 + $0x178] sm:$0xff] }
 0x853   :  { %9754 = vmatpush3.bf16.msra.mxu1 %v10329_v34  ;;  %v8846_v34 = vcombine.low %v6526_v23, %v6530_v49  ;;  %v6614_v23 = vld [vmem:[%s14277_s11 + $0x318] sm:$0xff] }
 0x854   :  { %9755 = vmatprep.subr.bf16.mxu1 %v10330_v4  ;;  %v8935_v45 = vcombine.high %v6614_v23, %v6618_v61 }
 0x855   :  { %v5746_v52 = vpop.permute.xlu0 %5745  ;;  %7451 = vmatpush1.bf16.msra.mxu0 %v8846_v34  ;;  %v6626_v34 = vld [vmem:[%s14277_s11 + $0x378] sm:$0xff] }
 0x856   :  { %5748 = vst.msk [vmem:[#allocation4 + $0x68] sm:$0xff] %vm5655_vm2, %v5746_v52  ;;  %7452 = vmatprep.subr.bf16.mxu0 %v8855_v12  ;;  %v8516_v52 = vcombine.high %v304_v11, %v308_v57  ;;  %v8934_v12 = vcombine.low %v6614_v23, %v6618_v61  ;;  %v8943_v14 = vcombine.high %v6622_v48, %v6626_v34 }
 0x857   :  { %9756 = vmatpush3.bf16.msra.mxu1 %v10330_v4  ;;  %v8507_v4 = vcombine.low %v296_v22, %v300_v0  ;;  %v8942_v19 = vcombine.low %v6622_v48, %v6626_v34  ;;  %v8950_v57 = vcombine.low %v6630_v17, %v6634_v58 }
 0x858   :  { %9757 = vmatprep.subr.bf16.mxu1 %v10331_v47 }
 0x859   :  { %v5738_v54 = vpop.permute.xlu0 %5737  ;;  %7453 = vmatpush1.bf16.msra.mxu0 %v8854_v1 }
 0x85a   :  { %5740 = vst.msk [vmem:[#allocation4 + $0x60] sm:$0xff] %vm5655_vm2, %v5738_v54  ;;  %7454 = vmatprep.subr.bf16.mxu0 %v8863_v43  ;;  %v6566_v54 = vld [vmem:[%s14277_s11 + $0x198] sm:$0xff]  ;;  %3248 = vmatmul.mubr.bf16.gmra.mrb[168].mxu0 %v8507_v4 }
 0x85b   :  { %9758 = vmatpush3.bf16.msra.mxu1 %v10331_v47  ;;  %v8870_v47 = vcombine.low %v6550_v6, %v6554_v62  ;;  %3255 = vmatprep.mubr.bf16.mxu0 %v8516_v52 }
 0x85c   :  { %9759 = vmatprep.subr.bf16.mxu1 %v10332_v55 }
 0x85d   :  { %v5780_v20 = vpop.permute.xlu1 %5779  ;;  %v5798_v53 = vld [vmem:[#allocation4 + $0x68] sm:$0xff]  ;;  %7455 = vmatpush1.bf16.msra.mxu0 %v8862_v41 }
 0x85e   :  { %5782 = vst.msk [vmem:[#allocation4 + $0x90] sm:$0xff] %vm5655_vm2, %v5780_v20  ;;  %7456 = vmatprep.subr.bf16.mxu0 %v8871_v38  ;;  %v6570_v20 = vld [vmem:[%s14277_s11 + $0x1b8] sm:$0xff]  ;;  %v8951_v38 = vcombine.high %v6630_v17, %v6634_v58 }
 0x85f   :  { %9760 = vmatpush3.bf16.msra.mxu1 %v10332_v55  ;;  %v8879_v55 = vcombine.high %v6558_v16, %v6562_v36 }
 0x860   :  { %9765 = vmatprep.subr.bf16.mxu1 %v14338_v50 }
 0x861   :  { %v5772_v24 = vpop.permute.xlu1 %5771  ;;  %v5797_v60 = vld [vmem:[#allocation4 + $0x60] sm:$0xff]  ;;  %7457 = vmatpush1.bf16.msra.mxu0 %v8870_v47 }
 0x862   :  { %5774 = vst.msk [vmem:[#allocation4 + $0x88] sm:$0xff] %vm5655_vm2, %v5772_v24  ;;  %v8878_v24 = vcombine.low %v6558_v16, %v6562_v36  ;;  %7458 = vmatprep.subr.bf16.mxu0 %v8879_v55  ;;  %3256 = vmatmul.mubr.bf16.gmra.mrb[172].mxu0 %v8515_v27 }
 0x865   :  { %v5803_v9 = vld [vmem:[#allocation4 + $0x90] sm:$0xff]  ;;  %7459 = vmatpush1.bf16.msra.mxu0 %v8878_v24 }
 0x866   :  { %v5813_v40 = vpack.c.bf16 %v5803_v9, %v5798_v53  ;;  %v8887_v53 = vcombine.high %v6566_v54, %v6570_v20  ;;  %v6574_v9 = vld [vmem:[%s14277_s11 + $0x1d8] sm:$0xff] }
 0x868   :  { %6205 = vmatprep.mubr.bf16.mxu1 %v5813_v40  ;;  %v6578_v40 = vld [vmem:[%s14277_s11 + $0x1f8] sm:$0xff]  ;;  %7460 = vmatprep.subr.bf16.mxu0 %v8887_v53 }
 0x869   :  { %v5802_v42 = vld [vmem:[#allocation4 + $0x88] sm:$0xff] }
 0x86a   :  { %v5812_v56 = vpack.c.bf16 %v5802_v42, %v5797_v60  ;;  %v8886_v60 = vcombine.low %v6566_v54, %v6570_v20  ;;  %v8895_v42 = vcombine.high %v6574_v9, %v6578_v40 }
 0x86c   :  { %6206 = vmatmul.mubr.bf16.gmra.mrb[124].mxu1 %v5812_v56  ;;  %v6582_v56 = vld [vmem:[%s14277_s11 + $0x218] sm:$0xff]  ;;  %7461 = vmatpush1.bf16.msra.mxu0 %v8886_v60 }
 0x86d   :  { %9761 = vmatprep.mubr.msk.bf16.mxu1 %vm5601_vm1, %v5809_v7  ;;  %v8894_v7 = vcombine.low %v6574_v9, %v6578_v40  ;;  %7462 = vmatprep.subr.bf16.mxu0 %v8895_v42  ;;  %v8903_v33 = vcombine.high %v6582_v56, %v6586_v51 }
 0x870   :  { %7463 = vmatpush1.bf16.msra.mxu0 %v8894_v7 }
 0x871   :  { %7464 = vmatprep.subr.bf16.mxu0 %v8903_v33 }
 0x874   :  { %9762 = vmatmul.mubr.msk.bf16.vlgmr.msra.gmra.mrb[128].mxu1 %vm5601_vm1, %v5814_v25  ;;  %v6594_v25 = vld [vmem:[%s14277_s11 + $0x278] sm:$0xff] }
 0x875   :  { %9773 = vmatprep.mubr.msk.bf16.mxu1 %vm10873_vm0, %v14338_v50  ;;  %9766 = vmatpush3.bf16.msra.mxu1 %v10333_v30  ;;  %v8910_v30 = vcombine.low %v6590_v29, %v6594_v25 }
 0x876   :  { %9767 = vmatprep.subr.bf16.mxu1 %v14338_v50 }
 0x879   :  { %9768 = vmatpush3.bf16.msra.mxu1 %v10334_v21 }
 0x87a   :  { %9769 = vmatprep.subr.bf16.mxu1 %v14338_v50 }
 0x87d   :  { %9770 = vmatpush3.bf16.msra.mxu1 %v10335_v26  ;;  %v6606_v26 = vld [vmem:[%s14277_s11 + $0x2d8] sm:$0xff] }
 0x87e   :  { %9771 = vmatprep.subr.bf16.mxu1 %v14338_v50 }
 0x881   :  { %9772 = vmatpush3.bf16.msra.mxu1 %v10336_v10  ;;  %v6610_v10 = vld [vmem:[%s14277_s11 + $0x2f8] sm:$0xff] }
 0x882   :  { %9777 = vmatprep.subr.bf16.mxu1 %v14338_v50  ;;  %v8927_v63 = vcombine.high %v6606_v26, %v6610_v10  ;;  %v8926_v49 = vcombine.low %v6606_v26, %v6610_v10  ;;  %v6638_v10 = vld [vmem:[%s14277_s11 + $0x3d8] sm:$0xff] }
 0x8da   :  { %v9173_v28 = vpop.f32.mrb[112].mxu1 }
 0x8db   :  { %v9174_v44 = vpop.f32.mrb[113].mxu1 }
 0x8dc   :  { %v13550_v37 = vadd.f32 %v9174_v44, %v9173_v28  ;;  %v9176_v39 = vpop.f32.mrb[114].mxu1  ;;  %v8902_v28 = vcombine.low %v6582_v56, %v6586_v51  ;;  %v8911_v44 = vcombine.high %v6590_v29, %v6594_v25 }
 0x8dd   :  { %v9177_v18 = vpop.f32.mrb[115].mxu1 }
 0x8de   :  { %v13552_v3 = vadd.f32 %v9177_v18, %v9176_v39  ;;  %v6598_v39 = vld [vmem:[%s14277_s11 + $0x298] sm:$0xff]  ;;  %7465 = vmatpush1.bf16.msra.mxu0 %v8902_v28  ;;  %v6151_v1 = vadd.f32 %v13550_v37, %v8772_v46 }
 0x8df   :  { %v6602_v18 = vld [vmem:[%s14277_s11 + $0x2b8] sm:$0xff]  ;;  %7466 = vmatprep.subr.bf16.mxu0 %v8911_v44 }
 0x8e0   :  { %v8919_v21 = vcombine.high %v6598_v39, %v6602_v18  ;;  %v8918_v35 = vcombine.low %v6598_v39, %v6602_v18  ;;  %v6154_v6 = vadd.f32 %v13552_v3, %v8772_v46 }
 0x8e2   :  { %7467 = vmatpush1.bf16.msra.mxu0 %v8910_v30 }
 0x8e3   :  { %7468 = vmatprep.subr.bf16.mxu0 %v8919_v21 }
 0x8e6   :  { %7469 = vmatpush1.bf16.msra.mxu0 %v8918_v35  ;;  %v6642_v35 = vld [vmem:[%s14277_s11 + $0x3f8] sm:$0xff] }
 0x8e7   :  { %7470 = vmatprep.subr.bf16.mxu0 %v8927_v63  ;;  %v8958_v63 = vcombine.low %v6638_v10, %v6642_v35 }
 0x8ea   :  { %7471 = vmatpush1.bf16.msra.mxu0 %v8926_v49 }
 0x8eb   :  { %7472 = vmatprep.subr.bf16.mxu0 %v8935_v45 }
 0x8ed   :  { %v3233_v17 = vpop.f32.mrb[160].mxu0 }
 0x8ee   :  { %7473 = vmatpush1.bf16.msra.mxu0 %v8934_v12  ;;  %v3235_v58 = vpop.f32.mrb[161].mxu0  ;;  %v6563_v17 = vld [vmem:[%s14277_s11 + $0x180] sm:$0xff] }
 0x8ef   :  { %7474 = vmatprep.subr.bf16.mxu0 %v8943_v14  ;;  %v10337_v14 = vld [vmem:[%s14279_s9] sm:$0xff]  }
 0x8f0   :  { %v6567_v58 = vld [vmem:[%s14277_s11 + $0x1a0] sm:$0xff] }
 0x8f2   :  { %7475 = vmatpush1.bf16.msra.mxu0 %v8942_v19 }
 0x8f3   :  { %7476 = vmatprep.subr.bf16.mxu0 %v8951_v38 }
 0x8f6   :  { %7477 = vmatpush1.bf16.msra.mxu0 %v8950_v57 }
 0x91d   :  { %v9179_v15 = vpop.f32.mrb[116].mxu1 }
 0x91e   :  { %v9180_v59 = vpop.f32.mrb[117].mxu1 }
 0x91f   :  { %v9181_v5 = vadd.f32 %v9180_v59, %v9179_v15  ;;  %v9182_v13 = vpop.f32.mrb[118].mxu1  ;;  %v8959_v15 = vcombine.high %v6638_v10, %v6642_v35  ;;  %v6527_v10 = vld [vmem:[%s14277_s11 + $0x60] sm:$0xff] }
 0x920   :  { %v9183_v2 = vpop.f32.mrb[119].mxu1 }
 0x921   :  { %v9184_v32 = vadd.f32 %v9183_v2, %v9182_v13  ;;  %v6159_v4 = vadd.f32 %v9181_v5, %v8772_v46  ;;  %7478 = vmatprep.subr.bf16.mxu0 %v8959_v15 }
 0x922   :  { %7479 = vmatpush1.bf16.msra.mxu0 %v8958_v63 }
 0x923   :  { %v6162_v55 = vadd.f32 %v9184_v32, %v8772_v46 }
 0x925   :  { %v9201_v31 = vpop.f32.mrb[120].mxu1 }
 0x926   :  { %v9202_v8 = vpop.f32.mrb[121].mxu1 }
 0x927   :  { %v9203_v22 = vadd.f32 %v9202_v8, %v9201_v31  ;;  %v9204_v0 = vpop.f32.mrb[122].mxu1  ;;  %v10338_v8 = vld [vmem:[%s14279_s9 + $0x8] sm:$0xff]  }
 0x928   :  { %v9205_v43 = vpop.f32.mrb[123].mxu1 }
 0x929   :  { %v9206_v62 = vadd.f32 %v9205_v43, %v9204_v0  ;;  %v6200_v41 = vadd.f32 %v9203_v22, %v6151_v1  ;;  %v10339_v1 = vld [vmem:[%s14279_s9 + $0x10] sm:$0xff]   ;;  %v3236_v22 = vpop.f32.mrb[162].mxu0  ;;  %v10340_v43 = vld [vmem:[%s14279_s9 + $0x18] sm:$0xff]  }
 0x92a   :  { %v3238_v0 = vpop.f32.mrb[163].mxu0  ;;  %v8881_v22 = vcombine.high %v6563_v17, %v6567_v58 }
 0x92b   :  { %v6203_v11 = vadd.f32 %v9206_v62, %v6154_v6  ;;  %v3241_v19 = vpop.f32.mrb[164].mxu0  ;;  %v6571_v0 = vld [vmem:[%s14277_s11 + $0x1c0] sm:$0xff] }
 0x92c   :  { %v3243_v6 = vpop.f32.mrb[165].mxu0  ;;  %v8880_v19 = vcombine.low %v6563_v17, %v6567_v58  ;;  %v6560_v17 = vld [vmem:[%s14277_s11 + $0x168] sm:$0xff] }
 0x92d   :  { %v3244_v62 = vpop.f32.mrb[166].mxu0 }
 0x92e   :  { %v3246_v38 = vpop.f32.mrb[167].mxu0  ;;  %v6579_v62 = vld [vmem:[%s14277_s11 + $0x200] sm:$0xff] }
 0x92f   :  { %v3249_v57 = vpop.f32.mrb[168].mxu0 }
 0x930   :  { %v6587_v57 = vld [vmem:[%s14277_s11 + $0x240] sm:$0xff] }
 0x93f   :  { %v9207_v16 = vpop.f32.mrb[124].mxu1 }
 0x940   :  { %v9208_v36 = vpop.f32.mrb[125].mxu1 }
 0x941   :  { %v9209_v37 = vadd.f32 %v9208_v36, %v9207_v16  ;;  %v9210_v47 = vpop.f32.mrb[126].mxu1  ;;  %v3251_v16 = vpop.f32.mrb[169].mxu0 }
 0x942   :  { %v9211_v52 = vpop.f32.mrb[127].mxu1  ;;  %v3252_v36 = vpop.f32.mrb[170].mxu0  ;;  %v6591_v16 = vld [vmem:[%s14277_s11 + $0x260] sm:$0xff] }
 0x943   :  { %v9212_v54 = vadd.f32 %v9211_v52, %v9210_v47  ;;  %v6208_v20 = vadd.f32 %v9209_v37, %v6159_v4  ;;  %v10343_v37 = vld [vmem:[%s14279_s9 + $0x30] sm:$0xff]   ;;  %v3254_v47 = vpop.f32.mrb[171].mxu0 }
 0x944   :  { %v6599_v47 = vld [vmem:[%s14277_s11 + $0x2a0] sm:$0xff] }
 0x945   :  { %v6211_v24 = vadd.f32 %v9212_v54, %v6162_v55 }
 0x947   :  { %v9763_v3 = vpop.f32.mrb[128].mxu1 }
 0x948   :  { %v6257_v53 = vadd.f32 %v9763_v3, %v6208_v20  ;;  %v6248_v9 = vpop.f32.mrb[129].mxu1 }
 0x949   :  { %v6249_v40 = vadd.f32 %v6248_v9, %v6200_v41  ;;  %v9764_v27 = vpop.f32.mrb[130].mxu1  ;;  %v10341_v41 = vld [vmem:[%s14279_s9 + $0x20] sm:$0xff]   ;;  %v3257_v9 = vpop.f32.mrb[172].mxu0 }
 0x94a   :  { %v8813_v60 = vmul.f32 -1.442695, %v6257_v53  ;;  %v6260_v42 = vadd.f32 %v9764_v27, %v6211_v24  ;;  %v6251_v56 = vpop.f32.mrb[131].mxu1  ;;  %v3259_v27 = vpop.f32.mrb[173].mxu0 }
 0x94b   :  { %v8811_v51 = vmul.f32 -1.442695, %v6249_v40  ;;  %v6252_v7 = vadd.f32 %v6251_v56, %v6203_v11  ;;  %v10342_v11 = vld [vmem:[%s14279_s9 + $0x28] sm:$0xff]  }
 0x94c   :  { %10813 = vpow2.f32 %v8813_v60  ;;  %v8814_v33 = vmul.f32 -1.442695, %v6260_v42 }
 0x94d   :  { %10815 = vpow2.f32 %v8811_v51  ;;  %v8812_v29 = vmul.f32 -1.442695, %v6252_v7 }
 0x94e   :  { %10817 = vpow2.f32 %v8814_v33 }
 0x94f   :  { %10819 = vpow2.f32 %v8812_v29 }
 0x956   :  { %v10814_v25 = vpop.eup %10813 }
 0x957   :  { %v10816_v28 = vpop.eup %10815  ;;  %v6277_v44 = vadd.f32 1.0, %v10814_v25 }
 0x958   :  { %v10818_v39 = vpop.eup %10817  ;;  %v6275_v18 = vadd.f32 1.0, %v10816_v28 }
 0x959   :  { %v10820_v30 = vpop.eup %10819  ;;  %10821 = vrcp.f32 %v6277_v44  ;;  %v6278_v21 = vadd.f32 1.0, %v10818_v39 }
 0x95a   :  { %10823 = vrcp.f32 %v6275_v18  ;;  %v6276_v26 = vadd.f32 1.0, %v10820_v30 }
 0x95b   :  { %10825 = vrcp.f32 %v6278_v21 }
 0x95c   :  { %10827 = vrcp.f32 %v6276_v26  ;;  %v6523_v26 = vld [vmem:[%s14277_s11 + $0x40] sm:$0xff] }
 0x95d   :  { %v8841_v63 = vcombine.high %v6523_v26, %v6527_v10 }
 0x963   :  { %v10822_v59 = vpop.eup %10821 }
 0x964   :  { %v10824_v23 = vpop.eup %10823  ;;  %v6289_v32 = vmul.f32 %v10822_v59, %v6257_v53  ;;  %v10344_v53 = vld [vmem:[%s14279_s9 + $0x38] sm:$0xff]   ;;  %v6531_v59 = vld [vmem:[%s14277_s11 + $0x80] sm:$0xff] }
 0x965   :  { %v10826_v61 = vpop.eup %10825  ;;  %v6287_v2 = vmul.f32 %v10824_v23, %v6249_v40  ;;  %v6515_v40 = vld [vmem:[%s14277_s11] sm:$0xff] }
 0x966   :  { %v10828_v5 = vpop.eup %10827  ;;  %v6290_v13 = vmul.f32 %v10826_v61, %v6260_v42  ;;  %v3260_v42 = vpop.f32.mrb[174].mxu0  ;;  %v6535_v23 = vld [vmem:[%s14277_s11 + $0xa0] sm:$0xff]  ;;  %v8840_v61 = vcombine.low %v6523_v26, %v6527_v10  ;;  %v6520_v26 = vld [vmem:[%s14277_s11 + $0x28] sm:$0xff] }
 0x967   :  { %v6288_v49 = vmul.f32 %v10828_v5, %v6252_v7  ;;  %v3262_v51 = vpop.f32.mrb[175].mxu0  ;;  %v8815_v7 = vld [vmem:[%s14280_s8] ss:$0 sm:$0xff]  ;;  %v8849_v5 = vcombine.high %v6531_v59, %v6535_v23  ;;  %s10876_s8 = smov 126  }
 0x968   :  { %v6619_v42 = vld [vmem:[%s14277_s11 + $0x340] sm:$0xff] }
 0x969   :  { %v6291_v45 = vadd.f32 %v6288_v49, %v6287_v2  ;;  %v10194_v48 = vpack.i.bf16 %v6288_v49, %v6290_v13  ;;  %v8848_v49 = vcombine.low %v6531_v59, %v6535_v23 }
 0x96b   :  { %v6292_v34 = vadd.f32 %v6291_v45, %v6289_v32  ;;  %10195 = vrot.lane.b32.xlu0 %v10194_v48, %s10874_s29  ;;  %v6547_v45 = vld [vmem:[%s14277_s11 + $0x100] sm:$0xff] }
 0x96c   :  { %v6551_v48 = vld [vmem:[%s14277_s11 + $0x120] sm:$0xff] }
 0x96d   :  { %v6293_v46 = vadd.f32 %v6292_v34, %v6290_v13  ;;  %v6539_v13 = vld [vmem:[%s14277_s11 + $0xc0] sm:$0xff] }
 0x96f   :  { %v6294_v12 = vmul.f32 0.25, %v6293_v46  ;;  %v8865_v46 = vcombine.high %v6547_v45, %v6551_v48 }
 0x971   :  { %v6295_v31 = vpack.c.bf16 %v6294_v12, %v6294_v12  ;;  %v6555_v12 = vld [vmem:[%s14277_s11 + $0x140] sm:$0xff] }
 0x973   :  { %9774 = vmatmul.mubr.msk.bf16.vlgmr.msra.gmra.mrb[132].mxu1 %vm5601_vm1, %v6295_v31  ;;  %v6559_v31 = vld [vmem:[%s14277_s11 + $0x160] sm:$0xff] }
 0x974   :  { %9793 = vmatprep.mubr.msk.bf16.mxu1 %vm10873_vm0, %v14338_v50  ;;  %9778 = vmatpush3.bf16.msra.mxu1 %v10337_v14  ;;  %v8864_v14 = vcombine.low %v6547_v45, %v6551_v48  ;;  %v6544_v45 = vld [vmem:[%s14277_s11 + $0xe8] sm:$0xff] }
 0x975   :  { %9779 = vmatprep.subr.bf16.mxu1 %v14338_v50 }
 0x978   :  { %9780 = vmatpush3.bf16.msra.mxu1 %v10338_v8  ;;  %v8873_v8 = vcombine.high %v6555_v12, %v6559_v31 }
 0x979   :  { %9781 = vmatprep.subr.bf16.mxu1 %v14338_v50 }
 0x97c   :  { %9782 = vmatpush3.bf16.msra.mxu1 %v10339_v1  ;;  %v8872_v1 = vcombine.low %v6555_v12, %v6559_v31  ;;  %v6552_v12 = vld [vmem:[%s14277_s11 + $0x128] sm:$0xff] }
 0x97d   :  { %9783 = vmatprep.subr.bf16.mxu1 %v14338_v50 }
 0x980   :  { %9784 = vmatpush3.bf16.msra.mxu1 %v10340_v43  ;;  %v6575_v43 = vld [vmem:[%s14277_s11 + $0x1e0] sm:$0xff] }
 0x981   :  { %9785 = vmatprep.subr.bf16.mxu1 %v14338_v50  ;;  %v8889_v6 = vcombine.high %v6571_v0, %v6575_v43  ;;  %v8888_v38 = vcombine.low %v6571_v0, %v6575_v43  ;;  %v6568_v0 = vld [vmem:[%s14277_s11 + $0x1a8] sm:$0xff] }
 0x984   :  { %9786 = vmatpush3.bf16.msra.mxu1 %v10341_v41  ;;  %v6583_v41 = vld [vmem:[%s14277_s11 + $0x220] sm:$0xff] }
 0x985   :  { %9787 = vmatprep.subr.bf16.mxu1 %v14338_v50  ;;  %v8896_v36 = vcombine.low %v6579_v62, %v6583_v41 }
 0x988   :  { %9788 = vmatpush3.bf16.msra.mxu1 %v10342_v11  ;;  %v8897_v11 = vcombine.high %v6579_v62, %v6583_v41 }
 0x989   :  { %9789 = vmatprep.subr.bf16.mxu1 %v14338_v50 }
 0x98c   :  { %9790 = vmatpush3.bf16.msra.mxu1 %v10343_v37  ;;  %v6595_v37 = vld [vmem:[%s14277_s11 + $0x280] sm:$0xff] }
 0x98d   :  { %9791 = vmatprep.subr.bf16.mxu1 %v14338_v50  ;;  %v6519_v50 = vld [vmem:[%s14277_s11 + $0x20] sm:$0xff] }
 0x98e   :  { %v8833_v60 = vcombine.high %v6515_v40, %v6519_v50  ;;  %v8832_v56 = vcombine.low %v6515_v40, %v6519_v50  ;;  %v6611_v40 = vld [vmem:[%s14277_s11 + $0x300] sm:$0xff] }
 0x98f   :  { %v6615_v50 = vld [vmem:[%s14277_s11 + $0x320] sm:$0xff] }
 0x990   :  { %9792 = vmatpush3.bf16.msra.mxu1 %v10344_v53  ;;  %v8912_v53 = vcombine.low %v6595_v37, %v6599_v47  ;;  %v8928_v51 = vcombine.low %v6611_v40, %v6615_v50 }
 0x991   :  { %7325 = vmatprep.subr.bf16.mxu1 %v8833_v60  ;;  %v8929_v60 = vcombine.high %v6611_v40, %v6615_v50  ;;  %v6600_v40 = vld [vmem:[%s14277_s11 + $0x2a8] sm:$0xff] }
 0x9dd   :  { %v10196_v4 = vpop.permute.xlu0 %10195 }
 0x9de   :  { %v10198_v52 = vunpack.i.h.bf16 %v10196_v4  ;;  %v10197_v55 = vunpack.i.l.bf16 %v10196_v4  ;;  %v8905_v4 = vcombine.high %v6587_v57, %v6591_v16 }
 0x9e0   :  { %v6511_v54 = vsel %vm5601_vm1, %v6287_v2, %v10198_v52  ;;  %v6512_v20 = vsel %vm5601_vm1, %v6289_v32, %v10197_v55  ;;  %v6543_v2 = vld [vmem:[%s14277_s11 + $0xe0] sm:$0xff]  ;;  %v8904_v52 = vcombine.low %v6587_v57, %v6591_v16  ;;  %v8913_v55 = vcombine.high %v6595_v37, %v6599_v47  ;;  %v6576_v57 = vld [vmem:[%s14277_s11 + $0x1e8] sm:$0xff] }
 0x9e1   :  { %v13729_v24 = vpack.c.bf16 %v6511_v54, %v6511_v54  ;;  %v13731_v3 = vpack.c.bf16 %v6512_v20, %v6512_v20  ;;  %v8857_v32 = vcombine.high %v6539_v13, %v6543_v2  ;;  %v8856_v34 = vcombine.low %v6539_v13, %v6543_v2  ;;  %v6603_v54 = vld [vmem:[%s14277_s11 + $0x2c0] sm:$0xff]  ;;  %v6584_v37 = vld [vmem:[%s14277_s11 + $0x228] sm:$0xff] }
 0x9e2   :  { %v6607_v20 = vld [vmem:[%s14277_s11 + $0x2e0] sm:$0xff]  ;;  %v20_v2 = vstv %s14281_s10 }
 0x9e3   :  { %7480 = vmatprep.mubr.bf16.mxu0 %v13731_v3  ;;  %v8921_v9 = vcombine.high %v6603_v54, %v6607_v20  ;;  %v8920_v27 = vcombine.low %v6603_v54, %v6607_v20  ;;  %21 = vst [vmem:[#allocation5] sm:$0x1] %v20_v2  ;;  %v6592_v54 = vld [vmem:[%s14277_s11 + $0x268] sm:$0xff]  ;;  %v6525_v2 = vld [vmem:[%s14277_s11 + $0x50] sm:$0xff] }
 0x9e4   :  { %7481 = vmatmul.mubr.bf16.vlgmr.msra.gmra.mrb[176].mxu0 %v13729_v24 }
 0xa46   :  { %v6372_v33 = vpop.f32.mrb[132].mxu1 }
 0xa47   :  { %v6373_v29 = vadd.f32 %v8815_v7, %v6372_v33  ;;  %v9775_v25 = vpop.f32.mrb[133].mxu1  ;;  %v6627_v33 = vld [vmem:[%s14277_s11 + $0x380] sm:$0xff] }
 0xa48   :  { %v6375_v28 = vpop.f32.mrb[134].mxu1 }
 0xa49   :  { %v8821_v44 = vmul.f32 -1.442695, %v6373_v29  ;;  %v9776_v39 = vpop.f32.mrb[135].mxu1 }
 0xa4a   :  { %v6639_v39 = vld [vmem:[%s14277_s11 + $0x3e0] sm:$0xff] }
 0xa4b   :  { %10829 = vpow2.f32 %v8821_v44  ;;  %v6635_v44 = vld [vmem:[%s14277_s11 + $0x3c0] sm:$0xff] }
 0xa4c   :  { %v8952_v10 = vcombine.low %v6635_v44, %v6639_v39 }
 0xa55   :  { %v10830_v18 = vpop.eup %10829 }
 0xa56   :  { %v6381_v30 = vadd.f32 1.0, %v10830_v18 }
 0xa58   :  { %10831 = vrcp.f32 %v6381_v30  ;;  %v8953_v30 = vcombine.high %v6635_v44, %v6639_v39  ;;  %v6624_v44 = vld [vmem:[%s14277_s11 + $0x368] sm:$0xff] }
 0xa62   :  { %v10832_v21 = vpop.eup %10831 }
 0xa63   :  { %v6384_v35 = vmul.f32 %v10832_v21, %v6373_v29  ;;  %v6631_v29 = vld [vmem:[%s14277_s11 + $0x3a0] sm:$0xff]  ;;  %v6516_v21 = vld [vmem:[%s14277_s11 + $0x8] sm:$0xff] }
 0xa64   :  { %v8945_v28 = vcombine.high %v6627_v33, %v6631_v29  ;;  %v8944_v18 = vcombine.low %v6627_v33, %v6631_v29  ;;  %v8834_v59 = vcombine.low %v6516_v21, %v6520_v26  ;;  %v6616_v33 = vld [vmem:[%s14277_s11 + $0x328] sm:$0xff] }
 0xa65   :  { %v6385_v15 = vpack.c.bf16 %v6384_v35, %v6384_v35  ;;  %v8835_v35 = vcombine.high %v6516_v21, %v6520_v26  ;;  %v6632_v21 = vld [vmem:[%s14277_s11 + $0x3a8] sm:$0xff] }
 0xa67   :  { %9794 = vmatmul.mubr.bf16.vlgmr.msra.gmra.mrb[136].mxu1 %v6385_v15  ;;  %v6524_v15 = vld [vmem:[%s14277_s11 + $0x48] sm:$0xff] }
 0xa68   :  { %7326 = vmatpush1.bf16.msra.mxu1 %v8832_v56  ;;  %7357 = vmatprep.mubr.bf16.mxu1 %v13731_v3  ;;  %v6623_v56 = vld [vmem:[%s14277_s11 + $0x360] sm:$0xff] }
 0xa69   :  { %7327 = vmatprep.subr.bf16.mxu1 %v8841_v63  ;;  %v8937_v7 = vcombine.high %v6619_v42, %v6623_v56  ;;  %v8936_v25 = vcombine.low %v6619_v42, %v6623_v56  ;;  %v6528_v63 = vld [vmem:[%s14277_s11 + $0x68] sm:$0xff] }
 0xa6a   :  { %v8843_v23 = vcombine.high %v6524_v15, %v6528_v63  ;;  %v8842_v13 = vcombine.low %v6524_v15, %v6528_v63  ;;  %v6608_v42 = vld [vmem:[%s14277_s11 + $0x2e8] sm:$0xff] }
 0xa6b   :  { %v6640_v15 = vld [vmem:[%s14277_s11 + $0x3e8] sm:$0xff] }
 0xa6c   :  { %7328 = vmatpush1.bf16.msra.mxu1 %v8840_v61  ;;  %v6532_v61 = vld [vmem:[%s14277_s11 + $0x88] sm:$0xff] }
 0xa6d   :  { %7329 = vmatprep.subr.bf16.mxu1 %v8849_v5  ;;  %v6536_v5 = vld [vmem:[%s14277_s11 + $0xa8] sm:$0xff] }
 0xa6e   :  { %v8850_v48 = vcombine.low %v6532_v61, %v6536_v5 }
 0xa70   :  { %7330 = vmatpush1.bf16.msra.mxu1 %v8848_v49  ;;  %v8851_v49 = vcombine.high %v6532_v61, %v6536_v5  ;;  %v6521_v61 = vld [vmem:[%s14277_s11 + $0x30] sm:$0xff] }
 0xa71   :  { %7331 = vmatprep.subr.bf16.mxu1 %v8857_v32  ;;  %v6540_v32 = vld [vmem:[%s14277_s11 + $0xc8] sm:$0xff] }
 0xa72   :  { %v8858_v31 = vcombine.low %v6540_v32, %v6544_v45 }
 0xa74   :  { %7332 = vmatpush1.bf16.msra.mxu1 %v8856_v34  ;;  %v8859_v34 = vcombine.high %v6540_v32, %v6544_v45 }
 0xa75   :  { %7333 = vmatprep.subr.bf16.mxu1 %v8865_v46  ;;  %v6548_v46 = vld [vmem:[%s14277_s11 + $0x108] sm:$0xff] }
 0xa76   :  { %v8866_v58 = vcombine.low %v6548_v46, %v6552_v12 }
 0xa78   :  { %7334 = vmatpush1.bf16.msra.mxu1 %v8864_v14  ;;  %v8867_v14 = vcombine.high %v6548_v46, %v6552_v12 }
 0xa79   :  { %7335 = vmatprep.subr.bf16.mxu1 %v8873_v8  ;;  %v6556_v8 = vld [vmem:[%s14277_s11 + $0x148] sm:$0xff] }
 0xa7c   :  { %7336 = vmatpush1.bf16.msra.mxu1 %v8872_v1  ;;  %v8875_v1 = vcombine.high %v6556_v8, %v6560_v17 }
 0xa7d   :  { %7337 = vmatprep.subr.bf16.mxu1 %v8881_v22  ;;  %v6564_v22 = vld [vmem:[%s14277_s11 + $0x188] sm:$0xff] }
 0xa7e   :  { %v8883_v41 = vcombine.high %v6564_v22, %v6568_v0  ;;  %v8882_v16 = vcombine.low %v6564_v22, %v6568_v0  ;;  %v6557_v0 = vld [vmem:[%s14277_s11 + $0x150] sm:$0xff] }
 0xa80   :  { %7338 = vmatpush1.bf16.msra.mxu1 %v8880_v19 }
 0xa81   :  { %7339 = vmatprep.subr.bf16.mxu1 %v8889_v6  ;;  %v8874_v6 = vcombine.low %v6556_v8, %v6560_v17 }
 0xa84   :  { %7340 = vmatpush1.bf16.msra.mxu1 %v8888_v38 }
 0xa85   :  { %7341 = vmatprep.subr.bf16.mxu1 %v8897_v11  ;;  %v6572_v11 = vld [vmem:[%s14277_s11 + $0x1c8] sm:$0xff] }
 0xa86   :  { %v8890_v47 = vcombine.low %v6572_v11, %v6576_v57 }
 0xa88   :  { %7342 = vmatpush1.bf16.msra.mxu1 %v8896_v36  ;;  %v8891_v36 = vcombine.high %v6572_v11, %v6576_v57  ;;  %v6569_v11 = vld [vmem:[%s14277_s11 + $0x1b0] sm:$0xff] }
 0xa89   :  { %7343 = vmatprep.subr.bf16.mxu1 %v8905_v4  ;;  %v6580_v4 = vld [vmem:[%s14277_s11 + $0x208] sm:$0xff] }
 0xa8a   :  { %v8898_v20 = vcombine.low %v6580_v4, %v6584_v37 }
 0xa8c   :  { %7344 = vmatpush1.bf16.msra.mxu1 %v8904_v52  ;;  %v8899_v52 = vcombine.high %v6580_v4, %v6584_v37  ;;  %v6577_v4 = vld [vmem:[%s14277_s11 + $0x1f0] sm:$0xff] }
 0xa8d   :  { %7345 = vmatprep.subr.bf16.mxu1 %v8913_v55  ;;  %v6588_v55 = vld [vmem:[%s14277_s11 + $0x248] sm:$0xff] }
 0xa8e   :  { %v8906_v50 = vcombine.low %v6588_v55, %v6592_v54 }
 0xa90   :  { %7346 = vmatpush1.bf16.msra.mxu1 %v8912_v53  ;;  %v8907_v53 = vcombine.high %v6588_v55, %v6592_v54 }
 0xa91   :  { %7347 = vmatprep.subr.bf16.mxu1 %v8921_v9  ;;  %v6596_v9 = vld [vmem:[%s14277_s11 + $0x288] sm:$0xff] }
 0xa92   :  { %v8914_v56 = vcombine.low %v6596_v9, %v6600_v40 }
 0xa94   :  { %7348 = vmatpush1.bf16.msra.mxu1 %v8920_v27  ;;  %v8915_v27 = vcombine.high %v6596_v9, %v6600_v40 }
 0xa95   :  { %7349 = vmatprep.subr.bf16.mxu1 %v8929_v60  ;;  %v6604_v60 = vld [vmem:[%s14277_s11 + $0x2c8] sm:$0xff] }
 0xa96   :  { %v8922_v29 = vcombine.low %v6604_v60, %v6608_v42 }
 0xa98   :  { %7350 = vmatpush1.bf16.msra.mxu1 %v8928_v51  ;;  %v8923_v51 = vcombine.high %v6604_v60, %v6608_v42 }
 0xa99   :  { %7351 = vmatprep.subr.bf16.mxu1 %v8937_v7  ;;  %v6612_v7 = vld [vmem:[%s14277_s11 + $0x308] sm:$0xff] }
 0xa9a   :  { %v8930_v39 = vcombine.low %v6612_v7, %v6616_v33 }
 0xa9c   :  { %7352 = vmatpush1.bf16.msra.mxu1 %v8936_v25  ;;  %v8931_v25 = vcombine.high %v6612_v7, %v6616_v33 }
 0xa9d   :  { %7353 = vmatprep.subr.bf16.mxu1 %v8945_v28  ;;  %v6620_v28 = vld [vmem:[%s14277_s11 + $0x348] sm:$0xff] }
 0xa9e   :  { %v8938_v26 = vcombine.low %v6620_v28, %v6624_v44 }
 0xaa0   :  { %7354 = vmatpush1.bf16.msra.mxu1 %v8944_v18  ;;  %v8939_v18 = vcombine.high %v6620_v28, %v6624_v44 }
 0xaa1   :  { %7355 = vmatprep.subr.bf16.mxu1 %v8953_v30  ;;  %v6628_v30 = vld [vmem:[%s14277_s11 + $0x388] sm:$0xff] }
 0xaa2   :  { %v8946_v63 = vcombine.low %v6628_v30, %v6632_v21 }
 0xaa4   :  { %7356 = vmatpush1.bf16.msra.mxu1 %v8952_v10  ;;  %v8947_v10 = vcombine.high %v6628_v30, %v6632_v21 }
 0xaa5   :  { %7366 = vmatprep.subr.bf16.mxu1 %v8835_v35  ;;  %v6636_v35 = vld [vmem:[%s14277_s11 + $0x3c8] sm:$0xff] }
 0xaa6   :  { %v8954_v5 = vcombine.low %v6636_v35, %v6640_v15 }
 0xaa7   :  { %7358 = vmatmul.mubr.bf16.vlgmr.msra.gmra.mrb[140].mxu1 %v13729_v24 }
 0xaa8   :  { %7367 = vmatpush1.bf16.msra.mxu1 %v8834_v59  ;;  %7398 = vmatprep.mubr.bf16.mxu1 %v13731_v3  ;;  %v8955_v59 = vcombine.high %v6636_v35, %v6640_v15 }
 0xaa9   :  { %7368 = vmatprep.subr.bf16.mxu1 %v8843_v23  ;;  %v6517_v23 = vld [vmem:[%s14277_s11 + $0x10] sm:$0xff] }
 0xaaa   :  { %v8836_v32 = vcombine.low %v6517_v23, %v6521_v61 }
 0xaac   :  { %7369 = vmatpush1.bf16.msra.mxu1 %v8842_v13  ;;  %v8837_v13 = vcombine.high %v6517_v23, %v6521_v61 }
 0xaad   :  { %7370 = vmatprep.subr.bf16.mxu1 %v8851_v49  ;;  %v6529_v49 = vld [vmem:[%s14277_s11 + $0x70] sm:$0xff] }
 0xaae   :  { %v8845_v45 = vcombine.high %v6525_v2, %v6529_v49  ;;  %v8844_v46 = vcombine.low %v6525_v2, %v6529_v49  ;;  %v10346_v49 = vld [vmem:[%s14282_s13] sm:$0xff]  }
 0xab0   :  { %7371 = vmatpush1.bf16.msra.mxu1 %v8850_v48  ;;  %v6533_v48 = vld [vmem:[%s14277_s11 + $0x90] sm:$0xff] }
 0xab1   :  { %7372 = vmatprep.subr.bf16.mxu1 %v8859_v34  ;;  %v6537_v34 = vld [vmem:[%s14277_s11 + $0xb0] sm:$0xff] }
 0xab2   :  { %v8853_v12 = vcombine.high %v6533_v48, %v6537_v34  ;;  %v8852_v8 = vcombine.low %v6533_v48, %v6537_v34  ;;  %v10349_v48 = vld [vmem:[%s14282_s13 + $0x50] sm:$0xff]  }
 0xab3   :  { %v10350_v34 = vld [vmem:[%s14282_s13 + $0x10] sm:$0xff]  }
 0xab4   :  { %7373 = vmatpush1.bf16.msra.mxu1 %v8858_v31  ;;  %v6541_v31 = vld [vmem:[%s14277_s11 + $0xd0] sm:$0xff] }
 0xab5   :  { %7374 = vmatprep.subr.bf16.mxu1 %v8867_v14  ;;  %v6545_v14 = vld [vmem:[%s14277_s11 + $0xf0] sm:$0xff] }
 0xab6   :  { %v8861_v17 = vcombine.high %v6541_v31, %v6545_v14 }
 0xab7   :  { %v13885_v43 = vpop.f32.mrb[176].mxu0 }
 0xab8   :  { %7375 = vmatpush1.bf16.msra.mxu1 %v8866_v58  ;;  %v13887_v19 = vpop.f32.mrb[177].mxu0  ;;  %v6549_v58 = vld [vmem:[%s14277_s11 + $0x110] sm:$0xff] }
 0xab9   :  { %v7486_v62 = vpop.f32.mrb[178].mxu0  ;;  %7376 = vmatprep.subr.bf16.mxu1 %v8875_v1  ;;  %v8860_v1 = vcombine.low %v6541_v31, %v6545_v14  ;;  %v10354_v31 = vld [vmem:[%s14282_s13 + $0x20] sm:$0xff]   ;;  %v10355_v14 = vld [vmem:[%s14282_s13 + $0x68] sm:$0xff]  }
 0xaba   :  { %v7487_v38 = vpop.f32.mrb[179].mxu0 }
 0xabb   :  { %v6565_v38 = vld [vmem:[%s14277_s11 + $0x190] sm:$0xff] }
 0xabc   :  { %7377 = vmatpush1.bf16.msra.mxu1 %v8874_v6  ;;  %v6561_v6 = vld [vmem:[%s14277_s11 + $0x170] sm:$0xff]  ;;  %v8884_v37 = vcombine.low %v6565_v38, %v6569_v11 }
 0xabd   :  { %7378 = vmatprep.subr.bf16.mxu1 %v8883_v41  ;;  %v8877_v41 = vcombine.high %v6557_v0, %v6561_v6  ;;  %v8876_v57 = vcombine.low %v6557_v0, %v6561_v6  ;;  %v10362_v6 = vld [vmem:[%s14282_s13 + $0x80] sm:$0xff]  }
 0xac0   :  { %7379 = vmatpush1.bf16.msra.mxu1 %v8882_v16  ;;  %v8885_v16 = vcombine.high %v6565_v38, %v6569_v11  ;;  %v10359_v11 = vld [vmem:[%s14282_s13 + $0x78] sm:$0xff]  }
 0xac1   :  { %7380 = vmatprep.subr.bf16.mxu1 %v8891_v36  ;;  %v6573_v36 = vld [vmem:[%s14277_s11 + $0x1d0] sm:$0xff] }
 0xac2   :  { %v8893_v55 = vcombine.high %v6573_v36, %v6577_v4  ;;  %v8892_v54 = vcombine.low %v6573_v36, %v6577_v4  ;;  %v10363_v36 = vld [vmem:[%s14282_s13 + $0xc8] sm:$0xff]  }
 0xac3   :  { %v10364_v4 = vld [vmem:[%s14282_s13 + $0x88] sm:$0xff]  }
 0xac4   :  { %7381 = vmatpush1.bf16.msra.mxu1 %v8890_v47  ;;  %v6581_v47 = vld [vmem:[%s14277_s11 + $0x210] sm:$0xff] }
 0xac5   :  { %7382 = vmatprep.subr.bf16.mxu1 %v8899_v52  ;;  %v6585_v52 = vld [vmem:[%s14277_s11 + $0x230] sm:$0xff] }
 0xac6   :  { %v8901_v9 = vcombine.high %v6581_v47, %v6585_v52  ;;  %v8900_v40 = vcombine.low %v6581_v47, %v6585_v52  ;;  %v10365_v47 = vld [vmem:[%s14282_s13 + $0xd0] sm:$0xff]  }
 0xac7   :  { %v10366_v52 = vld [vmem:[%s14282_s13 + $0x90] sm:$0xff]  }
 0xac8   :  { %7383 = vmatpush1.bf16.msra.mxu1 %v8898_v20  ;;  %v6589_v20 = vld [vmem:[%s14277_s11 + $0x250] sm:$0xff] }
 0xac9   :  { %7384 = vmatprep.subr.bf16.mxu1 %v8907_v53  ;;  %v6593_v53 = vld [vmem:[%s14277_s11 + $0x270] sm:$0xff] }
 0xaca   :  { %v8909_v60 = vcombine.high %v6589_v20, %v6593_v53  ;;  %v8908_v42 = vcombine.low %v6589_v20, %v6593_v53  ;;  %v10369_v20 = vld [vmem:[%s14282_s13 + $0xe0] sm:$0xff]  }
 0xacb   :  { %v10370_v53 = vld [vmem:[%s14282_s13 + $0xa0] sm:$0xff]  }
 0xacc   :  { %7385 = vmatpush1.bf16.msra.mxu1 %v8906_v50  ;;  %v6597_v50 = vld [vmem:[%s14277_s11 + $0x290] sm:$0xff] }
 0xacd   :  { %7386 = vmatprep.subr.bf16.mxu1 %v8915_v27  ;;  %v6601_v27 = vld [vmem:[%s14277_s11 + $0x2b0] sm:$0xff] }
 0xace   :  { %v8917_v7 = vcombine.high %v6597_v50, %v6601_v27  ;;  %v8916_v33 = vcombine.low %v6597_v50, %v6601_v27  ;;  %v10373_v50 = vld [vmem:[%s14282_s13 + $0xf0] sm:$0xff]  }
 0xacf   :  { %v10374_v27 = vld [vmem:[%s14282_s13 + $0xb0] sm:$0xff]  }
 0xad0   :  { %7387 = vmatpush1.bf16.msra.mxu1 %v8914_v56  ;;  %v6605_v56 = vld [vmem:[%s14277_s11 + $0x2d0] sm:$0xff] }
 0xad1   :  { %7388 = vmatprep.subr.bf16.mxu1 %v8923_v51  ;;  %v6609_v51 = vld [vmem:[%s14277_s11 + $0x2f0] sm:$0xff] }
 0xad2   :  { %v8925_v28 = vcombine.high %v6605_v56, %v6609_v51  ;;  %v8924_v44 = vcombine.low %v6605_v56, %v6609_v51  ;;  %v10377_v56 = vld [vmem:[%s14282_s13 + $0x1c0] sm:$0xff]   ;;  %v6645_v51 = vlaneseq }
 0xad4   :  { %7389 = vmatpush1.bf16.msra.mxu1 %v8922_v29  ;;  %v6613_v29 = vld [vmem:[%s14277_s11 + $0x310] sm:$0xff] }
 0xad5   :  { %7390 = vmatprep.subr.bf16.mxu1 %v8931_v25  ;;  %v6617_v25 = vld [vmem:[%s14277_s11 + $0x330] sm:$0xff] }
 0xad6   :  { %v8933_v30 = vcombine.high %v6613_v29, %v6617_v25  ;;  %v8932_v21 = vcombine.low %v6613_v29, %v6617_v25  ;;  %v14152_v25 = vld [vmem:[%s14283_s12] sm:$0xff] }
 0xad8   :  { %7391 = vmatpush1.bf16.msra.mxu1 %v8930_v39  ;;  %v6621_v39 = vld [vmem:[%s14277_s11 + $0x350] sm:$0xff] }
 0xad9   :  { %7392 = vmatprep.subr.bf16.mxu1 %v8939_v18  ;;  %v6625_v18 = vld [vmem:[%s14277_s11 + $0x370] sm:$0xff] }
 0xada   :  { %v8941_v35 = vcombine.high %v6621_v39, %v6625_v18  ;;  %v8940_v15 = vcombine.low %v6621_v39, %v6625_v18 }
 0xadc   :  { %7393 = vmatpush1.bf16.msra.mxu1 %v8938_v26  ;;  %v6629_v26 = vld [vmem:[%s14277_s11 + $0x390] sm:$0xff] }
 0xadd   :  { %7394 = vmatprep.subr.bf16.mxu1 %v8947_v10  ;;  %v6633_v10 = vld [vmem:[%s14277_s11 + $0x3b0] sm:$0xff] }
 0xade   :  { %v8949_v23 = vcombine.high %v6629_v26, %v6633_v10  ;;  %v8948_v61 = vcombine.low %v6629_v26, %v6633_v10  ;;  %v10393_v10 = vld [vmem:[%s14282_s13 + $0x140] sm:$0xff]  }
 0xae0   :  { %7395 = vmatpush1.bf16.msra.mxu1 %v8946_v63  ;;  %v6637_v63 = vld [vmem:[%s14277_s11 + $0x3d0] sm:$0xff] }
 0xae1   :  { %7396 = vmatprep.subr.bf16.mxu1 %v8955_v59  ;;  %v6641_v59 = vld [vmem:[%s14277_s11 + $0x3f0] sm:$0xff] }
 0xae2   :  { %v8956_v2 = vcombine.low %v6637_v63, %v6641_v59 }
 0xae4   :  { %7397 = vmatpush1.bf16.msra.mxu1 %v8954_v5  ;;  %v8957_v5 = vcombine.high %v6637_v63, %v6641_v59 }
 0xae5   :  { %7407 = vmatprep.subr.bf16.mxu1 %v8837_v13  ;;  %v10345_v13 = vld [vmem:[%s14282_s13 + $0x40] sm:$0xff]  }
 0xae7   :  { %7399 = vmatmul.mubr.bf16.vlgmr.msra.gmra.mrb[144].mxu1 %v13729_v24 }
 0xae8   :  { %7408 = vmatpush1.bf16.msra.mxu1 %v8836_v32  ;;  %7439 = vmatprep.mubr.bf16.mxu1 %v13731_v3  ;;  %v6553_v3 = vld [vmem:[%s14277_s11 + $0x130] sm:$0xff]  ;;  %v10347_v32 = vld [vmem:[%s14282_s13 + $0x48] sm:$0xff]  }
 0xae9   :  { %7409 = vmatprep.subr.bf16.mxu1 %v8845_v45  ;;  %v8869_v22 = vcombine.high %v6549_v58, %v6553_v3  ;;  %v8868_v62 = vcombine.low %v6549_v58, %v6553_v3  ;;  %v10348_v45 = vld [vmem:[%s14282_s13 + $0x8] sm:$0xff]   ;;  %v10357_v58 = vld [vmem:[%s14282_s13 + $0x70] sm:$0xff]  }
 0xaec   :  { %7410 = vmatpush1.bf16.msra.mxu1 %v8844_v46  ;;  %v10351_v46 = vld [vmem:[%s14282_s13 + $0x58] sm:$0xff]  }
 0xaed   :  { %7411 = vmatprep.subr.bf16.mxu1 %v8853_v12  ;;  %v10353_v12 = vld [vmem:[%s14282_s13 + $0x60] sm:$0xff]  }
 0xaf0   :  { %7412 = vmatpush1.bf16.msra.mxu1 %v8852_v8  ;;  %v8822_v8 = vld [vmem:[#allocation5] ss:$0 sm:$0xff] }
 0xaf1   :  { %7413 = vmatprep.subr.bf16.mxu1 %v8861_v17  ;;  %v10356_v17 = vld [vmem:[%s14282_s13 + $0x28] sm:$0xff]  }
 0xaf4   :  { %7414 = vmatpush1.bf16.msra.mxu1 %v8860_v1  ;;  %v10361_v1 = vld [vmem:[%s14282_s13 + $0xc0] sm:$0xff]  }
 0xaf5   :  { %7415 = vmatprep.subr.bf16.mxu1 %v8869_v22  ;;  %9255 = vmatprep.subr.bf16.mxu0 %v10361_v1  ;;  %v10403_v1 = vld [vmem:[%s14282_s13 + $0x168] sm:$0xff]  }
 0xaf6   :  { %9256 = vmatpush3.bf16.msra.mxu0 %v10362_v6  ;;  %v10404_v6 = vld [vmem:[%s14282_s13 + $0x128] sm:$0xff]  }
 0xaf7   :  { %9257 = vmatprep.subr.bf16.mxu0 %v10363_v36 }
 0xaf8   :  { %7416 = vmatpush1.bf16.msra.mxu1 %v8868_v62 }
 0xaf9   :  { %7417 = vmatprep.subr.bf16.mxu1 %v8877_v41  ;;  %v10358_v41 = vld [vmem:[%s14282_s13 + $0x30] sm:$0xff]  }
 0xafa   :  { %9258 = vmatpush3.bf16.msra.mxu0 %v10364_v4 }
 0xafb   :  { %9259 = vmatprep.subr.bf16.mxu0 %v10365_v47 }
 0xafc   :  { %7418 = vmatpush1.bf16.msra.mxu1 %v8876_v57  ;;  %v14406_v57 = vmov 0  }
 0xafd   :  { %7419 = vmatprep.subr.bf16.mxu1 %v8885_v16 }
 0xafe   :  { %9260 = vmatpush3.bf16.msra.mxu0 %v10366_v52 }
 0xb00   :  { %7420 = vmatpush1.bf16.msra.mxu1 %v8884_v37  ;;  %v10360_v37 = vld [vmem:[%s14282_s13 + $0x38] sm:$0xff]  }
 0xb01   :  { %7421 = vmatprep.subr.bf16.mxu1 %v8893_v55  ;;  %v10367_v55 = vld [vmem:[%s14282_s13 + $0xd8] sm:$0xff]  }
 0xb02   :  { %9261 = vmatprep.subr.bf16.mxu0 %v10367_v55 }
 0xb04   :  { %7422 = vmatpush1.bf16.msra.mxu1 %v8892_v54  ;;  %v10368_v54 = vld [vmem:[%s14282_s13 + $0x98] sm:$0xff]  }
 0xb05   :  { %7423 = vmatprep.subr.bf16.mxu1 %v8901_v9  ;;  %9262 = vmatpush3.bf16.msra.mxu0 %v10368_v54  ;;  %v10371_v9 = vld [vmem:[%s14282_s13 + $0xe8] sm:$0xff]  }
 0xb06   :  { %9263 = vmatprep.subr.bf16.mxu0 %v10369_v20 }
 0xb08   :  { %7424 = vmatpush1.bf16.msra.mxu1 %v8900_v40  ;;  %v10372_v40 = vld [vmem:[%s14282_s13 + $0xa8] sm:$0xff]  }
 0xb09   :  { %7425 = vmatprep.subr.bf16.mxu1 %v8909_v60  ;;  %9264 = vmatpush3.bf16.msra.mxu0 %v10370_v53  ;;  %v10375_v60 = vld [vmem:[%s14282_s13 + $0xf8] sm:$0xff]  }
 0xb0a   :  { %9265 = vmatprep.subr.bf16.mxu0 %v10371_v9 }
 0xb0c   :  { %7426 = vmatpush1.bf16.msra.mxu1 %v8908_v42  ;;  %v10376_v42 = vld [vmem:[%s14282_s13 + $0xb8] sm:$0xff]  }
 0xb0d   :  { %7427 = vmatprep.subr.bf16.mxu1 %v8917_v7  ;;  %9266 = vmatpush3.bf16.msra.mxu0 %v10372_v40  ;;  %v14145_v7 = vshrl.u32 %v6645_v51, 7 }
 0xb0e   :  { %9267 = vmatprep.subr.bf16.mxu0 %v10373_v50 }
 0xb0f   :  { %v6651_v29 = vsub.s32 1, %v14145_v7 }
 0xb10   :  { %7428 = vmatpush1.bf16.msra.mxu1 %v8916_v33  ;;  %v6647_v33 = vsub.s32 0, %v14145_v7 }
 0xb11   :  { %7429 = vmatprep.subr.bf16.mxu1 %v8925_v28  ;;  %9268 = vmatpush3.bf16.msra.mxu0 %v10374_v27 }
 0xb12   :  { %9269 = vmatprep.subr.bf16.mxu0 %v10375_v60  ;;  %v6648_v28 = vrot.slane %v14152_v25, %v6647_v33 }
 0xb14   :  { %7430 = vmatpush1.bf16.msra.mxu1 %v8924_v44  ;;  %v6652_v44 = vrot.slane %v14152_v25, %v6651_v29 }
 0xb15   :  { %7431 = vmatprep.subr.bf16.mxu1 %v8933_v30  ;;  %9270 = vmatpush3.bf16.msra.mxu0 %v10376_v42  ;;  %v6671_v42 = vsub.s32 6, %v14145_v7 }
 0xb16   :  { %9299 = vmatprep.subr.bf16.mxu0 %v10377_v56 }
 0xb17   :  { %v6672_v29 = vrot.slane %v14152_v25, %v6671_v42  ;;  %v8968_v42 = vld [vmem:[%s14284_s14] ss:$0 sm:$0xff]  ;;  %s10875_s14 = smov 2  }
 0xb18   :  { %7432 = vmatpush1.bf16.msra.mxu1 %v8932_v21 }
 0xb19   :  { %7433 = vmatprep.subr.bf16.mxu1 %v8941_v35 }
 0xb1c   :  { %7434 = vmatpush1.bf16.msra.mxu1 %v8940_v15 }
 0xb1d   :  { %7435 = vmatprep.subr.bf16.mxu1 %v8949_v23 }
 0xb20   :  { %7436 = vmatpush1.bf16.msra.mxu1 %v8948_v61 }
 0xb21   :  { %7437 = vmatprep.subr.bf16.mxu1 %v8957_v5 }
 0xb24   :  { %7438 = vmatpush1.bf16.msra.mxu1 %v8956_v2 }
 0xb25   :  { %9233 = vmatprep.subr.bf16.mxu1 %v10345_v13 }
 0xb27   :  { %7440 = vmatmul.mubr.bf16.vlgmr.msra.gmra.mrb[148].mxu1 %v13729_v24  ;;  %v10352_v24 = vld [vmem:[%s14282_s13 + $0x18] sm:$0xff]  }
 0xb28   :  { %9234 = vmatpush3.bf16.msra.mxu1 %v10346_v49 }
 0xb29   :  { %9235 = vmatprep.subr.bf16.mxu1 %v10347_v32 }
 0xb2c   :  { %9236 = vmatpush3.bf16.msra.mxu1 %v10348_v45 }
 0xb2d   :  { %9237 = vmatprep.subr.bf16.mxu1 %v10349_v48  ;;  %v10394_v48 = vld [vmem:[%s14282_s13 + $0x100] sm:$0xff]  }
 0xb30   :  { %9238 = vmatpush3.bf16.msra.mxu1 %v10350_v34 }
 0xb31   :  { %9239 = vmatprep.subr.bf16.mxu1 %v10351_v46  ;;  %v10395_v46 = vld [vmem:[%s14282_s13 + $0x148] sm:$0xff]  }
 0xb34   :  { %9240 = vmatpush3.bf16.msra.mxu1 %v10352_v24  ;;  %v10396_v24 = vld [vmem:[%s14282_s13 + $0x108] sm:$0xff]  }
 0xb35   :  { %9241 = vmatprep.subr.bf16.mxu1 %v10353_v12  ;;  %v10397_v12 = vld [vmem:[%s14282_s13 + $0x150] sm:$0xff]  }
 0xb38   :  { %9242 = vmatpush3.bf16.msra.mxu1 %v10354_v31  ;;  %v10398_v31 = vld [vmem:[%s14282_s13 + $0x110] sm:$0xff]  }
 0xb39   :  { %9243 = vmatprep.subr.bf16.mxu1 %v10355_v14  ;;  %v10399_v14 = vld [vmem:[%s14282_s13 + $0x158] sm:$0xff]  }
 0xb3a   :  { %v6491_v3 = vpop.f32.mrb[136].mxu1 }
 0xb3b   :  { %v14084_v22 = vadd.f32 %v8822_v8, %v6491_v3  ;;  %v9795_v0 = vpop.f32.mrb[137].mxu1  ;;  %v10400_v8 = vld [vmem:[%s14282_s13 + $0x118] sm:$0xff]   ;;  %v10402_v3 = vld [vmem:[%s14282_s13 + $0x120] sm:$0xff]  }
 0xb3c   :  { %v6494_v62 = vpop.f32.mrb[138].mxu1  ;;  %9244 = vmatpush3.bf16.msra.mxu1 %v10356_v17  ;;  %v10401_v17 = vld [vmem:[%s14282_s13 + $0x160] sm:$0xff]  }
 0xb3d   :  { %vm8232_vm3 = vcmp.gt.f32.partialorder %v14084_v22, 0.0  ;;  %v9796_v38 = vpop.f32.mrb[139].mxu1  ;;  %9245 = vmatprep.subr.bf16.mxu1 %v10357_v58  ;;  %v6675_v58 = vsub.s32 7, %v14145_v7  ;;  %v10405_v62 = vld [vmem:[%s14282_s13 + $0x170] sm:$0xff]  }
 0xb3e   :  { %v8233_v16 = vsel %vm8232_vm3, 1, %v14406_v57  ;;  %v10406_v38 = vld [vmem:[%s14282_s13 + $0x130] sm:$0xff]   ;;  %v10407_v57 = vld [vmem:[%s14282_s13 + $0x178] sm:$0xff]  }
 0xb3f   :  { %8235 = vperm.xlu1 %10199, %v8233_v16   ;;  %v6676_v0 = vrot.slane %v14152_v25, %v6675_v58  ;;  %v6659_v16 = vsub.s32 3, %v14145_v7  ;;  %v10392_v58 = vld [vmem:[%s14282_s13 + $0x1b8] sm:$0xff]  }
 0xb40   :  { %9246 = vmatpush3.bf16.msra.mxu1 %v10358_v41 }
 0xb41   :  { %9247 = vmatprep.subr.bf16.mxu1 %v10359_v11  ;;  %v7485_v41 = vadd.f32 %v13887_v19, %v6676_v0  ;;  %v6655_v11 = vsub.s32 2, %v14145_v7  ;;  %v10408_v19 = vld [vmem:[%s14282_s13 + $0x138] sm:$0xff]  }
 0xb43   :  { %v8967_v36 = vmul.f32 -1.442695, %v7485_v41  ;;  %v6656_v4 = vrot.slane %v14152_v25, %v6655_v11 }
 0xb44   :  { %9248 = vmatpush3.bf16.msra.mxu1 %v10360_v37  ;;  %v6660_v37 = vrot.slane %v14152_v25, %v6659_v16 }
 0xb45   :  { %9277 = vmatprep.subr.bf16.mxu1 %v10393_v10 }
 0xb7a   :  { %v7359_v39 = vpop.f32.mrb[140].mxu1 }
 0xb7b   :  { %v7360_v18 = vadd.f32 %v7359_v39, %v6648_v28  ;;  %v7361_v30 = vpop.f32.mrb[141].mxu1  ;;  %v7483_v28 = vadd.f32 %v13885_v43, %v6672_v29  ;;  %v10380_v43 = vld [vmem:[%s14282_s13 + $0x188] sm:$0xff]  }
 0xb7c   :  { %v7362_v21 = vadd.f32 %v7361_v30, %v6652_v44  ;;  %v7363_v26 = vpop.f32.mrb[142].mxu1 }
 0xb7d   :  { %v8960_v35 = vmul.f32 -1.442695, %v7360_v18  ;;  %v7364_v15 = vpop.f32.mrb[143].mxu1  ;;  %v8966_v39 = vmul.f32 -1.442695, %v7483_v28 }
 0xb7e   :  { %v8961_v63 = vmul.f32 -1.442695, %v7362_v21  ;;  %v10378_v15 = vld [vmem:[%s14282_s13 + $0x180] sm:$0xff]  }
 0xb7f   :  { %10833 = vpow2.f32 %v8960_v35 }
 0xb80   :  { %10835 = vpow2.f32 %v8961_v63 }
 0xb89   :  { %v10834_v59 = vpop.eup %10833 }
 0xb8a   :  { %v10836_v23 = vpop.eup %10835  ;;  %v7513_v61 = vadd.f32 1.0, %v10834_v59  ;;  %v10379_v59 = vld [vmem:[%s14282_s13 + $0x1c8] sm:$0xff]  }
 0xb8b   :  { %v7514_v5 = vadd.f32 1.0, %v10836_v23 }
 0xb8c   :  { %10837 = vrcp.f32 %v7513_v61  ;;  %v10381_v61 = vld [vmem:[%s14282_s13 + $0x1d0] sm:$0xff]  }
 0xb8d   :  { %10839 = vrcp.f32 %v7514_v5  ;;  %v10382_v5 = vld [vmem:[%s14282_s13 + $0x190] sm:$0xff]  }
 0xb8e   :  { %10841 = vpow2.f32 %v8967_v36 }
 0xb96   :  { %v10838_v13 = vpop.eup %10837 }
 0xb97   :  { %v10840_v2 = vpop.eup %10839  ;;  %v7537_v49 = vmul.f32 %v10838_v13, %v7360_v18 }
 0xb98   :  { %v7538_v32 = vmul.f32 %v10840_v2, %v7362_v21  ;;  %v10842_v50 = vpop.eup %10841  ;;  %v10383_v2 = vld [vmem:[%s14282_s13 + $0x1d8] sm:$0xff]  }
 0xb99   :  { %v7545_v34 = vpack.c.bf16 %v7537_v49, %v7537_v49  ;;  %v7520_v27 = vadd.f32 1.0, %v10842_v50 }
 0xb9a   :  { %v7546_v45 = vpack.c.bf16 %v7538_v32, %v7538_v32  ;;  %v10384_v32 = vld [vmem:[%s14282_s13 + $0x198] sm:$0xff]  }
 0xb9c   :  { %8104 = vmatprep.mubr.bf16.mxu1 %v7546_v45  ;;  %v10385_v45 = vld [vmem:[%s14282_s13 + $0x1e0] sm:$0xff]  }
 0xb9d   :  { %8105 = vmatmul.mubr.bf16.vlgmr.msra.gmra.mrb[152].mxu1 %v7545_v34  ;;  %v10387_v34 = vld [vmem:[%s14282_s13 + $0x1e8] sm:$0xff]  }
 0xb9e   :  { %9278 = vmatpush3.bf16.msra.mxu1 %v10394_v48  ;;  %v10386_v48 = vld [vmem:[%s14282_s13 + $0x1a0] sm:$0xff]  }
 0xb9f   :  { %9279 = vmatprep.subr.bf16.mxu1 %v10395_v46  ;;  %v10388_v46 = vld [vmem:[%s14282_s13 + $0x1a8] sm:$0xff]  }
 0xba2   :  { %9280 = vmatpush3.bf16.msra.mxu1 %v10396_v24  ;;  %v10389_v24 = vld [vmem:[%s14282_s13 + $0x1f0] sm:$0xff]  }
 0xba3   :  { %9281 = vmatprep.subr.bf16.mxu1 %v10397_v12  ;;  %v10390_v12 = vld [vmem:[%s14282_s13 + $0x1b0] sm:$0xff]  }
 0xba6   :  { %9282 = vmatpush3.bf16.msra.mxu1 %v10398_v31  ;;  %v10391_v31 = vld [vmem:[%s14282_s13 + $0x1f8] sm:$0xff]  }
 0xba7   :  { %9283 = vmatprep.subr.bf16.mxu1 %v10399_v14  ;;  %v6663_v14 = vsub.s32 4, %v14145_v7 }
 0xbaa   :  { %9284 = vmatpush3.bf16.msra.mxu1 %v10400_v8 }
 0xbab   :  { %9285 = vmatprep.subr.bf16.mxu1 %v10401_v17  ;;  %v6667_v17 = vsub.s32 5, %v14145_v7 }
 0xbad   :  { %v6668_v0 = vrot.slane %v14152_v25, %v6667_v17 }
 0xbae   :  { %9286 = vmatpush3.bf16.msra.mxu1 %v10402_v3 }
 0xbaf   :  { %9287 = vmatprep.subr.bf16.mxu1 %v10403_v1  ;;  %v6664_v1 = vrot.slane %v14152_v25, %v6663_v14 }
 0xbb2   :  { %9288 = vmatpush3.bf16.msra.mxu1 %v10404_v6 }
 0xbb3   :  { %9289 = vmatprep.subr.bf16.mxu1 %v10405_v62 }
 0xbb6   :  { %9290 = vmatpush3.bf16.msra.mxu1 %v10406_v38 }
 0xbb7   :  { %9291 = vmatprep.subr.bf16.mxu1 %v10407_v57 }
 0xbba   :  { %v7400_v47 = vpop.f32.mrb[144].mxu1  ;;  %9292 = vmatpush3.bf16.msra.mxu1 %v10408_v19 }
 0xbbb   :  { %v7401_v52 = vadd.f32 %v7400_v47, %v6656_v4  ;;  %v7402_v55 = vpop.f32.mrb[145].mxu1 }
 0xbbc   :  { %v7403_v54 = vadd.f32 %v7402_v55, %v6660_v37  ;;  %v7404_v20 = vpop.f32.mrb[146].mxu1 }
 0xbbd   :  { %v8962_v53 = vmul.f32 -1.442695, %v7401_v52  ;;  %v7405_v9 = vpop.f32.mrb[147].mxu1 }
 0xbbe   :  { %v8963_v40 = vmul.f32 -1.442695, %v7403_v54 }
 0xbbf   :  { %10843 = vpow2.f32 %v8962_v53 }
 0xbc0   :  { %10845 = vpow2.f32 %v8963_v40 }
 0xbc1   :  { %10847 = vrcp.f32 %v7520_v27 }
 0xbc9   :  { %v10844_v60 = vpop.eup %10843 }
 0xbca   :  { %v10846_v56 = vpop.eup %10845  ;;  %v7515_v51 = vadd.f32 1.0, %v10844_v60 }
 0xbcb   :  { %v7516_v33 = vadd.f32 1.0, %v10846_v56  ;;  %v10848_v44 = vpop.eup %10847 }
 0xbcc   :  { %10849 = vrcp.f32 %v7515_v51  ;;  %v7544_v26 = vmul.f32 %v10848_v44, %v7485_v41 }
 0xbcd   :  { %10851 = vrcp.f32 %v7516_v33 }
 0xbce   :  { %10853 = vpow2.f32 %v8966_v39  ;;  %v7552_v23 = vpack.c.bf16 %v7544_v26, %v7544_v26 }
 0xbd6   :  { %v10850_v18 = vpop.eup %10849 }
 0xbd7   :  { %v10852_v30 = vpop.eup %10851  ;;  %v7539_v21 = vmul.f32 %v10850_v18, %v7401_v52 }
 0xbd8   :  { %v7540_v10 = vmul.f32 %v10852_v30, %v7403_v54  ;;  %v10854_v13 = vpop.eup %10853 }
 0xbd9   :  { %v7547_v63 = vpack.c.bf16 %v7539_v21, %v7539_v21  ;;  %v7519_v49 = vadd.f32 1.0, %v10854_v13 }
 0xbda   :  { %v7548_v35 = vpack.c.bf16 %v7540_v10, %v7540_v10 }
 0xbdb   :  { %10855 = vrcp.f32 %v7519_v49 }
 0xbdc   :  { %8144 = vmatprep.mubr.bf16.mxu0 %v7548_v35  ;;  %v8831_v35 = vmul.f32 -1.442695, %v14084_v22 }
 0xbdd   :  { %8145 = vmatmul.mubr.bf16.vlgmr.msra.gmra.mrb[180].mxu0 %v7547_v63 }
 0xbde   :  { %9300 = vmatpush3.bf16.msra.mxu0 %v10378_v15  ;;  %8224 = vmatprep.mubr.bf16.mxu0 %v7552_v23 }
 0xbdf   :  { %9301 = vmatprep.subr.bf16.mxu0 %v10379_v59 }
 0xbe2   :  { %9302 = vmatpush3.bf16.msra.mxu0 %v10380_v43 }
 0xbe3   :  { %9303 = vmatprep.subr.bf16.mxu0 %v10381_v61 }
 0xbe5   :  { %v10856_v8 = vpop.eup %10855 }
 0xbe6   :  { %9304 = vmatpush3.bf16.msra.mxu0 %v10382_v5  ;;  %v7543_v3 = vmul.f32 %v10856_v8, %v7483_v28 }
 0xbe7   :  { %9305 = vmatprep.subr.bf16.mxu0 %v10383_v2 }
 0xbe8   :  { %v7551_v62 = vpack.c.bf16 %v7543_v3, %v7543_v3 }
 0xbea   :  { %9306 = vmatpush3.bf16.msra.mxu0 %v10384_v32  ;;  %v8236_v32 = vpop.permute.xlu1 %8235 }
 0xbeb   :  { %9307 = vmatprep.subr.bf16.mxu0 %v10385_v45  ;;  %vm8237_vm4 = vcmp.eq.s32.totalorder %v8236_v32, 1 }
 0xbee   :  { %9308 = vmatpush3.bf16.msra.mxu0 %v10386_v48 }
 0xbef   :  { %9309 = vmatprep.subr.bf16.mxu0 %v10387_v34 }
 0xbf2   :  { %9310 = vmatpush3.bf16.msra.mxu0 %v10388_v46 }
 0xbf3   :  { %9311 = vmatprep.subr.bf16.mxu0 %v10389_v24 }
 0xbf6   :  { %9312 = vmatpush3.bf16.msra.mxu0 %v10390_v12 }
 0xbf7   :  { %9313 = vmatprep.subr.bf16.mxu0 %v10391_v31 }
 0xbfa   :  { %9314 = vmatpush3.bf16.msra.mxu0 %v10392_v58  ;;  %v7441_v6 = vpop.f32.mrb[148].mxu1 }
 0xbfb   :  { %v7442_v41 = vadd.f32 %v7441_v6, %v6664_v1  ;;  %v7443_v38 = vpop.f32.mrb[149].mxu1 }
 0xbfc   :  { %v7444_v11 = vadd.f32 %v7443_v38, %v6668_v0  ;;  %v7445_v57 = vpop.f32.mrb[150].mxu1 }
 0xbfd   :  { %v8964_v16 = vmul.f32 -1.442695, %v7442_v41  ;;  %8225 = vmatmul.mubr.bf16.vlgmr.msra.gmra.mrb[184].mxu0 %v7551_v62  ;;  %v7446_v7 = vpop.f32.mrb[151].mxu1 }
 0xbfe   :  { %v8965_v36 = vmul.f32 -1.442695, %v7444_v11 }
 0xbff   :  { %10857 = vpow2.f32 %v8964_v16 }
 0xc00   :  { %10859 = vpow2.f32 %v8965_v36 }
 0xc09   :  { %v10858_v19 = vpop.eup %10857 }
 0xc0a   :  { %v10860_v4 = vpop.eup %10859  ;;  %v7517_v37 = vadd.f32 1.0, %v10858_v19 }
 0xc0b   :  { %v7518_v47 = vadd.f32 1.0, %v10860_v4 }
 0xc0c   :  { %10861 = vrcp.f32 %v7517_v37 }
 0xc0d   :  { %10863 = vrcp.f32 %v7518_v47 }
 0xc0e   :  { %10865 = vpow2.f32 %v8831_v35 }
 0xc16   :  { %v10862_v25 = vpop.eup %10861 }
 0xc17   :  { %v10864_v52 = vpop.eup %10863  ;;  %v7541_v55 = vmul.f32 %v10862_v25, %v7442_v41 }
 0xc18   :  { %v7542_v54 = vmul.f32 %v10864_v52, %v7444_v11  ;;  %v10866_v15 = vpop.eup %10865 }
 0xc19   :  { %v7549_v53 = vpack.c.bf16 %v7541_v55, %v7541_v55  ;;  %v6500_v63 = vadd.f32 1.0, %v10866_v15 }
 0xc1a   :  { %v7550_v20 = vpack.c.bf16 %v7542_v54, %v7542_v54 }
 0xc1b   :  { %10867 = vrcp.f32 %v6500_v63 }
 0xc1c   :  { %8184 = vmatprep.mubr.bf16.mxu1 %v7550_v20 }
 0xc1d   :  { %8185 = vmatmul.mubr.bf16.vlgmr.msra.gmra.mrb[156].mxu1 %v7549_v53 }
 0xc25   :  { %v10868_v49 = vpop.eup %10867 }
 0xc70   :  { %v9249_v9 = vpop.f32.mrb[152].mxu1 }
 0xc71   :  { %v9250_v40 = vpop.f32.mrb[153].mxu1 }
 0xc72   :  { %v9251_v50 = vadd.f32 %v9250_v40, %v9249_v9  ;;  %v9252_v27 = vpop.f32.mrb[154].mxu1 }
 0xc73   :  { %v9253_v60 = vpop.f32.mrb[155].mxu1 }
 0xc74   :  { %v8107_v33 = vadd.f32 %v9251_v50, %v8968_v42 }
 0xcb0   :  { %v9271_v56 = vpop.f32.mrb[180].mxu0 }
 0xcb1   :  { %v9272_v51 = vpop.f32.mrb[181].mxu0 }
 0xcb2   :  { %v9273_v29 = vadd.f32 %v9272_v51, %v9271_v56  ;;  %v9274_v28 = vpop.f32.mrb[182].mxu0 }
 0xcb3   :  { %v9275_v44 = vpop.f32.mrb[183].mxu0 }
 0xcb4   :  { %v8147_v39 = vadd.f32 %v9273_v29, %v8107_v33 }
 0xcd0   :  { %v9315_v18 = vpop.f32.mrb[184].mxu0 }
 0xcd1   :  { %v9316_v30 = vpop.f32.mrb[185].mxu0 }
 0xcd2   :  { %v9317_v21 = vadd.f32 %v9316_v30, %v9315_v18  ;;  %v9318_v26 = vpop.f32.mrb[186].mxu0 }
 0xcd3   :  { %v9319_v10 = vpop.f32.mrb[187].mxu0 }
 0xcf0   :  { %v9293_v59 = vpop.f32.mrb[156].mxu1 }
 0xcf1   :  { %v9294_v23 = vpop.f32.mrb[157].mxu1 }
 0xcf2   :  { %v9295_v43 = vadd.f32 %v9294_v23, %v9293_v59  ;;  %v9296_v61 = vpop.f32.mrb[158].mxu1 }
 0xcf3   :  { %v9297_v5 = vpop.f32.mrb[159].mxu1 }
 0xcf4   :  { %v8187_v13 = vadd.f32 %v9295_v43, %v8147_v39 }
 0xcf6   :  { %v8227_v2 = vadd.f32 %v9317_v21, %v8187_v13 }
 0xcf8   :  { %8239 = vrot.lane.b32.xlu0 %v8227_v2, %s10875_s14 }
 0xcfc   :  { %8248 = vrot.lane.b32.xlu0 %v10868_v49, %s10875_s14 }
 0xd6a   :  { %v8240_v45 = vpop.permute.xlu0 %8239 }
 0xd6b   :  { %v8242_v48 = vsel %vm8237_vm4, %v8227_v2, %v8240_v45 }
 0xd6c   :  { %8244 = vrot.lane.b32.xlu1 %v8242_v48, %s10876_s8 }
 0xd6e   :  { %v8249_v22 = vpop.permute.xlu0 %8248 }
 0xdde   :  { %v8245_v34 = vpop.permute.xlu1 %8244 }
 0xddf   :  { %v8252_v46 = vsel %vm8251_vm5, %v8245_v34, %v8249_v22 }
 0xde0   :  { %v8254_v24 = vsel %vm8253_vm6, %v8252_v46, 0.0 }
 0xde1   :  { %8255 = vst [vmem:[%s14285_s15] sm:$0xff] %v8254_v24 }

</bundles_post_ra>
